<compile_context>
chip_gen: v7x
topology: tpu7x:2x2x1
jax: 0.10.0
libtpu: 0.0.40
codegen_flags: <defaults>
</compile_context>

<pallas_src>
import functools

import jax
import jax.numpy as jnp
import numpy as np
from jax import lax
from jax.experimental import pallas as pl
from jax.experimental.pallas import tpu as pltpu

BN_EPS = 1e-5
BN_SCALE = float(1.0 / np.sqrt(1.0 + BN_EPS))

# concatenated output layout: [branch1x1(32) | branch3x3(32) | branch3x3dbl(48) | pool(16)]
_OUT_C = 128
_OFF_B1, _OFF_B3, _OFF_BD, _OFF_BP = 0, 32, 64, 112


def _round_up(x, m):
    return ((x + m - 1) // m) * m


# -----------------------------------------------------------------------------
# Fused InceptionA Pallas kernel (one grid step == one batch element)
# -----------------------------------------------------------------------------
def _inception_a_kernel(*refs, H, W, PH, PW, CP, has_ids):
    if has_ids:
        (x_ref, wb1_ref, wb31_ref, wb32_ref, wbd1_ref, wbd2_ref, wbd3_ref,
         wbp_ref, wids_ref, o_ref, h3_ref, hd1_ref, hd2_ref) = refs
    else:
        (x_ref, wb1_ref, wb31_ref, wb32_ref, wbd1_ref, wbd2_ref, wbd3_ref,
         wbp_ref, o_ref, h3_ref, hd1_ref, hd2_ref) = refs
        wids_ref = None

    f32 = jnp.float32
    bf16 = jnp.bfloat16
    HW = H * W

    def mm(a, w):
        return jnp.dot(a, w, preferred_element_type=f32)

    # --- shared input views (x is a zero-padded bf16 canvas) ------------------
    x_flat = x_ref[0].reshape(PH * PW, CP)                      # full canvas
    x_int = x_ref[0, 1:H + 1, 1:W + 1, :].reshape(HW, CP)       # 16x16 interior

    # --- 1x1 branches on the interior (weights already at their channel offset)
    b1 = jnp.maximum(mm(x_int, wb1_ref[...]), 0.0)              # cols [0, 32)
    if has_ids:
        idn = jnp.maximum(mm(x_int, wids_ref[...]), 0.0)        # identity downsample
    else:
        idn = x_int.astype(f32)                                 # plain residual

    # --- avg_pool2d(3, stride=1, pad=1, count_include_pad) branch -------------
    pooled = jnp.zeros((H, W, CP), f32)
    for i in range(3):
        for j in range(3):
            pooled = pooled + x_ref[0, i:i + H, j:j + W, :].astype(f32)
    pooled = (pooled * (1.0 / 9.0)).reshape(HW, CP).astype(bf16)
    bp = jnp.maximum(mm(pooled, wbp_ref[...]), 0.0)             # cols [112, 128)

    # --- 3x3 branches: 1x1 reduce on the full canvas (zero ring stays zero
    #     through conv(0)=0, BN(0)=0, ReLU(0)=0, which is exactly the padding
    #     the following 3x3 conv needs).
    h3_ref[...] = jnp.maximum(mm(x_flat, wb31_ref[...]), 0.0).reshape(PH, PW, -1)
    hd1_ref[...] = jnp.maximum(mm(x_flat, wbd1_ref[...]), 0.0).reshape(PH, PW, -1)

    # 3x3 conv via in-VMEM tap reduction (no im2col materialization)
    def conv3x3(src_ref, w_ref):
        n_out = w_ref.shape[-1]
        acc = jnp.zeros((HW, n_out), f32)
        for i in range(3):
            for j in range(3):
                patch = src_ref[i:i + H, j:j + W, :].reshape(HW, -1).astype(bf16)
                acc = acc + mm(patch, w_ref[i * 3 + j])
        return jnp.maximum(acc, 0.0)

    b3 = conv3x3(h3_ref, wb32_ref)                              # cols [32, 64)

    # double-3x3 branch: the second hop needs a fresh zero ring around its input
    d2 = conv3x3(hd1_ref, wbd2_ref)                             # (HW, 48)
    hd2_ref[...] = jnp.zeros(hd2_ref.shape, hd2_ref.dtype)
    hd2_ref[1:H + 1, 1:W + 1, :] = d2.reshape(H, W, -1)
    bd = conv3x3(hd2_ref, wbd3_ref)                             # cols [64, 112)

    # --- concat-free combine: each branch already occupies its channel slice of
    #     a 128-wide slab (zeros elsewhere), so cat(...) + identity is a sum.
    o_ref[...] = (b1 + b3 + bd + bp + idn).reshape(1, H, W, _OUT_C)


# -----------------------------------------------------------------------------
# Parameter init (PyTorch Conv2d weight layout) and one-time packing
# -----------------------------------------------------------------------------
def init_inception_a_params(key, in_channels, with_identity_downsample):
    def conv_w(k, cout, cin, kh, kw):
        fan_in = cin * kh * kw
        return (jax.random.normal(k, (cout, cin, kh, kw), jnp.float32)
                * np.sqrt(2.0 / fan_in))

    ks = jax.random.split(key, 8)
    p = {
        'b1x1': conv_w(ks[0], 32, in_channels, 1, 1),
        'b3_1': conv_w(ks[1], 16, in_channels, 1, 1),
        'b3_2': conv_w(ks[2], 32, 16, 3, 3),
        'bd_1': conv_w(ks[3], 32, in_channels, 1, 1),
        'bd_2': conv_w(ks[4], 48, 32, 3, 3),
        'bd_3': conv_w(ks[5], 48, 48, 3, 3),
        'bpool': conv_w(ks[6], 16, in_channels, 1, 1),
    }
    if with_identity_downsample:
        p['ids'] = conv_w(ks[7], _OUT_C, in_channels, 1, 1)
    return p


def pack_inception_a_params(raw, in_channels):
    """Fold BN scale, transpose to (K, N), pad K to the lane boundary, zero-extend
    the branch-tail weights to the 128-wide concat layout, cast to bf16."""
    CP = _round_up(max(in_channels, 1), 128)

    def pack_1x1(w, out_total=None, col_off=0):
        cout, cin = w.shape[:2]
        w2 = jnp.transpose(w[:, :, 0, 0]) * BN_SCALE              # (cin, cout)
        w2 = jnp.pad(w2, ((0, CP - cin), (0, 0)))
        if out_total is not None:
            w2 = jnp.pad(w2, ((0, 0), (col_off, out_total - col_off - cout)))
        return w2.astype(jnp.bfloat16)

    def pack_3x3(w, out_total=None, col_off=0):
        cout, cin = w.shape[:2]
        w2 = jnp.transpose(w, (2, 3, 1, 0)).reshape(9, cin, cout) * BN_SCALE
        if out_total is not None:
            w2 = jnp.pad(w2, ((0, 0), (0, 0),
                              (col_off, out_total - col_off - cout)))
        return w2.astype(jnp.bfloat16)

    packed = {
        'b1x1': pack_1x1(raw['b1x1'], _OUT_C, _OFF_B1),
        'b3_1': pack_1x1(raw['b3_1']),
        'b3_2': pack_3x3(raw['b3_2'], _OUT_C, _OFF_B3),
        'bd_1': pack_1x1(raw['bd_1']),
        'bd_2': pack_3x3(raw['bd_2']),
        'bd_3': pack_3x3(raw['bd_3'], _OUT_C, _OFF_BD),
        'bpool': pack_1x1(raw['bpool'], _OUT_C, _OFF_BP),
    }
    if 'ids' in raw:
        packed['ids'] = pack_1x1(raw['ids'])
    return packed


# -----------------------------------------------------------------------------
# Forward wrapper (whole forward jitted; NCHW in / NCHW out like PyTorch)
# -----------------------------------------------------------------------------
@jax.jit
def inception_a_forward(packed, x_nchw):
    N, Cin, H, W = x_nchw.shape
    CP = packed['b1x1'].shape[0]
    PH = _round_up(H + 2, 8)
    PW = _round_up(W + 2, 8)
    has_ids = 'ids' in packed
    if not has_ids:
        assert Cin == _OUT_C, "identity add needs in_channels == 128 when no downsample"

    # NCHW -> NHWC, one-time zero pad: a 1-wide spatial ring (shared by the 3x3
    # convs and the avg-pool) plus channel pad up to the 128-lane boundary.
    x = jnp.transpose(x_nchw, (0, 2, 3, 1)).astype(jnp.bfloat16)
    xp = jnp.pad(x, ((0, 0), (1, PH - H - 1), (1, PW - W - 1), (0, CP - Cin)))

    w_order = ['b1x1', 'b3_1', 'b3_2', 'bd_1', 'bd_2', 'bd_3', 'bpool']
    if has_ids:
        w_order.append('ids')
    weights = [packed[k] for k in w_order]

    def full_spec(a):
        return pl.BlockSpec(a.shape, lambda n, nd=a.ndim: (0,) * nd)

    kernel = functools.partial(_inception_a_kernel, H=H, W=W, PH=PH, PW=PW,
                               CP=CP, has_ids=has_ids)

    out = pl.pallas_call(
        kernel,
        out_shape=jax.ShapeDtypeStruct((N, H, W, _OUT_C), jnp.float32),
        grid_spec=pltpu.PrefetchScalarGridSpec(
            num_scalar_prefetch=0,
            grid=(N,),                                   # batch-parallel grid
            in_specs=[pl.BlockSpec((1, PH, PW, CP), lambda n: (n, 0, 0, 0))]
                     + [full_spec(w) for w in weights],
            out_specs=pl.BlockSpec((1, H, W, _OUT_C), lambda n: (n, 0, 0, 0)),
            scratch_shapes=[
                pltpu.VMEM((PH, PW, 16), jnp.float32),   # branch3x3 1x1 output
                pltpu.VMEM((PH, PW, 32), jnp.float32),   # branch3x3dbl 1x1 output
                pltpu.VMEM((PH, PW, 48), jnp.float32),   # branch3x3dbl mid output
            ]),
        compiler_params=pltpu.CompilerParams(
            dimension_semantics=("parallel",),
            vmem_limit_bytes=32 * 1024 * 1024),
    )(xp, *weights)

    return jnp.transpose(out, (0, 3, 1, 2))              # NHWC -> NCHW


# -----------------------------------------------------------------------------
# Pure-JAX (XLA) reference for correctness checking
# -----------------------------------------------------------------------------
def _conv_bn_relu_ref(x, w, padding):
    y = lax.conv_general_dilated(
        x, w, window_strides=(1, 1),
        padding=[(padding, padding), (padding, padding)],
        dimension_numbers=('NCHW', 'OIHW', 'NCHW'))
    return jnp.maximum(y * BN_SCALE, 0.0)


def _avg_pool_3x3_ref(x):
    xp = jnp.pad(x, ((0, 0), (0, 0), (1, 1), (1, 1)))
    H, W = x.shape[2], x.shape[3]
    acc = jnp.zeros_like(x)
    for i in range(3):
        for j in range(3):
            acc = acc + xp[:, :, i:i + H, j:j + W]
    return acc / 9.0


def inception_a_reference(raw, x):
    b1 = _conv_bn_relu_ref(x, raw['b1x1'], 0)
    b3 = _conv_bn_relu_ref(_conv_bn_relu_ref(x, raw['b3_1'], 0), raw['b3_2'], 1)
    bd = _conv_bn_relu_ref(x, raw['bd_1'], 0)
    bd = _conv_bn_relu_ref(bd, raw['bd_2'], 1)
    bd = _conv_bn_relu_ref(bd, raw['bd_3'], 1)
    bp = _conv_bn_relu_ref(_avg_pool_3x3_ref(x), raw['bpool'], 0)
    out = jnp.concatenate([b1, b3, bd, bp], axis=1)
    idn = _conv_bn_relu_ref(x, raw['ids'], 0) if 'ids' in raw else x
    return out + idn


# -----------------------------------------------------------------------------
if __name__ == "__main__":
    key = jax.random.PRNGKey(0)
    k_p1, k_x1, k_p2, k_x2 = jax.random.split(key, 4)

    # Config 1: small in_channels, identity_downsample = BasicConv2d(cin, 128, 1)
    cin = 4
    raw = init_inception_a_params(k_p1, cin, with_identity_downsample=True)
    packed = pack_inception_a_params(raw, cin)
    x = jax.random.normal(k_x1, (2, cin, 16, 16), jnp.float32)

    out = jax.block_until_ready(inception_a_forward(packed, x))
    assert out.shape == (2, 128, 16, 16), out.shape
    assert bool(jnp.all(jnp.isfinite(out)))
    ref = inception_a_reference(raw, x)
    err = float(jnp.max(jnp.abs(out - ref)) / (jnp.max(jnp.abs(ref)) + 1e-6))
    assert err < 5e-2, f"mismatch vs reference (downsample path): {err}"

    # Config 2: identity_downsample=None (requires in_channels == 128)
    cin2 = 128
    raw2 = init_inception_a_params(k_p2, cin2, with_identity_downsample=False)
    packed2 = pack_inception_a_params(raw2, cin2)
    x2 = jax.random.normal(k_x2, (2, cin2, 16, 16), jnp.float32)

    out2 = jax.block_until_ready(inception_a_forward(packed2, x2))
    assert out2.shape == (2, 128, 16, 16), out2.shape
    ref2 = inception_a_reference(raw2, x2)
    err2 = float(jnp.max(jnp.abs(out2 - ref2)) / (jnp.max(jnp.abs(ref2)) + 1e-6))
    assert err2 < 5e-2, f"mismatch vs reference (plain residual path): {err2}"

    print("KERNEL_OK")
</pallas_src>

<mosaic_0001>
module attributes {stable_mosaic.version = 11 : i64} {
  func.func @_inception_a_kernel(%arg0: i32, %arg1: memref<1x24x24x128xbf16, #tpu.memory_space<vmem>>, %arg2: memref<128x128xbf16, #tpu.memory_space<vmem>>, %arg3: memref<128x16xbf16, #tpu.memory_space<vmem>>, %arg4: memref<9x16x128xbf16, #tpu.memory_space<vmem>>, %arg5: memref<128x32xbf16, #tpu.memory_space<vmem>>, %arg6: memref<9x32x48xbf16, #tpu.memory_space<vmem>>, %arg7: memref<9x48x128xbf16, #tpu.memory_space<vmem>>, %arg8: memref<128x128xbf16, #tpu.memory_space<vmem>>, %arg9: memref<128x128xbf16, #tpu.memory_space<vmem>>, %arg10: memref<1x16x16x128xf32, #tpu.memory_space<vmem>>, %arg11: memref<24x24x16xf32, #tpu.memory_space<vmem>>, %arg12: memref<24x24x32xf32, #tpu.memory_space<vmem>>, %arg13: memref<24x24x48xf32, #tpu.memory_space<vmem>>) attributes {dimension_semantics = [#tpu.dimension_semantics<parallel>], iteration_bounds = array<i64: 2>, scalar_prefetch = 0 : i64, scratch_operands = 3 : i64, tpu.core_type = #tpu.core_type<tc>, window_params = [{transform_indices = @transform_0, window_bounds = array<i64: 1, 24, 24, 128>}, {pipeline_mode = #tpu.pipeline_mode<synchronous>, transform_indices = @transform_1, window_bounds = array<i64: 128, 128>}, {pipeline_mode = #tpu.pipeline_mode<synchronous>, transform_indices = @transform_2, window_bounds = array<i64: 128, 16>}, {pipeline_mode = #tpu.pipeline_mode<synchronous>, transform_indices = @transform_3, window_bounds = array<i64: 9, 16, 128>}, {pipeline_mode = #tpu.pipeline_mode<synchronous>, transform_indices = @transform_4, window_bounds = array<i64: 128, 32>}, {pipeline_mode = #tpu.pipeline_mode<synchronous>, transform_indices = @transform_5, window_bounds = array<i64: 9, 32, 48>}, {pipeline_mode = #tpu.pipeline_mode<synchronous>, transform_indices = @transform_6, window_bounds = array<i64: 9, 48, 128>}, {pipeline_mode = #tpu.pipeline_mode<synchronous>, transform_indices = @transform_7, window_bounds = array<i64: 128, 128>}, {pipeline_mode = #tpu.pipeline_mode<synchronous>, transform_indices = @transform_8, window_bounds = array<i64: 128, 128>}, {transform_indices = @transform_9, window_bounds = array<i64: 1, 16, 16, 128>}]} {
    %c0 = arith.constant 0 : index
    %c0_0 = arith.constant 0 : index
    %c0_1 = arith.constant 0 : index
    %c0_2 = arith.constant 0 : index
    %0 = vector.load %arg1[%c0, %c0_0, %c0_1, %c0_2] : memref<1x24x24x128xbf16, #tpu.memory_space<vmem>>, vector<1x24x24x128xbf16>
    %1 = vector.shape_cast %0 : vector<1x24x24x128xbf16> to vector<24x24x128xbf16>
    %2 = vector.shape_cast %1 : vector<24x24x128xbf16> to vector<576x128xbf16>
    %c0_3 = arith.constant 0 : index
    %c1 = arith.constant 1 : index
    %c1_4 = arith.constant 1 : index
    %c0_5 = arith.constant 0 : index
    %3 = vector.load %arg1[%c0_3, %c1, %c1_4, %c0_5] : memref<1x24x24x128xbf16, #tpu.memory_space<vmem>>, vector<1x16x16x128xbf16>
    %4 = vector.shape_cast %3 : vector<1x16x16x128xbf16> to vector<16x16x128xbf16>
    %5 = vector.shape_cast %4 : vector<16x16x128xbf16> to vector<256x128xbf16>
    %c0_6 = arith.constant 0 : index
    %c0_7 = arith.constant 0 : index
    %6 = vector.load %arg2[%c0_6, %c0_7] : memref<128x128xbf16, #tpu.memory_space<vmem>>, vector<128x128xbf16>
    %cst = arith.constant dense<0.000000e+00> : vector<256x128xf32>
    %7 = tpu.matmul %5, %6, %cst {dimension_numbers = #tpu.dot_dimension_numbers<[1], [0], [0], [1], [0, 0, 1, 1], [], []>} : vector<256x128xbf16>, vector<128x128xbf16>, vector<256x128xf32> -> vector<256x128xf32>
    %cst_8 = arith.constant 0.000000e+00 : f32
    %8 = vector.broadcast %cst_8 : f32 to vector<256x128xf32>
    %9 = arith.maximumf %7, %8 : vector<256x128xf32>
    %c0_9 = arith.constant 0 : index
    %c0_10 = arith.constant 0 : index
    %10 = vector.load %arg9[%c0_9, %c0_10] : memref<128x128xbf16, #tpu.memory_space<vmem>>, vector<128x128xbf16>
    %cst_11 = arith.constant dense<0.000000e+00> : vector<256x128xf32>
    %11 = tpu.matmul %5, %10, %cst_11 {dimension_numbers = #tpu.dot_dimension_numbers<[1], [0], [0], [1], [0, 0, 1, 1], [], []>} : vector<256x128xbf16>, vector<128x128xbf16>, vector<256x128xf32> -> vector<256x128xf32>
    %cst_12 = arith.constant 0.000000e+00 : f32
    %12 = vector.broadcast %cst_12 : f32 to vector<256x128xf32>
    %13 = arith.maximumf %11, %12 : vector<256x128xf32>
    %cst_13 = arith.constant 0.000000e+00 : f32
    %14 = vector.broadcast %cst_13 : f32 to vector<16x16x128xf32>
    %c0_14 = arith.constant 0 : index
    %c0_15 = arith.constant 0 : index
    %c0_16 = arith.constant 0 : index
    %c0_17 = arith.constant 0 : index
    %15 = vector.load %arg1[%c0_14, %c0_15, %c0_16, %c0_17] : memref<1x24x24x128xbf16, #tpu.memory_space<vmem>>, vector<1x16x16x128xbf16>
    %16 = vector.shape_cast %15 : vector<1x16x16x128xbf16> to vector<16x16x128xbf16>
    %17 = arith.extf %16 : vector<16x16x128xbf16> to vector<16x16x128xf32>
    %18 = arith.addf %14, %17 : vector<16x16x128xf32>
    %c0_18 = arith.constant 0 : index
    %c0_19 = arith.constant 0 : index
    %c1_20 = arith.constant 1 : index
    %c0_21 = arith.constant 0 : index
    %19 = vector.load %arg1[%c0_18, %c0_19, %c1_20, %c0_21] : memref<1x24x24x128xbf16, #tpu.memory_space<vmem>>, vector<1x16x16x128xbf16>
    %20 = vector.shape_cast %19 : vector<1x16x16x128xbf16> to vector<16x16x128xbf16>
    %21 = arith.extf %20 : vector<16x16x128xbf16> to vector<16x16x128xf32>
    %22 = arith.addf %18, %21 : vector<16x16x128xf32>
    %c0_22 = arith.constant 0 : index
    %c0_23 = arith.constant 0 : index
    %c2 = arith.constant 2 : index
    %c0_24 = arith.constant 0 : index
    %23 = vector.load %arg1[%c0_22, %c0_23, %c2, %c0_24] : memref<1x24x24x128xbf16, #tpu.memory_space<vmem>>, vector<1x16x16x128xbf16>
    %24 = vector.shape_cast %23 : vector<1x16x16x128xbf16> to vector<16x16x128xbf16>
    %25 = arith.extf %24 : vector<16x16x128xbf16> to vector<16x16x128xf32>
    %26 = arith.addf %22, %25 : vector<16x16x128xf32>
    %c0_25 = arith.constant 0 : index
    %c1_26 = arith.constant 1 : index
    %c0_27 = arith.constant 0 : index
    %c0_28 = arith.constant 0 : index
    %27 = vector.load %arg1[%c0_25, %c1_26, %c0_27, %c0_28] : memref<1x24x24x128xbf16, #tpu.memory_space<vmem>>, vector<1x16x16x128xbf16>
    %28 = vector.shape_cast %27 : vector<1x16x16x128xbf16> to vector<16x16x128xbf16>
    %29 = arith.extf %28 : vector<16x16x128xbf16> to vector<16x16x128xf32>
    %30 = arith.addf %26, %29 : vector<16x16x128xf32>
    %c0_29 = arith.constant 0 : index
    %c1_30 = arith.constant 1 : index
    %c1_31 = arith.constant 1 : index
    %c0_32 = arith.constant 0 : index
    %31 = vector.load %arg1[%c0_29, %c1_30, %c1_31, %c0_32] : memref<1x24x24x128xbf16, #tpu.memory_space<vmem>>, vector<1x16x16x128xbf16>
    %32 = vector.shape_cast %31 : vector<1x16x16x128xbf16> to vector<16x16x128xbf16>
    %33 = arith.extf %32 : vector<16x16x128xbf16> to vector<16x16x128xf32>
    %34 = arith.addf %30, %33 : vector<16x16x128xf32>
    %c0_33 = arith.constant 0 : index
    %c1_34 = arith.constant 1 : index
    %c2_35 = arith.constant 2 : index
    %c0_36 = arith.constant 0 : index
    %35 = vector.load %arg1[%c0_33, %c1_34, %c2_35, %c0_36] : memref<1x24x24x128xbf16, #tpu.memory_space<vmem>>, vector<1x16x16x128xbf16>
    %36 = vector.shape_cast %35 : vector<1x16x16x128xbf16> to vector<16x16x128xbf16>
    %37 = arith.extf %36 : vector<16x16x128xbf16> to vector<16x16x128xf32>
    %38 = arith.addf %34, %37 : vector<16x16x128xf32>
    %c0_37 = arith.constant 0 : index
    %c2_38 = arith.constant 2 : index
    %c0_39 = arith.constant 0 : index
    %c0_40 = arith.constant 0 : index
    %39 = vector.load %arg1[%c0_37, %c2_38, %c0_39, %c0_40] : memref<1x24x24x128xbf16, #tpu.memory_space<vmem>>, vector<1x16x16x128xbf16>
    %40 = vector.shape_cast %39 : vector<1x16x16x128xbf16> to vector<16x16x128xbf16>
    %41 = arith.extf %40 : vector<16x16x128xbf16> to vector<16x16x128xf32>
    %42 = arith.addf %38, %41 : vector<16x16x128xf32>
    %c0_41 = arith.constant 0 : index
    %c2_42 = arith.constant 2 : index
    %c1_43 = arith.constant 1 : index
    %c0_44 = arith.constant 0 : index
    %43 = vector.load %arg1[%c0_41, %c2_42, %c1_43, %c0_44] : memref<1x24x24x128xbf16, #tpu.memory_space<vmem>>, vector<1x16x16x128xbf16>
    %44 = vector.shape_cast %43 : vector<1x16x16x128xbf16> to vector<16x16x128xbf16>
    %45 = arith.extf %44 : vector<16x16x128xbf16> to vector<16x16x128xf32>
    %46 = arith.addf %42, %45 : vector<16x16x128xf32>
    %c0_45 = arith.constant 0 : index
    %c2_46 = arith.constant 2 : index
    %c2_47 = arith.constant 2 : index
    %c0_48 = arith.constant 0 : index
    %47 = vector.load %arg1[%c0_45, %c2_46, %c2_47, %c0_48] : memref<1x24x24x128xbf16, #tpu.memory_space<vmem>>, vector<1x16x16x128xbf16>
    %48 = vector.shape_cast %47 : vector<1x16x16x128xbf16> to vector<16x16x128xbf16>
    %49 = arith.extf %48 : vector<16x16x128xbf16> to vector<16x16x128xf32>
    %50 = arith.addf %46, %49 : vector<16x16x128xf32>
    %cst_49 = arith.constant 0.111111112 : f32
    %51 = vector.broadcast %cst_49 : f32 to vector<16x16x128xf32>
    %52 = arith.mulf %50, %51 : vector<16x16x128xf32>
    %53 = vector.shape_cast %52 : vector<16x16x128xf32> to vector<256x128xf32>
    %54 = arith.truncf %53 : vector<256x128xf32> to vector<256x128xbf16>
    %c0_50 = arith.constant 0 : index
    %c0_51 = arith.constant 0 : index
    %55 = vector.load %arg8[%c0_50, %c0_51] : memref<128x128xbf16, #tpu.memory_space<vmem>>, vector<128x128xbf16>
    %cst_52 = arith.constant dense<0.000000e+00> : vector<256x128xf32>
    %56 = tpu.matmul %54, %55, %cst_52 {dimension_numbers = #tpu.dot_dimension_numbers<[1], [0], [0], [1], [0, 0, 1, 1], [], []>} : vector<256x128xbf16>, vector<128x128xbf16>, vector<256x128xf32> -> vector<256x128xf32>
    %cst_53 = arith.constant 0.000000e+00 : f32
    %57 = vector.broadcast %cst_53 : f32 to vector<256x128xf32>
    %58 = arith.maximumf %56, %57 : vector<256x128xf32>
    %c0_54 = arith.constant 0 : index
    %c0_55 = arith.constant 0 : index
    %59 = vector.load %arg3[%c0_54, %c0_55] : memref<128x16xbf16, #tpu.memory_space<vmem>>, vector<128x16xbf16>
    %cst_56 = arith.constant dense<0.000000e+00> : vector<576x16xf32>
    %60 = tpu.matmul %2, %59, %cst_56 {dimension_numbers = #tpu.dot_dimension_numbers<[1], [0], [0], [1], [0, 0, 1, 1], [], []>} : vector<576x128xbf16>, vector<128x16xbf16>, vector<576x16xf32> -> vector<576x16xf32>
    %cst_57 = arith.constant 0.000000e+00 : f32
    %61 = vector.broadcast %cst_57 : f32 to vector<576x16xf32>
    %62 = arith.maximumf %60, %61 : vector<576x16xf32>
    %63 = vector.shape_cast %62 : vector<576x16xf32> to vector<24x24x16xf32>
    %c0_58 = arith.constant 0 : index
    %c0_59 = arith.constant 0 : index
    %c0_60 = arith.constant 0 : index
    %64 = vector.load %arg11[%c0_58, %c0_59, %c0_60] : memref<24x24x16xf32, #tpu.memory_space<vmem>>, vector<24x24x16xf32>
    tpu.vector_store %arg11[%c0_58, %c0_59, %c0_60], %63 {strides = array<i32>} : memref<24x24x16xf32, #tpu.memory_space<vmem>>, vector<24x24x16xf32>,
    %c0_61 = arith.constant 0 : index
    %c0_62 = arith.constant 0 : index
    %65 = vector.load %arg5[%c0_61, %c0_62] : memref<128x32xbf16, #tpu.memory_space<vmem>>, vector<128x32xbf16>
    %cst_63 = arith.constant dense<0.000000e+00> : vector<576x32xf32>
    %66 = tpu.matmul %2, %65, %cst_63 {dimension_numbers = #tpu.dot_dimension_numbers<[1], [0], [0], [1], [0, 0, 1, 1], [], []>} : vector<576x128xbf16>, vector<128x32xbf16>, vector<576x32xf32> -> vector<576x32xf32>
    %cst_64 = arith.constant 0.000000e+00 : f32
    %67 = vector.broadcast %cst_64 : f32 to vector<576x32xf32>
    %68 = arith.maximumf %66, %67 : vector<576x32xf32>
    %69 = vector.shape_cast %68 : vector<576x32xf32> to vector<24x24x32xf32>
    %c0_65 = arith.constant 0 : index
    %c0_66 = arith.constant 0 : index
    %c0_67 = arith.constant 0 : index
    %70 = vector.load %arg12[%c0_65, %c0_66, %c0_67] : memref<24x24x32xf32, #tpu.memory_space<vmem>>, vector<24x24x32xf32>
    tpu.vector_store %arg12[%c0_65, %c0_66, %c0_67], %69 {strides = array<i32>} : memref<24x24x32xf32, #tpu.memory_space<vmem>>, vector<24x24x32xf32>,
    %cst_68 = arith.constant 0.000000e+00 : f32
    %71 = vector.broadcast %cst_68 : f32 to vector<256x128xf32>
    %c0_69 = arith.constant 0 : index
    %c0_70 = arith.constant 0 : index
    %c0_71 = arith.constant 0 : index
    %72 = vector.load %arg11[%c0_69, %c0_70, %c0_71] : memref<24x24x16xf32, #tpu.memory_space<vmem>>, vector<16x16x16xf32>
    %73 = vector.shape_cast %72 : vector<16x16x16xf32> to vector<256x16xf32>
    %74 = arith.truncf %73 : vector<256x16xf32> to vector<256x16xbf16>
    %c0_72 = arith.constant 0 : index
    %c0_73 = arith.constant 0 : index
    %c0_74 = arith.constant 0 : index
    %75 = vector.load %arg4[%c0_72, %c0_73, %c0_74] : memref<9x16x128xbf16, #tpu.memory_space<vmem>>, vector<1x16x128xbf16>
    %76 = vector.shape_cast %75 : vector<1x16x128xbf16> to vector<16x128xbf16>
    %cst_75 = arith.constant dense<0.000000e+00> : vector<256x128xf32>
    %77 = tpu.matmul %74, %76, %cst_75 {dimension_numbers = #tpu.dot_dimension_numbers<[1], [0], [0], [1], [0, 0, 1, 1], [], []>} : vector<256x16xbf16>, vector<16x128xbf16>, vector<256x128xf32> -> vector<256x128xf32>
    %78 = arith.addf %71, %77 : vector<256x128xf32>
    %c0_76 = arith.constant 0 : index
    %c1_77 = arith.constant 1 : index
    %c0_78 = arith.constant 0 : index
    %79 = vector.load %arg11[%c0_76, %c1_77, %c0_78] : memref<24x24x16xf32, #tpu.memory_space<vmem>>, vector<16x16x16xf32>
    %80 = vector.shape_cast %79 : vector<16x16x16xf32> to vector<256x16xf32>
    %81 = arith.truncf %80 : vector<256x16xf32> to vector<256x16xbf16>
    %c1_79 = arith.constant 1 : index
    %c0_80 = arith.constant 0 : index
    %c0_81 = arith.constant 0 : index
    %82 = vector.load %arg4[%c1_79, %c0_80, %c0_81] : memref<9x16x128xbf16, #tpu.memory_space<vmem>>, vector<1x16x128xbf16>
    %83 = vector.shape_cast %82 : vector<1x16x128xbf16> to vector<16x128xbf16>
    %cst_82 = arith.constant dense<0.000000e+00> : vector<256x128xf32>
    %84 = tpu.matmul %81, %83, %cst_82 {dimension_numbers = #tpu.dot_dimension_numbers<[1], [0], [0], [1], [0, 0, 1, 1], [], []>} : vector<256x16xbf16>, vector<16x128xbf16>, vector<256x128xf32> -> vector<256x128xf32>
    %85 = arith.addf %78, %84 : vector<256x128xf32>
    %c0_83 = arith.constant 0 : index
    %c2_84 = arith.constant 2 : index
    %c0_85 = arith.constant 0 : index
    %86 = vector.load %arg11[%c0_83, %c2_84, %c0_85] : memref<24x24x16xf32, #tpu.memory_space<vmem>>, vector<16x16x16xf32>
    %87 = vector.shape_cast %86 : vector<16x16x16xf32> to vector<256x16xf32>
    %88 = arith.truncf %87 : vector<256x16xf32> to vector<256x16xbf16>
    %c2_86 = arith.constant 2 : index
    %c0_87 = arith.constant 0 : index
    %c0_88 = arith.constant 0 : index
    %89 = vector.load %arg4[%c2_86, %c0_87, %c0_88] : memref<9x16x128xbf16, #tpu.memory_space<vmem>>, vector<1x16x128xbf16>
    %90 = vector.shape_cast %89 : vector<1x16x128xbf16> to vector<16x128xbf16>
    %cst_89 = arith.constant dense<0.000000e+00> : vector<256x128xf32>
    %91 = tpu.matmul %88, %90, %cst_89 {dimension_numbers = #tpu.dot_dimension_numbers<[1], [0], [0], [1], [0, 0, 1, 1], [], []>} : vector<256x16xbf16>, vector<16x128xbf16>, vector<256x128xf32> -> vector<256x128xf32>
    %92 = arith.addf %85, %91 : vector<256x128xf32>
    %c1_90 = arith.constant 1 : index
    %c0_91 = arith.constant 0 : index
    %c0_92 = arith.constant 0 : index
    %93 = vector.load %arg11[%c1_90, %c0_91, %c0_92] : memref<24x24x16xf32, #tpu.memory_space<vmem>>, vector<16x16x16xf32>
    %94 = vector.shape_cast %93 : vector<16x16x16xf32> to vector<256x16xf32>
    %95 = arith.truncf %94 : vector<256x16xf32> to vector<256x16xbf16>
    %c3 = arith.constant 3 : index
    %c0_93 = arith.constant 0 : index
    %c0_94 = arith.constant 0 : index
    %96 = vector.load %arg4[%c3, %c0_93, %c0_94] : memref<9x16x128xbf16, #tpu.memory_space<vmem>>, vector<1x16x128xbf16>
    %97 = vector.shape_cast %96 : vector<1x16x128xbf16> to vector<16x128xbf16>
    %cst_95 = arith.constant dense<0.000000e+00> : vector<256x128xf32>
    %98 = tpu.matmul %95, %97, %cst_95 {dimension_numbers = #tpu.dot_dimension_numbers<[1], [0], [0], [1], [0, 0, 1, 1], [], []>} : vector<256x16xbf16>, vector<16x128xbf16>, vector<256x128xf32> -> vector<256x128xf32>
    %99 = arith.addf %92, %98 : vector<256x128xf32>
    %c1_96 = arith.constant 1 : index
    %c1_97 = arith.constant 1 : index
    %c0_98 = arith.constant 0 : index
    %100 = vector.load %arg11[%c1_96, %c1_97, %c0_98] : memref<24x24x16xf32, #tpu.memory_space<vmem>>, vector<16x16x16xf32>
    %101 = vector.shape_cast %100 : vector<16x16x16xf32> to vector<256x16xf32>
    %102 = arith.truncf %101 : vector<256x16xf32> to vector<256x16xbf16>
    %c4 = arith.constant 4 : index
    %c0_99 = arith.constant 0 : index
    %c0_100 = arith.constant 0 : index
    %103 = vector.load %arg4[%c4, %c0_99, %c0_100] : memref<9x16x128xbf16, #tpu.memory_space<vmem>>, vector<1x16x128xbf16>
    %104 = vector.shape_cast %103 : vector<1x16x128xbf16> to vector<16x128xbf16>
    %cst_101 = arith.constant dense<0.000000e+00> : vector<256x128xf32>
    %105 = tpu.matmul %102, %104, %cst_101 {dimension_numbers = #tpu.dot_dimension_numbers<[1], [0], [0], [1], [0, 0, 1, 1], [], []>} : vector<256x16xbf16>, vector<16x128xbf16>, vector<256x128xf32> -> vector<256x128xf32>
    %106 = arith.addf %99, %105 : vector<256x128xf32>
    %c1_102 = arith.constant 1 : index
    %c2_103 = arith.constant 2 : index
    %c0_104 = arith.constant 0 : index
    %107 = vector.load %arg11[%c1_102, %c2_103, %c0_104] : memref<24x24x16xf32, #tpu.memory_space<vmem>>, vector<16x16x16xf32>
    %108 = vector.shape_cast %107 : vector<16x16x16xf32> to vector<256x16xf32>
    %109 = arith.truncf %108 : vector<256x16xf32> to vector<256x16xbf16>
    %c5 = arith.constant 5 : index
    %c0_105 = arith.constant 0 : index
    %c0_106 = arith.constant 0 : index
    %110 = vector.load %arg4[%c5, %c0_105, %c0_106] : memref<9x16x128xbf16, #tpu.memory_space<vmem>>, vector<1x16x128xbf16>
    %111 = vector.shape_cast %110 : vector<1x16x128xbf16> to vector<16x128xbf16>
    %cst_107 = arith.constant dense<0.000000e+00> : vector<256x128xf32>
    %112 = tpu.matmul %109, %111, %cst_107 {dimension_numbers = #tpu.dot_dimension_numbers<[1], [0], [0], [1], [0, 0, 1, 1], [], []>} : vector<256x16xbf16>, vector<16x128xbf16>, vector<256x128xf32> -> vector<256x128xf32>
    %113 = arith.addf %106, %112 : vector<256x128xf32>
    %c2_108 = arith.constant 2 : index
    %c0_109 = arith.constant 0 : index
    %c0_110 = arith.constant 0 : index
    %114 = vector.load %arg11[%c2_108, %c0_109, %c0_110] : memref<24x24x16xf32, #tpu.memory_space<vmem>>, vector<16x16x16xf32>
    %115 = vector.shape_cast %114 : vector<16x16x16xf32> to vector<256x16xf32>
    %116 = arith.truncf %115 : vector<256x16xf32> to vector<256x16xbf16>
    %c6 = arith.constant 6 : index
    %c0_111 = arith.constant 0 : index
    %c0_112 = arith.constant 0 : index
    %117 = vector.load %arg4[%c6, %c0_111, %c0_112] : memref<9x16x128xbf16, #tpu.memory_space<vmem>>, vector<1x16x128xbf16>
    %118 = vector.shape_cast %117 : vector<1x16x128xbf16> to vector<16x128xbf16>
    %cst_113 = arith.constant dense<0.000000e+00> : vector<256x128xf32>
    %119 = tpu.matmul %116, %118, %cst_113 {dimension_numbers = #tpu.dot_dimension_numbers<[1], [0], [0], [1], [0, 0, 1, 1], [], []>} : vector<256x16xbf16>, vector<16x128xbf16>, vector<256x128xf32> -> vector<256x128xf32>
    %120 = arith.addf %113, %119 : vector<256x128xf32>
    %c2_114 = arith.constant 2 : index
    %c1_115 = arith.constant 1 : index
    %c0_116 = arith.constant 0 : index
    %121 = vector.load %arg11[%c2_114, %c1_115, %c0_116] : memref<24x24x16xf32, #tpu.memory_space<vmem>>, vector<16x16x16xf32>
    %122 = vector.shape_cast %121 : vector<16x16x16xf32> to vector<256x16xf32>
    %123 = arith.truncf %122 : vector<256x16xf32> to vector<256x16xbf16>
    %c7 = arith.constant 7 : index
    %c0_117 = arith.constant 0 : index
    %c0_118 = arith.constant 0 : index
    %124 = vector.load %arg4[%c7, %c0_117, %c0_118] : memref<9x16x128xbf16, #tpu.memory_space<vmem>>, vector<1x16x128xbf16>
    %125 = vector.shape_cast %124 : vector<1x16x128xbf16> to vector<16x128xbf16>
    %cst_119 = arith.constant dense<0.000000e+00> : vector<256x128xf32>
    %126 = tpu.matmul %123, %125, %cst_119 {dimension_numbers = #tpu.dot_dimension_numbers<[1], [0], [0], [1], [0, 0, 1, 1], [], []>} : vector<256x16xbf16>, vector<16x128xbf16>, vector<256x128xf32> -> vector<256x128xf32>
    %127 = arith.addf %120, %126 : vector<256x128xf32>
    %c2_120 = arith.constant 2 : index
    %c2_121 = arith.constant 2 : index
    %c0_122 = arith.constant 0 : index
    %128 = vector.load %arg11[%c2_120, %c2_121, %c0_122] : memref<24x24x16xf32, #tpu.memory_space<vmem>>, vector<16x16x16xf32>
    %129 = vector.shape_cast %128 : vector<16x16x16xf32> to vector<256x16xf32>
    %130 = arith.truncf %129 : vector<256x16xf32> to vector<256x16xbf16>
    %c8 = arith.constant 8 : index
    %c0_123 = arith.constant 0 : index
    %c0_124 = arith.constant 0 : index
    %131 = vector.load %arg4[%c8, %c0_123, %c0_124] : memref<9x16x128xbf16, #tpu.memory_space<vmem>>, vector<1x16x128xbf16>
    %132 = vector.shape_cast %131 : vector<1x16x128xbf16> to vector<16x128xbf16>
    %cst_125 = arith.constant dense<0.000000e+00> : vector<256x128xf32>
    %133 = tpu.matmul %130, %132, %cst_125 {dimension_numbers = #tpu.dot_dimension_numbers<[1], [0], [0], [1], [0, 0, 1, 1], [], []>} : vector<256x16xbf16>, vector<16x128xbf16>, vector<256x128xf32> -> vector<256x128xf32>
    %134 = arith.addf %127, %133 : vector<256x128xf32>
    %cst_126 = arith.constant 0.000000e+00 : f32
    %135 = vector.broadcast %cst_126 : f32 to vector<256x128xf32>
    %136 = arith.maximumf %134, %135 : vector<256x128xf32>
    %cst_127 = arith.constant 0.000000e+00 : f32
    %137 = vector.broadcast %cst_127 : f32 to vector<256x48xf32>
    %c0_128 = arith.constant 0 : index
    %c0_129 = arith.constant 0 : index
    %c0_130 = arith.constant 0 : index
    %138 = vector.load %arg12[%c0_128, %c0_129, %c0_130] : memref<24x24x32xf32, #tpu.memory_space<vmem>>, vector<16x16x32xf32>
    %139 = vector.shape_cast %138 : vector<16x16x32xf32> to vector<256x32xf32>
    %140 = arith.truncf %139 : vector<256x32xf32> to vector<256x32xbf16>
    %c0_131 = arith.constant 0 : index
    %c0_132 = arith.constant 0 : index
    %c0_133 = arith.constant 0 : index
    %141 = vector.load %arg6[%c0_131, %c0_132, %c0_133] : memref<9x32x48xbf16, #tpu.memory_space<vmem>>, vector<1x32x48xbf16>
    %142 = vector.shape_cast %141 : vector<1x32x48xbf16> to vector<32x48xbf16>
    %cst_134 = arith.constant dense<0.000000e+00> : vector<256x48xf32>
    %143 = tpu.matmul %140, %142, %cst_134 {dimension_numbers = #tpu.dot_dimension_numbers<[1], [0], [0], [1], [0, 0, 1, 1], [], []>} : vector<256x32xbf16>, vector<32x48xbf16>, vector<256x48xf32> -> vector<256x48xf32>
    %144 = arith.addf %137, %143 : vector<256x48xf32>
    %c0_135 = arith.constant 0 : index
    %c1_136 = arith.constant 1 : index
    %c0_137 = arith.constant 0 : index
    %145 = vector.load %arg12[%c0_135, %c1_136, %c0_137] : memref<24x24x32xf32, #tpu.memory_space<vmem>>, vector<16x16x32xf32>
    %146 = vector.shape_cast %145 : vector<16x16x32xf32> to vector<256x32xf32>
    %147 = arith.truncf %146 : vector<256x32xf32> to vector<256x32xbf16>
    %c1_138 = arith.constant 1 : index
    %c0_139 = arith.constant 0 : index
    %c0_140 = arith.constant 0 : index
    %148 = vector.load %arg6[%c1_138, %c0_139, %c0_140] : memref<9x32x48xbf16, #tpu.memory_space<vmem>>, vector<1x32x48xbf16>
    %149 = vector.shape_cast %148 : vector<1x32x48xbf16> to vector<32x48xbf16>
    %cst_141 = arith.constant dense<0.000000e+00> : vector<256x48xf32>
    %150 = tpu.matmul %147, %149, %cst_141 {dimension_numbers = #tpu.dot_dimension_numbers<[1], [0], [0], [1], [0, 0, 1, 1], [], []>} : vector<256x32xbf16>, vector<32x48xbf16>, vector<256x48xf32> -> vector<256x48xf32>
    %151 = arith.addf %144, %150 : vector<256x48xf32>
    %c0_142 = arith.constant 0 : index
    %c2_143 = arith.constant 2 : index
    %c0_144 = arith.constant 0 : index
    %152 = vector.load %arg12[%c0_142, %c2_143, %c0_144] : memref<24x24x32xf32, #tpu.memory_space<vmem>>, vector<16x16x32xf32>
    %153 = vector.shape_cast %152 : vector<16x16x32xf32> to vector<256x32xf32>
    %154 = arith.truncf %153 : vector<256x32xf32> to vector<256x32xbf16>
    %c2_145 = arith.constant 2 : index
    %c0_146 = arith.constant 0 : index
    %c0_147 = arith.constant 0 : index
    %155 = vector.load %arg6[%c2_145, %c0_146, %c0_147] : memref<9x32x48xbf16, #tpu.memory_space<vmem>>, vector<1x32x48xbf16>
    %156 = vector.shape_cast %155 : vector<1x32x48xbf16> to vector<32x48xbf16>
    %cst_148 = arith.constant dense<0.000000e+00> : vector<256x48xf32>
    %157 = tpu.matmul %154, %156, %cst_148 {dimension_numbers = #tpu.dot_dimension_numbers<[1], [0], [0], [1], [0, 0, 1, 1], [], []>} : vector<256x32xbf16>, vector<32x48xbf16>, vector<256x48xf32> -> vector<256x48xf32>
    %158 = arith.addf %151, %157 : vector<256x48xf32>
    %c1_149 = arith.constant 1 : index
    %c0_150 = arith.constant 0 : index
    %c0_151 = arith.constant 0 : index
    %159 = vector.load %arg12[%c1_149, %c0_150, %c0_151] : memref<24x24x32xf32, #tpu.memory_space<vmem>>, vector<16x16x32xf32>
    %160 = vector.shape_cast %159 : vector<16x16x32xf32> to vector<256x32xf32>
    %161 = arith.truncf %160 : vector<256x32xf32> to vector<256x32xbf16>
    %c3_152 = arith.constant 3 : index
    %c0_153 = arith.constant 0 : index
    %c0_154 = arith.constant 0 : index
    %162 = vector.load %arg6[%c3_152, %c0_153, %c0_154] : memref<9x32x48xbf16, #tpu.memory_space<vmem>>, vector<1x32x48xbf16>
    %163 = vector.shape_cast %162 : vector<1x32x48xbf16> to vector<32x48xbf16>
    %cst_155 = arith.constant dense<0.000000e+00> : vector<256x48xf32>
    %164 = tpu.matmul %161, %163, %cst_155 {dimension_numbers = #tpu.dot_dimension_numbers<[1], [0], [0], [1], [0, 0, 1, 1], [], []>} : vector<256x32xbf16>, vector<32x48xbf16>, vector<256x48xf32> -> vector<256x48xf32>
    %165 = arith.addf %158, %164 : vector<256x48xf32>
    %c1_156 = arith.constant 1 : index
    %c1_157 = arith.constant 1 : index
    %c0_158 = arith.constant 0 : index
    %166 = vector.load %arg12[%c1_156, %c1_157, %c0_158] : memref<24x24x32xf32, #tpu.memory_space<vmem>>, vector<16x16x32xf32>
    %167 = vector.shape_cast %166 : vector<16x16x32xf32> to vector<256x32xf32>
    %168 = arith.truncf %167 : vector<256x32xf32> to vector<256x32xbf16>
    %c4_159 = arith.constant 4 : index
    %c0_160 = arith.constant 0 : index
    %c0_161 = arith.constant 0 : index
    %169 = vector.load %arg6[%c4_159, %c0_160, %c0_161] : memref<9x32x48xbf16, #tpu.memory_space<vmem>>, vector<1x32x48xbf16>
    %170 = vector.shape_cast %169 : vector<1x32x48xbf16> to vector<32x48xbf16>
    %cst_162 = arith.constant dense<0.000000e+00> : vector<256x48xf32>
    %171 = tpu.matmul %168, %170, %cst_162 {dimension_numbers = #tpu.dot_dimension_numbers<[1], [0], [0], [1], [0, 0, 1, 1], [], []>} : vector<256x32xbf16>, vector<32x48xbf16>, vector<256x48xf32> -> vector<256x48xf32>
    %172 = arith.addf %165, %171 : vector<256x48xf32>
    %c1_163 = arith.constant 1 : index
    %c2_164 = arith.constant 2 : index
    %c0_165 = arith.constant 0 : index
    %173 = vector.load %arg12[%c1_163, %c2_164, %c0_165] : memref<24x24x32xf32, #tpu.memory_space<vmem>>, vector<16x16x32xf32>
    %174 = vector.shape_cast %173 : vector<16x16x32xf32> to vector<256x32xf32>
    %175 = arith.truncf %174 : vector<256x32xf32> to vector<256x32xbf16>
    %c5_166 = arith.constant 5 : index
    %c0_167 = arith.constant 0 : index
    %c0_168 = arith.constant 0 : index
    %176 = vector.load %arg6[%c5_166, %c0_167, %c0_168] : memref<9x32x48xbf16, #tpu.memory_space<vmem>>, vector<1x32x48xbf16>
    %177 = vector.shape_cast %176 : vector<1x32x48xbf16> to vector<32x48xbf16>
    %cst_169 = arith.constant dense<0.000000e+00> : vector<256x48xf32>
    %178 = tpu.matmul %175, %177, %cst_169 {dimension_numbers = #tpu.dot_dimension_numbers<[1], [0], [0], [1], [0, 0, 1, 1], [], []>} : vector<256x32xbf16>, vector<32x48xbf16>, vector<256x48xf32> -> vector<256x48xf32>
    %179 = arith.addf %172, %178 : vector<256x48xf32>
    %c2_170 = arith.constant 2 : index
    %c0_171 = arith.constant 0 : index
    %c0_172 = arith.constant 0 : index
    %180 = vector.load %arg12[%c2_170, %c0_171, %c0_172] : memref<24x24x32xf32, #tpu.memory_space<vmem>>, vector<16x16x32xf32>
    %181 = vector.shape_cast %180 : vector<16x16x32xf32> to vector<256x32xf32>
    %182 = arith.truncf %181 : vector<256x32xf32> to vector<256x32xbf16>
    %c6_173 = arith.constant 6 : index
    %c0_174 = arith.constant 0 : index
    %c0_175 = arith.constant 0 : index
    %183 = vector.load %arg6[%c6_173, %c0_174, %c0_175] : memref<9x32x48xbf16, #tpu.memory_space<vmem>>, vector<1x32x48xbf16>
    %184 = vector.shape_cast %183 : vector<1x32x48xbf16> to vector<32x48xbf16>
    %cst_176 = arith.constant dense<0.000000e+00> : vector<256x48xf32>
    %185 = tpu.matmul %182, %184, %cst_176 {dimension_numbers = #tpu.dot_dimension_numbers<[1], [0], [0], [1], [0, 0, 1, 1], [], []>} : vector<256x32xbf16>, vector<32x48xbf16>, vector<256x48xf32> -> vector<256x48xf32>
    %186 = arith.addf %179, %185 : vector<256x48xf32>
    %c2_177 = arith.constant 2 : index
    %c1_178 = arith.constant 1 : index
    %c0_179 = arith.constant 0 : index
    %187 = vector.load %arg12[%c2_177, %c1_178, %c0_179] : memref<24x24x32xf32, #tpu.memory_space<vmem>>, vector<16x16x32xf32>
    %188 = vector.shape_cast %187 : vector<16x16x32xf32> to vector<256x32xf32>
    %189 = arith.truncf %188 : vector<256x32xf32> to vector<256x32xbf16>
    %c7_180 = arith.constant 7 : index
    %c0_181 = arith.constant 0 : index
    %c0_182 = arith.constant 0 : index
    %190 = vector.load %arg6[%c7_180, %c0_181, %c0_182] : memref<9x32x48xbf16, #tpu.memory_space<vmem>>, vector<1x32x48xbf16>
    %191 = vector.shape_cast %190 : vector<1x32x48xbf16> to vector<32x48xbf16>
    %cst_183 = arith.constant dense<0.000000e+00> : vector<256x48xf32>
    %192 = tpu.matmul %189, %191, %cst_183 {dimension_numbers = #tpu.dot_dimension_numbers<[1], [0], [0], [1], [0, 0, 1, 1], [], []>} : vector<256x32xbf16>, vector<32x48xbf16>, vector<256x48xf32> -> vector<256x48xf32>
    %193 = arith.addf %186, %192 : vector<256x48xf32>
    %c2_184 = arith.constant 2 : index
    %c2_185 = arith.constant 2 : index
    %c0_186 = arith.constant 0 : index
    %194 = vector.load %arg12[%c2_184, %c2_185, %c0_186] : memref<24x24x32xf32, #tpu.memory_space<vmem>>, vector<16x16x32xf32>
    %195 = vector.shape_cast %194 : vector<16x16x32xf32> to vector<256x32xf32>
    %196 = arith.truncf %195 : vector<256x32xf32> to vector<256x32xbf16>
    %c8_187 = arith.constant 8 : index
    %c0_188 = arith.constant 0 : index
    %c0_189 = arith.constant 0 : index
    %197 = vector.load %arg6[%c8_187, %c0_188, %c0_189] : memref<9x32x48xbf16, #tpu.memory_space<vmem>>, vector<1x32x48xbf16>
    %198 = vector.shape_cast %197 : vector<1x32x48xbf16> to vector<32x48xbf16>
    %cst_190 = arith.constant dense<0.000000e+00> : vector<256x48xf32>
    %199 = tpu.matmul %196, %198, %cst_190 {dimension_numbers = #tpu.dot_dimension_numbers<[1], [0], [0], [1], [0, 0, 1, 1], [], []>} : vector<256x32xbf16>, vector<32x48xbf16>, vector<256x48xf32> -> vector<256x48xf32>
    %200 = arith.addf %193, %199 : vector<256x48xf32>
    %cst_191 = arith.constant 0.000000e+00 : f32
    %201 = vector.broadcast %cst_191 : f32 to vector<256x48xf32>
    %202 = arith.maximumf %200, %201 : vector<256x48xf32>
    %cst_192 = arith.constant 0.000000e+00 : f32
    %203 = vector.broadcast %cst_192 : f32 to vector<24x24x48xf32>
    %c0_193 = arith.constant 0 : index
    %c0_194 = arith.constant 0 : index
    %c0_195 = arith.constant 0 : index
    %204 = vector.load %arg13[%c0_193, %c0_194, %c0_195] : memref<24x24x48xf32, #tpu.memory_space<vmem>>, vector<24x24x48xf32>
    tpu.vector_store %arg13[%c0_193, %c0_194, %c0_195], %203 {strides = array<i32>} : memref<24x24x48xf32, #tpu.memory_space<vmem>>, vector<24x24x48xf32>,
    %205 = vector.shape_cast %202 : vector<256x48xf32> to vector<16x16x48xf32>
    %c1_196 = arith.constant 1 : index
    %c1_197 = arith.constant 1 : index
    %c0_198 = arith.constant 0 : index
    %206 = vector.load %arg13[%c1_196, %c1_197, %c0_198] : memref<24x24x48xf32, #tpu.memory_space<vmem>>, vector<16x16x48xf32>
    tpu.vector_store %arg13[%c1_196, %c1_197, %c0_198], %205 {strides = array<i32>} : memref<24x24x48xf32, #tpu.memory_space<vmem>>, vector<16x16x48xf32>,
    %cst_199 = arith.constant 0.000000e+00 : f32
    %207 = vector.broadcast %cst_199 : f32 to vector<256x128xf32>
    %c0_200 = arith.constant 0 : index
    %c0_201 = arith.constant 0 : index
    %c0_202 = arith.constant 0 : index
    %208 = vector.load %arg13[%c0_200, %c0_201, %c0_202] : memref<24x24x48xf32, #tpu.memory_space<vmem>>, vector<16x16x48xf32>
    %209 = vector.shape_cast %208 : vector<16x16x48xf32> to vector<256x48xf32>
    %210 = arith.truncf %209 : vector<256x48xf32> to vector<256x48xbf16>
    %c0_203 = arith.constant 0 : index
    %c0_204 = arith.constant 0 : index
    %c0_205 = arith.constant 0 : index
    %211 = vector.load %arg7[%c0_203, %c0_204, %c0_205] : memref<9x48x128xbf16, #tpu.memory_space<vmem>>, vector<1x48x128xbf16>
    %212 = vector.shape_cast %211 : vector<1x48x128xbf16> to vector<48x128xbf16>
    %cst_206 = arith.constant dense<0.000000e+00> : vector<256x128xf32>
    %213 = tpu.matmul %210, %212, %cst_206 {dimension_numbers = #tpu.dot_dimension_numbers<[1], [0], [0], [1], [0, 0, 1, 1], [], []>} : vector<256x48xbf16>, vector<48x128xbf16>, vector<256x128xf32> -> vector<256x128xf32>
    %214 = arith.addf %207, %213 : vector<256x128xf32>
    %c0_207 = arith.constant 0 : index
    %c1_208 = arith.constant 1 : index
    %c0_209 = arith.constant 0 : index
    %215 = vector.load %arg13[%c0_207, %c1_208, %c0_209] : memref<24x24x48xf32, #tpu.memory_space<vmem>>, vector<16x16x48xf32>
    %216 = vector.shape_cast %215 : vector<16x16x48xf32> to vector<256x48xf32>
    %217 = arith.truncf %216 : vector<256x48xf32> to vector<256x48xbf16>
    %c1_210 = arith.constant 1 : index
    %c0_211 = arith.constant 0 : index
    %c0_212 = arith.constant 0 : index
    %218 = vector.load %arg7[%c1_210, %c0_211, %c0_212] : memref<9x48x128xbf16, #tpu.memory_space<vmem>>, vector<1x48x128xbf16>
    %219 = vector.shape_cast %218 : vector<1x48x128xbf16> to vector<48x128xbf16>
    %cst_213 = arith.constant dense<0.000000e+00> : vector<256x128xf32>
    %220 = tpu.matmul %217, %219, %cst_213 {dimension_numbers = #tpu.dot_dimension_numbers<[1], [0], [0], [1], [0, 0, 1, 1], [], []>} : vector<256x48xbf16>, vector<48x128xbf16>, vector<256x128xf32> -> vector<256x128xf32>
    %221 = arith.addf %214, %220 : vector<256x128xf32>
    %c0_214 = arith.constant 0 : index
    %c2_215 = arith.constant 2 : index
    %c0_216 = arith.constant 0 : index
    %222 = vector.load %arg13[%c0_214, %c2_215, %c0_216] : memref<24x24x48xf32, #tpu.memory_space<vmem>>, vector<16x16x48xf32>
    %223 = vector.shape_cast %222 : vector<16x16x48xf32> to vector<256x48xf32>
    %224 = arith.truncf %223 : vector<256x48xf32> to vector<256x48xbf16>
    %c2_217 = arith.constant 2 : index
    %c0_218 = arith.constant 0 : index
    %c0_219 = arith.constant 0 : index
    %225 = vector.load %arg7[%c2_217, %c0_218, %c0_219] : memref<9x48x128xbf16, #tpu.memory_space<vmem>>, vector<1x48x128xbf16>
    %226 = vector.shape_cast %225 : vector<1x48x128xbf16> to vector<48x128xbf16>
    %cst_220 = arith.constant dense<0.000000e+00> : vector<256x128xf32>
    %227 = tpu.matmul %224, %226, %cst_220 {dimension_numbers = #tpu.dot_dimension_numbers<[1], [0], [0], [1], [0, 0, 1, 1], [], []>} : vector<256x48xbf16>, vector<48x128xbf16>, vector<256x128xf32> -> vector<256x128xf32>
    %228 = arith.addf %221, %227 : vector<256x128xf32>
    %c1_221 = arith.constant 1 : index
    %c0_222 = arith.constant 0 : index
    %c0_223 = arith.constant 0 : index
    %229 = vector.load %arg13[%c1_221, %c0_222, %c0_223] : memref<24x24x48xf32, #tpu.memory_space<vmem>>, vector<16x16x48xf32>
    %230 = vector.shape_cast %229 : vector<16x16x48xf32> to vector<256x48xf32>
    %231 = arith.truncf %230 : vector<256x48xf32> to vector<256x48xbf16>
    %c3_224 = arith.constant 3 : index
    %c0_225 = arith.constant 0 : index
    %c0_226 = arith.constant 0 : index
    %232 = vector.load %arg7[%c3_224, %c0_225, %c0_226] : memref<9x48x128xbf16, #tpu.memory_space<vmem>>, vector<1x48x128xbf16>
    %233 = vector.shape_cast %232 : vector<1x48x128xbf16> to vector<48x128xbf16>
    %cst_227 = arith.constant dense<0.000000e+00> : vector<256x128xf32>
    %234 = tpu.matmul %231, %233, %cst_227 {dimension_numbers = #tpu.dot_dimension_numbers<[1], [0], [0], [1], [0, 0, 1, 1], [], []>} : vector<256x48xbf16>, vector<48x128xbf16>, vector<256x128xf32> -> vector<256x128xf32>
    %235 = arith.addf %228, %234 : vector<256x128xf32>
    %c1_228 = arith.constant 1 : index
    %c1_229 = arith.constant 1 : index
    %c0_230 = arith.constant 0 : index
    %236 = vector.load %arg13[%c1_228, %c1_229, %c0_230] : memref<24x24x48xf32, #tpu.memory_space<vmem>>, vector<16x16x48xf32>
    %237 = vector.shape_cast %236 : vector<16x16x48xf32> to vector<256x48xf32>
    %238 = arith.truncf %237 : vector<256x48xf32> to vector<256x48xbf16>
    %c4_231 = arith.constant 4 : index
    %c0_232 = arith.constant 0 : index
    %c0_233 = arith.constant 0 : index
    %239 = vector.load %arg7[%c4_231, %c0_232, %c0_233] : memref<9x48x128xbf16, #tpu.memory_space<vmem>>, vector<1x48x128xbf16>
    %240 = vector.shape_cast %239 : vector<1x48x128xbf16> to vector<48x128xbf16>
    %cst_234 = arith.constant dense<0.000000e+00> : vector<256x128xf32>
    %241 = tpu.matmul %238, %240, %cst_234 {dimension_numbers = #tpu.dot_dimension_numbers<[1], [0], [0], [1], [0, 0, 1, 1], [], []>} : vector<256x48xbf16>, vector<48x128xbf16>, vector<256x128xf32> -> vector<256x128xf32>
    %242 = arith.addf %235, %241 : vector<256x128xf32>
    %c1_235 = arith.constant 1 : index
    %c2_236 = arith.constant 2 : index
    %c0_237 = arith.constant 0 : index
    %243 = vector.load %arg13[%c1_235, %c2_236, %c0_237] : memref<24x24x48xf32, #tpu.memory_space<vmem>>, vector<16x16x48xf32>
    %244 = vector.shape_cast %243 : vector<16x16x48xf32> to vector<256x48xf32>
    %245 = arith.truncf %244 : vector<256x48xf32> to vector<256x48xbf16>
    %c5_238 = arith.constant 5 : index
    %c0_239 = arith.constant 0 : index
    %c0_240 = arith.constant 0 : index
    %246 = vector.load %arg7[%c5_238, %c0_239, %c0_240] : memref<9x48x128xbf16, #tpu.memory_space<vmem>>, vector<1x48x128xbf16>
    %247 = vector.shape_cast %246 : vector<1x48x128xbf16> to vector<48x128xbf16>
    %cst_241 = arith.constant dense<0.000000e+00> : vector<256x128xf32>
    %248 = tpu.matmul %245, %247, %cst_241 {dimension_numbers = #tpu.dot_dimension_numbers<[1], [0], [0], [1], [0, 0, 1, 1], [], []>} : vector<256x48xbf16>, vector<48x128xbf16>, vector<256x128xf32> -> vector<256x128xf32>
    %249 = arith.addf %242, %248 : vector<256x128xf32>
    %c2_242 = arith.constant 2 : index
    %c0_243 = arith.constant 0 : index
    %c0_244 = arith.constant 0 : index
    %250 = vector.load %arg13[%c2_242, %c0_243, %c0_244] : memref<24x24x48xf32, #tpu.memory_space<vmem>>, vector<16x16x48xf32>
    %251 = vector.shape_cast %250 : vector<16x16x48xf32> to vector<256x48xf32>
    %252 = arith.truncf %251 : vector<256x48xf32> to vector<256x48xbf16>
    %c6_245 = arith.constant 6 : index
    %c0_246 = arith.constant 0 : index
    %c0_247 = arith.constant 0 : index
    %253 = vector.load %arg7[%c6_245, %c0_246, %c0_247] : memref<9x48x128xbf16, #tpu.memory_space<vmem>>, vector<1x48x128xbf16>
    %254 = vector.shape_cast %253 : vector<1x48x128xbf16> to vector<48x128xbf16>
    %cst_248 = arith.constant dense<0.000000e+00> : vector<256x128xf32>
    %255 = tpu.matmul %252, %254, %cst_248 {dimension_numbers = #tpu.dot_dimension_numbers<[1], [0], [0], [1], [0, 0, 1, 1], [], []>} : vector<256x48xbf16>, vector<48x128xbf16>, vector<256x128xf32> -> vector<256x128xf32>
    %256 = arith.addf %249, %255 : vector<256x128xf32>
    %c2_249 = arith.constant 2 : index
    %c1_250 = arith.constant 1 : index
    %c0_251 = arith.constant 0 : index
    %257 = vector.load %arg13[%c2_249, %c1_250, %c0_251] : memref<24x24x48xf32, #tpu.memory_space<vmem>>, vector<16x16x48xf32>
    %258 = vector.shape_cast %257 : vector<16x16x48xf32> to vector<256x48xf32>
    %259 = arith.truncf %258 : vector<256x48xf32> to vector<256x48xbf16>
    %c7_252 = arith.constant 7 : index
    %c0_253 = arith.constant 0 : index
    %c0_254 = arith.constant 0 : index
    %260 = vector.load %arg7[%c7_252, %c0_253, %c0_254] : memref<9x48x128xbf16, #tpu.memory_space<vmem>>, vector<1x48x128xbf16>
    %261 = vector.shape_cast %260 : vector<1x48x128xbf16> to vector<48x128xbf16>
    %cst_255 = arith.constant dense<0.000000e+00> : vector<256x128xf32>
    %262 = tpu.matmul %259, %261, %cst_255 {dimension_numbers = #tpu.dot_dimension_numbers<[1], [0], [0], [1], [0, 0, 1, 1], [], []>} : vector<256x48xbf16>, vector<48x128xbf16>, vector<256x128xf32> -> vector<256x128xf32>
    %263 = arith.addf %256, %262 : vector<256x128xf32>
    %c2_256 = arith.constant 2 : index
    %c2_257 = arith.constant 2 : index
    %c0_258 = arith.constant 0 : index
    %264 = vector.load %arg13[%c2_256, %c2_257, %c0_258] : memref<24x24x48xf32, #tpu.memory_space<vmem>>, vector<16x16x48xf32>
    %265 = vector.shape_cast %264 : vector<16x16x48xf32> to vector<256x48xf32>
    %266 = arith.truncf %265 : vector<256x48xf32> to vector<256x48xbf16>
    %c8_259 = arith.constant 8 : index
    %c0_260 = arith.constant 0 : index
    %c0_261 = arith.constant 0 : index
    %267 = vector.load %arg7[%c8_259, %c0_260, %c0_261] : memref<9x48x128xbf16, #tpu.memory_space<vmem>>, vector<1x48x128xbf16>
    %268 = vector.shape_cast %267 : vector<1x48x128xbf16> to vector<48x128xbf16>
    %cst_262 = arith.constant dense<0.000000e+00> : vector<256x128xf32>
    %269 = tpu.matmul %266, %268, %cst_262 {dimension_numbers = #tpu.dot_dimension_numbers<[1], [0], [0], [1], [0, 0, 1, 1], [], []>} : vector<256x48xbf16>, vector<48x128xbf16>, vector<256x128xf32> -> vector<256x128xf32>
    %270 = arith.addf %263, %269 : vector<256x128xf32>
    %cst_263 = arith.constant 0.000000e+00 : f32
    %271 = vector.broadcast %cst_263 : f32 to vector<256x128xf32>
    %272 = arith.maximumf %270, %271 : vector<256x128xf32>
    %273 = arith.addf %9, %136 : vector<256x128xf32>
    %274 = arith.addf %273, %272 : vector<256x128xf32>
    %275 = arith.addf %274, %58 : vector<256x128xf32>
    %276 = arith.addf %275, %13 : vector<256x128xf32>
    %277 = vector.shape_cast %276 : vector<256x128xf32> to vector<1x16x16x128xf32>
    %c0_264 = arith.constant 0 : index
    %c0_265 = arith.constant 0 : index
    %c0_266 = arith.constant 0 : index
    %c0_267 = arith.constant 0 : index
    %278 = vector.load %arg10[%c0_264, %c0_265, %c0_266, %c0_267] : memref<1x16x16x128xf32, #tpu.memory_space<vmem>>, vector<1x16x16x128xf32>
    tpu.vector_store %arg10[%c0_264, %c0_265, %c0_266, %c0_267], %277 {strides = array<i32>} : memref<1x16x16x128xf32, #tpu.memory_space<vmem>>, vector<1x16x16x128xf32>,
    return
  }
  func.func @transform_0(%arg0: i32) -> (i32, i32, i32, i32) {
    %c0_i32 = arith.constant 0 : i32
    %c0_i32_0 = arith.constant 0 : i32
    %c0_i32_1 = arith.constant 0 : i32
    %c0_i32_2 = arith.constant 0 : i32
    return %arg0, %c0_i32, %c0_i32_0, %c0_i32_1 : i32, i32, i32, i32
  }
  func.func @transform_1(%arg0: i32) -> (i32, i32) {
    %c0_i32 = arith.constant 0 : i32
    %c0_i32_0 = arith.constant 0 : i32
    %c0_i32_1 = arith.constant 0 : i32
    return %c0_i32, %c0_i32_0 : i32, i32
  }
  func.func @transform_2(%arg0: i32) -> (i32, i32) {
    %c0_i32 = arith.constant 0 : i32
    %c0_i32_0 = arith.constant 0 : i32
    %c0_i32_1 = arith.constant 0 : i32
    return %c0_i32, %c0_i32_0 : i32, i32
  }
  func.func @transform_3(%arg0: i32) -> (i32, i32, i32) {
    %c0_i32 = arith.constant 0 : i32
    %c0_i32_0 = arith.constant 0 : i32
    %c0_i32_1 = arith.constant 0 : i32
    %c0_i32_2 = arith.constant 0 : i32
    return %c0_i32, %c0_i32_0, %c0_i32_1 : i32, i32, i32
  }
  func.func @transform_4(%arg0: i32) -> (i32, i32) {
    %c0_i32 = arith.constant 0 : i32
    %c0_i32_0 = arith.constant 0 : i32
    %c0_i32_1 = arith.constant 0 : i32
    return %c0_i32, %c0_i32_0 : i32, i32
  }
  func.func @transform_5(%arg0: i32) -> (i32, i32, i32) {
    %c0_i32 = arith.constant 0 : i32
    %c0_i32_0 = arith.constant 0 : i32
    %c0_i32_1 = arith.constant 0 : i32
    %c0_i32_2 = arith.constant 0 : i32
    return %c0_i32, %c0_i32_0, %c0_i32_1 : i32, i32, i32
  }
  func.func @transform_6(%arg0: i32) -> (i32, i32, i32) {
    %c0_i32 = arith.constant 0 : i32
    %c0_i32_0 = arith.constant 0 : i32
    %c0_i32_1 = arith.constant 0 : i32
    %c0_i32_2 = arith.constant 0 : i32
    return %c0_i32, %c0_i32_0, %c0_i32_1 : i32, i32, i32
  }
  func.func @transform_7(%arg0: i32) -> (i32, i32) {
    %c0_i32 = arith.constant 0 : i32
    %c0_i32_0 = arith.constant 0 : i32
    %c0_i32_1 = arith.constant 0 : i32
    return %c0_i32, %c0_i32_0 : i32, i32
  }
  func.func @transform_8(%arg0: i32) -> (i32, i32) {
    %c0_i32 = arith.constant 0 : i32
    %c0_i32_0 = arith.constant 0 : i32
    %c0_i32_1 = arith.constant 0 : i32
    return %c0_i32, %c0_i32_0 : i32, i32
  }
  func.func @transform_9(%arg0: i32) -> (i32, i32, i32, i32) {
    %c0_i32 = arith.constant 0 : i32
    %c0_i32_0 = arith.constant 0 : i32
    %c0_i32_1 = arith.constant 0 : i32
    %c0_i32_2 = arith.constant 0 : i32
    return %arg0, %c0_i32, %c0_i32_0, %c0_i32_1 : i32, i32, i32, i32
  }
}

</mosaic_0001>

<bundles_post_ra>
// kernel: inception_a_forward.1
= control target key start
LH: loop header
LB: loop body
LE: loop exit
PB: predicated region body
PF: predicated region fallthrough
CT: control target
= control target key end

     0   :  { %14 = vsyncpa [#allocation6], 0  ;;  %s20382_s0 = inlined_call_operand.vmem [shape: bf16[2,24,24,128], index: 0, kind: input, shape index: {}]   ;;  %s20383_s1 = inlined_call_operand.vmem [shape: bf16[128,128], index: 1, kind: input, shape index: {}]   ;;  %s20384_s2 = inlined_call_operand.vmem [shape: bf16[128,16], index: 2, kind: input, shape index: {}]   ;;  %s20385_s3 = inlined_call_operand.vmem [shape: bf16[9,16,128], index: 3, kind: input, shape index: {}]   ;;  %s20386_s4 = inlined_call_operand.vmem [shape: bf16[128,32], index: 4, kind: input, shape index: {}]   ;;  %s20387_s5 = inlined_call_operand.vmem [shape: bf16[9,32,48], index: 5, kind: input, shape index: {}]   ;;  %s20388_s6 = inlined_call_operand.vmem [shape: bf16[9,48,128], index: 6, kind: input, shape index: {}]   ;;  %s20389_s7 = inlined_call_operand.vmem [shape: bf16[128,128], index: 7, kind: input, shape index: {}]   ;;  %s20390_s8 = inlined_call_operand.vmem [shape: bf16[128,128], index: 8, kind: input, shape index: {}]   ;;  %s20391_s9 = inlined_call_operand.hbm [shape: f32[2,16,16,128], index: 9, kind: output, shape index: {}]  }
   0x1   :  { %16 = vsyncpa [#allocation6 + $0x1], 0  ;;  %s17028_s30 = smov 0   ;;  %s17030_s10 = smov 0  }
   0x2   :  { %s17032_s11 = smov 0   ;;  %s17034_s12 = smov 0  }
   0x3 LB: > { %s17049_s13 = sadd.s32 4294967295, %s16972_s12   ;;  %s13064_s14 = sadd.s32 4294967294, %s16972_s12   ;;  %s16972_s12 = sphi %s17034_s12, %s20809_s12   ;;  %s16968_s11 = sphi %s17032_s11, %s20808_s11   ;;  %s16964_s10 = sphi %s17030_s10, %s20807_s10   ;;  %s16960_s30 = sphi %s17028_s30, %s20806_s30  }
   0x4   : > { %s17053_s15 = sadd.s32 1, %s16972_s12   ;;  %s223_s16 = sadd.s32 1, %s16968_s11 }
   0x5   : > { %s220_s17 = ssub.s32 %s16972_s12, %s17053_s15  ;;  %p233_p0 = scmp.ne.s32.totalorder %s16968_s11, %s16964_s10 }
   0x6   : > { %p221_p1 = scmp.eq.s32.totalorder %s220_s17, 0  ;;  %p234_p2 = scmp.eq.s32.totalorder %s17049_s13, 1 }
   0x7   : > { %p239_p3 = scmp.ne.s32.totalorder %s16964_s10, %s16960_s30  ;;  %p240_p4 = scmp.eq.s32.totalorder %s13064_s14, 1 }
   0x8   : > { %s17064_s18 = scalar_select %p221_p1, %s16968_s11, %s223_s16  }
   0x9   : > { %p17066_p5 = por %p234_p2, %p233_p0  ;;  %p17070_p6 = por %p240_p4, %p239_p3 }
   0xa   : > { %p13067_p7 = scmp.ge.s32.totalorder %s16972_s12, 1  ;;  %p290_p8 = scmp.lt.s32.totalorder %s16972_s12, 3 }
   0xc   : > { %p291_p9 = pnand %p13067_p7, %p290_p8 }
   0xe   : > { %294 = sbr.rel (%p291_p9) target bundleno = 2301 (0x8fd), region = 56 }
  0x15   : > { %v16780_v0 = vld [vmem:[%s20383_s1] sm:$0xff]   ;;  %p326_p10 = scmp.lt.s32.totalorder %s17049_s13, 1  ;;  %v16781_v1 = vld [vmem:[%s20383_s1 + $0x8] sm:$0xff]   ;;  %v16782_v2 = vld [vmem:[%s20383_s1 + $0x10] sm:$0xff]   ;;  %vm453_vm0 = vsmask.f32 3328 }
  0x16   : > { %14675 = vmatprep.subr.bf16.mxu0 %v16780_v0  ;;  %v16783_v3 = vld [vmem:[%s20383_s1 + $0x18] sm:$0xff]   ;;  %vm454_vm1 = vsmask.f32 7440  ;;  %v16784_v9 = vld [vmem:[%s20383_s1 + $0x20] sm:$0xff]   ;;  %vm1594_vm2 = vcmask 1046528   ;;  %vm1787_vm3 = vcmask 1045504  }
  0x17   : > { %s327_s25 = scalar_select %p326_p10, %s17049_s13, 1  ;;  %14676 = vmatpush3.bf16.msra.mxu0 %v16780_v0  ;;  %vm17122_vm4 = vmor %vm453_vm0, %vm454_vm1  ;;  %v16785_v41 = vld [vmem:[%s20383_s1 + $0x28] sm:$0xff]   ;;  %v16786_v55 = vld [vmem:[%s20383_s1 + $0x30] sm:$0xff]   ;;  %vm3951_vm5 = vcmask 130048   ;;  %vm4481_vm6 = vcmask 261120   ;;  %vm9928_vm7 = vcmask 392192  }
  0x18   : > { %14677 = vmatprep.subr.bf16.mxu0 %v16781_v1  ;;  %s13909_s14 = sshll.u32 %s17049_s13, 12 }
  0x19   : > { %s16737_s28 = smul.u32 288, %s327_s25  ;;  %s20332_s23 = scalar_lea.hbm %s20391_s9, %s13909_s14 }
  0x1a   : > { %s16975_s25 = smov [#allocation5]  }
  0x1b   : > { %s17090_s16 = scalar_lea.vmem %s20382_s0, %s16737_s28  ;;  %14678 = vmatpush3.bf16.msra.mxu0 %v16781_v1  ;;  %s323_s28 = sand.u32 1, %s16964_s10  }
  0x1c   : > { %14679 = vmatprep.subr.bf16.mxu0 %v16782_v2  ;;  %v13070_v4 = vld [vmem:[%s17090_s16 + $0xc] sm:$0xf]  ;;  %v13071_v5 = vld [vmem:[%s17090_s16 + $0x10] sm:$0xf]  ;;  %v13072_v6 = vld [vmem:[%s17090_s16 + $0x14] sm:$0x1] }
  0x1d   : > { %v457_v7 = vshrl.u32 %v13070_v4, 16  ;;  %v460_v8 = vshll.u32 %v13070_v4, 16  ;;  %v466_v10 = vshll.u32 %v13071_v5, 16  ;;  %v470_v11 = vshrl.u32 %v13071_v5, 16  ;;  %v17102_v18 = vld [vmem:[%s17090_s16 + $0x18] sm:$0xf] }
  0x1e   : > { %v476_v12 = vshll.u32 %v13072_v6, 16  ;;  %v2028_v13 = vunpack.c.l.bf16 %v13070_v4  ;;  %v2029_v16 = vunpack.c.l.bf16 %v13071_v5  ;;  %v2030_v17 = vunpack.c.l.bf16 %v13072_v6  ;;  %v17105_v19 = vld [vmem:[%s17090_s16 + $0x1c] sm:$0xf]  ;;  %v17110_v24 = vld [vmem:[%s17090_s16 + $0x20] sm:$0x1]  ;;  %v1420_v29 = vld [vmem:[%s17090_s16 + $0xc] sm:$0xff]  }
  0x1f   : > { %14680 = vmatpush3.bf16.msra.mxu0 %v16782_v2  ;;  %v459_v14 = vrot.slane %v457_v7, 4  ;;  %v462_v15 = vrot.slane %v460_v8, 5  ;;  %v468_v20 = vrot.slane %v466_v10, 5  ;;  %v472_v21 = vrot.slane %v470_v11, 4  ;;  %v1515_v30 = vld [vmem:[%s17090_s16 + $0x14] sm:$0x1] }
  0x20   : > { %14681 = vmatprep.subr.bf16.mxu0 %v16783_v3  ;;  %v478_v22 = vrot.slane %v476_v12, 5  ;;  %v17107_v23 = vrot.slane %v2028_v13, 1  ;;  %v17112_v26 = vrot.slane %v2029_v16, 1  ;;  %v17114_v27 = vrot.slane %v2030_v17, 1  ;;  %v1740_v36 = vld [vmem:[%s17090_s16 + $0xc] sm:$0xe] }
  0x21   : > { %v463_v25 = vor.u32 %v462_v15, %v459_v14  ;;  %v17116_v28 = vrot.slane %v2029_v16, 2  ;;  %v473_v32 = vor.u32 %v472_v21, %v468_v20  ;;  %v17126_v33 = vrot.slane %v2030_v17, 2  ;;  %v14013_v54 = vld [vmem:[%s17090_s16 + $0x18] sm:$0xff]   ;;  %v13076_v13 = vld [vmem:[%s17090_s16 + $0x24] sm:$0xf]  ;;  %s13068_s29 = sshll.u32 %s323_s28, 8 }
  0x22   : > { %v481_v34 = vshrl.u32 %v17102_v18, 16  ;;  %v484_v35 = vshll.u32 %v17102_v18, 16  ;;  %v490_v38 = vshll.u32 %v17105_v19, 16  ;;  %v494_v39 = vshrl.u32 %v17105_v19, 16  ;;  %v13183_v8 = vld [vmem:[%s17090_s16 + $0x18] sm:$0xe] }
  0x23   : > { %14682 = vmatpush3.bf16.msra.mxu0 %v16783_v3  ;;  %v464_v37 = vrot.slane %v463_v25, 4  ;;  %v500_v40 = vshll.u32 %v17110_v24, 16  ;;  %v474_v42 = vrot.slane %v473_v32, 4  ;;  %v1452_v45 = vunpack.c.l.bf16 %v1420_v29  ;;  %v16787_v14 = vld [vmem:[%s20383_s1 + $0x38] sm:$0xff]   ;;  %s20341_s13 = scalar_lea.sflag [#allocation6], %s323_s28  ;;  %s16914_s26 = sshll.u32 %s16975_s25, 4  ;;  %s16915_s26 = int_to_ptr.vmem [resolvable:$false] %s16914_s26 }
  0x24   : > { %14683 = vmatprep.subr.bf16.mxu0 %v16784_v9  ;;  %v483_v43 = vrot.slane %v481_v34, 4  ;;  %v486_v44 = vrot.slane %v484_v35, 5  ;;  %v492_v47 = vrot.slane %v490_v38, 5  ;;  %v496_v48 = vrot.slane %v494_v39, 4  ;;  %v13077_v35 = vld [vmem:[%s17090_s16 + $0x28] sm:$0xf] }
  0x25   : > { %v469_v46 = vsel %vm17122_vm4, %v464_v37, %v468_v20  ;;  %v502_v49 = vrot.slane %v500_v40, 5  ;;  %v479_v50 = vsel %vm17122_vm4, %v474_v42, %v478_v22  ;;  %v1453_v52 = vunpack.c.h.bf16 %v1420_v29  ;;  %s16916_s27 = scalar_lea.vmem %s16915_s26, 8192 }
  0x26   : > { %v487_v51 = vor.u32 %v486_v44, %v483_v43  ;;  %v1531_v53 = vunpack.c.l.bf16 %v1515_v30  ;;  %v17145_v56 = vcombine.low %v469_v46, %v479_v50  ;;  %v497_v57 = vor.u32 %v496_v48, %v492_v47 }
  0x27   : > { %14684 = vmatpush3.bf16.msra.mxu0 %v16784_v9  ;;  %v1600_v58 = vrot.slane %v1452_v45, 1  ;;  %v1756_v59 = vunpack.c.l.bf16 %v1740_v36  ;;  %v1601_v61 = vrot.slane %v1453_v52, 1  ;;  %v1794_v63 = vrot.slane %v1453_v52, 2 }
  0x28   : > { %14685 = vmatprep.subr.bf16.mxu0 %v16785_v41  ;;  %v488_v60 = vrot.slane %v487_v51, 4  ;;  %v1603_v62 = vrot.slane %v1531_v53, 1  ;;  %14691 = vmatprep.mubr.bf16.mxu0 %v17145_v56  ;;  %v498_v0 = vrot.slane %v497_v57, 4  ;;  %v1796_v2 = vrot.slane %v1531_v53, 2  ;;  %v13079_v57 = vld [vmem:[%s17090_s16 + $0x30] sm:$0xf] }
  0x29   : > { %v1793_v1 = vrot.slane %v1756_v59, 2  ;;  %v13944_v3 = vunpack.c.l.bf16 %v14013_v54  ;;  %v1602_v5 = vsel %vm1594_vm2, %v1600_v58, %v1601_v61  ;;  %v13945_v7 = vunpack.c.h.bf16 %v14013_v54  ;;  %v13080_v58 = vld [vmem:[%s17090_s16 + $0x34] sm:$0xf] }
  0x2a   : > { %v493_v4 = vsel %vm17122_vm4, %v488_v60, %v492_v47  ;;  %v1604_v6 = vsel %vm1594_vm2, %v1601_v61, %v1603_v62  ;;  %v503_v9 = vsel %vm17122_vm4, %v498_v0, %v502_v49  ;;  %v1709_v10 = vadd.f32 %v1602_v5, %v1452_v45 }
  0x2b   : > { %14686 = vmatpush3.bf16.msra.mxu0 %v16785_v41  ;;  %v1710_v11 = vadd.f32 %v1604_v6, %v1453_v52  ;;  %v1795_v12 = vsel %vm1787_vm3, %v1793_v1, %v1794_v63  ;;  %v17160_v15 = vcombine.low %v493_v4, %v503_v9  ;;  %v1797_v16 = vsel %vm1787_vm3, %v1794_v63, %v1796_v2  ;;  %v13078_v41 = vld [vmem:[%s17090_s16 + $0x2c] sm:$0x1]  ;;  %v13081_v4 = vld [vmem:[%s17090_s16 + $0x38] sm:$0x1] }
  0x2c   : > { %14687 = vmatprep.subr.bf16.mxu0 %v16786_v55  ;;  %v2031_v17 = vunpack.c.l.bf16 %v17102_v18  ;;  %v2032_v20 = vunpack.c.l.bf16 %v17105_v19  ;;  %v1902_v21 = vadd.f32 %v1795_v12, %v1709_v10  ;;  %v2033_v25 = vunpack.c.l.bf16 %v17110_v24  ;;  %v16788_v24 = vld [vmem:[%s20390_s8] sm:$0xff]   ;;  %v16789_v63 = vld [vmem:[%s20390_s8 + $0x8] sm:$0xff]  }
  0x2d   : > { %v1903_v22 = vadd.f32 %v1797_v16, %v1710_v11  ;;  %v2285_v29 = vunpack.c.l.bf16 %v13183_v8  ;;  %v505_v36 = vshrl.u32 %v13076_v13, 16  ;;  %v508_v43 = vshll.u32 %v13076_v13, 16 }
  0x2e   : > { %v2129_v30 = vrot.slane %v2031_v17, 1  ;;  %v2130_v32 = vrot.slane %v2032_v20, 1  ;;  %v2322_v34 = vrot.slane %v2032_v20, 2  ;;  %v1998_v37 = vadd.f32 %v13944_v3, %v1902_v21  ;;  %v16790_v20 = vld [vmem:[%s20390_s8 + $0x10] sm:$0xff]  }
  0x2f   : > { %14688 = vmatpush3.bf16.msra.mxu0 %v16786_v55  ;;  %v1999_v38 = vadd.f32 %v13945_v7, %v1903_v22  ;;  %v2132_v39 = vrot.slane %v2033_v25, 1  ;;  %v2321_v40 = vrot.slane %v2285_v29, 2  ;;  %v2324_v19 = vrot.slane %v2033_v25, 2 }
  0x30   : > { %14689 = vmatprep.subr.bf16.mxu0 %v16787_v14  ;;  %v2131_v18 = vsel %vm1594_vm2, %v2129_v30, %v2130_v32  ;;  %v507_v42 = vrot.slane %v505_v36, 4  ;;  %v514_v47 = vshll.u32 %v13077_v35, 16  ;;  %v510_v50 = vrot.slane %v508_v43, 5  ;;  %v13082_v30 = vld [vmem:[%s17090_s16 + $0x3c] sm:$0xf] }
  0x31   : > { %v2133_v44 = vsel %vm1594_vm2, %v2130_v32, %v2132_v39  ;;  %v17173_v45 = vadd.f32 %v2131_v18, %v1998_v37  ;;  %v17176_v46 = vsel %vm1787_vm3, %v2321_v40, %v2322_v34  ;;  %v2325_v49 = vsel %vm1787_vm3, %v2322_v34, %v2324_v19  ;;  %v13084_v18 = vld [vmem:[%s17090_s16 + $0x44] sm:$0x1] }
  0x32   : > { %v2239_v48 = vadd.f32 %v2133_v44, %v1999_v38  ;;  %v518_v51 = vshrl.u32 %v13077_v35, 16  ;;  %v516_v52 = vrot.slane %v514_v47, 5  ;;  %v524_v53 = vshll.u32 %v13078_v41, 16  ;;  %v16791_v44 = vld [vmem:[%s20390_s8 + $0x18] sm:$0xff]  }
  0x33   : > { %14690 = vmatpush3.bf16.msra.mxu0 %v16787_v14  ;;  %v2034_v54 = vunpack.c.l.bf16 %v13076_v13  ;;  %v2035_v55 = vunpack.c.l.bf16 %v13077_v35  ;;  %v511_v60 = vor.u32 %v510_v50, %v507_v42  ;;  %v2036_v62 = vunpack.c.l.bf16 %v13078_v41  ;;  %v13083_v41 = vld [vmem:[%s17090_s16 + $0x40] sm:$0xf] }
  0x34   : > { %v17181_v59 = vadd.f32 %v2325_v49, %v2239_v48  ;;  %14723 = vmatprep.subr.bf16.mxu0 %v16788_v24  ;;  %v520_v61 = vrot.slane %v518_v51, 4  ;;  %v526_v0 = vrot.slane %v524_v53, 5  ;;  %v529_v9 = vshrl.u32 %v13079_v57, 16 }
  0x35   : > { %v17186_v1 = vrot.slane %v2034_v54, 1  ;;  %v17188_v2 = vrot.slane %v2035_v55, 1  ;;  %v17190_v3 = vrot.slane %v2035_v55, 2  ;;  %v512_v5 = vrot.slane %v511_v60, 4  ;;  %v13085_v55 = vld [vmem:[%s17090_s16 + $0x48] sm:$0xf] }
  0x36   : > { %14692 = vmatmul.mubr.bf16.vlgmr.msra.gmra.mrb[0].mxu0 %v17160_v15  ;;  %v521_v6 = vor.u32 %v520_v61, %v516_v52  ;;  %v17194_v7 = vrot.slane %v2036_v62, 1  ;;  %v17196_v8 = vrot.slane %v2036_v62, 2  ;;  %v532_v10 = vshll.u32 %v13079_v57, 16  ;;  %v13086_v62 = vld [vmem:[%s17090_s16 + $0x4c] sm:$0xf] }
  0x37   : > { %14724 = vmatpush3.bf16.msra.mxu0 %v16788_v24  ;;  %v538_v11 = vshll.u32 %v13080_v58, 16  ;;  %v542_v12 = vshrl.u32 %v13080_v58, 16  ;;  %v517_v13 = vsel %vm17122_vm4, %v512_v5, %v516_v52  ;;  %v548_v16 = vshll.u32 %v13081_v4, 16 }
  0x38   : > { %v522_v14 = vrot.slane %v521_v6, 4  ;;  %v2037_v17 = vunpack.c.l.bf16 %v13079_v57  ;;  %14725 = vmatprep.subr.bf16.mxu0 %v16789_v63  ;;  %v531_v21 = vrot.slane %v529_v9, 4  ;;  %v534_v22 = vrot.slane %v532_v10, 5  ;;  %v16792_v6 = vld [vmem:[%s20390_s8 + $0x20] sm:$0xff]  }
  0x39   : > { %v540_v25 = vrot.slane %v538_v11, 5  ;;  %v544_v29 = vrot.slane %v542_v12, 4  ;;  %v550_v34 = vrot.slane %v548_v16, 5  ;;  %v2038_v35 = vunpack.c.l.bf16 %v13080_v58 }
  0x3a   : > { %v527_v32 = vsel %vm17122_vm4, %v522_v14, %v526_v0  ;;  %v2039_v36 = vunpack.c.l.bf16 %v13081_v4  ;;  %v535_v38 = vor.u32 %v534_v22, %v531_v21  ;;  %v17208_v40 = vrot.slane %v2037_v17, 1  ;;  %v13087_v14 = vld [vmem:[%s17090_s16 + $0x50] sm:$0x1] }
  0x3b   : > { %v17206_v37 = vcombine.low %v517_v13, %v527_v32  ;;  %v545_v39 = vor.u32 %v544_v29, %v540_v25  ;;  %14726 = vmatpush3.bf16.msra.mxu0 %v16789_v63  ;;  %v17212_v19 = vrot.slane %v2038_v35, 1  ;;  %v17216_v42 = vrot.slane %v2038_v35, 2 }
  0x3c   : > { %v17214_v24 = vrot.slane %v2039_v36, 1  ;;  %v17218_v43 = vrot.slane %v2039_v36, 2  ;;  %14727 = vmatprep.subr.bf16.mxu0 %v16790_v20  ;;  %v536_v47 = vrot.slane %v535_v38, 4  ;;  %v553_v49 = vshrl.u32 %v13082_v30, 16  ;;  %v13088_v36 = vld [vmem:[%s17090_s16 + $0x54] sm:$0xf] }
  0x3d   : > { %14695 = vmatprep.mubr.bf16.mxu0 %v17206_v37  ;;  %v546_v48 = vrot.slane %v545_v39, 4  ;;  %v556_v50 = vshll.u32 %v13082_v30, 16  ;;  %v562_v51 = vshll.u32 %v13083_v41, 16  ;;  %v566_v52 = vshrl.u32 %v13083_v41, 16  ;;  %v16793_v38 = vld [vmem:[%s20390_s8 + $0x28] sm:$0xff]  }
  0x3e   : > { %v572_v53 = vshll.u32 %v13084_v18, 16  ;;  %v2040_v54 = vunpack.c.l.bf16 %v13082_v30  ;;  %v541_v57 = vsel %vm17122_vm4, %v536_v47, %v540_v25  ;;  %v555_v60 = vrot.slane %v553_v49, 4 }
  0x3f   : > { %v551_v58 = vsel %vm17122_vm4, %v546_v48, %v550_v34  ;;  %v558_v61 = vrot.slane %v556_v50, 5  ;;  %14728 = vmatpush3.bf16.msra.mxu0 %v16790_v20  ;;  %v564_v0 = vrot.slane %v562_v51, 5  ;;  %v568_v4 = vrot.slane %v566_v52, 4  ;;  %v13089_v48 = vld [vmem:[%s17090_s16 + $0x58] sm:$0xf] }
  0x40   : > { %v17230_v63 = vcombine.low %v541_v57, %v551_v58  ;;  %v574_v5 = vrot.slane %v572_v53, 5  ;;  %14729 = vmatprep.subr.bf16.mxu0 %v16791_v44  ;;  %v2041_v10 = vunpack.c.l.bf16 %v13083_v41  ;;  %v2042_v11 = vunpack.c.l.bf16 %v13084_v18  ;;  %v13090_v52 = vld [vmem:[%s17090_s16 + $0x5c] sm:$0x1]  ;;  %v16794_v53 = vld [vmem:[%s20390_s8 + $0x30] sm:$0xff]  }
  0x41   : > { %v559_v9 = vor.u32 %v558_v61, %v555_v60  ;;  %v17235_v12 = vrot.slane %v2040_v54, 1  ;;  %v569_v13 = vor.u32 %v568_v4, %v564_v0  ;;  %v577_v16 = vshrl.u32 %v13085_v55, 16 }
  0x42   : > { %14696 = vmatmul.mubr.bf16.gmra.mrb[4].mxu0 %v17230_v63  ;;  %v580_v17 = vshll.u32 %v13085_v55, 16  ;;  %v586_v20 = vshll.u32 %v13086_v62, 16  ;;  %v17239_v22 = vrot.slane %v2041_v10, 1  ;;  %v17241_v25 = vrot.slane %v2042_v11, 1 }
  0x43   : > { %v560_v21 = vrot.slane %v559_v9, 4  ;;  %v17243_v29 = vrot.slane %v2041_v10, 2  ;;  %14730 = vmatpush3.bf16.msra.mxu0 %v16791_v44  ;;  %v570_v30 = vrot.slane %v569_v13, 4  ;;  %v17245_v32 = vrot.slane %v2042_v11, 2 }
  0x44   : > { %v579_v34 = vrot.slane %v577_v16, 4  ;;  %v582_v35 = vrot.slane %v580_v17, 5  ;;  %14731 = vmatprep.subr.bf16.mxu0 %v16792_v6  ;;  %v588_v41 = vrot.slane %v586_v20, 5  ;;  %v590_v18 = vshrl.u32 %v13086_v62, 16  ;;  %v13091_v16 = vld [vmem:[%s17090_s16 + $0x60] sm:$0xf] }
  0x45   : > { %v565_v39 = vsel %vm17122_vm4, %v560_v21, %v564_v0  ;;  %v596_v47 = vshll.u32 %v13087_v14, 16  ;;  %v575_v44 = vsel %vm17122_vm4, %v570_v30, %v574_v5  ;;  %v2043_v50 = vunpack.c.l.bf16 %v13085_v55 }
  0x46   : > { %v583_v49 = vor.u32 %v582_v35, %v579_v34  ;;  %v2044_v51 = vunpack.c.l.bf16 %v13086_v62  ;;  %v17260_v54 = vcombine.low %v565_v39, %v575_v44  ;;  %v592_v57 = vrot.slane %v590_v18, 4  ;;  %v13092_v34 = vld [vmem:[%s17090_s16 + $0x64] sm:$0xf]  ;;  %v13093_v44 = vld [vmem:[%s17090_s16 + $0x68] sm:$0x1] }
  0x47   : > { %v598_v58 = vrot.slane %v596_v47, 5  ;;  %v2045_v60 = vunpack.c.l.bf16 %v13087_v14  ;;  %14732 = vmatpush3.bf16.msra.mxu0 %v16792_v6  ;;  %v17262_v0 = vrot.slane %v2043_v50, 1  ;;  %v601_v10 = vshrl.u32 %v13088_v36, 16 }
  0x48   : > { %v584_v61 = vrot.slane %v583_v49, 4  ;;  %v17264_v4 = vrot.slane %v2044_v51, 1  ;;  %v17266_v5 = vrot.slane %v2044_v51, 2  ;;  %14733 = vmatprep.subr.bf16.mxu0 %v16793_v38  ;;  %14699 = vmatprep.mubr.bf16.mxu0 %v17260_v54  ;;  %v593_v55 = vor.u32 %v592_v57, %v588_v41 }
  0x49   : > { %20422 = vst [vmem:[#allocation8_spill] sm:$0xff] %v17262_v0  ;;  %v17269_v62 = vrot.slane %v2045_v60, 1  ;;  %v17271_v9 = vrot.slane %v2045_v60, 2  ;;  %v604_v11 = vshll.u32 %v13088_v36, 16  ;;  %v610_v13 = vshll.u32 %v13089_v48, 16 }
  0x4a   : > { %20423 = vst [vmem:[#allocation9_spill] sm:$0xff] %v17264_v4  ;;  %20424 = vst [vmem:[#allocation10_spill] sm:$0xff] %v17266_v5  ;;  %v589_v6 = vsel %vm17122_vm4, %v584_v61, %v588_v41  ;;  %v614_v14 = vshrl.u32 %v13089_v48, 16  ;;  %v594_v17 = vrot.slane %v593_v55, 4  ;;  %v603_v20 = vrot.slane %v601_v10, 4  ;;  %v16795_v41 = vld [vmem:[%s20390_s8 + $0x38] sm:$0xff]  }
  0x4b   : > { %20425 = vst [vmem:[#allocation11_spill] sm:$0xff] %v17269_v62  ;;  %20426 = vst [vmem:[#allocation12_spill] sm:$0xff] %v17271_v9  ;;  %v620_v21 = vshll.u32 %v13090_v52, 16  ;;  %v2046_v30 = vunpack.c.l.bf16 %v13088_v36  ;;  %14734 = vmatpush3.bf16.msra.mxu0 %v16793_v38  ;;  %v606_v35 = vrot.slane %v604_v11, 5  ;;  %v612_v39 = vrot.slane %v610_v13, 5 }
  0x4c   : > { %v616_v18 = vrot.slane %v614_v14, 4  ;;  %v2047_v47 = vunpack.c.l.bf16 %v13089_v48  ;;  %14735 = vmatprep.subr.bf16.mxu0 %v16794_v53  ;;  %v599_v49 = vsel %vm17122_vm4, %v594_v17, %v598_v58  ;;  %v2048_v51 = vunpack.c.l.bf16 %v13090_v52  ;;  %v17292_v48 = vld [vmem:[%s20389_s7] sm:$0xff]   ;;  %v13094_v11 = vld [vmem:[%s17090_s16 + $0x6c] sm:$0xf]  ;;  %v13114_v0 = vld [vmem:[%s17090_s16 + $0xbc] sm:$0x1] }
  0x4d   : > { %v622_v50 = vrot.slane %v620_v21, 5  ;;  %v17283_v57 = vrot.slane %v2046_v30, 1  ;;  %v17285_v36 = vcombine.low %v589_v6, %v599_v49  ;;  %v607_v38 = vor.u32 %v606_v35, %v603_v20 }
  0x4e   : > { %v617_v60 = vor.u32 %v616_v18, %v612_v39  ;;  %v17287_v61 = vrot.slane %v2047_v47, 1  ;;  %v17294_v55 = vrot.slane %v2048_v51, 1  ;;  %v17296_v10 = vrot.slane %v2047_v47, 2 }
  0x4f   : > { %20427 = vst [vmem:[#allocation13_spill] sm:$0xff] %v17283_v57  ;;  %v17298_v58 = vrot.slane %v2048_v51, 2  ;;  %v625_v52 = vshrl.u32 %v13091_v16, 16  ;;  %14736 = vmatpush3.bf16.msra.mxu0 %v16794_v53  ;;  %v608_v6 = vrot.slane %v607_v38, 4  ;;  %v628_v14 = vshll.u32 %v13091_v16, 16 }
  0x50   : > { %20428 = vst [vmem:[#allocation14_spill] sm:$0xff] %v17287_v61  ;;  %20429 = vst [vmem:[#allocation15_spill] sm:$0xff] %v17294_v55  ;;  %14700 = vmatmul.mubr.bf16.gmra.mrb[8].mxu0 %v17285_v36  ;;  %v618_v13 = vrot.slane %v617_v60, 4  ;;  %v634_v17 = vshll.u32 %v13092_v34, 16  ;;  %14737 = vmatprep.subr.bf16.mxu0 %v16795_v41  ;;  %v638_v21 = vshrl.u32 %v13092_v34, 16  ;;  %v644_v30 = vshll.u32 %v13093_v44, 16 }
  0x51   : > { %20430 = vst [vmem:[#allocation16_spill] sm:$0xff] %v17296_v10  ;;  %20431 = vst [vmem:[#allocation17_spill] sm:$0xff] %v17298_v58  ;;  %v627_v20 = vrot.slane %v625_v52, 4  ;;  %v2049_v35 = vunpack.c.l.bf16 %v13091_v16  ;;  %v613_v18 = vsel %vm17122_vm4, %v608_v6, %v612_v39  ;;  %v630_v49 = vrot.slane %v628_v14, 5  ;;  %v13095_v16 = vld [vmem:[%s17090_s16 + $0x70] sm:$0xf] }
  0x52   : > { %v623_v47 = vsel %vm17122_vm4, %v618_v13, %v622_v50  ;;  %v636_v53 = vrot.slane %v634_v17, 5  ;;  %v640_v38 = vrot.slane %v638_v21, 4  ;;  %v646_v60 = vrot.slane %v644_v30, 5  ;;  %v13096_v13 = vld [vmem:[%s17090_s16 + $0x74] sm:$0x1] }
  0x53   : > { %v17306_v51 = vcombine.low %v613_v18, %v623_v47  ;;  %v2050_v10 = vunpack.c.l.bf16 %v13092_v34  ;;  %14738 = vmatpush3.bf16.msra.mxu0 %v16795_v41  ;;  %v631_v52 = vor.u32 %v630_v49, %v627_v20  ;;  %v2051_v58 = vunpack.c.l.bf16 %v13093_v44 }
  0x54   : > { %v17308_v55 = vrot.slane %v2049_v35, 1  ;;  %v649_v57 = vshrl.u32 %v13094_v11, 16  ;;  %14771 = vmatprep.subr.bf16.mxu0 %v17292_v48  ;;  %v641_v39 = vor.u32 %v640_v38, %v636_v53  ;;  %v652_v14 = vshll.u32 %v13094_v11, 16 }
  0x55   : > { %14703 = vmatprep.mubr.bf16.mxu0 %v17306_v51  ;;  %v17313_v50 = vrot.slane %v2050_v10, 1  ;;  %v17315_v6 = vrot.slane %v2050_v10, 2  ;;  %v632_v17 = vrot.slane %v631_v52, 4  ;;  %v17318_v34 = vrot.slane %v2051_v58, 1 }
  0x56   : > { %20432 = vst [vmem:[#allocation18_spill] sm:$0xff] %v17308_v55  ;;  %v17320_v44 = vrot.slane %v2051_v58, 2  ;;  %v651_v41 = vrot.slane %v649_v57, 4  ;;  %v642_v20 = vrot.slane %v641_v39, 4  ;;  %v654_v21 = vrot.slane %v652_v14, 5 }
  0x57   : > { %20433 = vst [vmem:[#allocation19_spill] sm:$0xff] %v17313_v50  ;;  %20434 = vst [vmem:[#allocation20_spill] sm:$0xff] %v17315_v6  ;;  %v658_v30 = vshll.u32 %v13095_v16, 16  ;;  %v662_v35 = vshrl.u32 %v13095_v16, 16  ;;  %v637_v18 = vsel %vm17122_vm4, %v632_v17, %v636_v53  ;;  %v668_v47 = vshll.u32 %v13096_v13, 16 }
  0x58   : > { %20435 = vst [vmem:[#allocation21_spill] sm:$0xff] %v17318_v34  ;;  %20436 = vst [vmem:[#allocation22_spill] sm:$0xff] %v17320_v44  ;;  %v2052_v10 = vunpack.c.l.bf16 %v13094_v11  ;;  %v2053_v49 = vunpack.c.l.bf16 %v13095_v16  ;;  %v647_v38 = vsel %vm17122_vm4, %v642_v20, %v646_v60  ;;  %v655_v52 = vor.u32 %v654_v21, %v651_v41  ;;  %v13097_v44 = vld [vmem:[%s17090_s16 + $0x78] sm:$0xf]  ;;  %v13098_v55 = vld [vmem:[%s17090_s16 + $0x7c] sm:$0xf] }
  0x59   : > { %v660_v6 = vrot.slane %v658_v30, 5  ;;  %v664_v58 = vrot.slane %v662_v35, 4  ;;  %v17327_v57 = vcombine.low %v637_v18, %v647_v38  ;;  %v670_v39 = vrot.slane %v668_v47, 5  ;;  %v13099_v16 = vld [vmem:[%s17090_s16 + $0x80] sm:$0x1] }
  0x5a   : > { %v2054_v14 = vunpack.c.l.bf16 %v13096_v13  ;;  %v17329_v34 = vrot.slane %v2052_v10, 1  ;;  %v656_v50 = vrot.slane %v655_v52, 4  ;;  %v17332_v17 = vrot.slane %v2053_v49, 1 }
  0x5b   : > { %v665_v53 = vor.u32 %v664_v58, %v660_v6  ;;  %v17334_v11 = vrot.slane %v2053_v49, 2  ;;  %14704 = vmatmul.mubr.bf16.gmra.mrb[12].mxu0 %v17327_v57  ;;  %v673_v20 = vshrl.u32 %v13097_v44, 16  ;;  %v676_v21 = vshll.u32 %v13097_v44, 16 }
  0x5c   : > { %20437 = vst [vmem:[#allocation23_spill] sm:$0xff] %v17329_v34  ;;  %20438 = vst [vmem:[#allocation24_spill] sm:$0xff] %v17332_v17  ;;  %v17338_v60 = vrot.slane %v2054_v14, 1  ;;  %v17340_v41 = vrot.slane %v2054_v14, 2  ;;  %v661_v13 = vsel %vm17122_vm4, %v656_v50, %v660_v6  ;;  %v682_v35 = vshll.u32 %v13098_v55, 16 }
  0x5d   : > { %20439 = vst [vmem:[#allocation25_spill] sm:$0xff] %v17334_v11  ;;  %v666_v30 = vrot.slane %v665_v53, 4  ;;  %v686_v18 = vshrl.u32 %v13098_v55, 16  ;;  %v675_v47 = vrot.slane %v673_v20, 4  ;;  %v678_v10 = vrot.slane %v676_v21, 5 }
  0x5e   : > { %20440 = vst [vmem:[#allocation26_spill] sm:$0xff] %v17338_v60  ;;  %20441 = vst [vmem:[#allocation27_spill] sm:$0xff] %v17340_v41  ;;  %v692_v49 = vshll.u32 %v13099_v16, 16  ;;  %v2055_v38 = vunpack.c.l.bf16 %v13097_v44  ;;  %v684_v58 = vrot.slane %v682_v35, 5  ;;  %v2056_v11 = vunpack.c.l.bf16 %v13098_v55  ;;  %v13100_v41 = vld [vmem:[%s17090_s16 + $0x84] sm:$0xf] }
  0x5f   : > { %v671_v52 = vsel %vm17122_vm4, %v666_v30, %v670_v39  ;;  %v688_v14 = vrot.slane %v686_v18, 4  ;;  %v679_v34 = vor.u32 %v678_v10, %v675_v47  ;;  %v2057_v6 = vunpack.c.l.bf16 %v13099_v16  ;;  %v13101_v53 = vld [vmem:[%s17090_s16 + $0x88] sm:$0xf]  ;;  %v13102_v21 = vld [vmem:[%s17090_s16 + $0x8c] sm:$0x1] }
  0x60   : > { %v17347_v60 = vcombine.low %v661_v13, %v671_v52  ;;  %v694_v50 = vrot.slane %v692_v49, 5  ;;  %v17350_v61 = vrot.slane %v2055_v38, 1  ;;  %v17352_v20 = vrot.slane %v2056_v11, 1  ;;  %v13103_v52 = vld [vmem:[%s17090_s16 + $0x90] sm:$0xf] }
  0x61   : > { %v689_v17 = vor.u32 %v688_v14, %v684_v58  ;;  %v17354_v44 = vrot.slane %v2056_v11, 2  ;;  %v680_v39 = vrot.slane %v679_v34, 4  ;;  %v17358_v55 = vrot.slane %v2057_v6, 1 }
  0x62   : > { %20442 = vst [vmem:[#allocation28_spill] sm:$0xff] %v17350_v61  ;;  %20443 = vst [vmem:[#allocation29_spill] sm:$0xff] %v17352_v20  ;;  %14707 = vmatprep.mubr.bf16.mxu0 %v17347_v60  ;;  %v17360_v13 = vrot.slane %v2057_v6, 2  ;;  %v697_v30 = vshrl.u32 %v13100_v41, 16  ;;  %v700_v16 = vshll.u32 %v13100_v41, 16  ;;  %v706_v18 = vshll.u32 %v13101_v53, 16 }
  0x63   : > { %20444 = vst [vmem:[#allocation30_spill] sm:$0xff] %v17354_v44  ;;  %20445 = vst [vmem:[#allocation31_spill] sm:$0xff] %v17358_v55  ;;  %v690_v35 = vrot.slane %v689_v17, 4  ;;  %v710_v47 = vshrl.u32 %v13101_v53, 16  ;;  %v685_v10 = vsel %vm17122_vm4, %v680_v39, %v684_v58  ;;  %v716_v11 = vshll.u32 %v13102_v21, 16 }
  0x64   : > { %20446 = vst [vmem:[#allocation32_spill] sm:$0xff] %v17360_v13  ;;  %v699_v49 = vrot.slane %v697_v30, 4  ;;  %v2058_v38 = vunpack.c.l.bf16 %v13100_v41  ;;  %v702_v14 = vrot.slane %v700_v16, 5  ;;  %v708_v6 = vrot.slane %v706_v18, 5  ;;  %v13104_v20 = vld [vmem:[%s17090_s16 + $0x94] sm:$0xf] }
  0x65   : > { %v695_v34 = vsel %vm17122_vm4, %v690_v35, %v694_v50  ;;  %v712_v44 = vrot.slane %v710_v47, 4  ;;  %v718_v17 = vrot.slane %v716_v11, 5  ;;  %v2059_v55 = vunpack.c.l.bf16 %v13101_v53  ;;  %v13105_v39 = vld [vmem:[%s17090_s16 + $0x98] sm:$0x1] }
  0x66   : > { %v17367_v13 = vcombine.low %v685_v10, %v695_v34  ;;  %v2060_v61 = vunpack.c.l.bf16 %v13102_v21  ;;  %v703_v5 = vor.u32 %v702_v14, %v699_v49  ;;  %v17370_v58 = vrot.slane %v2058_v38, 1 }
  0x67   : > { %v713_v9 = vor.u32 %v712_v44, %v708_v6  ;;  %v721_v30 = vshrl.u32 %v13103_v52, 16  ;;  %v17374_v41 = vrot.slane %v2059_v55, 1  ;;  %v17378_v35 = vrot.slane %v2059_v55, 2 }
  0x68   : > { %20447 = vst [vmem:[#allocation33_spill] sm:$0xff] %v17370_v58  ;;  %14708 = vmatmul.mubr.bf16.gmra.mrb[16].mxu0 %v17367_v13  ;;  %v17376_v50 = vrot.slane %v2060_v61, 1  ;;  %v17380_v16 = vrot.slane %v2060_v61, 2  ;;  %v704_v53 = vrot.slane %v703_v5, 4  ;;  %v724_v44 = vshll.u32 %v13103_v52, 16 }
  0x69   : > { %20448 = vst [vmem:[#allocation34_spill] sm:$0xff] %v17374_v41  ;;  %20450 = vst [vmem:[#allocation36_spill] sm:$0xff] %v17378_v35  ;;  %v714_v21 = vrot.slane %v713_v9, 4  ;;  %v723_v18 = vrot.slane %v721_v30, 4  ;;  %v730_v47 = vshll.u32 %v13104_v20, 16  ;;  %v734_v10 = vshrl.u32 %v13104_v20, 16 }
  0x6a   : > { %20449 = vst [vmem:[#allocation35_spill] sm:$0xff] %v17376_v50  ;;  %20451 = vst [vmem:[#allocation37_spill] sm:$0xff] %v17380_v16  ;;  %v740_v49 = vshll.u32 %v13105_v39, 16  ;;  %v2061_v11 = vunpack.c.l.bf16 %v13103_v52  ;;  %v709_v38 = vsel %vm17122_vm4, %v704_v53, %v708_v6  ;;  %v726_v55 = vrot.slane %v724_v44, 5  ;;  %v13106_v61 = vld [vmem:[%s17090_s16 + $0x9c] sm:$0xf] }
  0x6b   : > { %v719_v34 = vsel %vm17122_vm4, %v714_v21, %v718_v17  ;;  %v2062_v14 = vunpack.c.l.bf16 %v13104_v20  ;;  %v732_v5 = vrot.slane %v730_v47, 5  ;;  %v736_v9 = vrot.slane %v734_v10, 4  ;;  %v13107_v16 = vld [vmem:[%s17090_s16 + $0xa0] sm:$0xf]  ;;  %v13108_v53 = vld [vmem:[%s17090_s16 + $0xa4] sm:$0x1] }
  0x6c   : > { %v17387_v35 = vcombine.low %v709_v38, %v719_v34  ;;  %v742_v30 = vrot.slane %v740_v49, 5  ;;  %v727_v50 = vor.u32 %v726_v55, %v723_v18  ;;  %v2063_v58 = vunpack.c.l.bf16 %v13105_v39 }
  0x6d   : > { %v17390_v41 = vrot.slane %v2061_v11, 1  ;;  %v17392_v52 = vrot.slane %v2062_v14, 1  ;;  %v737_v6 = vor.u32 %v736_v9, %v732_v5  ;;  %v17395_v17 = vrot.slane %v2062_v14, 2 }
  0x6e   : > { %14711 = vmatprep.mubr.bf16.mxu0 %v17387_v35  ;;  %v745_v20 = vshrl.u32 %v13106_v61, 16  ;;  %v748_v21 = vshll.u32 %v13106_v61, 16  ;;  %v728_v44 = vrot.slane %v727_v50, 4  ;;  %v17398_v47 = vrot.slane %v2063_v58, 1 }
  0x6f   : > { %20452 = vst [vmem:[#allocation38_spill] sm:$0xff] %v17390_v41  ;;  %20453 = vst [vmem:[#allocation39_spill] sm:$0xff] %v17392_v52  ;;  %v17400_v10 = vrot.slane %v2063_v58, 2  ;;  %v754_v18 = vshll.u32 %v13107_v16, 16  ;;  %v738_v39 = vrot.slane %v737_v6, 4  ;;  %v758_v38 = vshrl.u32 %v13107_v16, 16 }
  0x70   : > { %20454 = vst [vmem:[#allocation40_spill] sm:$0xff] %v17395_v17  ;;  %20455 = vst [vmem:[#allocation41_spill] sm:$0xff] %v17398_v47  ;;  %v747_v49 = vrot.slane %v745_v20, 4  ;;  %v750_v11 = vrot.slane %v748_v21, 5  ;;  %v733_v34 = vsel %vm17122_vm4, %v728_v44, %v732_v5  ;;  %v764_v14 = vshll.u32 %v13108_v53, 16 }
  0x71   : > { %20456 = vst [vmem:[#allocation42_spill] sm:$0xff] %v17400_v10  ;;  %v756_v55 = vrot.slane %v754_v18, 5  ;;  %v2064_v9 = vunpack.c.l.bf16 %v13106_v61  ;;  %v743_v50 = vsel %vm17122_vm4, %v738_v39, %v742_v30  ;;  %v760_v47 = vrot.slane %v758_v38, 4  ;;  %v13109_v10 = vld [vmem:[%s17090_s16 + $0xa8] sm:$0xf] }
  0x72   : > { %v751_v17 = vor.u32 %v750_v11, %v747_v49  ;;  %v2065_v58 = vunpack.c.l.bf16 %v13107_v16  ;;  %v17407_v41 = vcombine.low %v733_v34, %v743_v50  ;;  %v766_v6 = vrot.slane %v764_v14, 5  ;;  %v13110_v52 = vld [vmem:[%s17090_s16 + $0xac] sm:$0xf]  ;;  %v13111_v18 = vld [vmem:[%s17090_s16 + $0xb0] sm:$0x1] }
  0x73   : > { %v2066_v20 = vunpack.c.l.bf16 %v13108_v53  ;;  %v17409_v21 = vrot.slane %v2064_v9, 1  ;;  %v761_v5 = vor.u32 %v760_v47, %v756_v55  ;;  %v769_v39 = vshrl.u32 %v13109_v10, 16  ;;  %v13112_v50 = vld [vmem:[%s17090_s16 + $0xb4] sm:$0xf] }
  0x74   : > { %v752_v62 = vrot.slane %v751_v17, 4  ;;  %v17412_v44 = vrot.slane %v2065_v58, 1  ;;  %v17414_v61 = vrot.slane %v2065_v58, 2  ;;  %14712 = vmatmul.mubr.bf16.gmra.mrb[20].mxu0 %v17407_v41  ;;  %v772_v49 = vshll.u32 %v13109_v10, 16 }
  0x75   : > { %20457 = vst [vmem:[#allocation43_spill] sm:$0xff] %v17409_v21  ;;  %v17418_v30 = vrot.slane %v2066_v20, 1  ;;  %v17420_v16 = vrot.slane %v2066_v20, 2  ;;  %v762_v11 = vrot.slane %v761_v5, 4  ;;  %v778_v17 = vshll.u32 %v13110_v52, 16 }
  0x76   : > { %20458 = vst [vmem:[#allocation44_spill] sm:$0xff] %v17412_v44  ;;  %20459 = vst [vmem:[#allocation45_spill] sm:$0xff] %v17414_v61  ;;  %v757_v53 = vsel %vm17122_vm4, %v752_v62, %v756_v55  ;;  %v782_v47 = vshrl.u32 %v13110_v52, 16  ;;  %v771_v38 = vrot.slane %v769_v39, 4  ;;  %v774_v34 = vrot.slane %v772_v49, 5 }
  0x77   : > { %20460 = vst [vmem:[#allocation46_spill] sm:$0xff] %v17418_v30  ;;  %20461 = vst [vmem:[#allocation47_spill] sm:$0xff] %v17420_v16  ;;  %v788_v14 = vshll.u32 %v13111_v18, 16  ;;  %v2067_v9 = vunpack.c.l.bf16 %v13109_v10  ;;  %v767_v58 = vsel %vm17122_vm4, %v762_v11, %v766_v6  ;;  %v780_v20 = vrot.slane %v778_v17, 5  ;;  %v13113_v21 = vld [vmem:[%s17090_s16 + $0xb8] sm:$0xf] }
  0x78   : > { %v784_v61 = vrot.slane %v782_v47, 4  ;;  %v2068_v16 = vunpack.c.l.bf16 %v13110_v52  ;;  %v17427_v30 = vcombine.low %v757_v53, %v767_v58  ;;  %v775_v62 = vor.u32 %v774_v34, %v771_v38  ;;  %v13115_v17 = vld [vmem:[%s17090_s16 + $0xc0] sm:$0xf] }
  0x79   : > { %v790_v55 = vrot.slane %v788_v14, 5  ;;  %v2069_v5 = vunpack.c.l.bf16 %v13111_v18  ;;  %v17430_v39 = vrot.slane %v2067_v9, 1  ;;  %v793_v53 = vshrl.u32 %v13112_v50, 16 }
  0x7a   : > { %20462 = vst [vmem:[#allocation48_spill] sm:$0xff] %v17427_v30  ;;  %v785_v44 = vor.u32 %v784_v61, %v780_v20  ;;  %v17432_v49 = vrot.slane %v2068_v16, 1  ;;  %v17434_v10 = vrot.slane %v2068_v16, 2  ;;  %14715 = vmatprep.mubr.bf16.mxu0 %v17427_v30  ;;  %v776_v6 = vrot.slane %v775_v62, 4 }
  0x7b   : > { %20463 = vst [vmem:[#allocation49_spill] sm:$0xff] %v17430_v39  ;;  %v17438_v11 = vrot.slane %v2069_v5, 1  ;;  %v17440_v52 = vrot.slane %v2069_v5, 2  ;;  %v796_v18 = vshll.u32 %v13112_v50, 16  ;;  %v802_v38 = vshll.u32 %v13113_v21, 16 }
  0x7c   : > { %20464 = vst [vmem:[#allocation50_spill] sm:$0xff] %v17432_v49  ;;  %20465 = vst [vmem:[#allocation51_spill] sm:$0xff] %v17434_v10  ;;  %v786_v47 = vrot.slane %v785_v44, 4  ;;  %v806_v61 = vshrl.u32 %v13113_v21, 16  ;;  %v781_v34 = vsel %vm17122_vm4, %v776_v6, %v780_v20  ;;  %v795_v16 = vrot.slane %v793_v53, 4 }
  0x7d   : > { %20466 = vst [vmem:[#allocation52_spill] sm:$0xff] %v17438_v11  ;;  %20467 = vst [vmem:[#allocation53_spill] sm:$0xff] %v17440_v52  ;;  %v812_v14 = vshll.u32 %v13114_v0, 16  ;;  %v2070_v9 = vunpack.c.l.bf16 %v13112_v50  ;;  %v798_v62 = vrot.slane %v796_v18, 5  ;;  %v804_v5 = vrot.slane %v802_v38, 5 }
  0x7e   : > { %v791_v58 = vsel %vm17122_vm4, %v786_v47, %v790_v55  ;;  %v808_v10 = vrot.slane %v806_v61, 4  ;;  %v2071_v11 = vunpack.c.l.bf16 %v13113_v21  ;;  %v2072_v39 = vunpack.c.l.bf16 %v13114_v0  ;;  %v13116_v20 = vld [vmem:[%s17090_s16 + $0xc4] sm:$0xf]  ;;  %v13117_v6 = vld [vmem:[%s17090_s16 + $0xc8] sm:$0x1] }
  0x7f   : > { %v17447_v52 = vcombine.low %v781_v34, %v791_v58  ;;  %v814_v44 = vrot.slane %v812_v14, 5  ;;  %v799_v49 = vor.u32 %v798_v62, %v795_v16  ;;  %v17449_v30 = vrot.slane %v2070_v9, 1  ;;  %v1514_v9 = vld [vmem:[%s17090_s16 + $0x8] sm:$0x1] }
  0x80   : > { %v809_v4 = vor.u32 %v808_v10, %v804_v5  ;;  %v817_v53 = vshrl.u32 %v13115_v17, 16  ;;  %v17454_v50 = vrot.slane %v2071_v11, 1  ;;  %v17456_v55 = vrot.slane %v2072_v39, 1 }
  0x81   : > { %20468 = vst [vmem:[#allocation54_spill] sm:$0xff] %v17447_v52  ;;  %20469 = vst [vmem:[#allocation55_spill] sm:$0xff] %v17449_v30  ;;  %14716 = vmatmul.mubr.bf16.gmra.mrb[24].mxu0 %v17447_v52  ;;  %v17458_v47 = vrot.slane %v2071_v11, 2  ;;  %v17460_v18 = vrot.slane %v2072_v39, 2  ;;  %v800_v0 = vrot.slane %v799_v49, 4  ;;  %v820_v38 = vshll.u32 %v13115_v17, 16 }
  0x82   : > { %20470 = vst [vmem:[#allocation56_spill] sm:$0xff] %v17454_v50  ;;  %20471 = vst [vmem:[#allocation57_spill] sm:$0xff] %v17456_v55  ;;  %v810_v21 = vrot.slane %v809_v4, 4  ;;  %v819_v10 = vrot.slane %v817_v53, 4  ;;  %v826_v61 = vshll.u32 %v13116_v20, 16  ;;  %v830_v34 = vshrl.u32 %v13116_v20, 16 }
  0x83   : > { %20472 = vst [vmem:[#allocation58_spill] sm:$0xff] %v17458_v47  ;;  %20473 = vst [vmem:[#allocation59_spill] sm:$0xff] %v17460_v18  ;;  %v836_v16 = vshll.u32 %v13117_v6, 16  ;;  %v2073_v14 = vunpack.c.l.bf16 %v13115_v17  ;;  %v805_v58 = vsel %vm17122_vm4, %v800_v0, %v804_v5  ;;  %v822_v11 = vrot.slane %v820_v38, 5  ;;  %v13911_v39 = vld [vmem:[%s17090_s16] sm:$0xff]  }
  0x84   : > { %v815_v62 = vsel %vm17122_vm4, %v810_v21, %v814_v44  ;;  %v2074_v47 = vunpack.c.l.bf16 %v13116_v20  ;;  %v828_v4 = vrot.slane %v826_v61, 5  ;;  %v832_v49 = vrot.slane %v830_v34, 4  ;;  %v1739_v52 = vld [vmem:[%s17090_s16] sm:$0xe] }
  0x85   : > { %v17468_v18 = vcombine.low %v805_v58, %v815_v62  ;;  %v838_v53 = vrot.slane %v836_v16, 5  ;;  %v823_v55 = vor.u32 %v822_v11, %v819_v10  ;;  %v2075_v30 = vunpack.c.l.bf16 %v13117_v6  ;;  %v13150_v10 = vld [vmem:[%s17090_s16 + $0xc] sm:$0xff]  }
  0x86   : > { %v17470_v50 = vrot.slane %v2073_v14, 1  ;;  %v17472_v17 = vrot.slane %v2074_v47, 1  ;;  %v833_v5 = vor.u32 %v832_v49, %v828_v4  ;;  %v17476_v44 = vrot.slane %v2074_v47, 2 }
  0x87   : > { %14719 = vmatprep.mubr.bf16.mxu0 %v17468_v18  ;;  %v13912_v20 = vunpack.c.l.bf16 %v13911_v39  ;;  %v13913_v0 = vunpack.c.h.bf16 %v13911_v39  ;;  %v824_v21 = vrot.slane %v823_v55, 4  ;;  %v17478_v38 = vrot.slane %v2075_v30, 1 }
  0x88   : > { %20474 = vst [vmem:[#allocation60_spill] sm:$0xff] %v17470_v50  ;;  %20475 = vst [vmem:[#allocation61_spill] sm:$0xff] %v17472_v17  ;;  %v17480_v61 = vrot.slane %v2075_v30, 2  ;;  %v1530_v6 = vunpack.c.l.bf16 %v1514_v9  ;;  %v834_v34 = vrot.slane %v833_v5, 4  ;;  %v1755_v58 = vunpack.c.l.bf16 %v1739_v52  ;;  %v14021_v5 = vld [vmem:[%s17090_s16 + $0x18] sm:$0xff]  }
  0x89   : > { %20476 = vst [vmem:[#allocation62_spill] sm:$0xff] %v17476_v44  ;;  %20477 = vst [vmem:[#allocation63_spill] sm:$0xff] %v17478_v38  ;;  %v1595_v16 = vrot.slane %v13912_v20, 1  ;;  %v1596_v14 = vrot.slane %v13913_v0, 1  ;;  %v829_v47 = vsel %vm17122_vm4, %v824_v21, %v828_v4  ;;  %v1789_v11 = vrot.slane %v13913_v0, 2 }
  0x8a   : > { %20478 = vst [vmem:[#allocation64_spill] sm:$0xff] %v17480_v61  ;;  %v1598_v62 = vrot.slane %v1530_v6, 1  ;;  %v1791_v55 = vrot.slane %v1530_v6, 2  ;;  %v839_v39 = vsel %vm17122_vm4, %v834_v34, %v838_v53  ;;  %v1788_v49 = vrot.slane %v1755_v58, 2  ;;  %v13182_v44 = vld [vmem:[%s17090_s16 + $0xc] sm:$0xe] }
  0x8b   : > { %v1597_v30 = vsel %vm1594_vm2, %v1595_v16, %v1596_v14  ;;  %v1964_v9 = vunpack.c.l.bf16 %v13150_v10  ;;  %v17490_v61 = vcombine.low %v829_v47, %v839_v39  ;;  %v13230_v4 = vld [vmem:[%s17090_s16 + $0x20] sm:$0x1]  ;;  %v13246_v21 = vld [vmem:[%s17090_s16 + $0x18] sm:$0xe]  ;;  %v1965_v31 = vunpack.c.h.bf16 %v13150_v10 }
  0x8c   : > { %v1599_v52 = vsel %vm1594_vm2, %v1596_v14, %v1598_v62  ;;  %v1707_v38 = vadd.f32 %v13912_v20, %v1597_v30  ;;  %v1792_v50 = vsel %vm1787_vm3, %v1789_v11, %v1791_v55  ;;  %v1790_v6 = vsel %vm1787_vm3, %v1788_v49, %v1789_v11 }
  0x8d   : > { %v1708_v17 = vadd.f32 %v13913_v0, %v1599_v52  ;;  %v2126_v53 = vsel %vm1594_vm2, %v17107_v23, %v17112_v26  ;;  %14720 = vmatmul.mubr.bf16.gmra.mrb[28].mxu0 %v17490_v61  ;;  %v2128_v20 = vsel %vm1594_vm2, %v17112_v26, %v17114_v27  ;;  %v2284_v16 = vunpack.c.l.bf16 %v13182_v44  ;;  %v13231_v26 = vld [vmem:[%s17090_s16 + $0x2c] sm:$0x1]  ;;  %v13247_v27 = vld [vmem:[%s17090_s16 + $0x24] sm:$0xe] }
  0x8e   : > { %v1900_v34 = vadd.f32 %v1790_v6, %v1707_v38  ;;  %v2320_v0 = vsel %vm1787_vm3, %v17116_v28, %v17126_v33  ;;  %14739 = vmatprep.mubr.bf16.mxu0 %v17145_v56  ;;  %v13976_v14 = vunpack.c.l.bf16 %v14021_v5  ;;  %v17508_v58 = vunpack.c.h.bf16 %v14021_v5  ;;  %v13200_v56 = vld [vmem:[%s17090_s16 + $0x24] sm:$0xff]  }
  0x8f   : > { %v1901_v10 = vadd.f32 %v1792_v50, %v1708_v17  ;;  %v2573_v23 = vunpack.c.l.bf16 %v13230_v4  ;;  %v2316_v62 = vrot.slane %v2284_v16, 2  ;;  %v2797_v38 = vunpack.c.l.bf16 %v13246_v21 }
  0x90   : > { %v1996_v47 = vadd.f32 %v1964_v9, %v1900_v34  ;;  %v2430_v11 = vadd.f32 %v17176_v46, %v17173_v45  ;;  %v2637_v55 = vrot.slane %v13976_v14, 1  ;;  %v2638_v33 = vrot.slane %v17508_v58, 1  ;;  %v16797_v45 = vld [vmem:[%s20389_s7 + $0x8] sm:$0xff]  }
  0x91   : > { %v1997_v44 = vadd.f32 %v1965_v31, %v1901_v10  ;;  %v2640_v39 = vrot.slane %v2573_v23, 1  ;;  %v2318_v17 = vsel %vm1787_vm3, %v2316_v62, %v17116_v28  ;;  %v2829_v30 = vrot.slane %v2797_v38, 2  ;;  %v1516_v31 = vld [vmem:[%s17090_s16 + $0x20] sm:$0x1] }
  0x92   : > { %v2236_v50 = vadd.f32 %v2126_v53, %v1996_v47  ;;  %v17519_v49 = vrot.slane %v17508_v58, 2  ;;  %v2639_v9 = vsel %vm1594_vm2, %v2637_v55, %v2638_v33  ;;  %v2832_v52 = vrot.slane %v2573_v23, 2 }
  0x93   : > { %v2237_v46 = vadd.f32 %v2128_v20, %v1997_v44  ;;  %v2641_v5 = vsel %vm1594_vm2, %v2638_v33, %v2640_v39  ;;  %v2495_v6 = vunpack.c.l.bf16 %v13200_v56  ;;  %v2496_v28 = vunpack.c.h.bf16 %v13200_v56  ;;  %v1741_v39 = vld [vmem:[%s17090_s16 + $0x18] sm:$0xe] }
  0x94   : > { %v2428_v4 = vadd.f32 %v2318_v17, %v2236_v50  ;;  %v2831_v21 = vsel %vm1787_vm3, %v2829_v30, %v17519_v49  ;;  %v2833_v34 = vsel %vm1787_vm3, %v17519_v49, %v2832_v52  ;;  %v2574_v16 = vunpack.c.l.bf16 %v13231_v26 }
  0x95   : > { %v2429_v53 = vadd.f32 %v2320_v0, %v2237_v46  ;;  %v2798_v10 = vunpack.c.l.bf16 %v13247_v27  ;;  %14740 = vmatmul.mubr.bf16.vlgmr.msra.gmra.mrb[32].mxu0 %v17160_v15  ;;  %v2527_v47 = vadd.f32 %v2495_v6, %v2430_v11  ;;  %v2528_v23 = vadd.f32 %v2496_v28, %v17181_v59  ;;  %v16798_v15 = vld [vmem:[%s20389_s7 + $0x10] sm:$0xff]  }
  0x96   : > { %v2525_v20 = vadd.f32 %v13976_v14, %v2428_v4  ;;  %v2642_v62 = vrot.slane %v2495_v6, 1  ;;  %14772 = vmatpush3.bf16.msra.mxu0 %v17292_v48  ;;  %14743 = vmatprep.mubr.bf16.mxu0 %v17206_v37  ;;  %v2643_v0 = vrot.slane %v2496_v28, 1  ;;  %v2645_v44 = vrot.slane %v2574_v16, 1  ;;  %v13154_v4 = vld [vmem:[%s17090_s16 + $0x24] sm:$0xff]  }
  0x97   : > { %v2526_v38 = vadd.f32 %v17508_v58, %v2429_v53  ;;  %v2834_v55 = vrot.slane %v2798_v10, 2  ;;  %14773 = vmatprep.subr.bf16.mxu0 %v16797_v45  ;;  %v2835_v11 = vrot.slane %v2496_v28, 2  ;;  %v2837_v27 = vrot.slane %v2574_v16, 2  ;;  %v13184_v10 = vld [vmem:[%s17090_s16 + $0x24] sm:$0xe] }
  0x98   : > { %v2749_v26 = vadd.f32 %v2639_v9, %v2525_v20  ;;  %v1532_v59 = vunpack.c.l.bf16 %v1516_v31  ;;  %v2644_v48 = vsel %vm1594_vm2, %v2642_v62, %v2643_v0  ;;  %v2646_v37 = vsel %vm1594_vm2, %v2643_v0, %v2645_v44  ;;  %v13232_v62 = vld [vmem:[%s17090_s16 + $0x38] sm:$0x1] }
  0x99   : > { %v2750_v56 = vadd.f32 %v2641_v5, %v2526_v38  ;;  %v1711_v50 = vadd.f32 %v13976_v14, %v2639_v9  ;;  %v2751_v30 = vadd.f32 %v2644_v48, %v2527_v47  ;;  %v2752_v46 = vadd.f32 %v2646_v37, %v2528_v23  ;;  %v16799_v14 = vld [vmem:[%s20389_s7 + $0x18] sm:$0xff]   ;;  %v14022_v23 = vld [vmem:[%s17090_s16 + $0x30] sm:$0xff]  }
  0x9a   : > { %v2941_v17 = vadd.f32 %v2831_v21, %v2749_v26  ;;  %v2836_v52 = vsel %vm1787_vm3, %v2834_v55, %v2835_v11  ;;  %14774 = vmatpush3.bf16.msra.mxu0 %v16797_v45  ;;  %v2838_v28 = vsel %vm1787_vm3, %v2835_v11, %v2837_v27  ;;  %v1608_v31 = vrot.slane %v1532_v59, 1  ;;  %v13248_v27 = vld [vmem:[%s17090_s16 + $0x30] sm:$0xe] }
  0x9b   : > { %v2942_v6 = vadd.f32 %v2833_v34, %v2750_v56  ;;  %v1757_v5 = vunpack.c.l.bf16 %v1741_v39  ;;  %14775 = vmatprep.subr.bf16.mxu0 %v16798_v15  ;;  %v2943_v21 = vadd.f32 %v2836_v52, %v2751_v30  ;;  %v2944_v53 = vadd.f32 %v2838_v28, %v2752_v46  ;;  %v17582_v39 = vld [vmem:[%s17090_s16 + $0x24] sm:$0xff]  }
  0x9c   : > { %v17548_v9 = vmul.f32 0.11111111, %v2941_v17  ;;  %v1801_v16 = vrot.slane %v1532_v59, 2  ;;  %v1609_v45 = vsel %vm1594_vm2, %v2638_v33, %v1608_v31  ;;  %v1968_v47 = vunpack.c.l.bf16 %v13154_v4 }
  0x9d   : > { %v17551_v20 = vmul.f32 0.11111111, %v2942_v6  ;;  %v1798_v34 = vrot.slane %v1757_v5, 2  ;;  %14744 = vmatmul.mubr.bf16.gmra.mrb[36].mxu0 %v17230_v63  ;;  %v17557_v38 = vmul.f32 0.11111111, %v2943_v21  ;;  %v1712_v44 = vadd.f32 %v17508_v58, %v1609_v45  ;;  %v16800_v58 = vld [vmem:[%s20389_s7 + $0x20] sm:$0xff]  }
  0x9e   : > { %v17559_v0 = vmul.f32 0.11111111, %v2944_v53  ;;  %v1802_v55 = vsel %vm1787_vm3, %v17519_v49, %v1801_v16  ;;  %14747 = vmatprep.mubr.bf16.mxu0 %v17260_v54  ;;  %14776 = vmatpush3.bf16.msra.mxu0 %v16798_v15  ;;  %v1969_v63 = vunpack.c.h.bf16 %v13154_v4  ;;  %v2136_v11 = vsel %vm1594_vm2, %v17186_v1, %v17188_v2  ;;  %v1517_v21 = vld [vmem:[%s17090_s16 + $0x2c] sm:$0x1]  ;;  %v1742_v45 = vld [vmem:[%s17090_s16 + $0x24] sm:$0xe] }
  0x9f   : > { %v3005_v33 = vpack.c.bf16 %v17551_v20, %v17548_v9  ;;  %v1800_v26 = vsel %vm1787_vm3, %v1798_v34, %v17519_v49  ;;  %14777 = vmatprep.subr.bf16.mxu0 %v16799_v14  ;;  %v1905_v59 = vadd.f32 %v1802_v55, %v1712_v44  ;;  %v2138_v49 = vsel %vm1594_vm2, %v17188_v2, %v17194_v7  ;;  %v20488_v20 = vld [vmem:[#allocation15_spill] sm:$0xff] }
  0xa0   : > { %v3006_v54 = vpack.c.bf16 %v17559_v0, %v17557_v38  ;;  %v1904_v15 = vadd.f32 %v1800_v26, %v1711_v50  ;;  %v2286_v56 = vunpack.c.l.bf16 %v13184_v10  ;;  %v2330_v1 = vsel %vm1787_vm3, %v17190_v3, %v17196_v8  ;;  %v16801_v50 = vld [vmem:[%s20389_s7 + $0x28] sm:$0xff]   ;;  %v16806_v38 = vld [vmem:[%s20384_s2 + $0x10] sm:$0xff]  }
  0xa1   : > { %v17587_v48 = vunpack.c.l.bf16 %v14022_v23  ;;  %v17589_v37 = vunpack.c.h.bf16 %v14022_v23  ;;  %v2001_v30 = vadd.f32 %v1969_v63, %v1905_v59  ;;  %v2575_v46 = vunpack.c.l.bf16 %v13232_v62  ;;  %v13185_v63 = vld [vmem:[%s17090_s16 + $0x30] sm:$0xe] }
  0xa2   : > { %v2000_v17 = vadd.f32 %v1968_v47, %v1904_v15  ;;  %v2799_v2 = vunpack.c.l.bf16 %v13248_v27  ;;  %14778 = vmatpush3.bf16.msra.mxu0 %v16799_v14  ;;  %v2326_v7 = vrot.slane %v2286_v56, 2  ;;  %v1456_v10 = vunpack.c.l.bf16 %v17582_v39 }
  0xa3   : > { %v2647_v52 = vrot.slane %v17587_v48, 1  ;;  %v17596_v8 = vrot.slane %v17589_v37, 1  ;;  %v17599_v4 = vrot.slane %v17589_v37, 2  ;;  %14779 = vmatprep.subr.bf16.mxu0 %v16800_v58  ;;  %v2241_v28 = vadd.f32 %v2138_v49, %v2001_v30 }
  0xa4   : > { %v2240_v6 = vadd.f32 %v2136_v11, %v2000_v17  ;;  %v2650_v31 = vrot.slane %v2575_v46, 1  ;;  %v2839_v5 = vrot.slane %v2799_v2, 2  ;;  %v2328_v53 = vsel %vm1787_vm3, %v2326_v7, %v17190_v3  ;;  %v16802_v3 = vld [vmem:[%s20389_s7 + $0x30] sm:$0xff]   ;;  %v17636_v2 = vld [vmem:[%s17090_s16 + $0x3c] sm:$0xff]  }
  0xa5   : > { %v17606_v14 = vsel %vm1594_vm2, %v2647_v52, %v17596_v8  ;;  %v2842_v16 = vrot.slane %v2575_v46, 2  ;;  %14748 = vmatmul.mubr.bf16.gmra.mrb[40].mxu0 %v17285_v36  ;;  %v2433_v47 = vadd.f32 %v2330_v1, %v2241_v28  ;;  %v1457_v36 = vunpack.c.h.bf16 %v17582_v39  ;;  %v16803_v39 = vld [vmem:[%s20389_s7 + $0x38] sm:$0xff]  }
  0xa6   : > { %v2432_v34 = vadd.f32 %v2328_v53, %v2240_v6  ;;  %v2651_v23 = vsel %vm1594_vm2, %v17596_v8, %v2650_v31  ;;  %v2841_v62 = vsel %vm1787_vm3, %v2839_v5, %v17599_v4  ;;  %14751 = vmatprep.mubr.bf16.mxu0 %v17306_v51  ;;  %14780 = vmatpush3.bf16.msra.mxu0 %v16800_v58  ;;  %v1533_v55 = vunpack.c.l.bf16 %v1517_v21 }
  0xa7   : > { %v2843_v44 = vsel %vm1787_vm3, %v17599_v4, %v2842_v16  ;;  %v1610_v26 = vrot.slane %v1456_v10, 1  ;;  %14781 = vmatprep.subr.bf16.mxu0 %v16801_v50  ;;  %v2530_v51 = vadd.f32 %v17589_v37, %v2433_v47  ;;  %v1758_v27 = vunpack.c.l.bf16 %v1742_v45  ;;  %v13249_v16 = vld [vmem:[%s17090_s16 + $0x3c] sm:$0xe] }
  0xa8   : > { %v2529_v11 = vadd.f32 %v17587_v48, %v2432_v34  ;;  %v2141_v58 = vsel %vm1594_vm2, %v17208_v40, %v17212_v19  ;;  %v1611_v15 = vrot.slane %v1457_v36, 1  ;;  %v1613_v59 = vrot.slane %v1533_v55, 1  ;;  %v13233_v40 = vld [vmem:[%s17090_s16 + $0x44] sm:$0x1]  ;;  %v1518_v34 = vld [vmem:[%s17090_s16 + $0x38] sm:$0x1] }
  0xa9   : > { %v1804_v49 = vrot.slane %v1457_v36, 2  ;;  %v1806_v56 = vrot.slane %v1533_v55, 2  ;;  %v2754_v17 = vadd.f32 %v2651_v23, %v2530_v51  ;;  %v1803_v30 = vrot.slane %v1758_v27, 2 }
  0xaa   : > { %v2753_v1 = vadd.f32 %v17606_v14, %v2529_v11  ;;  %v2143_v46 = vsel %vm1594_vm2, %v17212_v19, %v17214_v24  ;;  %14782 = vmatpush3.bf16.msra.mxu0 %v16801_v50  ;;  %v1612_v7 = vsel %vm1594_vm2, %v1610_v26, %v1611_v15  ;;  %v1614_v52 = vsel %vm1594_vm2, %v1611_v15, %v1613_v59 }
  0xab   : > { %v1807_v6 = vsel %vm1787_vm3, %v1804_v49, %v1806_v56  ;;  %v2287_v28 = vunpack.c.l.bf16 %v13185_v63  ;;  %14783 = vmatprep.subr.bf16.mxu0 %v16802_v3  ;;  %v2946_v5 = vadd.f32 %v2843_v44, %v2754_v17  ;;  %v1713_v21 = vadd.f32 %v1612_v7, %v1456_v10  ;;  %v17658_v44 = vld [vmem:[%s20384_s2] sm:$0xff]  }
  0xac   : > { %v2945_v31 = vadd.f32 %v2841_v62, %v2753_v1  ;;  %v1714_v53 = vadd.f32 %v1614_v52, %v1457_v36  ;;  %v1805_v19 = vsel %vm1787_vm3, %v1803_v30, %v1804_v49  ;;  %v2335_v50 = vsel %vm1787_vm3, %v17216_v42, %v17218_v43  ;;  %v1743_v1 = vld [vmem:[%s17090_s16 + $0x30] sm:$0xe]  ;;  %v13158_v17 = vld [vmem:[%s17090_s16 + $0x3c] sm:$0xff]  }
  0xad   : > { %v2331_v24 = vrot.slane %v2287_v28, 2  ;;  %v2499_v45 = vunpack.c.l.bf16 %v17636_v2  ;;  %14752 = vmatmul.mubr.bf16.gmra.mrb[44].mxu0 %v17327_v57  ;;  %v17652_v23 = vmul.f32 0.11111111, %v2946_v5  ;;  %v1906_v62 = vadd.f32 %v1805_v19, %v1713_v21  ;;  %v13186_v52 = vld [vmem:[%s17090_s16 + $0x3c] sm:$0xe] }
  0xae   : > { %v17650_v47 = vmul.f32 0.11111111, %v2945_v31  ;;  %v1907_v10 = vadd.f32 %v1807_v6, %v1714_v53  ;;  %14755 = vmatprep.mubr.bf16.mxu0 %v17347_v60  ;;  %14784 = vmatpush3.bf16.msra.mxu0 %v16802_v3  ;;  %v2500_v36 = vunpack.c.h.bf16 %v17636_v2  ;;  %v2576_v57 = vunpack.c.l.bf16 %v13233_v40  ;;  %v14023_v53 = vld [vmem:[%s17090_s16 + $0x48] sm:$0xff]  }
  0xaf   : > { %v2333_v43 = vsel %vm1787_vm3, %v2331_v24, %v17216_v42  ;;  %v2652_v55 = vrot.slane %v2499_v45, 1  ;;  %14785 = vmatprep.subr.bf16.mxu0 %v16803_v39  ;;  %v2002_v60 = vadd.f32 %v17587_v48, %v1906_v62  ;;  %v2800_v63 = vunpack.c.l.bf16 %v13249_v16 }
  0xb0   : > { %v3007_v26 = vpack.c.bf16 %v17652_v23, %v17650_v47  ;;  %v2003_v3 = vadd.f32 %v17589_v37, %v1907_v10  ;;  %v2653_v11 = vrot.slane %v2500_v36, 1  ;;  %v2655_v51 = vrot.slane %v2576_v57, 1  ;;  %v13234_v10 = vld [vmem:[%s17090_s16 + $0x50] sm:$0x1] }
  0xb1   : > { %v2845_v27 = vrot.slane %v2500_v36, 2  ;;  %v2847_v42 = vrot.slane %v2576_v57, 2  ;;  %v2242_v15 = vadd.f32 %v2141_v58, %v2002_v60  ;;  %v2844_v49 = vrot.slane %v2800_v63, 2  ;;  %v13250_v57 = vld [vmem:[%s17090_s16 + $0x48] sm:$0xe] }
  0xb2   : > { %v2243_v59 = vadd.f32 %v2143_v46, %v2003_v3  ;;  %v1534_v56 = vunpack.c.l.bf16 %v1518_v34  ;;  %14786 = vmatpush3.bf16.msra.mxu0 %v16803_v39  ;;  %v2654_v30 = vsel %vm1594_vm2, %v2652_v55, %v2653_v11  ;;  %v2656_v2 = vsel %vm1594_vm2, %v2653_v11, %v2655_v51  ;;  %v1428_v3 = vld [vmem:[%s17090_s16 + $0x3c] sm:$0xff]  }
  0xb3   : > { %v2848_v40 = vsel %vm1787_vm3, %v2845_v27, %v2847_v42  ;;  %v1715_v7 = vadd.f32 %v17587_v48, %v17606_v14  ;;  %14819 = vmatprep.subr.bf16.mxu0 %v17658_v44  ;;  %v2434_v58 = vadd.f32 %v2333_v43, %v2242_v15  ;;  %v2846_v6 = vsel %vm1787_vm3, %v2844_v49, %v2845_v27 }
  0xb4   : > { %v2435_v46 = vadd.f32 %v2335_v50, %v2243_v59  ;;  %v1618_v28 = vrot.slane %v1534_v56, 1  ;;  %v1759_v31 = vunpack.c.l.bf16 %v1743_v1  ;;  %v1811_v5 = vrot.slane %v1534_v56, 2 }
  0xb5   : > { %v1972_v39 = vunpack.c.l.bf16 %v13158_v17  ;;  %v1973_v21 = vunpack.c.h.bf16 %v13158_v17  ;;  %14756 = vmatmul.mubr.bf16.gmra.mrb[48].mxu0 %v17367_v13  ;;  %v2531_v16 = vadd.f32 %v2499_v45, %v2434_v58  ;;  %v2146_v14 = vsel %vm1594_vm2, %v17235_v12, %v17239_v22  ;;  %v1519_v17 = vld [vmem:[%s17090_s16 + $0x44] sm:$0x1] }
  0xb6   : > { %v2532_v19 = vadd.f32 %v2500_v36, %v2435_v46  ;;  %v1619_v48 = vsel %vm1594_vm2, %v17596_v8, %v1618_v28  ;;  %14759 = vmatprep.mubr.bf16.mxu0 %v17387_v35  ;;  %v1808_v50 = vrot.slane %v1759_v31, 2  ;;  %v1812_v34 = vsel %vm1787_vm3, %v17599_v4, %v1811_v5 }
  0xb7   : > { %v1716_v24 = vadd.f32 %v17589_v37, %v1619_v48  ;;  %v2148_v13 = vsel %vm1594_vm2, %v17239_v22, %v17241_v25  ;;  %v2755_v45 = vadd.f32 %v2654_v30, %v2531_v16  ;;  %v2288_v62 = vunpack.c.l.bf16 %v13186_v52  ;;  %v20479_v52 = vld [vmem:[#allocation48_spill] sm:$0xff]  ;;  %v13187_v48 = vld [vmem:[%s17090_s16 + $0x48] sm:$0xe] }
  0xb8   : > { %v2756_v8 = vadd.f32 %v2656_v2, %v2532_v19  ;;  %v2340_v12 = vsel %vm1787_vm3, %v17243_v29, %v17245_v32  ;;  %v1810_v35 = vsel %vm1787_vm3, %v1808_v50, %v17599_v4  ;;  %v17697_v43 = vunpack.c.l.bf16 %v14023_v53 }
  0xb9   : > { %v1909_v37 = vadd.f32 %v1812_v34, %v1716_v24  ;;  %v17699_v36 = vunpack.c.h.bf16 %v14023_v53  ;;  %v2947_v55 = vadd.f32 %v2846_v6, %v2755_v45  ;;  %v1908_v22 = vadd.f32 %v1810_v35, %v1715_v7 }
  0xba   : > { %v2948_v60 = vadd.f32 %v2848_v40, %v2756_v8  ;;  %v2336_v25 = vrot.slane %v2288_v62, 2  ;;  %v2577_v11 = vunpack.c.l.bf16 %v13234_v10  ;;  %v2657_v32 = vrot.slane %v17697_v43, 1  ;;  %v20481_v10 = vld [vmem:[#allocation8_spill] sm:$0xff] }
  0xbb   : > { %v2005_v63 = vadd.f32 %v1973_v21, %v1909_v37  ;;  %v17705_v51 = vrot.slane %v17699_v36, 1  ;;  %v17707_v4 = vmul.f32 0.11111111, %v2947_v55  ;;  %v2004_v42 = vadd.f32 %v1972_v39, %v1908_v22  ;;  %v13235_v37 = vld [vmem:[%s17090_s16 + $0x5c] sm:$0x1] }
  0xbc   : > { %v17709_v27 = vmul.f32 0.11111111, %v2948_v60  ;;  %v2338_v15 = vsel %vm1787_vm3, %v2336_v25, %v17243_v29  ;;  %v2660_v56 = vrot.slane %v2577_v11, 1  ;;  %v2801_v1 = vunpack.c.l.bf16 %v13250_v57  ;;  %v1744_v29 = vld [vmem:[%s17090_s16 + $0x3c] sm:$0xe] }
  0xbd   : > { %v2245_v59 = vadd.f32 %v2148_v13, %v2005_v63  ;;  %v17715_v49 = vsel %vm1594_vm2, %v2657_v32, %v17705_v51  ;;  %14760 = vmatmul.mubr.bf16.gmra.mrb[52].mxu0 %v17407_v41  ;;  %v2244_v2 = vadd.f32 %v2146_v14, %v2004_v42  ;;  %v17722_v40 = vrot.slane %v17699_v36, 2  ;;  %v13208_v13 = vld [vmem:[%s17090_s16 + $0x54] sm:$0xff]  }
  0xbe   : > { %v3008_v30 = vpack.c.bf16 %v17709_v27, %v17707_v4  ;;  %v2852_v7 = vrot.slane %v2577_v11, 2  ;;  %14763 = vmatprep.mubr.bf16.mxu0 %v20479_v52  ;;  %v2661_v46 = vsel %vm1594_vm2, %v17705_v51, %v2660_v56  ;;  %v2849_v6 = vrot.slane %v2801_v1, 2  ;;  %v20482_v22 = vld [vmem:[#allocation11_spill] sm:$0xff] }
  0xbf   : > { %v2437_v58 = vadd.f32 %v2340_v12, %v2245_v59  ;;  %v1460_v28 = vunpack.c.l.bf16 %v1428_v3  ;;  %v2436_v41 = vadd.f32 %v2338_v15, %v2244_v2  ;;  %v1461_v5 = vunpack.c.h.bf16 %v1428_v3  ;;  %v20480_v12 = vld [vmem:[#allocation9_spill] sm:$0xff]  ;;  %v13251_v3 = vld [vmem:[%s17090_s16 + $0x54] sm:$0xe] }
  0xc0   : > { %v2853_v31 = vsel %vm1787_vm3, %v17722_v40, %v2852_v7  ;;  %v1535_v39 = vunpack.c.l.bf16 %v1519_v17  ;;  %v2851_v53 = vsel %vm1787_vm3, %v2849_v6, %v17722_v40  ;;  %v1760_v19 = vunpack.c.l.bf16 %v1744_v29  ;;  %v20483_v15 = vld [vmem:[#allocation54_spill] sm:$0xff]  ;;  %v20484_v17 = vld [vmem:[#allocation12_spill] sm:$0xff] }
  0xc1   : > { %v2534_v21 = vadd.f32 %v17699_v36, %v2437_v58  ;;  %v1620_v16 = vrot.slane %v1460_v28, 1  ;;  %v2533_v14 = vadd.f32 %v17697_v43, %v2436_v41  ;;  %v1621_v24 = vrot.slane %v1461_v5, 1  ;;  %v20485_v2 = vld [vmem:[#allocation10_spill] sm:$0xff] }
  0xc2   : > { %v1623_v50 = vrot.slane %v1535_v39, 1  ;;  %v1814_v34 = vrot.slane %v1461_v5, 2  ;;  %v1813_v8 = vrot.slane %v1760_v19, 2  ;;  %v1816_v62 = vrot.slane %v1535_v39, 2  ;;  %v1520_v6 = vld [vmem:[%s17090_s16 + $0x50] sm:$0x1] }
  0xc3   : > { %v2758_v45 = vadd.f32 %v2661_v46, %v2534_v21  ;;  %v2151_v35 = vsel %vm1594_vm2, %v20481_v10, %v20480_v12  ;;  %v2757_v57 = vadd.f32 %v17715_v49, %v2533_v14  ;;  %v1622_v55 = vsel %vm1594_vm2, %v1620_v16, %v1621_v24 }
  0xc4   : > { %v1624_v60 = vsel %vm1594_vm2, %v1621_v24, %v1623_v50  ;;  %v2153_v25 = vsel %vm1594_vm2, %v20480_v12, %v20482_v22  ;;  %v1717_v11 = vadd.f32 %v1622_v55, %v1460_v28  ;;  %v1815_v42 = vsel %vm1787_vm3, %v1813_v8, %v1814_v34 }
  0xc5   : > { %v2950_v63 = vadd.f32 %v2853_v31, %v2758_v45  ;;  %v1718_v32 = vadd.f32 %v1624_v60, %v1461_v5  ;;  %14764 = vmatmul.mubr.bf16.gmra.mrb[56].mxu0 %v20483_v15  ;;  %v2949_v59 = vadd.f32 %v2851_v53, %v2757_v57  ;;  %v1817_v56 = vsel %vm1787_vm3, %v1814_v34, %v1816_v62  ;;  %v1745_v45 = vld [vmem:[%s17090_s16 + $0x48] sm:$0xe] }
  0xc6   : > { %v2289_v1 = vunpack.c.l.bf16 %v13187_v48  ;;  %v2345_v7 = vsel %vm1787_vm3, %v20485_v2, %v20484_v17  ;;  %14767 = vmatprep.mubr.bf16.mxu0 %v17468_v18  ;;  %v1910_v52 = vadd.f32 %v1815_v42, %v1717_v11  ;;  %v2503_v46 = vunpack.c.l.bf16 %v13208_v13  ;;  %v20486_v17 = vld [vmem:[#allocation14_spill] sm:$0xff] }
  0xc7   : > { %v17754_v29 = vmul.f32 0.11111111, %v2950_v63  ;;  %v1911_v58 = vadd.f32 %v1817_v56, %v1718_v32  ;;  %v17757_v28 = vmul.f32 0.11111111, %v2949_v59  ;;  %v2504_v31 = vunpack.c.h.bf16 %v13208_v13 }
  0xc8   : > { %v2341_v41 = vrot.slane %v2289_v1, 2  ;;  %v2578_v5 = vunpack.c.l.bf16 %v13235_v37  ;;  %v2006_v39 = vadd.f32 %v17697_v43, %v1910_v52  ;;  %v2662_v53 = vrot.slane %v2503_v46, 1  ;;  %v13162_v37 = vld [vmem:[%s17090_s16 + $0x54] sm:$0xff]   ;;  %v13236_v1 = vld [vmem:[%s17090_s16 + $0x68] sm:$0x1] }
  0xc9   : > { %v2007_v21 = vadd.f32 %v17699_v36, %v1911_v58  ;;  %v2802_v16 = vunpack.c.l.bf16 %v13251_v3  ;;  %v3009_v18 = vpack.c.bf16 %v17754_v29, %v17757_v28  ;;  %v2663_v48 = vrot.slane %v2504_v31, 1 }
  0xca   : > { %v2343_v19 = vsel %vm1787_vm3, %v2341_v41, %v20485_v2  ;;  %v2665_v14 = vrot.slane %v2578_v5, 1  ;;  %v2246_v24 = vadd.f32 %v2151_v35, %v2006_v39  ;;  %v2855_v13 = vrot.slane %v2504_v31, 2  ;;  %v13188_v35 = vld [vmem:[%s17090_s16 + $0x54] sm:$0xe]  ;;  %v20487_v2 = vld [vmem:[#allocation13_spill] sm:$0xff] }
  0xcb   : > { %v2247_v50 = vadd.f32 %v2153_v25, %v2007_v21  ;;  %v2854_v34 = vrot.slane %v2802_v16, 2  ;;  %v2664_v8 = vsel %vm1594_vm2, %v2662_v53, %v2663_v48  ;;  %v2857_v12 = vrot.slane %v2578_v5, 2  ;;  %v14024_v25 = vld [vmem:[%s17090_s16 + $0x60] sm:$0xff]  }
  0xcc   : > { %v2666_v62 = vsel %vm1594_vm2, %v2663_v48, %v2665_v14  ;;  %v1536_v10 = vunpack.c.l.bf16 %v1520_v6  ;;  %v2438_v57 = vadd.f32 %v2343_v19, %v2246_v24  ;;  %v1719_v22 = vadd.f32 %v17697_v43, %v17715_v49  ;;  %v20490_v5 = vld [vmem:[#allocation16_spill] sm:$0xff] }
  0xcd   : > { %v2439_v55 = vadd.f32 %v2345_v7, %v2247_v50  ;;  %v2856_v60 = vsel %vm1787_vm3, %v2854_v34, %v2855_v13  ;;  %14768 = vmatmul.mubr.bf16.gmra.mrb[60].mxu0 %v17490_v61  ;;  %v2858_v3 = vsel %vm1787_vm3, %v2855_v13, %v2857_v12  ;;  %v1761_v11 = vunpack.c.l.bf16 %v1745_v45  ;;  %v1746_v12 = vld [vmem:[%s17090_s16 + $0x54] sm:$0xe] }
  0xce   : > { %v1628_v63 = vrot.slane %v1536_v10, 1  ;;  %v1821_v32 = vrot.slane %v1536_v10, 2  ;;  %14787 = vmatprep.mubr.bf16.mxu0 %v3005_v33  ;;  %v2535_v42 = vadd.f32 %v2503_v46, %v2438_v57  ;;  %v1976_v59 = vunpack.c.l.bf16 %v13162_v37  ;;  %v13252_v46 = vld [vmem:[%s17090_s16 + $0x60] sm:$0xe] }
  0xcf   : > { %v2536_v15 = vadd.f32 %v2504_v31, %v2439_v55  ;;  %v1977_v56 = vunpack.c.h.bf16 %v13162_v37  ;;  %v1818_v49 = vrot.slane %v1761_v11, 2  ;;  %v2156_v7 = vsel %vm1594_vm2, %v20487_v2, %v20486_v17  ;;  %v20489_v31 = vld [vmem:[#allocation17_spill] sm:$0xff] }
  0xd0   : > { %v1629_v43 = vsel %vm1594_vm2, %v17705_v51, %v1628_v63  ;;  %v1822_v61 = vsel %vm1787_vm3, %v17722_v40, %v1821_v32  ;;  %v2759_v52 = vadd.f32 %v2664_v8, %v2535_v42  ;;  %v2158_v33 = vsel %vm1594_vm2, %v20486_v17, %v20488_v20  ;;  %v16805_v51 = vld [vmem:[%s20384_s2 + $0x8] sm:$0xff]  }
  0xd1   : > { %v2760_v58 = vadd.f32 %v2666_v62, %v2536_v15  ;;  %v1720_v9 = vadd.f32 %v17699_v36, %v1629_v43  ;;  %v1820_v6 = vsel %vm1787_vm3, %v1818_v49, %v17722_v40  ;;  %v2290_v41 = vunpack.c.l.bf16 %v13188_v35  ;;  %v1432_v40 = vld [vmem:[%s17090_s16 + $0x54] sm:$0xff]   ;;  %v1521_v62 = vld [vmem:[%s17090_s16 + $0x5c] sm:$0x1]  ;;  %v17849_v17 = vld [vmem:[%s17090_s16 + $0x6c] sm:$0xff]  }
  0xd2   : > { %v2350_v39 = vsel %vm1787_vm3, %v20490_v5, %v20489_v31  ;;  %v17800_v36 = vunpack.c.l.bf16 %v14024_v25  ;;  %v2951_v21 = vadd.f32 %v2856_v60, %v2759_v52  ;;  %v1912_v16 = vadd.f32 %v1820_v6, %v1719_v22 }
  0xd3   : > { %v2952_v53 = vadd.f32 %v2858_v3, %v2760_v58  ;;  %v1913_v19 = vadd.f32 %v1822_v61, %v1720_v9  ;;  %v2346_v48 = vrot.slane %v2290_v41, 2  ;;  %v17802_v14 = vunpack.c.h.bf16 %v14024_v25  ;;  %v13237_v41 = vld [vmem:[%s17090_s16 + $0x74] sm:$0x1] }
  0xd4   : > { %v2579_v24 = vunpack.c.l.bf16 %v13236_v1  ;;  %v2667_v50 = vrot.slane %v17800_v36, 1  ;;  %v17806_v34 = vmul.f32 0.11111111, %v2951_v21  ;;  %v2008_v45 = vadd.f32 %v1976_v59, %v1912_v16  ;;  %v13189_v59 = vld [vmem:[%s17090_s16 + $0x60] sm:$0xe] }
  0xd5   : > { %v17808_v13 = vmul.f32 0.11111111, %v2952_v53  ;;  %v2009_v8 = vadd.f32 %v1977_v56, %v1913_v19  ;;  %14788 = vmatmul.mubr.bf16.vlgmr.msra.gmra.mrb[64].mxu0 %v3006_v54  ;;  %v2348_v10 = vsel %vm1787_vm3, %v2346_v48, %v20490_v5  ;;  %v17818_v37 = vrot.slane %v17802_v14, 1  ;;  %v16807_v56 = vld [vmem:[%s20384_s2 + $0x18] sm:$0xff]   ;;  %v13253_v53 = vld [vmem:[%s17090_s16 + $0x6c] sm:$0xe] }
  0xd6   : > { %v2670_v57 = vrot.slane %v2579_v24, 1  ;;  %v2803_v55 = vunpack.c.l.bf16 %v13252_v46  ;;  %14820 = vmatpush3.bf16.msra.mxu0 %v17658_v44  ;;  %14791 = vmatprep.mubr.bf16.mxu0 %v3007_v26  ;;  %v2248_v0 = vadd.f32 %v2156_v7, %v2008_v45  ;;  %v17830_v22 = vrot.slane %v17802_v14, 2  ;;  %v20491_v46 = vld [vmem:[#allocation19_spill] sm:$0xff]  ;;  %v16808_v16 = vld [vmem:[%s20384_s2 + $0x20] sm:$0xff]  }
  0xd7   : > { %v3010_v60 = vpack.c.bf16 %v17808_v13, %v17806_v34  ;;  %v2249_v54 = vadd.f32 %v2158_v33, %v2009_v8  ;;  %14821 = vmatprep.subr.bf16.mxu0 %v16805_v51  ;;  %v17834_v44 = vsel %vm1594_vm2, %v2667_v50, %v17818_v37  ;;  %v2862_v26 = vrot.slane %v2579_v24, 2  ;;  %v20493_v24 = vld [vmem:[#allocation21_spill] sm:$0xff]  ;;  %v20495_v45 = vld [vmem:[#allocation20_spill] sm:$0xff] }
  0xd8   : > { %v2671_v47 = vsel %vm1594_vm2, %v17818_v37, %v2670_v57  ;;  %v2859_v23 = vrot.slane %v2803_v55, 2  ;;  %v2440_v35 = vadd.f32 %v2348_v10, %v2248_v0  ;;  %v1464_v3 = vunpack.c.l.bf16 %v1432_v40  ;;  %v1522_v0 = vld [vmem:[%s17090_s16 + $0x68] sm:$0x1] }
  0xd9   : > { %v2441_v25 = vadd.f32 %v2350_v39, %v2249_v54  ;;  %v1465_v63 = vunpack.c.h.bf16 %v1432_v40  ;;  %v2863_v32 = vsel %vm1787_vm3, %v17830_v22, %v2862_v26  ;;  %v1537_v42 = vunpack.c.l.bf16 %v1521_v62  ;;  %v20494_v40 = vld [vmem:[#allocation22_spill] sm:$0xff] }
  0xda   : > { %v2861_v11 = vsel %vm1787_vm3, %v2859_v23, %v17830_v22  ;;  %v1762_v15 = vunpack.c.l.bf16 %v1746_v12  ;;  %14822 = vmatpush3.bf16.msra.mxu0 %v16805_v51  ;;  %v2537_v1 = vadd.f32 %v17800_v36, %v2440_v35  ;;  %v1630_v49 = vrot.slane %v1464_v3, 1  ;;  %v20492_v51 = vld [vmem:[#allocation18_spill] sm:$0xff]  ;;  %v1747_v35 = vld [vmem:[%s17090_s16 + $0x60] sm:$0xe] }
  0xdb   : > { %v2538_v43 = vadd.f32 %v17802_v14, %v2441_v25  ;;  %v1631_v61 = vrot.slane %v1465_v63, 1  ;;  %14823 = vmatprep.subr.bf16.mxu0 %v16806_v38  ;;  %v1633_v2 = vrot.slane %v1537_v42, 1  ;;  %v1824_v52 = vrot.slane %v1465_v63, 2  ;;  %v13166_v25 = vld [vmem:[%s17090_s16 + $0x6c] sm:$0xff]  }
  0xdc   : > { %v1823_v7 = vrot.slane %v1762_v15, 2  ;;  %v1826_v58 = vrot.slane %v1537_v42, 2  ;;  %v2761_v9 = vadd.f32 %v17834_v44, %v2537_v1  ;;  %v2161_v6 = vsel %vm1594_vm2, %v20492_v51, %v20491_v46  ;;  %v16809_v42 = vld [vmem:[%s20384_s2 + $0x28] sm:$0xff]  }
  0xdd   : > { %v2762_v20 = vadd.f32 %v2671_v47, %v2538_v43  ;;  %v1632_v33 = vsel %vm1594_vm2, %v1630_v49, %v1631_v61  ;;  %14792 = vmatmul.mubr.bf16.gmra.mrb[68].mxu0 %v3008_v30  ;;  %v1634_v31 = vsel %vm1594_vm2, %v1631_v61, %v1633_v2  ;;  %v2291_v30 = vunpack.c.l.bf16 %v13189_v59  ;;  %v13190_v2 = vld [vmem:[%s17090_s16 + $0x6c] sm:$0xe] }
  0xde   : > { %v1721_v5 = vadd.f32 %v1632_v33, %v1464_v3  ;;  %v1825_v39 = vsel %vm1787_vm3, %v1823_v7, %v1824_v52  ;;  %v1827_v21 = vsel %vm1787_vm3, %v1824_v52, %v1826_v58  ;;  %14795 = vmatprep.mubr.bf16.mxu0 %v3009_v18  ;;  %14824 = vmatpush3.bf16.msra.mxu0 %v16806_v38  ;;  %v2507_v62 = vunpack.c.l.bf16 %v17849_v17 }
  0xdf   : > { %v2953_v19 = vadd.f32 %v2861_v11, %v2761_v9  ;;  %v2954_v4 = vadd.f32 %v2863_v32, %v2762_v20  ;;  %v1722_v27 = vadd.f32 %v1634_v31, %v1465_v63  ;;  %v2163_v50 = vsel %vm1594_vm2, %v20491_v46, %v20493_v24  ;;  %14825 = vmatprep.subr.bf16.mxu0 %v16807_v56  ;;  %v14025_v20 = vld [vmem:[%s17090_s16 + $0x78] sm:$0xff]   ;;  %v20500_v24 = vld [vmem:[#allocation25_spill] sm:$0xff] }
  0xe0   : > { %v1914_v48 = vadd.f32 %v1825_v39, %v1721_v5  ;;  %v2355_v8 = vsel %vm1787_vm3, %v20495_v45, %v20494_v40  ;;  %v2351_v12 = vrot.slane %v2291_v30, 2  ;;  %v2508_v57 = vunpack.c.h.bf16 %v17849_v17  ;;  %v13238_v5 = vld [vmem:[%s17090_s16 + $0x80] sm:$0x1] }
  0xe1   : > { %v2985_v29 = vmul.f32 0.11111111, %v2953_v19  ;;  %v2986_v28 = vmul.f32 0.11111111, %v2954_v4  ;;  %v1915_v18 = vadd.f32 %v1827_v21, %v1722_v27  ;;  %v2580_v55 = vunpack.c.l.bf16 %v13237_v41  ;;  %v20497_v41 = vld [vmem:[#allocation23_spill] sm:$0xff]  ;;  %v20498_v27 = vld [vmem:[#allocation26_spill] sm:$0xff] }
  0xe2   : > { %v2010_v10 = vadd.f32 %v17800_v36, %v1914_v48  ;;  %v2672_v38 = vrot.slane %v2507_v62, 1  ;;  %v2353_v23 = vsel %vm1787_vm3, %v2351_v12, %v20495_v45  ;;  %v2804_v26 = vunpack.c.l.bf16 %v13253_v53  ;;  %14826 = vmatpush3.bf16.msra.mxu0 %v16807_v56  ;;  %v16811_v19 = vld [vmem:[%s20384_s2 + $0x38] sm:$0xff]  }
  0xe3   : > { %v3011_v54 = vpack.c.bf16 %v2986_v28, %v2985_v29  ;;  %v2011_v47 = vadd.f32 %v17802_v14, %v1915_v18  ;;  %v2673_v63 = vrot.slane %v2508_v57, 1  ;;  %v2675_v11 = vrot.slane %v2580_v55, 1  ;;  %14827 = vmatprep.subr.bf16.mxu0 %v16808_v16  ;;  %v20499_v48 = vld [vmem:[#allocation27_spill] sm:$0xff] }
  0xe4   : > { %v2250_v3 = vadd.f32 %v2161_v6, %v2010_v10  ;;  %v2865_v32 = vrot.slane %v2508_v57, 2  ;;  %v2864_v59 = vrot.slane %v2804_v26, 2  ;;  %v2867_v1 = vrot.slane %v2580_v55, 2  ;;  %v20496_v6 = vld [vmem:[#allocation24_spill] sm:$0xff]  ;;  %v1436_v26 = vld [vmem:[%s17090_s16 + $0x6c] sm:$0xff]  }
  0xe5   : > { %v2251_v15 = vadd.f32 %v2163_v50, %v2011_v47  ;;  %v1538_v43 = vunpack.c.l.bf16 %v1522_v0  ;;  %14796 = vmatmul.mubr.bf16.gmra.mrb[72].mxu0 %v3010_v60  ;;  %v2674_v49 = vsel %vm1594_vm2, %v2672_v38, %v2673_v63  ;;  %v2676_v61 = vsel %vm1594_vm2, %v2673_v63, %v2675_v11  ;;  %v1523_v0 = vld [vmem:[%s17090_s16 + $0x74] sm:$0x1] }
  0xe6   : > { %v2442_v56 = vadd.f32 %v2353_v23, %v2250_v3  ;;  %v1723_v17 = vadd.f32 %v17800_v36, %v17834_v44  ;;  %14799 = vmatprep.mubr.bf16.mxu0 %v3011_v54  ;;  %v2866_v52 = vsel %vm1787_vm3, %v2864_v59, %v2865_v32  ;;  %v2868_v58 = vsel %vm1787_vm3, %v2865_v32, %v2867_v1  ;;  %v16810_v36 = vld [vmem:[%s20384_s2 + $0x30] sm:$0xff]   ;;  %v1748_v59 = vld [vmem:[%s17090_s16 + $0x6c] sm:$0xe]  ;;  %v17946_v1 = vld [vmem:[%s20386_s4] sm:$0xff]  }
  0xe7   : > { %v2443_v7 = vadd.f32 %v2355_v8, %v2251_v15  ;;  %v1638_v9 = vrot.slane %v1538_v43, 1  ;;  %14828 = vmatpush3.bf16.msra.mxu0 %v16808_v16  ;;  %v1763_v13 = vunpack.c.l.bf16 %v1747_v35  ;;  %v1831_v60 = vrot.slane %v1538_v43, 2 }
  0xe8   : > { %v2539_v34 = vadd.f32 %v2507_v62, %v2442_v56  ;;  %v1980_v33 = vunpack.c.l.bf16 %v13166_v25  ;;  %14829 = vmatprep.subr.bf16.mxu0 %v16809_v42  ;;  %v1981_v51 = vunpack.c.h.bf16 %v13166_v25  ;;  %v2166_v31 = vsel %vm1594_vm2, %v20497_v41, %v20496_v6  ;;  %v20502_v41 = vld [vmem:[#allocation28_spill] sm:$0xff] }
  0xe9   : > { %v2540_v44 = vadd.f32 %v2508_v57, %v2443_v7  ;;  %v1639_v46 = vsel %vm1594_vm2, %v17818_v37, %v1638_v9  ;;  %v1828_v53 = vrot.slane %v1763_v13, 2  ;;  %v1832_v16 = vsel %vm1787_vm3, %v17830_v22, %v1831_v60 }
  0xea   : > { %v2763_v39 = vadd.f32 %v2674_v49, %v2539_v34  ;;  %v1724_v21 = vadd.f32 %v17802_v14, %v1639_v46  ;;  %v2168_v37 = vsel %vm1594_vm2, %v20496_v6, %v20498_v27  ;;  %v2292_v30 = vunpack.c.l.bf16 %v13190_v2  ;;  %v13254_v14 = vld [vmem:[%s17090_s16 + $0x78] sm:$0xe]  ;;  %v20501_v6 = vld [vmem:[#allocation29_spill] sm:$0xff] }
  0xeb   : > { %v2764_v4 = vadd.f32 %v2676_v61, %v2540_v44  ;;  %v2360_v50 = vsel %vm1787_vm3, %v20500_v24, %v20499_v48  ;;  %14830 = vmatpush3.bf16.msra.mxu0 %v16809_v42  ;;  %v1830_v45 = vsel %vm1787_vm3, %v1828_v53, %v17830_v22  ;;  %v17923_v62 = vunpack.c.l.bf16 %v14025_v20 }
  0xec   : > { %v2955_v40 = vadd.f32 %v2866_v52, %v2763_v39  ;;  %v1917_v8 = vadd.f32 %v1832_v16, %v1724_v21  ;;  %14831 = vmatprep.subr.bf16.mxu0 %v16810_v36  ;;  %v1916_v28 = vadd.f32 %v1830_v45, %v1723_v17  ;;  %v2356_v18 = vrot.slane %v2292_v30, 2  ;;  %v20503_v16 = vld [vmem:[#allocation31_spill] sm:$0xff]  ;;  %v20504_v45 = vld [vmem:[#allocation32_spill] sm:$0xff] }
  0xed   : > { %v2956_v29 = vadd.f32 %v2868_v58, %v2764_v4  ;;  %v17925_v12 = vunpack.c.h.bf16 %v14025_v20  ;;  %v2581_v55 = vunpack.c.l.bf16 %v13238_v5  ;;  %v2677_v38 = vrot.slane %v17923_v62, 1  ;;  %v13191_v5 = vld [vmem:[%s17090_s16 + $0x78] sm:$0xe]  ;;  %v13216_v4 = vld [vmem:[%s17090_s16 + $0x84] sm:$0xff]  }
  0xee   : > { %v2987_v10 = vmul.f32 0.11111111, %v2955_v40  ;;  %v2013_v57 = vadd.f32 %v1981_v51, %v1917_v8  ;;  %v2012_v47 = vadd.f32 %v1980_v33, %v1916_v28  ;;  %v2358_v22 = vsel %vm1787_vm3, %v2356_v18, %v20500_v24  ;;  %v13239_v24 = vld [vmem:[%s17090_s16 + $0x8c] sm:$0x1]  ;;  %v20505_v8 = vld [vmem:[#allocation30_spill] sm:$0xff] }
  0xef   : > { %v2988_v54 = vmul.f32 0.11111111, %v2956_v29  ;;  %v17932_v23 = vrot.slane %v17925_v12, 1  ;;  %14832 = vmatpush3.bf16.msra.mxu0 %v16810_v36  ;;  %v2680_v25 = vrot.slane %v2581_v55, 1  ;;  %v2805_v3 = vunpack.c.l.bf16 %v13254_v14  ;;  %v13255_v28 = vld [vmem:[%s17090_s16 + $0x84] sm:$0xe] }
  0xf0   : > { %v2253_v35 = vadd.f32 %v2168_v37, %v2013_v57  ;;  %v17936_v63 = vrot.slane %v17925_v12, 2  ;;  %14833 = vmatprep.subr.bf16.mxu0 %v16811_v19  ;;  %v2252_v32 = vadd.f32 %v2166_v31, %v2012_v47  ;;  %v2872_v15 = vrot.slane %v2581_v55, 2 }
  0xf1   : > { %v3012_v11 = vpack.c.bf16 %v2988_v54, %v2987_v10  ;;  %v17940_v42 = vsel %vm1594_vm2, %v2677_v38, %v17932_v23  ;;  %v2681_v56 = vsel %vm1594_vm2, %v17932_v23, %v2680_v25  ;;  %v2869_v49 = vrot.slane %v2805_v3, 2  ;;  %v1524_v3 = vld [vmem:[%s17090_s16 + $0x80] sm:$0x1] }
  0xf2   : > { %v2445_v43 = vadd.f32 %v2360_v50, %v2253_v35  ;;  %v1468_v61 = vunpack.c.l.bf16 %v1436_v26  ;;  %v2444_v17 = vadd.f32 %v2358_v22, %v2252_v32  ;;  %v2873_v2 = vsel %vm1787_vm3, %v17936_v63, %v2872_v15 }
  0xf3   : > { %14800 = vmatmul.mubr.bf16.gmra.mrb[76].mxu0 %v3012_v11  ;;  %v1469_v7 = vunpack.c.h.bf16 %v1436_v26  ;;  %v1539_v52 = vunpack.c.l.bf16 %v1523_v0  ;;  %v2871_v9 = vsel %vm1787_vm3, %v2869_v49, %v17936_v63  ;;  %v1764_v34 = vunpack.c.l.bf16 %v1748_v59 }
  0xf4   : > { %v2542_v58 = vadd.f32 %v17925_v12, %v2445_v43  ;;  %v1640_v20 = vrot.slane %v1468_v61, 1  ;;  %14834 = vmatpush3.bf16.msra.mxu0 %v16811_v19  ;;  %v2541_v13 = vadd.f32 %v17923_v62, %v2444_v17  ;;  %v2171_v31 = vsel %vm1594_vm2, %v20502_v41, %v20501_v6  ;;  %v1749_v17 = vld [vmem:[%s17090_s16 + $0x78] sm:$0xe] }
  0xf5   : > { %v1641_v60 = vrot.slane %v1469_v7, 1  ;;  %v1643_v33 = vrot.slane %v1539_v52, 1  ;;  %v1834_v36 = vrot.slane %v1469_v7, 2  ;;  %14907 = vmatprep.subr.bf16.mxu0 %v17946_v1  ;;  %v1833_v46 = vrot.slane %v1764_v34, 2 }
  0xf6   : > { %v2766_v44 = vadd.f32 %v2681_v56, %v2542_v58  ;;  %v1836_v51 = vrot.slane %v1539_v52, 2  ;;  %v2765_v39 = vadd.f32 %v17940_v42, %v2541_v13  ;;  %v2173_v19 = vsel %vm1594_vm2, %v20501_v6, %v20503_v16  ;;  %v20507_v16 = vld [vmem:[#allocation33_spill] sm:$0xff] }
  0xf7   : > { %v1642_v21 = vsel %vm1594_vm2, %v1640_v20, %v1641_v60  ;;  %v1644_v53 = vsel %vm1594_vm2, %v1641_v60, %v1643_v33  ;;  %v1835_v48 = vsel %vm1787_vm3, %v1833_v46, %v1834_v36  ;;  %v2293_v40 = vunpack.c.l.bf16 %v13191_v5  ;;  %v13192_v5 = vld [vmem:[%s17090_s16 + $0x84] sm:$0xe] }
  0xf8   : > { %v2958_v27 = vadd.f32 %v2873_v2, %v2766_v44  ;;  %v1725_v37 = vadd.f32 %v1642_v21, %v1468_v61  ;;  %v1726_v30 = vadd.f32 %v1644_v53, %v1469_v7  ;;  %v2957_v50 = vadd.f32 %v2871_v9, %v2765_v39  ;;  %v13170_v9 = vld [vmem:[%s17090_s16 + $0x84] sm:$0xff]   ;;  %v14026_v39 = vld [vmem:[%s17090_s16 + $0x90] sm:$0xff]  }
  0xf9   : > { %v1837_v14 = vsel %vm1787_vm3, %v1834_v36, %v1836_v51  ;;  %v2365_v29 = vsel %vm1787_vm3, %v20505_v8, %v20504_v45  ;;  %v2511_v55 = vunpack.c.l.bf16 %v13216_v4  ;;  %v2361_v0 = vrot.slane %v2293_v40, 2  ;;  %v20510_v40 = vld [vmem:[#allocation36_spill] sm:$0xff] }
  0xfa   : > { %v2990_v18 = vmul.f32 0.11111111, %v2958_v27  ;;  %v1918_v10 = vadd.f32 %v1835_v48, %v1725_v37  ;;  %v1919_v57 = vadd.f32 %v1837_v14, %v1726_v30  ;;  %v2989_v38 = vmul.f32 0.11111111, %v2957_v50  ;;  %v20508_v30 = vld [vmem:[#allocation35_spill] sm:$0xff]  ;;  %v20509_v14 = vld [vmem:[#allocation37_spill] sm:$0xff] }
  0xfb   : > { %v2512_v54 = vunpack.c.h.bf16 %v13216_v4  ;;  %v2582_v47 = vunpack.c.l.bf16 %v13239_v24  ;;  %v2682_v35 = vrot.slane %v2511_v55, 1  ;;  %v2806_v25 = vunpack.c.l.bf16 %v13255_v28  ;;  %v13240_v24 = vld [vmem:[%s17090_s16 + $0x98] sm:$0x1] }
  0xfc   : > { %v2014_v22 = vadd.f32 %v17923_v62, %v1918_v10  ;;  %v2015_v26 = vadd.f32 %v17925_v12, %v1919_v57  ;;  %v3013_v11 = vpack.c.bf16 %v2990_v18, %v2989_v38  ;;  %v2363_v32 = vsel %vm1787_vm3, %v2361_v0, %v20505_v8  ;;  %v13256_v10 = vld [vmem:[%s17090_s16 + $0x90] sm:$0xe] }
  0xfd   : > { %v2683_v15 = vrot.slane %v2512_v54, 1  ;;  %v2685_v59 = vrot.slane %v2582_v47, 1  ;;  %v2874_v49 = vrot.slane %v2806_v25, 2  ;;  %v2875_v61 = vrot.slane %v2512_v54, 2 }
  0xfe   : > { %v2254_v43 = vadd.f32 %v2171_v31, %v2014_v22  ;;  %v2255_v56 = vadd.f32 %v2173_v19, %v2015_v26  ;;  %14803 = vmatprep.mubr.bf16.mxu0 %v3013_v11  ;;  %v2877_v52 = vrot.slane %v2582_v47, 2  ;;  %v1540_v58 = vunpack.c.l.bf16 %v1524_v3  ;;  %v1440_v11 = vld [vmem:[%s17090_s16 + $0x84] sm:$0xff]  }
  0xff   : > { %v2684_v2 = vsel %vm1594_vm2, %v2682_v35, %v2683_v15  ;;  %v2686_v7 = vsel %vm1594_vm2, %v2683_v15, %v2685_v59  ;;  %v2876_v13 = vsel %vm1787_vm3, %v2874_v49, %v2875_v61  ;;  %v1727_v60 = vadd.f32 %v17923_v62, %v17940_v42  ;;  %v20506_v42 = vld [vmem:[#allocation34_spill] sm:$0xff]  ;;  %v1525_v49 = vld [vmem:[%s17090_s16 + $0x8c] sm:$0x1] }
 0x100   : > { %v2446_v20 = vadd.f32 %v2363_v32, %v2254_v43  ;;  %v2447_v34 = vadd.f32 %v2365_v29, %v2255_v56  ;;  %v2878_v33 = vsel %vm1787_vm3, %v2875_v61, %v2877_v52  ;;  %v1648_v36 = vrot.slane %v1540_v58, 1  ;;  %v1750_v61 = vld [vmem:[%s17090_s16 + $0x84] sm:$0xe] }
 0x101   : > { %v1765_v44 = vunpack.c.l.bf16 %v1749_v17  ;;  %v1841_v46 = vrot.slane %v1540_v58, 2  ;;  %v1984_v41 = vunpack.c.l.bf16 %v13170_v9  ;;  %v1985_v31 = vunpack.c.h.bf16 %v13170_v9 }
 0x102   : > { %v2543_v51 = vadd.f32 %v2511_v55, %v2446_v20  ;;  %v2544_v6 = vadd.f32 %v2512_v54, %v2447_v34  ;;  %v1649_v21 = vsel %vm1594_vm2, %v17932_v23, %v1648_v36  ;;  %v2176_v19 = vsel %vm1594_vm2, %v20507_v16, %v20506_v42 }
 0x103   : > { %v1838_v53 = vrot.slane %v1765_v44, 2  ;;  %v1842_v62 = vsel %vm1787_vm3, %v17936_v63, %v1841_v46  ;;  %v1728_v37 = vadd.f32 %v17925_v12, %v1649_v21  ;;  %v2178_v48 = vsel %vm1594_vm2, %v20506_v42, %v20508_v30  ;;  %v13193_v30 = vld [vmem:[%s17090_s16 + $0x90] sm:$0xe] }
 0x104   : > { %v2767_v4 = vadd.f32 %v2684_v2, %v2543_v51  ;;  %v2768_v27 = vadd.f32 %v2686_v7, %v2544_v6  ;;  %v2294_v50 = vunpack.c.l.bf16 %v13192_v5  ;;  %v2370_v45 = vsel %vm1787_vm3, %v20510_v40, %v20509_v14 }
 0x105   : > { %v1840_v23 = vsel %vm1787_vm3, %v1838_v53, %v17936_v63  ;;  %v18007_v8 = vunpack.c.l.bf16 %v14026_v39  ;;  %v1921_v12 = vadd.f32 %v1842_v62, %v1728_v37  ;;  %v18010_v55 = vunpack.c.h.bf16 %v14026_v39 }
 0x106   : > { %v2959_v29 = vadd.f32 %v2876_v13, %v2767_v4  ;;  %v2960_v28 = vadd.f32 %v2878_v33, %v2768_v27  ;;  %v1920_v18 = vadd.f32 %v1840_v23, %v1727_v60  ;;  %v2366_v57 = vrot.slane %v2294_v50, 2  ;;  %v20515_v4 = vld [vmem:[#allocation39_spill] sm:$0xff]  ;;  %v20516_v27 = vld [vmem:[#allocation38_spill] sm:$0xff] }
 0x107   : > { %v2583_v38 = vunpack.c.l.bf16 %v13240_v24  ;;  %v2687_v63 = vrot.slane %v18007_v8, 1  ;;  %v2017_v22 = vadd.f32 %v1985_v31, %v1921_v12  ;;  %v18016_v35 = vrot.slane %v18010_v55, 1  ;;  %v13241_v12 = vld [vmem:[%s17090_s16 + $0xa4] sm:$0x1] }
 0x108   : > { %v2991_v0 = vmul.f32 0.11111111, %v2959_v29  ;;  %v2992_v54 = vmul.f32 0.11111111, %v2960_v28  ;;  %v2016_v47 = vadd.f32 %v1984_v41, %v1920_v18  ;;  %v2368_v26 = vsel %vm1787_vm3, %v2366_v57, %v20510_v40  ;;  %v20517_v28 = vld [vmem:[#allocation41_spill] sm:$0xff] }
 0x109   : > { %v2690_v25 = vrot.slane %v2583_v38, 1  ;;  %v2807_v3 = vunpack.c.l.bf16 %v13256_v10  ;;  %v18019_v32 = vpop.f32.mrb[0].mxu0  ;;  %v2257_v43 = vadd.f32 %v2178_v48, %v2017_v22  ;;  %v18022_v56 = vrot.slane %v18010_v55, 2  ;;  %v13220_v48 = vld [vmem:[%s17090_s16 + $0x9c] sm:$0xff]  }
 0x10a   : > { %20511 = vst [vmem:[#allocation48_spill] sm:$0xff] %v18019_v32  ;;  %v3014_v15 = vpack.c.bf16 %v2992_v54, %v2991_v0  ;;  %v2256_v59 = vadd.f32 %v2176_v19, %v2016_v47  ;;  %v18026_v17 = vpop.f32.mrb[1].mxu0  ;;  %v18030_v2 = vsel %vm1594_vm2, %v2687_v63, %v18016_v35  ;;  %v2882_v58 = vrot.slane %v2583_v38, 2  ;;  %v20518_v38 = vld [vmem:[#allocation42_spill] sm:$0xff]  ;;  %v20519_v63 = vld [vmem:[#allocation40_spill] sm:$0xff] }
 0x10b   : > { %20512 = vst [vmem:[#allocation9_spill] sm:$0xff] %v18026_v17  ;;  %v2691_v7 = vsel %vm1594_vm2, %v18016_v35, %v2690_v25  ;;  %v2879_v52 = vrot.slane %v2807_v3, 2  ;;  %v18034_v9 = vpop.f32.mrb[2].mxu0  ;;  %v2449_v34 = vadd.f32 %v2370_v45, %v2257_v43  ;;  %v1472_v13 = vunpack.c.l.bf16 %v1440_v11  ;;  %v13257_v47 = vld [vmem:[%s17090_s16 + $0x9c] sm:$0xe] }
 0x10c   : > { %20513 = vst [vmem:[#allocation8_spill] sm:$0xff] %v18034_v9  ;;  %14804 = vmatmul.mubr.bf16.gmra.mrb[80].mxu0 %v3014_v15  ;;  %v2448_v20 = vadd.f32 %v2368_v26, %v2256_v59  ;;  %v1473_v60 = vunpack.c.h.bf16 %v1440_v11  ;;  %v18036_v33 = vpop.f32.mrb[3].mxu0  ;;  %v2883_v44 = vsel %vm1787_vm3, %v18022_v56, %v2882_v58  ;;  %v1541_v46 = vunpack.c.l.bf16 %v1525_v49 }
 0x10d   : > { %20514 = vst [vmem:[#allocation11_spill] sm:$0xff] %v18036_v33  ;;  %v2881_v36 = vsel %vm1787_vm3, %v2879_v52, %v18022_v56  ;;  %v1766_v51 = vunpack.c.l.bf16 %v1750_v61  ;;  %v2546_v41 = vadd.f32 %v18010_v55, %v2449_v34  ;;  %v1650_v31 = vrot.slane %v1472_v13, 1 }
 0x10e   : > { %v2545_v6 = vadd.f32 %v18007_v8, %v2448_v20  ;;  %v1651_v5 = vrot.slane %v1473_v60, 1  ;;  %v1653_v39 = vrot.slane %v1541_v46, 1  ;;  %v1844_v53 = vrot.slane %v1473_v60, 2  ;;  %v1526_v20 = vld [vmem:[%s17090_s16 + $0x98] sm:$0x1] }
 0x10f   : > { %v1843_v21 = vrot.slane %v1766_v51, 2  ;;  %v1846_v62 = vrot.slane %v1541_v46, 2  ;;  %v2770_v16 = vadd.f32 %v2691_v7, %v2546_v41  ;;  %v2181_v37 = vsel %vm1594_vm2, %v20516_v27, %v20515_v4  ;;  %v1751_v46 = vld [vmem:[%s17090_s16 + $0x90] sm:$0xe] }
 0x110   : > { %v2769_v42 = vadd.f32 %v18030_v2, %v2545_v6  ;;  %v1652_v19 = vsel %vm1594_vm2, %v1650_v31, %v1651_v5  ;;  %v1654_v24 = vsel %vm1594_vm2, %v1651_v5, %v1653_v39  ;;  %v2183_v18 = vsel %vm1594_vm2, %v20515_v4, %v20517_v28  ;;  %v13174_v39 = vld [vmem:[%s17090_s16 + $0x9c] sm:$0xff]  }
 0x111   : > { %v1729_v23 = vadd.f32 %v1652_v19, %v1472_v13  ;;  %v1845_v50 = vsel %vm1787_vm3, %v1843_v21, %v1844_v53  ;;  %v1847_v14 = vsel %vm1787_vm3, %v1844_v53, %v1846_v62  ;;  %v2962_v45 = vadd.f32 %v2883_v44, %v2770_v16  ;;  %v20525_v28 = vld [vmem:[#allocation43_spill] sm:$0xff] }
 0x112   : > { %v2961_v40 = vadd.f32 %v2881_v36, %v2769_v42  ;;  %v1730_v29 = vadd.f32 %v1654_v24, %v1473_v60  ;;  %v2295_v57 = vunpack.c.l.bf16 %v13193_v30  ;;  %v2375_v0 = vsel %vm1787_vm3, %v20519_v63, %v20518_v38 }
 0x113   : > { %v1922_v10 = vadd.f32 %v1845_v50, %v1729_v23  ;;  %v2515_v54 = vunpack.c.l.bf16 %v13220_v48  ;;  %v2994_v26 = vmul.f32 0.11111111, %v2962_v45  ;;  %v2516_v3 = vunpack.c.h.bf16 %v13220_v48  ;;  %v13194_v50 = vld [vmem:[%s17090_s16 + $0x9c] sm:$0xe] }
 0x114   : > { %v2993_v22 = vmul.f32 0.11111111, %v2961_v40  ;;  %v1923_v25 = vadd.f32 %v1847_v14, %v1730_v29  ;;  %v2371_v15 = vrot.slane %v2295_v57, 2  ;;  %v2584_v59 = vunpack.c.l.bf16 %v13241_v12  ;;  %v20524_v29 = vld [vmem:[#allocation44_spill] sm:$0xff]  ;;  %v20526_v57 = vld [vmem:[#allocation46_spill] sm:$0xff] }
 0x115   : > { %v2018_v11 = vadd.f32 %v18007_v8, %v1922_v10  ;;  %v2692_v43 = vrot.slane %v2515_v54, 1  ;;  %v18063_v49 = vpop.f32.mrb[4].mxu0  ;;  %v2693_v52 = vrot.slane %v2516_v3, 1  ;;  %v2808_v58 = vunpack.c.l.bf16 %v13257_v47 }
 0x116   : > { %20520 = vst [vmem:[#allocation54_spill] sm:$0xff] %v18063_v49  ;;  %v3015_v61 = vpack.c.bf16 %v2994_v26, %v2993_v22  ;;  %v2019_v7 = vadd.f32 %v18010_v55, %v1923_v25  ;;  %v18067_v34 = vpop.f32.mrb[5].mxu0  ;;  %v2373_v60 = vsel %vm1787_vm3, %v2371_v15, %v20519_v63  ;;  %v2695_v36 = vrot.slane %v2584_v59, 1  ;;  %v13242_v22 = vld [vmem:[%s17090_s16 + $0xb0] sm:$0x1] }
 0x117   : > { %20521 = vst [vmem:[#allocation12_spill] sm:$0xff] %v18067_v34  ;;  %v2258_v13 = vadd.f32 %v2181_v37, %v2018_v11  ;;  %v2885_v44 = vrot.slane %v2516_v3, 2  ;;  %v18072_v51 = vpop.f32.mrb[6].mxu0  ;;  %v2694_v41 = vsel %vm1594_vm2, %v2692_v43, %v2693_v52  ;;  %v2884_v31 = vrot.slane %v2808_v58, 2 }
 0x118   : > { %20522 = vst [vmem:[#allocation10_spill] sm:$0xff] %v18072_v51  ;;  %14807 = vmatprep.mubr.bf16.mxu0 %v3015_v61  ;;  %v2259_v6 = vadd.f32 %v2183_v18, %v2019_v7  ;;  %v2887_v5 = vrot.slane %v2584_v59, 2  ;;  %v18076_v21 = vpop.f32.mrb[7].mxu0  ;;  %v2696_v62 = vsel %vm1594_vm2, %v2693_v52, %v2695_v36  ;;  %v1542_v42 = vunpack.c.l.bf16 %v1526_v20 }
 0x119   : > { %20523 = vst [vmem:[#allocation14_spill] sm:$0xff] %v18076_v21  ;;  %v2450_v53 = vadd.f32 %v2373_v60, %v2258_v13  ;;  %v1731_v16 = vadd.f32 %v18007_v8, %v18030_v2  ;;  %v2886_v4 = vsel %vm1787_vm3, %v2884_v31, %v2885_v44  ;;  %v1767_v37 = vunpack.c.l.bf16 %v1751_v46  ;;  %v14027_v8 = vld [vmem:[%s17090_s16 + $0xa8] sm:$0xff]   ;;  %v1444_v46 = vld [vmem:[%s17090_s16 + $0x9c] sm:$0xff]  }
 0x11a   : > { %v2451_v19 = vadd.f32 %v2375_v0, %v2259_v6  ;;  %v2888_v27 = vsel %vm1787_vm3, %v2885_v44, %v2887_v5  ;;  %v1658_v48 = vrot.slane %v1542_v42, 1  ;;  %v1851_v24 = vrot.slane %v1542_v42, 2 }
 0x11b   : > { %v2547_v30 = vadd.f32 %v2515_v54, %v2450_v53  ;;  %v1988_v23 = vunpack.c.l.bf16 %v13174_v39  ;;  %v1848_v40 = vrot.slane %v1767_v37, 2  ;;  %v1989_v45 = vunpack.c.h.bf16 %v13174_v39  ;;  %v1527_v39 = vld [vmem:[%s17090_s16 + $0xa4] sm:$0x1] }
 0x11c   : > { %v2548_v14 = vadd.f32 %v2516_v3, %v2451_v19  ;;  %v2186_v18 = vsel %vm1594_vm2, %v20525_v28, %v20524_v29  ;;  %v1659_v12 = vsel %vm1594_vm2, %v18016_v35, %v1658_v48  ;;  %v1852_v10 = vsel %vm1787_vm3, %v18022_v56, %v1851_v24  ;;  %v20527_v3 = vld [vmem:[#allocation47_spill] sm:$0xff]  ;;  %v20528_v35 = vld [vmem:[#allocation45_spill] sm:$0xff] }
 0x11d   : > { %v2771_v2 = vadd.f32 %v2694_v41, %v2547_v30  ;;  %v2188_v38 = vsel %vm1594_vm2, %v20524_v29, %v20526_v57  ;;  %v1732_v0 = vadd.f32 %v18010_v55, %v1659_v12  ;;  %v1850_v54 = vsel %vm1787_vm3, %v1848_v40, %v18022_v56  ;;  %v13258_v55 = vld [vmem:[%s17090_s16 + $0xa8] sm:$0xe] }
 0x11e   : > { %v2772_v63 = vadd.f32 %v2696_v62, %v2548_v14  ;;  %v2296_v47 = vunpack.c.l.bf16 %v13194_v50  ;;  %v1924_v25 = vadd.f32 %v1850_v54, %v1731_v16  ;;  %v2380_v11 = vsel %vm1787_vm3, %v20528_v35, %v20527_v3 }
 0x11f   : > { %v2963_v26 = vadd.f32 %v2886_v4, %v2771_v2  ;;  %v18102_v15 = vunpack.c.l.bf16 %v14027_v8  ;;  %v1925_v43 = vadd.f32 %v1852_v10, %v1732_v0  ;;  %v18104_v7 = vunpack.c.h.bf16 %v14027_v8  ;;  %v1752_v4 = vld [vmem:[%s17090_s16 + $0x9c] sm:$0xe] }
 0x120   : > { %v2964_v59 = vadd.f32 %v2888_v27, %v2772_v63  ;;  %v2376_v61 = vrot.slane %v2296_v47, 2  ;;  %v2020_v56 = vadd.f32 %v1988_v23, %v1924_v25  ;;  %v2585_v58 = vunpack.c.l.bf16 %v13242_v22  ;;  %v20533_v47 = vld [vmem:[#allocation50_spill] sm:$0xff]  ;;  %v20534_v22 = vld [vmem:[#allocation49_spill] sm:$0xff] }
 0x121   : > { %v2995_v52 = vmul.f32 0.11111111, %v2963_v26  ;;  %v2697_v20 = vrot.slane %v18102_v15, 1  ;;  %v2021_v60 = vadd.f32 %v1989_v45, %v1925_v43  ;;  %v18111_v44 = vrot.slane %v18104_v7, 1  ;;  %v13195_v25 = vld [vmem:[%s17090_s16 + $0xa8] sm:$0xe] }
 0x122   : > { %v2996_v13 = vmul.f32 0.11111111, %v2964_v59  ;;  %v2378_v36 = vsel %vm1787_vm3, %v2376_v61, %v20528_v35  ;;  %v2260_v6 = vadd.f32 %v2186_v18, %v2020_v56  ;;  %v2700_v41 = vrot.slane %v2585_v58, 1  ;;  %v20535_v59 = vld [vmem:[#allocation52_spill] sm:$0xff]  ;;  %v13224_v61 = vld [vmem:[%s17090_s16 + $0xb4] sm:$0xff]  }
 0x123   : > { %v2809_v31 = vunpack.c.l.bf16 %v13258_v55  ;;  %v18115_v5 = vrot.slane %v18104_v7, 2  ;;  %v18118_v53 = vpop.f32.mrb[8].mxu0  ;;  %v2261_v42 = vadd.f32 %v2188_v38, %v2021_v60  ;;  %v18122_v16 = vsel %vm1594_vm2, %v2697_v20, %v18111_v44  ;;  %v13243_v20 = vld [vmem:[%s17090_s16 + $0xbc] sm:$0x1] }
 0x124   : > { %20529 = vst [vmem:[#allocation13_spill] sm:$0xff] %v18118_v53  ;;  %v3016_v62 = vpack.c.bf16 %v2996_v13, %v2995_v52  ;;  %v2892_v19 = vrot.slane %v2585_v58, 2  ;;  %v18125_v27 = vpop.f32.mrb[9].mxu0  ;;  %v2452_v37 = vadd.f32 %v2378_v36, %v2260_v6  ;;  %v2701_v30 = vsel %vm1594_vm2, %v18111_v44, %v2700_v41  ;;  %v20537_v6 = vld [vmem:[#allocation51_spill] sm:$0xff] }
 0x125   : > { %20530 = vst [vmem:[#allocation15_spill] sm:$0xff] %v18125_v27  ;;  %v2889_v48 = vrot.slane %v2809_v31, 2  ;;  %v1476_v24 = vunpack.c.l.bf16 %v1444_v46  ;;  %v18129_v23 = vpop.f32.mrb[10].mxu0  ;;  %v2453_v50 = vadd.f32 %v2380_v11, %v2261_v42  ;;  %v1477_v40 = vunpack.c.h.bf16 %v1444_v46  ;;  %v20536_v46 = vld [vmem:[#allocation53_spill] sm:$0xff]  ;;  %v13259_v31 = vld [vmem:[%s17090_s16 + $0xb4] sm:$0xe] }
 0x126   : > { %20531 = vst [vmem:[#allocation17_spill] sm:$0xff] %v18129_v23  ;;  %14808 = vmatmul.mubr.bf16.gmra.mrb[84].mxu0 %v3016_v62  ;;  %v2893_v14 = vsel %vm1787_vm3, %v18115_v5, %v2892_v19  ;;  %v1543_v45 = vunpack.c.l.bf16 %v1527_v39  ;;  %v18133_v29 = vpop.f32.mrb[11].mxu0  ;;  %v2549_v28 = vadd.f32 %v18102_v15, %v2452_v37  ;;  %v1768_v2 = vunpack.c.l.bf16 %v1752_v4 }
 0x127   : > { %20532 = vst [vmem:[#allocation16_spill] sm:$0xff] %v18133_v29  ;;  %v2891_v18 = vsel %vm1787_vm3, %v2889_v48, %v18115_v5  ;;  %v1660_v8 = vrot.slane %v1476_v24, 1  ;;  %v2550_v12 = vadd.f32 %v18104_v7, %v2453_v50  ;;  %v1661_v10 = vrot.slane %v1477_v40, 1 }
 0x128   : > { %v1663_v57 = vrot.slane %v1543_v45, 1  ;;  %v1854_v38 = vrot.slane %v1477_v40, 2  ;;  %v2773_v63 = vadd.f32 %v18122_v16, %v2549_v28  ;;  %v1853_v0 = vrot.slane %v1768_v2, 2 }
 0x129   : > { %v1856_v54 = vrot.slane %v1543_v45, 2  ;;  %v2191_v26 = vsel %vm1594_vm2, %v20534_v22, %v20533_v47  ;;  %v2774_v3 = vadd.f32 %v2701_v30, %v2550_v12  ;;  %v1662_v35 = vsel %vm1594_vm2, %v1660_v8, %v1661_v10  ;;  %v1528_v45 = vld [vmem:[%s17090_s16 + $0xb0] sm:$0x1] }
 0x12a   : > { %v1664_v11 = vsel %vm1594_vm2, %v1661_v10, %v1663_v57  ;;  %v2193_v43 = vsel %vm1594_vm2, %v20533_v47, %v20535_v59  ;;  %v2965_v55 = vadd.f32 %v2891_v18, %v2773_v63  ;;  %v1733_v52 = vadd.f32 %v1662_v35, %v1476_v24 }
 0x12b   : > { %v1734_v56 = vadd.f32 %v1664_v11, %v1477_v40  ;;  %v1855_v58 = vsel %vm1787_vm3, %v1853_v0, %v1854_v38  ;;  %v2966_v13 = vadd.f32 %v2893_v14, %v2774_v3  ;;  %v1857_v60 = vsel %vm1787_vm3, %v1854_v38, %v1856_v54  ;;  %v1753_v54 = vld [vmem:[%s17090_s16 + $0xa8] sm:$0xe]  ;;  %v13178_v11 = vld [vmem:[%s17090_s16 + $0xb4] sm:$0xff]  }
 0x12c   : > { %v2297_v36 = vunpack.c.l.bf16 %v13195_v25  ;;  %v2385_v41 = vsel %vm1787_vm3, %v20537_v6, %v20536_v46  ;;  %v2997_v39 = vmul.f32 0.11111111, %v2965_v55  ;;  %v1926_v62 = vadd.f32 %v1855_v58, %v1733_v52 }
 0x12d   : > { %v1927_v42 = vadd.f32 %v1857_v60, %v1734_v56  ;;  %v2519_v19 = vunpack.c.l.bf16 %v13224_v61  ;;  %v2998_v4 = vmul.f32 0.11111111, %v2966_v13  ;;  %v2520_v30 = vunpack.c.h.bf16 %v13224_v61 }
 0x12e   : > { %v2381_v37 = vrot.slane %v2297_v36, 2  ;;  %v2586_v48 = vunpack.c.l.bf16 %v13243_v20  ;;  %v2022_v24 = vadd.f32 %v18102_v15, %v1926_v62  ;;  %v2810_v40 = vunpack.c.l.bf16 %v13259_v31  ;;  %v18160_v28 = vpop.f32.mrb[12].mxu0  ;;  %v14028_v31 = vld [vmem:[%s17090_s16 + $0xc0] sm:$0xff]   ;;  %v20543_v62 = vld [vmem:[#allocation55_spill] sm:$0xff] }
 0x12f   : > { %v2023_v50 = vadd.f32 %v18104_v7, %v1927_v42  ;;  %v2702_v14 = vrot.slane %v2519_v19, 1  ;;  %20538 = vst [vmem:[#allocation19_spill] sm:$0xff] %v18160_v28  ;;  %v3017_v18 = vpack.c.bf16 %v2998_v4, %v2997_v39  ;;  %v2703_v2 = vrot.slane %v2520_v30, 1  ;;  %v18164_v10 = vpop.f32.mrb[13].mxu0 }
 0x130   : > { %v2383_v8 = vsel %vm1787_vm3, %v2381_v37, %v20537_v6  ;;  %v2705_v12 = vrot.slane %v2586_v48, 1  ;;  %20539 = vst [vmem:[#allocation18_spill] sm:$0xff] %v18164_v10  ;;  %v2262_v57 = vadd.f32 %v2191_v26, %v2022_v24  ;;  %v2894_v63 = vrot.slane %v2810_v40, 2  ;;  %v18167_v47 = vpop.f32.mrb[14].mxu0  ;;  %v13196_v6 = vld [vmem:[%s17090_s16 + $0xb4] sm:$0xe] }
 0x131   : > { %v2263_v38 = vadd.f32 %v2193_v43, %v2023_v50  ;;  %v2895_v0 = vrot.slane %v2520_v30, 2  ;;  %20540 = vst [vmem:[#allocation21_spill] sm:$0xff] %v18167_v47  ;;  %14811 = vmatprep.mubr.bf16.mxu0 %v3017_v18  ;;  %v2704_v22 = vsel %vm1594_vm2, %v2702_v14, %v2703_v2  ;;  %v2897_v3 = vrot.slane %v2586_v48, 2  ;;  %v18172_v59 = vpop.f32.mrb[15].mxu0  ;;  %v13244_v24 = vld [vmem:[%s17090_s16 + $0xc8] sm:$0x1] }
 0x132   : > { %v2706_v25 = vsel %vm1594_vm2, %v2703_v2, %v2705_v12  ;;  %v1544_v35 = vunpack.c.l.bf16 %v1528_v45  ;;  %20541 = vst [vmem:[#allocation22_spill] sm:$0xff] %v18172_v59  ;;  %v2454_v61 = vadd.f32 %v2383_v8, %v2262_v57  ;;  %v1735_v55 = vadd.f32 %v18102_v15, %v18122_v16  ;;  %v20542_v16 = vld [vmem:[#allocation56_spill] sm:$0xff]  ;;  %v20545_v14 = vld [vmem:[#allocation59_spill] sm:$0xff]  ;;  %v20546_v40 = vld [vmem:[#allocation58_spill] sm:$0xff] }
 0x133   : > { %v2455_v26 = vadd.f32 %v2385_v41, %v2263_v38  ;;  %v2896_v43 = vsel %vm1787_vm3, %v2894_v63, %v2895_v0  ;;  %v2898_v52 = vsel %vm1787_vm3, %v2895_v0, %v2897_v3  ;;  %v1769_v58 = vunpack.c.l.bf16 %v1753_v54  ;;  %v13260_v57 = vld [vmem:[%s17090_s16 + $0xc0] sm:$0xe] }
 0x134   : > { %v1668_v56 = vrot.slane %v1544_v35, 1  ;;  %v1861_v20 = vrot.slane %v1544_v35, 2  ;;  %v2551_v13 = vadd.f32 %v2519_v19, %v2454_v61  ;;  %v1992_v36 = vunpack.c.l.bf16 %v13178_v11 }
 0x135   : > { %v2552_v60 = vadd.f32 %v2520_v30, %v2455_v26  ;;  %v1993_v46 = vunpack.c.h.bf16 %v13178_v11  ;;  %v1858_v39 = vrot.slane %v1769_v58, 2  ;;  %v2196_v42 = vsel %vm1594_vm2, %v20543_v62, %v20542_v16  ;;  %v20544_v30 = vld [vmem:[#allocation57_spill] sm:$0xff] }
 0x136   : > { %v1669_v41 = vsel %vm1594_vm2, %v18111_v44, %v1668_v56  ;;  %v1862_v15 = vsel %vm1787_vm3, %v18115_v5, %v1861_v20  ;;  %v2775_v4 = vadd.f32 %v2704_v22, %v2551_v13  ;;  %v2198_v48 = vsel %vm1594_vm2, %v20542_v16, %v20544_v30 }
 0x137   : > { %v2776_v37 = vadd.f32 %v2706_v25, %v2552_v60  ;;  %v1736_v19 = vadd.f32 %v18104_v7, %v1669_v41  ;;  %v1860_v44 = vsel %vm1787_vm3, %v1858_v39, %v18115_v5  ;;  %v2298_v50 = vunpack.c.l.bf16 %v13196_v6  ;;  %v1529_v60 = vld [vmem:[%s17090_s16 + $0xbc] sm:$0x1] }
 0x138   : > { %v2390_v45 = vsel %vm1787_vm3, %v20546_v40, %v20545_v14  ;;  %v18197_v18 = vunpack.c.l.bf16 %v14028_v31  ;;  %v2967_v8 = vadd.f32 %v2896_v43, %v2775_v4  ;;  %v1928_v12 = vadd.f32 %v1860_v44, %v1735_v55  ;;  %v1448_v55 = vld [vmem:[%s17090_s16 + $0xb4] sm:$0xff]  }
 0x139   : > { %v2968_v2 = vadd.f32 %v2898_v52, %v2776_v37  ;;  %v1929_v7 = vadd.f32 %v1862_v15, %v1736_v19  ;;  %v2386_v38 = vrot.slane %v2298_v50, 2  ;;  %v18200_v63 = vunpack.c.h.bf16 %v14028_v31 }
 0x13a   : > { %v2587_v0 = vunpack.c.l.bf16 %v13244_v24  ;;  %v2707_v54 = vrot.slane %v18197_v18, 1  ;;  %v2999_v5 = vmul.f32 0.11111111, %v2967_v8  ;;  %v2024_v25 = vadd.f32 %v1992_v36, %v1928_v12  ;;  %v1754_v36 = vld [vmem:[%s17090_s16 + $0xb4] sm:$0xe] }
 0x13b   : > { %v3000_v22 = vmul.f32 0.11111111, %v2968_v2  ;;  %v2025_v3 = vadd.f32 %v1993_v46, %v1929_v7  ;;  %v18203_v35 = vpop.f32.mrb[16].mxu0  ;;  %v2388_v11 = vsel %vm1787_vm3, %v2386_v38, %v20546_v40  ;;  %v2708_v61 = vrot.slane %v18200_v63, 1  ;;  %v20551_v38 = vld [vmem:[#allocation61_spill] sm:$0xff] }
 0x13c   : > { %20547 = vst [vmem:[#allocation20_spill] sm:$0xff] %v18203_v35  ;;  %v2710_v26 = vrot.slane %v2587_v0, 1  ;;  %v2811_v43 = vunpack.c.l.bf16 %v13260_v57  ;;  %v18209_v52 = vpop.f32.mrb[17].mxu0  ;;  %v2264_v58 = vadd.f32 %v2196_v42, %v2024_v25  ;;  %v2900_v13 = vrot.slane %v18200_v63, 2 }
 0x13d   : > { %20548 = vst [vmem:[#allocation24_spill] sm:$0xff] %v18209_v52  ;;  %v3018_v56 = vpack.c.bf16 %v3000_v22, %v2999_v5  ;;  %v2265_v20 = vadd.f32 %v2198_v48, %v2025_v3  ;;  %v18214_v46 = vpop.f32.mrb[18].mxu0  ;;  %v2709_v6 = vsel %vm1594_vm2, %v2707_v54, %v2708_v61  ;;  %v2902_v39 = vrot.slane %v2587_v0, 2  ;;  %v20552_v0 = vld [vmem:[#allocation60_spill] sm:$0xff]  ;;  %v13228_v22 = vld [vmem:[%s17090_s16 + $0xcc] sm:$0xff]  }
 0x13e   : > { %20549 = vst [vmem:[#allocation23_spill] sm:$0xff] %v18214_v46  ;;  %v2711_v31 = vsel %vm1594_vm2, %v2708_v61, %v2710_v26  ;;  %v2899_v41 = vrot.slane %v2811_v43, 2  ;;  %v18218_v15 = vpop.f32.mrb[19].mxu0  ;;  %v2456_v16 = vadd.f32 %v2388_v11, %v2264_v58  ;;  %v1480_v4 = vunpack.c.l.bf16 %v1448_v55  ;;  %v13197_v5 = vld [vmem:[%s17090_s16 + $0xc0] sm:$0xe] }
 0x13f   : > { %20550 = vst [vmem:[#allocation26_spill] sm:$0xff] %v18218_v15  ;;  %14812 = vmatmul.mubr.bf16.gmra.mrb[88].mxu0 %v3018_v56  ;;  %v2457_v62 = vadd.f32 %v2390_v45, %v2265_v20  ;;  %v1481_v42 = vunpack.c.h.bf16 %v1448_v55  ;;  %v2903_v19 = vsel %vm1787_vm3, %v2900_v13, %v2902_v39  ;;  %v1545_v30 = vunpack.c.l.bf16 %v1529_v60  ;;  %v20553_v56 = vld [vmem:[#allocation63_spill] sm:$0xff]  ;;  %v13245_v20 = vld [vmem:[%s17090_s16 + $0xd4] sm:$0x1]  ;;  %v13261_v39 = vld [vmem:[%s17090_s16 + $0xcc] sm:$0xe] }
 0x140   : > { %v2901_v37 = vsel %vm1787_vm3, %v2899_v41, %v2900_v13  ;;  %v1770_v48 = vunpack.c.l.bf16 %v1754_v36  ;;  %v2553_v24 = vadd.f32 %v18197_v18, %v2456_v16  ;;  %v1670_v50 = vrot.slane %v1480_v4, 1  ;;  %v20554_v36 = vld [vmem:[#allocation64_spill] sm:$0xff] }
 0x141   : > { %v2554_v44 = vadd.f32 %v18200_v63, %v2457_v62  ;;  %v1671_v14 = vrot.slane %v1481_v42, 1  ;;  %v1673_v40 = vrot.slane %v1545_v30, 1  ;;  %v1864_v2 = vrot.slane %v1481_v42, 2 }
 0x142   : > { %v1863_v8 = vrot.slane %v1770_v48, 2  ;;  %v1866_v45 = vrot.slane %v1545_v30, 2  ;;  %v2777_v12 = vadd.f32 %v2709_v6, %v2553_v24  ;;  %v2201_v54 = vsel %vm1594_vm2, %v20552_v0, %v20551_v38  ;;  %v20555_v6 = vld [vmem:[#allocation62_spill] sm:$0xff] }
 0x143   : > { %v2778_v7 = vadd.f32 %v2711_v31, %v2554_v44  ;;  %v1672_v57 = vsel %vm1594_vm2, %v1670_v50, %v1671_v14  ;;  %v1674_v25 = vsel %vm1594_vm2, %v1671_v14, %v1673_v40  ;;  %v2203_v58 = vsel %vm1594_vm2, %v20551_v38, %v20553_v56 }
 0x144   : > { %v1737_v3 = vadd.f32 %v1672_v57, %v1480_v4  ;;  %v1865_v11 = vsel %vm1787_vm3, %v1863_v8, %v1864_v2  ;;  %v1867_v61 = vsel %vm1787_vm3, %v1864_v2, %v1866_v45  ;;  %v2969_v26 = vadd.f32 %v2901_v37, %v2777_v12 }
 0x145   : > { %v2970_v43 = vadd.f32 %v2903_v19, %v2778_v7  ;;  %v1738_v55 = vadd.f32 %v1674_v25, %v1481_v42  ;;  %v2299_v60 = vunpack.c.l.bf16 %v13197_v5  ;;  %v2395_v31 = vsel %vm1787_vm3, %v20555_v6, %v20554_v36 }
 0x146   : > { %v1930_v13 = vadd.f32 %v1865_v11, %v1737_v3  ;;  %v2523_v41 = vunpack.c.l.bf16 %v13228_v22  ;;  %v3001_v16 = vmul.f32 0.11111111, %v2969_v26  ;;  %v2524_v30 = vunpack.c.h.bf16 %v13228_v22 }
 0x147   : > { %v3002_v62 = vmul.f32 0.11111111, %v2970_v43  ;;  %v1931_v4 = vadd.f32 %v1867_v61, %v1738_v55  ;;  %v2391_v42 = vrot.slane %v2299_v60, 2  ;;  %v2588_v19 = vunpack.c.l.bf16 %v13245_v20  ;;  %v18242_v24 = vpop.f32.mrb[20].mxu0 }
 0x148   : > { %v2026_v37 = vadd.f32 %v18197_v18, %v1930_v13  ;;  %v2712_v48 = vrot.slane %v2523_v41, 1  ;;  %20556 = vst [vmem:[#allocation27_spill] sm:$0xff] %v18242_v24  ;;  %v2713_v14 = vrot.slane %v2524_v30, 1  ;;  %v2812_v40 = vunpack.c.l.bf16 %v13261_v39  ;;  %v18245_v8 = vpop.f32.mrb[21].mxu0 }
 0x149   : > { %v3019_v44 = vpack.c.bf16 %v3002_v62, %v3001_v16  ;;  %v2027_v50 = vadd.f32 %v18200_v63, %v1931_v4  ;;  %20557 = vst [vmem:[#allocation25_spill] sm:$0xff] %v18245_v8  ;;  %v2393_v45 = vsel %vm1787_vm3, %v2391_v42, %v20555_v6  ;;  %v2715_v12 = vrot.slane %v2588_v19, 1  ;;  %v18249_v7 = vpop.f32.mrb[22].mxu0  ;;  %v18262_v6 = vld [vmem:[%s17090_s16] sm:$0xff]   ;;  %v18270_v16 = vld [vmem:[%s17090_s16 + $0x8] sm:$0xff]   ;;  %v18273_v62 = vld [vmem:[%s17090_s16 + $0x10] sm:$0xff]  }
 0x14a   : > { %v2266_v2 = vadd.f32 %v2201_v54, %v2026_v37  ;;  %20558 = vst [vmem:[#allocation29_spill] sm:$0xff] %v18249_v7  ;;  %v2904_v57 = vrot.slane %v2812_v40, 2  ;;  %v2905_v38 = vrot.slane %v2524_v30, 2  ;;  %v18251_v0 = vpop.f32.mrb[23].mxu0  ;;  %v2907_v22 = vrot.slane %v2588_v19, 2  ;;  %v16819_v4 = vld [vmem:[%s20386_s4 + $0x8] sm:$0xff]  }
 0x14b   : > { %14815 = vmatprep.mubr.bf16.mxu0 %v3019_v44  ;;  %v2267_v18 = vadd.f32 %v2203_v58, %v2027_v50  ;;  %20559 = vst [vmem:[#allocation28_spill] sm:$0xff] %v18251_v0  ;;  %v2714_v25 = vsel %vm1594_vm2, %v2712_v48, %v2713_v14  ;;  %v2716_v54 = vsel %vm1594_vm2, %v2713_v14, %v2715_v12  ;;  %v16824_v42 = vld [vmem:[%s20386_s4 + $0x10] sm:$0xff]   ;;  %v18293_v44 = vld [vmem:[%s17090_s16 + $0x18] sm:$0xff]   ;;  %v18296_v50 = vld [vmem:[%s17090_s16 + $0x20] sm:$0xff]  }
 0x14c   : > { %v2458_v5 = vadd.f32 %v2393_v45, %v2266_v2  ;;  %v2906_v61 = vsel %vm1787_vm3, %v2904_v57, %v2905_v38  ;;  %v2908_v43 = vsel %vm1787_vm3, %v2905_v38, %v2907_v22  ;;  %v16836_v2 = vld [vmem:[%s20386_s4 + $0x20] sm:$0xff]   ;;  %v18318_v57 = vld [vmem:[%s17090_s16 + $0x30] sm:$0xff]   ;;  %v16841_v38 = vld [vmem:[%s20386_s4 + $0x28] sm:$0xff]  }
 0x14d   : > { %v2459_v63 = vadd.f32 %v2395_v31, %v2267_v18  ;;  %v18315_v18 = vld [vmem:[%s17090_s16 + $0x28] sm:$0xff]   ;;  %v18543_v0 = vld [vmem:[%s17090_s16 + $0x118] sm:$0xff]  }
 0x14e   : > { %v2555_v3 = vadd.f32 %v2523_v41, %v2458_v5 }
 0x14f   : > { %v2556_v11 = vadd.f32 %v2524_v30, %v2459_v63 }
 0x150   : > { %v2779_v26 = vadd.f32 %v2714_v25, %v2555_v3  ;;  %v16846_v25 = vld [vmem:[%s20386_s4 + $0x30] sm:$0xff]  }
 0x151   : > { %v2780_v55 = vadd.f32 %v2716_v54, %v2556_v11  ;;  %v18337_v54 = vld [vmem:[%s17090_s16 + $0x38] sm:$0xff]   ;;  %v18340_v11 = vld [vmem:[%s17090_s16 + $0x40] sm:$0xff]  }
 0x152   : > { %v2971_v56 = vadd.f32 %v2906_v61, %v2779_v26  ;;  %v16851_v61 = vld [vmem:[%s20386_s4 + $0x38] sm:$0xff]  }
 0x153   : > { %v2972_v58 = vadd.f32 %v2908_v43, %v2780_v55 }
 0x154   : > { %v3003_v20 = vmul.f32 0.11111111, %v2971_v56  ;;  %v18257_v13 = vpop.f32.mrb[24].mxu0 }
 0x155   : > { %20560 = vst [vmem:[#allocation31_spill] sm:$0xff] %v18257_v13  ;;  %v3004_v60 = vmul.f32 0.11111111, %v2972_v58  ;;  %v18259_v36 = vpop.f32.mrb[25].mxu0  ;;  %v18356_v58 = vld [vmem:[%s17090_s16 + $0x48] sm:$0xff]  }
 0x156   : > { %20561 = vst [vmem:[#allocation32_spill] sm:$0xff] %v18259_v36  ;;  %v18264_v31 = vpop.f32.mrb[26].mxu0 }
 0x157   : > { %20562 = vst [vmem:[#allocation30_spill] sm:$0xff] %v18264_v31  ;;  %v3020_v41 = vpack.c.bf16 %v3004_v60, %v3003_v20  ;;  %v18266_v39 = vpop.f32.mrb[27].mxu0  ;;  %v18359_v20 = vld [vmem:[%s17090_s16 + $0x50] sm:$0xff]  }
 0x158   : > { %20563 = vst [vmem:[#allocation34_spill] sm:$0xff] %v18266_v39 }
 0x159   : > { %14816 = vmatmul.mubr.bf16.gmra.mrb[92].mxu0 %v3020_v41 }
 0x15a   : > { %14835 = vmatprep.mubr.bf16.mxu0 %v18262_v6 }
 0x160   : > { %v18279_v30 = vpop.f32.mrb[28].mxu0 }
 0x161   : > { %14836 = vmatmul.mubr.bf16.vlgmr.msra.gmra.mrb[96].mxu0 %v18270_v16  ;;  %20564 = vst [vmem:[#allocation33_spill] sm:$0xff] %v18279_v30  ;;  %v18283_v37 = vpop.f32.mrb[29].mxu0  ;;  %v18530_v30 = vld [vmem:[%s17090_s16 + $0x110] sm:$0xff]  }
 0x162   : > { %14908 = vmatpush3.bf16.msra.mxu0 %v17946_v1  ;;  %14839 = vmatprep.mubr.bf16.mxu0 %v18273_v62  ;;  %20565 = vst [vmem:[#allocation35_spill] sm:$0xff] %v18283_v37  ;;  %v18288_v19 = vpop.f32.mrb[30].mxu0  ;;  %v16829_v1 = vld [vmem:[%s20386_s4 + $0x18] sm:$0xff]   ;;  %v18522_v37 = vld [vmem:[%s17090_s16 + $0x100] sm:$0xff]  }
 0x163   : > { %14909 = vmatprep.subr.bf16.mxu0 %v16819_v4  ;;  %20566 = vst [vmem:[#allocation37_spill] sm:$0xff] %v18288_v19  ;;  %v18290_v48 = vpop.f32.mrb[31].mxu0 }
 0x164   : > { %20567 = vst [vmem:[#allocation36_spill] sm:$0xff] %v18290_v48 }
 0x166   : > { %14910 = vmatpush3.bf16.msra.mxu0 %v16819_v4 }
 0x167   : > { %14911 = vmatprep.subr.bf16.mxu0 %v16824_v42 }
 0x168   : > { %v18302_v14 = vpop.f32.mrb[32].mxu0 }
 0x169   : > { %14840 = vmatmul.mubr.bf16.gmra.mrb[100].mxu0 %v18293_v44  ;;  %20568 = vst [vmem:[#allocation39_spill] sm:$0xff] %v18302_v14  ;;  %v18305_v40 = vpop.f32.mrb[33].mxu0 }
 0x16a   : > { %14843 = vmatprep.mubr.bf16.mxu0 %v18296_v50  ;;  %14912 = vmatpush3.bf16.msra.mxu0 %v16824_v42  ;;  %20569 = vst [vmem:[#allocation38_spill] sm:$0xff] %v18305_v40  ;;  %v18310_v45 = vpop.f32.mrb[34].mxu0 }
 0x16b   : > { %14913 = vmatprep.subr.bf16.mxu0 %v16829_v1  ;;  %20570 = vst [vmem:[#allocation41_spill] sm:$0xff] %v18310_v45  ;;  %v18312_v12 = vpop.f32.mrb[35].mxu0 }
 0x16c   : > { %20571 = vst [vmem:[#allocation42_spill] sm:$0xff] %v18312_v12 }
 0x16e   : > { %14914 = vmatpush3.bf16.msra.mxu0 %v16829_v1  ;;  %v18372_v1 = vld [vmem:[%s17090_s16 + $0x58] sm:$0xff]  }
 0x16f   : > { %14915 = vmatprep.subr.bf16.mxu0 %v16836_v2 }
 0x170   : > { %v18324_v5 = vpop.f32.mrb[36].mxu0 }
 0x171   : > { %14844 = vmatmul.mubr.bf16.gmra.mrb[104].mxu0 %v18315_v18  ;;  %20572 = vst [vmem:[#allocation40_spill] sm:$0xff] %v18324_v5  ;;  %v18327_v22 = vpop.f32.mrb[37].mxu0 }
 0x172   : > { %14847 = vmatprep.mubr.bf16.mxu0 %v18318_v57  ;;  %14916 = vmatpush3.bf16.msra.mxu0 %v16836_v2  ;;  %20573 = vst [vmem:[#allocation44_spill] sm:$0xff] %v18327_v22  ;;  %v18329_v63 = vpop.f32.mrb[38].mxu0  ;;  %v18375_v2 = vld [vmem:[%s17090_s16 + $0x60] sm:$0xff]  }
 0x173   : > { %14917 = vmatprep.subr.bf16.mxu0 %v16841_v38  ;;  %20574 = vst [vmem:[#allocation43_spill] sm:$0xff] %v18329_v63  ;;  %v18334_v3 = vpop.f32.mrb[39].mxu0 }
 0x174   : > { %20575 = vst [vmem:[#allocation46_spill] sm:$0xff] %v18334_v3 }
 0x176   : > { %14918 = vmatpush3.bf16.msra.mxu0 %v16841_v38 }
 0x177   : > { %14919 = vmatprep.subr.bf16.mxu0 %v16846_v25 }
 0x178   : > { %v18346_v26 = vpop.f32.mrb[40].mxu0 }
 0x179   : > { %14848 = vmatmul.mubr.bf16.gmra.mrb[108].mxu0 %v18337_v54  ;;  %20576 = vst [vmem:[#allocation47_spill] sm:$0xff] %v18346_v26  ;;  %v18349_v43 = vpop.f32.mrb[41].mxu0 }
 0x17a   : > { %14851 = vmatprep.mubr.bf16.mxu0 %v18340_v11  ;;  %20577 = vst [vmem:[#allocation45_spill] sm:$0xff] %v18349_v43  ;;  %14920 = vmatpush3.bf16.msra.mxu0 %v16846_v25  ;;  %v18351_v55 = vpop.f32.mrb[42].mxu0 }
 0x17b   : > { %20578 = vst [vmem:[#allocation50_spill] sm:$0xff] %v18351_v55  ;;  %14921 = vmatprep.subr.bf16.mxu0 %v16851_v61  ;;  %v18353_v56 = vpop.f32.mrb[43].mxu0 }
 0x17c   : > { %20579 = vst [vmem:[#allocation49_spill] sm:$0xff] %v18353_v56 }
 0x17e   : > { %14922 = vmatpush3.bf16.msra.mxu0 %v16851_v61 }
 0x180   : > { %v18362_v60 = vpop.f32.mrb[44].mxu0 }
 0x181   : > { %14852 = vmatmul.mubr.bf16.gmra.mrb[112].mxu0 %v18356_v58  ;;  %20580 = vst [vmem:[#allocation52_spill] sm:$0xff] %v18362_v60  ;;  %v18365_v41 = vpop.f32.mrb[45].mxu0 }
 0x182   : > { %14855 = vmatprep.mubr.bf16.mxu0 %v18359_v20  ;;  %20581 = vst [vmem:[#allocation53_spill] sm:$0xff] %v18365_v41  ;;  %v18367_v4 = vpop.f32.mrb[46].mxu0 }
 0x183   : > { %20582 = vst [vmem:[#allocation51_spill] sm:$0xff] %v18367_v4  ;;  %v18369_v42 = vpop.f32.mrb[47].mxu0  ;;  %v18388_v4 = vld [vmem:[%s17090_s16 + $0x68] sm:$0xff]  }
 0x184   : > { %20583 = vst [vmem:[#allocation56_spill] sm:$0xff] %v18369_v42  ;;  %v18391_v42 = vld [vmem:[%s17090_s16 + $0x70] sm:$0xff]  }
 0x188   : > { %v18378_v38 = vpop.f32.mrb[48].mxu0 }
 0x189   : > { %14856 = vmatmul.mubr.bf16.gmra.mrb[116].mxu0 %v18372_v1  ;;  %20584 = vst [vmem:[#allocation55_spill] sm:$0xff] %v18378_v38  ;;  %v18381_v25 = vpop.f32.mrb[49].mxu0 }
 0x18a   : > { %14859 = vmatprep.mubr.bf16.mxu0 %v18375_v2  ;;  %20585 = vst [vmem:[#allocation57_spill] sm:$0xff] %v18381_v25  ;;  %v18383_v61 = vpop.f32.mrb[50].mxu0 }
 0x18b   : > { %20586 = vst [vmem:[#allocation59_spill] sm:$0xff] %v18383_v61  ;;  %v18385_v41 = vpop.f32.mrb[51].mxu0  ;;  %v18404_v61 = vld [vmem:[%s17090_s16 + $0x78] sm:$0xff]  }
 0x18c   : > { %20587 = vst [vmem:[#allocation58_spill] sm:$0xff] %v18385_v41  ;;  %v18407_v41 = vld [vmem:[%s17090_s16 + $0x80] sm:$0xff]  }
 0x190   : > { %v18394_v60 = vpop.f32.mrb[52].mxu0 }
 0x191   : > { %14860 = vmatmul.mubr.bf16.gmra.mrb[120].mxu0 %v18388_v4  ;;  %20588 = vst [vmem:[#allocation61_spill] sm:$0xff] %v18394_v60  ;;  %v18397_v38 = vpop.f32.mrb[53].mxu0 }
 0x192   : > { %14863 = vmatprep.mubr.bf16.mxu0 %v18391_v42  ;;  %20589 = vst [vmem:[#allocation60_spill] sm:$0xff] %v18397_v38  ;;  %v18399_v56 = vpop.f32.mrb[54].mxu0 }
 0x193   : > { %20590 = vst [vmem:[#allocation63_spill] sm:$0xff] %v18399_v56  ;;  %v18401_v25 = vpop.f32.mrb[55].mxu0  ;;  %v18420_v56 = vld [vmem:[%s17090_s16 + $0x88] sm:$0xff]  }
 0x194   : > { %20591 = vst [vmem:[#allocation64_spill] sm:$0xff] %v18401_v25  ;;  %v18423_v25 = vld [vmem:[%s17090_s16 + $0x90] sm:$0xff]  }
 0x198   : > { %v18410_v55 = vpop.f32.mrb[56].mxu0 }
 0x199   : > { %14864 = vmatmul.mubr.bf16.gmra.mrb[124].mxu0 %v18404_v61  ;;  %20592 = vst [vmem:[#allocation62_spill] sm:$0xff] %v18410_v55  ;;  %v18413_v60 = vpop.f32.mrb[57].mxu0 }
 0x19a   : > { %14867 = vmatprep.mubr.bf16.mxu0 %v18407_v41  ;;  %20593 = vst [vmem:[#allocation65_spill] sm:$0xff] %v18413_v60  ;;  %v18415_v43 = vpop.f32.mrb[58].mxu0 }
 0x19b   : > { %20594 = vst [vmem:[#allocation66_spill] sm:$0xff] %v18415_v43  ;;  %v18417_v38 = vpop.f32.mrb[59].mxu0  ;;  %v18436_v43 = vld [vmem:[%s17090_s16 + $0x98] sm:$0xff]  }
 0x19c   : > { %20595 = vst [vmem:[#allocation67_spill] sm:$0xff] %v18417_v38  ;;  %v18439_v38 = vld [vmem:[%s17090_s16 + $0xa0] sm:$0xff]  }
 0x1a0   : > { %v18426_v26 = vpop.f32.mrb[60].mxu0 }
 0x1a1   : > { %14868 = vmatmul.mubr.bf16.gmra.mrb[128].mxu0 %v18420_v56  ;;  %20596 = vst [vmem:[#allocation68_spill] sm:$0xff] %v18426_v26  ;;  %v18429_v55 = vpop.f32.mrb[61].mxu0 }
 0x1a2   : > { %14871 = vmatprep.mubr.bf16.mxu0 %v18423_v25  ;;  %20597 = vst [vmem:[#allocation69_spill] sm:$0xff] %v18429_v55  ;;  %v18431_v3 = vpop.f32.mrb[62].mxu0 }
 0x1a3   : > { %20598 = vst [vmem:[#allocation70_spill] sm:$0xff] %v18431_v3  ;;  %v18433_v60 = vpop.f32.mrb[63].mxu0  ;;  %v18452_v3 = vld [vmem:[%s17090_s16 + $0xa8] sm:$0xff]  }
 0x1a4   : > { %20599 = vst [vmem:[#allocation71_spill] sm:$0xff] %v18433_v60  ;;  %v18455_v60 = vld [vmem:[%s17090_s16 + $0xb0] sm:$0xff]  }
 0x1a8   : > { %v18442_v63 = vpop.f32.mrb[64].mxu0 }
 0x1a9   : > { %14872 = vmatmul.mubr.bf16.gmra.mrb[132].mxu0 %v18436_v43  ;;  %20600 = vst [vmem:[#allocation72_spill] sm:$0xff] %v18442_v63  ;;  %v18445_v26 = vpop.f32.mrb[65].mxu0  ;;  %v18484_v63 = vld [vmem:[%s17090_s16 + $0xc8] sm:$0xff]  }
 0x1aa   : > { %14875 = vmatprep.mubr.bf16.mxu0 %v18439_v38  ;;  %20601 = vst [vmem:[#allocation73_spill] sm:$0xff] %v18445_v26  ;;  %v18447_v22 = vpop.f32.mrb[66].mxu0 }
 0x1ab   : > { %20602 = vst [vmem:[#allocation74_spill] sm:$0xff] %v18447_v22  ;;  %v18449_v55 = vpop.f32.mrb[67].mxu0  ;;  %v18471_v22 = vld [vmem:[%s17090_s16 + $0xc0] sm:$0xff]  }
 0x1ac   : > { %20603 = vst [vmem:[#allocation75_spill] sm:$0xff] %v18449_v55  ;;  %v18468_v55 = vld [vmem:[%s17090_s16 + $0xb8] sm:$0xff]  }
 0x1b0   : > { %v18458_v5 = vpop.f32.mrb[68].mxu0 }
 0x1b1   : > { %14876 = vmatmul.mubr.bf16.gmra.mrb[136].mxu0 %v18452_v3  ;;  %20604 = vst [vmem:[#allocation76_spill] sm:$0xff] %v18458_v5  ;;  %v18461_v12 = vpop.f32.mrb[69].mxu0 }
 0x1b2   : > { %14879 = vmatprep.mubr.bf16.mxu0 %v18455_v60  ;;  %20605 = vst [vmem:[#allocation77_spill] sm:$0xff] %v18461_v12  ;;  %v18463_v45 = vpop.f32.mrb[70].mxu0 }
 0x1b3   : > { %20606 = vst [vmem:[#allocation78_spill] sm:$0xff] %v18463_v45  ;;  %v18465_v40 = vpop.f32.mrb[71].mxu0  ;;  %v18492_v45 = vld [vmem:[%s17090_s16 + $0xd8] sm:$0xff]  }
 0x1b4   : > { %20607 = vst [vmem:[#allocation79_spill] sm:$0xff] %v18465_v40  ;;  %v18487_v40 = vld [vmem:[%s17090_s16 + $0xd0] sm:$0xff]  }
 0x1b8   : > { %v18474_v14 = vpop.f32.mrb[72].mxu0 }
 0x1b9   : > { %14880 = vmatmul.mubr.bf16.gmra.mrb[140].mxu0 %v18468_v55  ;;  %20608 = vst [vmem:[#allocation80_spill] sm:$0xff] %v18474_v14  ;;  %v18477_v5 = vpop.f32.mrb[73].mxu0  ;;  %v18495_v14 = vld [vmem:[%s17090_s16 + $0xe0] sm:$0xff]  }
 0x1ba   : > { %14883 = vmatprep.mubr.bf16.mxu0 %v18471_v22  ;;  %20609 = vst [vmem:[#allocation81_spill] sm:$0xff] %v18477_v5  ;;  %v18479_v26 = vpop.f32.mrb[74].mxu0 }
 0x1bb   : > { %20610 = vst [vmem:[#allocation82_spill] sm:$0xff] %v18479_v26  ;;  %v18481_v12 = vpop.f32.mrb[75].mxu0 }
 0x1bc   : > { %20611 = vst [vmem:[#allocation83_spill] sm:$0xff] %v18481_v12  ;;  %v16856_v12 = vld [vmem:[%s20385_s3 + $0x8] sm:$0xff]  }
 0x1bd   : > { %14995 = vmatprep.subr.bf16.mxu0 %v16856_v12  ;;  %15967 = vmatprep.subr.bf16.mxu1 %v16856_v12 }
 0x1be   : > { %15968 = vmatpush3.bf16.msra.mxu1 %v16856_v12 }
 0x1c1   : > { %14884 = vmatmul.mubr.bf16.gmra.mrb[144].mxu0 %v18484_v63 }
 0x1c2   : > { %14887 = vmatprep.mubr.bf16.mxu0 %v18487_v40 }
 0x1c6   : > { %v18497_v5 = vpop.f32.mrb[76].mxu0 }
 0x1c7   : > { %20612 = vst [vmem:[#allocation84_spill] sm:$0xff] %v18497_v5  ;;  %v18499_v26 = vpop.f32.mrb[77].mxu0  ;;  %v18511_v5 = vld [vmem:[%s17090_s16 + $0xe8] sm:$0xff]  }
 0x1c8   : > { %20613 = vst [vmem:[#allocation85_spill] sm:$0xff] %v18499_v26  ;;  %v18504_v48 = vpop.f32.mrb[78].mxu0  ;;  %v18514_v26 = vld [vmem:[%s17090_s16 + $0xf0] sm:$0xff]  }
 0x1c9   : > { %20614 = vst [vmem:[#allocation86_spill] sm:$0xff] %v18504_v48  ;;  %14888 = vmatmul.mubr.bf16.gmra.mrb[148].mxu0 %v18492_v45  ;;  %v18507_v19 = vpop.f32.mrb[79].mxu0  ;;  %v18519_v48 = vld [vmem:[%s17090_s16 + $0xf8] sm:$0xff]  }
 0x1ca   : > { %20615 = vst [vmem:[#allocation87_spill] sm:$0xff] %v18507_v19  ;;  %14891 = vmatprep.mubr.bf16.mxu0 %v18495_v14  ;;  %v18527_v19 = vld [vmem:[%s17090_s16 + $0x108] sm:$0xff]   ;;  %s20212_s16 = scalar_lea.vmem [#allocation5], %s13068_s29 }
 0x1cb   : > { %s13002_s17 = sshll.u32 %s20212_s16, 4  ;;  %s20334_s17 = int_to_ptr.vmem [resolvable:$true] %s13002_s17 }
 0x1cc   : > { %s16910_s24 = scalar_lea.vmem %s20334_s17, 4096  ;;  %p16917_p0 = scmp.lt.s32.totalorder %s20334_s17, %s16915_s26 }
 0x1cd   : > { %p16911_p11 = scmp.ne.s32.totalorder %s20334_s17, %s16910_s24  ;;  %p16918_p1 = scmp.lt.s32.totalorder %s16916_s27, %s16910_s24 }
 0x1cf   : > { %p16912_p12 = pnand %p16911_p11, %p17066_p5  ;;  %p16919_p2 = por %p16918_p1, %p16917_p0 }
 0x1d1   : > { %14892 = vmatmul.mubr.bf16.gmra.mrb[152].mxu0 %v18511_v5  ;;  %p16913_p13 = pneg %p16912_p12 }
 0x1d2   : > { %14895 = vmatprep.mubr.bf16.mxu0 %v18514_v26 }
 0x1d3   : > { %p16920_p3 = pnand %p16919_p2, %p16913_p13 }
 0x1d9   : > { %14896 = vmatmul.mubr.bf16.gmra.mrb[156].mxu0 %v18519_v48 }
 0x1da   : > { %14899 = vmatprep.mubr.bf16.mxu0 %v18522_v37 }
 0x1df   : > { %v18532_v39 = vpop.f32.mrb[80].mxu0 }
 0x1e0   : > { %20616 = vst [vmem:[#allocation88_spill] sm:$0xff] %v18532_v39  ;;  %v18534_v31 = vpop.f32.mrb[81].mxu0 }
 0x1e1   : > { %20617 = vst [vmem:[#allocation89_spill] sm:$0xff] %v18534_v31  ;;  %14900 = vmatmul.mubr.bf16.gmra.mrb[160].mxu0 %v18527_v19  ;;  %v18537_v36 = vpop.f32.mrb[82].mxu0 }
 0x1e2   : > { %20618 = vst [vmem:[#allocation90_spill] sm:$0xff] %v18537_v36  ;;  %14903 = vmatprep.mubr.bf16.mxu0 %v18530_v30  ;;  %v18540_v13 = vpop.f32.mrb[83].mxu0 }
 0x1e3   : > { %20619 = vst [vmem:[#allocation91_spill] sm:$0xff] %v18540_v13 }
 0x1e9   : > { %14904 = vmatmul.mubr.bf16.gmra.mrb[164].mxu0 %v18543_v0 }
 0x1ea   : > { %14923 = vmatprep.mubr.bf16.mxu0 %v18262_v6 }
 0x1f1   : > { %14924 = vmatmul.mubr.bf16.vlgmr.msra.gmra.mrb[168].mxu0 %v18270_v16 }
 0x1f2   : > { %14927 = vmatprep.mubr.bf16.mxu0 %v18273_v62  ;;  %14996 = vmatpush3.bf16.msra.mxu0 %v16856_v12 }
 0x1f9   : > { %14928 = vmatmul.mubr.bf16.gmra.mrb[172].mxu0 %v18293_v44  ;;  %v18550_v31 = vpop.f32.mrb[84].mxu0 }
 0x1fa   : > { %20620 = vst [vmem:[#allocation92_spill] sm:$0xff] %v18550_v31  ;;  %14931 = vmatprep.mubr.bf16.mxu0 %v18296_v50  ;;  %v18553_v36 = vpop.f32.mrb[85].mxu0  ;;  %v18578_v50 = vld [vmem:[%s20385_s3] sm:$0xff]  }
 0x1fb   : > { %20621 = vst [vmem:[#allocation93_spill] sm:$0xff] %v18553_v36  ;;  %v18555_v13 = vpop.f32.mrb[86].mxu0  ;;  %15029 = vmatprep.subr.bf16.mxu1 %v18578_v50 }
 0x1fc   : > { %20622 = vst [vmem:[#allocation94_spill] sm:$0xff] %v18555_v13  ;;  %v18557_v39 = vpop.f32.mrb[87].mxu0  ;;  %v19013_v13 = vld [vmem:[%s20385_s3 + $0x30] sm:$0xff]  }
 0x1fd   : > { %20623 = vst [vmem:[#allocation95_spill] sm:$0xff] %v18557_v39 }
 0x201   : > { %14932 = vmatmul.mubr.bf16.gmra.mrb[176].mxu0 %v18315_v18 }
 0x202   : > { %14935 = vmatprep.mubr.bf16.mxu0 %v18318_v57 }
 0x209   : > { %14936 = vmatmul.mubr.bf16.gmra.mrb[180].mxu0 %v18337_v54 }
 0x20a   : > { %14939 = vmatprep.mubr.bf16.mxu0 %v18340_v11 }
 0x211   : > { %14940 = vmatmul.mubr.bf16.gmra.mrb[184].mxu0 %v18356_v58 }
 0x212   : > { %14943 = vmatprep.mubr.bf16.mxu0 %v18359_v20  ;;  %v18565_v6 = vpop.f32.mrb[88].mxu0 }
 0x213   : > { %20624 = vst [vmem:[#allocation96_spill] sm:$0xff] %v18565_v6  ;;  %v18567_v16 = vpop.f32.mrb[89].mxu0 }
 0x214   : > { %20625 = vst [vmem:[#allocation97_spill] sm:$0xff] %v18567_v16  ;;  %v18569_v62 = vpop.f32.mrb[90].mxu0 }
 0x215   : > { %20626 = vst [vmem:[#allocation98_spill] sm:$0xff] %v18569_v62  ;;  %v18571_v44 = vpop.f32.mrb[91].mxu0 }
 0x216   : > { %20627 = vst [vmem:[#allocation99_spill] sm:$0xff] %v18571_v44 }
 0x219   : > { %14944 = vmatmul.mubr.bf16.gmra.mrb[188].mxu0 %v18372_v1 }
 0x21a   : > { %14947 = vmatprep.mubr.bf16.mxu0 %v18375_v2 }
 0x221   : > { %14948 = vmatmul.mubr.bf16.gmra.mrb[192].mxu0 %v18388_v4 }
 0x222   : > { %14951 = vmatprep.mubr.bf16.mxu0 %v18391_v42 }
 0x229   : > { %14952 = vmatmul.mubr.bf16.gmra.mrb[196].mxu0 %v18404_v61 }
 0x22a   : > { %14955 = vmatprep.mubr.bf16.mxu0 %v18407_v41 }
 0x22c   : > { %v18585_v12 = vpop.f32.mrb[92].mxu0 }
 0x22d   : > { %20628 = vst [vmem:[#allocation100_spill] sm:$0xff] %v18585_v12  ;;  %v18587_v18 = vpop.f32.mrb[93].mxu0 }
 0x22e   : > { %20629 = vst [vmem:[#allocation101_spill] sm:$0xff] %v18587_v18  ;;  %v18589_v57 = vpop.f32.mrb[94].mxu0 }
 0x22f   : > { %20630 = vst [vmem:[#allocation102_spill] sm:$0xff] %v18589_v57  ;;  %v18591_v54 = vpop.f32.mrb[95].mxu0 }
 0x230   : > { %20631 = vst [vmem:[#allocation103_spill] sm:$0xff] %v18591_v54 }
 0x231   : > { %14956 = vmatmul.mubr.bf16.gmra.mrb[200].mxu0 %v18420_v56 }
 0x232   : > { %14959 = vmatprep.mubr.bf16.mxu0 %v18423_v25 }
 0x234   : > { %v14837_v11 = vpop.f32.mrb[96].mxu0 }
 0x235   : > { %v3881_v58 = vmax.f32 %v14837_v11, 0.0  ;;  %v3592_v20 = vpop.f32.mrb[97].mxu0 }
 0x236   : > { %v3879_v4 = vmax.f32 %v3592_v20, 0.0  ;;  %v14838_v42 = vpop.f32.mrb[98].mxu0 }
 0x237   : > { %3954 = vst.msk [vmem:[#allocation2 + $0x10] sm:$0xff] %vm3951_vm5, %v3881_v58  ;;  %v3882_v41 = vmax.f32 %v14838_v42, 0.0  ;;  %v3595_v1 = vpop.f32.mrb[99].mxu0 }
 0x238   : > { %3952 = vst.msk [vmem:[#allocation2] sm:$0xff] %vm3951_vm5, %v3879_v4  ;;  %v3880_v2 = vmax.f32 %v3595_v1, 0.0 }
 0x239   : > { %3955 = vst.msk [vmem:[#allocation2 + $0x18] sm:$0xff] %vm3951_vm5, %v3882_v41  ;;  %14960 = vmatmul.mubr.bf16.gmra.mrb[204].mxu0 %v18436_v43 }
 0x23a   : > { %3953 = vst.msk [vmem:[#allocation2 + $0x8] sm:$0xff] %vm3951_vm5, %v3880_v2  ;;  %14963 = vmatprep.mubr.bf16.mxu0 %v18439_v38 }
 0x23c   : > { %v14841_v56 = vpop.f32.mrb[100].mxu0 }
 0x23d   : > { %v3885_v25 = vmax.f32 %v14841_v56, 0.0  ;;  %v3608_v61 = vpop.f32.mrb[101].mxu0 }
 0x23e   : > { %v3883_v11 = vmax.f32 %v3608_v61, 0.0  ;;  %v14842_v20 = vpop.f32.mrb[102].mxu0 }
 0x23f   : > { %3958 = vst.msk [vmem:[#allocation2 + $0x30] sm:$0xff] %vm3951_vm5, %v3885_v25  ;;  %v3886_v58 = vmax.f32 %v14842_v20, 0.0  ;;  %v3611_v42 = vpop.f32.mrb[103].mxu0 }
 0x240   : > { %3956 = vst.msk [vmem:[#allocation2 + $0x20] sm:$0xff] %vm3951_vm5, %v3883_v11  ;;  %v3884_v4 = vmax.f32 %v3611_v42, 0.0 }
 0x241   : > { %3959 = vst.msk [vmem:[#allocation2 + $0x38] sm:$0xff] %vm3951_vm5, %v3886_v58  ;;  %14964 = vmatmul.mubr.bf16.gmra.mrb[208].mxu0 %v18452_v3 }
 0x242   : > { %3957 = vst.msk [vmem:[#allocation2 + $0x28] sm:$0xff] %vm3951_vm5, %v3884_v4  ;;  %14967 = vmatprep.mubr.bf16.mxu0 %v18455_v60 }
 0x244   : > { %v14845_v43 = vpop.f32.mrb[104].mxu0 }
 0x245   : > { %v3889_v38 = vmax.f32 %v14845_v43, 0.0  ;;  %v3624_v41 = vpop.f32.mrb[105].mxu0 }
 0x246   : > { %v3887_v1 = vmax.f32 %v3624_v41, 0.0  ;;  %v14846_v2 = vpop.f32.mrb[106].mxu0 }
 0x247   : > { %3962 = vst.msk [vmem:[#allocation2 + $0x50] sm:$0xff] %vm3951_vm5, %v3889_v38  ;;  %v3890_v56 = vmax.f32 %v14846_v2, 0.0  ;;  %v3627_v25 = vpop.f32.mrb[107].mxu0  ;;  %v5087_v18 = vld [vmem:[#allocation2 + $0x1a] sm:$0xff] }
 0x248   : > { %3960 = vst.msk [vmem:[#allocation2 + $0x40] sm:$0xff] %vm3951_vm5, %v3887_v1  ;;  %v3888_v61 = vmax.f32 %v3627_v25, 0.0  ;;  %v5982_v33 = vld [vmem:[#allocation2 + $0x32] sm:$0xff] }
 0x249   : > { %3963 = vst.msk [vmem:[#allocation2 + $0x58] sm:$0xff] %vm3951_vm5, %v3890_v56  ;;  %14968 = vmatmul.mubr.bf16.gmra.mrb[212].mxu0 %v18468_v55 }
 0x24a   : > { %3961 = vst.msk [vmem:[#allocation2 + $0x48] sm:$0xff] %vm3951_vm5, %v3888_v61  ;;  %14971 = vmatprep.mubr.bf16.mxu0 %v18471_v22  ;;  %v18622_v22 = vld [vmem:[%s20387_s5 + $0x10] sm:$0xff]  }
 0x24b   : > { %15301 = vmatprep.subr.bf16.mxu0 %v18622_v22 }
 0x24c   : > { %v14849_v3 = vpop.f32.mrb[108].mxu0 }
 0x24d   : > { %v3893_v60 = vmax.f32 %v14849_v3, 0.0  ;;  %v3640_v11 = vpop.f32.mrb[109].mxu0 }
 0x24e   : > { %v3891_v20 = vmax.f32 %v3640_v11, 0.0  ;;  %v14850_v58 = vpop.f32.mrb[110].mxu0 }
 0x24f   : > { %3966 = vst.msk [vmem:[#allocation2 + $0x70] sm:$0xff] %vm3951_vm5, %v3893_v60  ;;  %v3894_v42 = vmax.f32 %v14850_v58, 0.0  ;;  %v3643_v4 = vpop.f32.mrb[111].mxu0 }
 0x250   : > { %3964 = vst.msk [vmem:[#allocation2 + $0x60] sm:$0xff] %vm3951_vm5, %v3891_v20  ;;  %v3892_v43 = vmax.f32 %v3643_v4, 0.0 }
 0x251   : > { %3967 = vst.msk [vmem:[#allocation2 + $0x78] sm:$0xff] %vm3951_vm5, %v3894_v42  ;;  %14972 = vmatmul.mubr.bf16.gmra.mrb[216].mxu0 %v18484_v63 }
 0x252   : > { %3965 = vst.msk [vmem:[#allocation2 + $0x68] sm:$0xff] %vm3951_vm5, %v3892_v43  ;;  %14975 = vmatprep.mubr.bf16.mxu0 %v18487_v40 }
 0x254   : > { %v14853_v55 = vpop.f32.mrb[112].mxu0 }
 0x255   : > { %v3897_v38 = vmax.f32 %v14853_v55, 0.0  ;;  %v3656_v41 = vpop.f32.mrb[113].mxu0 }
 0x256   : > { %v3895_v1 = vmax.f32 %v3656_v41, 0.0  ;;  %v14854_v2 = vpop.f32.mrb[114].mxu0 }
 0x257   : > { %3970 = vst.msk [vmem:[#allocation2 + $0x90] sm:$0xff] %vm3951_vm5, %v3897_v38  ;;  %v3898_v56 = vmax.f32 %v14854_v2, 0.0  ;;  %v3659_v63 = vpop.f32.mrb[115].mxu0 }
 0x258   : > { %3968 = vst.msk [vmem:[#allocation2 + $0x80] sm:$0xff] %vm3951_vm5, %v3895_v1  ;;  %v3896_v25 = vmax.f32 %v3659_v63, 0.0 }
 0x259   : > { %3971 = vst.msk [vmem:[#allocation2 + $0x98] sm:$0xff] %vm3951_vm5, %v3898_v56  ;;  %14976 = vmatmul.mubr.bf16.gmra.mrb[220].mxu0 %v18492_v45 }
 0x25a   : > { %3969 = vst.msk [vmem:[#allocation2 + $0x88] sm:$0xff] %vm3951_vm5, %v3896_v25  ;;  %14979 = vmatprep.mubr.bf16.mxu0 %v18495_v14 }
 0x25c   : > { %v14857_v40 = vpop.f32.mrb[116].mxu0 }
 0x25d   : > { %v3901_v61 = vmax.f32 %v14857_v40, 0.0  ;;  %v3672_v3 = vpop.f32.mrb[117].mxu0 }
 0x25e   : > { %v3899_v60 = vmax.f32 %v3672_v3, 0.0  ;;  %v14858_v11 = vpop.f32.mrb[118].mxu0 }
 0x25f   : > { %3974 = vst.msk [vmem:[#allocation2 + $0xb0] sm:$0xff] %vm3951_vm5, %v3901_v61  ;;  %v3902_v20 = vmax.f32 %v14858_v11, 0.0  ;;  %v3675_v58 = vpop.f32.mrb[119].mxu0  ;;  %v5690_v15 = vld [vmem:[#allocation2 + $0x79] sm:$0xff] }
 0x260   : > { %3972 = vst.msk [vmem:[#allocation2 + $0xa0] sm:$0xff] %vm3951_vm5, %v3899_v60  ;;  %v3900_v42 = vmax.f32 %v3675_v58, 0.0  ;;  %v4604_v58 = vld [vmem:[#allocation2 + $0x1] sm:$0xff]  ;;  %v5692_v59 = vld [vmem:[#allocation2 + $0x91] sm:$0xff] }
 0x261   : > { %3975 = vst.msk [vmem:[#allocation2 + $0xb8] sm:$0xff] %vm3951_vm5, %v3902_v20  ;;  %14980 = vmatmul.mubr.bf16.gmra.mrb[224].mxu0 %v18511_v5  ;;  %v5096_v6 = vld [vmem:[#allocation2 + $0x82] sm:$0xff]  ;;  %v5988_v17 = vld [vmem:[#allocation2 + $0x7a] sm:$0xff] }
 0x262   : > { %3973 = vst.msk [vmem:[#allocation2 + $0xa8] sm:$0xff] %vm3951_vm5, %v3900_v42  ;;  %14983 = vmatprep.mubr.bf16.mxu0 %v18514_v26  ;;  %v4605_v42 = vld [vmem:[#allocation2 + $0x9] sm:$0xff] }
 0x264   : > { %v14861_v14 = vpop.f32.mrb[120].mxu0 }
 0x265   : > { %v3905_v45 = vmax.f32 %v14861_v14, 0.0  ;;  %v3688_v4 = vpop.f32.mrb[121].mxu0 }
 0x266   : > { %v3903_v43 = vmax.f32 %v3688_v4, 0.0  ;;  %v14862_v55 = vpop.f32.mrb[122].mxu0 }
 0x267   : > { %3978 = vst.msk [vmem:[#allocation2 + $0xd0] sm:$0xff] %vm3951_vm5, %v3905_v45  ;;  %v3906_v38 = vmax.f32 %v14862_v55, 0.0  ;;  %v3691_v41 = vpop.f32.mrb[123].mxu0  ;;  %v4636_v55 = vpack.c.bf16 %v4605_v42, %v4604_v58 }
 0x268   : > { %3976 = vst.msk [vmem:[#allocation2 + $0xc0] sm:$0xff] %vm3951_vm5, %v3903_v43  ;;  %v3904_v1 = vmax.f32 %v3691_v41, 0.0 }
 0x269   : > { %3979 = vst.msk [vmem:[#allocation2 + $0xd8] sm:$0xff] %vm3951_vm5, %v3906_v38  ;;  %14984 = vmatmul.mubr.bf16.gmra.mrb[228].mxu0 %v18519_v48 }
 0x26a   : > { %3977 = vst.msk [vmem:[#allocation2 + $0xc8] sm:$0xff] %vm3951_vm5, %v3904_v1  ;;  %14987 = vmatprep.mubr.bf16.mxu0 %v18522_v37  ;;  %v18659_v1 = vld [vmem:[%s20385_s3 + $0x10] sm:$0xff]  }
 0x26c   : > { %v14865_v5 = vpop.f32.mrb[124].mxu0 }
 0x26d   : > { %v3909_v26 = vmax.f32 %v14865_v5, 0.0  ;;  %v3704_v2 = vpop.f32.mrb[125].mxu0 }
 0x26e   : > { %v3907_v56 = vmax.f32 %v3704_v2, 0.0  ;;  %v14866_v63 = vpop.f32.mrb[126].mxu0 }
 0x26f   : > { %3982 = vst.msk [vmem:[#allocation2 + $0xf0] sm:$0xff] %vm3951_vm5, %v3909_v26  ;;  %v3910_v25 = vmax.f32 %v14866_v63, 0.0  ;;  %v3707_v40 = vpop.f32.mrb[127].mxu0  ;;  %v4607_v26 = vld [vmem:[#allocation2 + $0x21] sm:$0xff]  ;;  %v4609_v63 = vld [vmem:[#allocation2 + $0x39] sm:$0xff] }
 0x270   : > { %3980 = vst.msk [vmem:[#allocation2 + $0xe0] sm:$0xff] %vm3951_vm5, %v3907_v56  ;;  %v3908_v61 = vmax.f32 %v3707_v40, 0.0  ;;  %v4606_v40 = vld [vmem:[#allocation2 + $0x19] sm:$0xff] }
 0x271   : > { %3983 = vst.msk [vmem:[#allocation2 + $0xf8] sm:$0xff] %vm3951_vm5, %v3910_v25  ;;  %14988 = vmatmul.mubr.bf16.gmra.mrb[232].mxu0 %v18527_v19  ;;  %v4620_v48 = vld [vmem:[#allocation2 + $0xc1] sm:$0xff]  ;;  %v4621_v3 = vld [vmem:[#allocation2 + $0xc9] sm:$0xff] }
 0x272   : > { %3981 = vst.msk [vmem:[#allocation2 + $0xe8] sm:$0xff] %vm3951_vm5, %v3908_v61  ;;  %v4644_v37 = vpack.c.bf16 %v4621_v3, %v4620_v48  ;;  %14991 = vmatprep.mubr.bf16.mxu0 %v18530_v30  ;;  %v4637_v3 = vpack.c.bf16 %v4607_v26, %v4606_v40  ;;  %v4613_v26 = vld [vmem:[#allocation2 + $0x69] sm:$0xff] }
 0x274   : > { %v14869_v60 = vpop.f32.mrb[128].mxu0  ;;  %15013 = vmatprep.mubr.msk.bf16.mxu1 %vm3951_vm5, %v4644_v37  ;;  %v4608_v37 = vld [vmem:[#allocation2 + $0x31] sm:$0xff] }
 0x275   : > { %v3913_v11 = vmax.f32 %v14869_v60, 0.0  ;;  %v3720_v20 = vpop.f32.mrb[129].mxu0  ;;  %v4638_v58 = vpack.c.bf16 %v4609_v63, %v4608_v37 }
 0x276   : > { %v3911_v14 = vmax.f32 %v3720_v20, 0.0  ;;  %v14870_v45 = vpop.f32.mrb[130].mxu0 }
 0x277   : > { %3986 = vst.msk [vmem:[#allocation2 + $0x110] sm:$0xff] %vm3951_vm5, %v3913_v11  ;;  %v3914_v4 = vmax.f32 %v14870_v45, 0.0  ;;  %v3723_v19 = vpop.f32.mrb[131].mxu0  ;;  %v4622_v30 = vld [vmem:[#allocation2 + $0xd9] sm:$0xff] }
 0x278   : > { %3984 = vst.msk [vmem:[#allocation2 + $0x100] sm:$0xff] %vm3951_vm5, %v3911_v14  ;;  %v3912_v43 = vmax.f32 %v3723_v19, 0.0  ;;  %v4624_v60 = vld [vmem:[#allocation2 + $0xf1] sm:$0xff] }
 0x279   : > { %3987 = vst.msk [vmem:[#allocation2 + $0x118] sm:$0xff] %vm3951_vm5, %v3914_v4  ;;  %14992 = vmatmul.mubr.bf16.gmra.mrb[236].mxu0 %v18543_v0  ;;  %v4623_v38 = vld [vmem:[#allocation2 + $0xe1] sm:$0xff] }
 0x27a   : > { %3985 = vst.msk [vmem:[#allocation2 + $0x108] sm:$0xff] %vm3951_vm5, %v3912_v43  ;;  %14997 = vmatprep.mubr.msk.bf16.mxu0 %vm3951_vm5, %v4636_v55  ;;  %v4645_v41 = vpack.c.bf16 %v4623_v38, %v4622_v30  ;;  %v4610_v43 = vld [vmem:[#allocation2 + $0x49] sm:$0xff]  ;;  %v4611_v55 = vld [vmem:[#allocation2 + $0x51] sm:$0xff]  ;;  %v18679_v30 = vld [vmem:[%s20387_s5] sm:$0xff]  }
 0x27c   : > { %v14873_v5 = vpop.f32.mrb[132].mxu0  ;;  %15014 = vmatmul.mubr.msk.bf16.vlgmr.msra.gmra.mrb[0].mxu1 %vm3951_vm5, %v4645_v41 }
 0x27d   : > { %v3917_v2 = vmax.f32 %v14873_v5, 0.0  ;;  %v3736_v56 = vpop.f32.mrb[133].mxu0  ;;  %15030 = vmatpush3.bf16.msra.mxu1 %v18578_v50  ;;  %v16859_v50 = vld [vmem:[%s20387_s5 + $0x18] sm:$0xff]   ;;  %v4612_v5 = vld [vmem:[#allocation2 + $0x61] sm:$0xff] }
 0x27e   : > { %v3915_v0 = vmax.f32 %v3736_v56, 0.0  ;;  %v14874_v25 = vpop.f32.mrb[134].mxu0  ;;  %15063 = vmatprep.subr.bf16.mxu1 %v18659_v1  ;;  %v4640_v40 = vpack.c.bf16 %v4613_v26, %v4612_v5 }
 0x27f   : > { %3990 = vst.msk [vmem:[#allocation2 + $0x130] sm:$0xff] %vm3951_vm5, %v3917_v2  ;;  %v3918_v61 = vmax.f32 %v14874_v25, 0.0  ;;  %v3739_v48 = vpop.f32.mrb[135].mxu0  ;;  %v4625_v11 = vld [vmem:[#allocation2 + $0xf9] sm:$0xff] }
 0x280   : > { %3988 = vst.msk [vmem:[#allocation2 + $0x120] sm:$0xff] %vm3951_vm5, %v3915_v0  ;;  %v3916_v20 = vmax.f32 %v3739_v48, 0.0  ;;  %v4646_v42 = vpack.c.bf16 %v4625_v11, %v4624_v60  ;;  %v4627_v14 = vld [vmem:[#allocation2 + $0x111] sm:$0xff]  ;;  %v4639_v0 = vpack.c.bf16 %v4611_v55, %v4610_v43  ;;  %v4615_v60 = vld [vmem:[#allocation2 + $0x81] sm:$0xff] }
 0x281   : > { %3991 = vst.msk [vmem:[#allocation2 + $0x138] sm:$0xff] %vm3951_vm5, %v3918_v61  ;;  %14998 = vmatmul.mubr.msk.bf16.vlgmr.msra.gmra.mrb[240].mxu0 %vm3951_vm5, %v4637_v3  ;;  %v4626_v45 = vld [vmem:[#allocation2 + $0x109] sm:$0xff]  ;;  %v4616_v43 = vld [vmem:[#allocation2 + $0x91] sm:$0xff] }
 0x282   : > { %3989 = vst.msk [vmem:[#allocation2 + $0x128] sm:$0xff] %vm3951_vm5, %v3916_v20  ;;  %15001 = vmatprep.mubr.msk.bf16.mxu0 %vm3951_vm5, %v4638_v58  ;;  %15017 = vmatprep.mubr.msk.bf16.mxu1 %vm3951_vm5, %v4646_v42  ;;  %v4647_v4 = vpack.c.bf16 %v4627_v14, %v4626_v45  ;;  %v4617_v58 = vld [vmem:[#allocation2 + $0x99] sm:$0xff] }
 0x283   : > { %15302 = vmatpush3.bf16.msra.mxu0 %v18622_v22 }
 0x284   : > { %v14877_v19 = vpop.f32.mrb[136].mxu0  ;;  %15018 = vmatmul.mubr.msk.bf16.gmra.mrb[4].mxu1 %vm3951_vm5, %v4647_v4  ;;  %15303 = vmatprep.subr.bf16.mxu0 %v16859_v50 }
 0x285   : > { %v3921_v38 = vmax.f32 %v14877_v19, 0.0  ;;  %v3752_v41 = vpop.f32.mrb[137].mxu0 }
 0x286   : > { %v3919_v2 = vmax.f32 %v3752_v41, 0.0  ;;  %v14878_v56 = vpop.f32.mrb[138].mxu0 }
 0x287   : > { %3994 = vst.msk [vmem:[#allocation2 + $0x150] sm:$0xff] %vm3951_vm5, %v3921_v38  ;;  %v3922_v22 = vmax.f32 %v14878_v56, 0.0  ;;  %v3755_v63 = vpop.f32.mrb[139].mxu0  ;;  %15304 = vmatpush3.bf16.msra.mxu0 %v16859_v50  ;;  %v4614_v50 = vld [vmem:[#allocation2 + $0x79] sm:$0xff]  ;;  %v4642_v38 = vpack.c.bf16 %v4617_v58, %v4616_v43  ;;  %v4618_v56 = vld [vmem:[#allocation2 + $0xa9] sm:$0xff] }
 0x288   : > { %3992 = vst.msk [vmem:[#allocation2 + $0x140] sm:$0xff] %vm3951_vm5, %v3919_v2  ;;  %v3920_v25 = vmax.f32 %v3755_v63, 0.0  ;;  %15337 = vmatprep.subr.bf16.mxu0 %v18679_v30  ;;  %v4641_v19 = vpack.c.bf16 %v4615_v60, %v4614_v50 }
 0x289   : > { %3995 = vst.msk [vmem:[#allocation2 + $0x158] sm:$0xff] %vm3951_vm5, %v3922_v22  ;;  %15002 = vmatmul.mubr.msk.bf16.gmra.mrb[244].mxu0 %vm3951_vm5, %v4639_v0  ;;  %v4628_v61 = vld [vmem:[#allocation2 + $0x121] sm:$0xff]  ;;  %v4629_v48 = vld [vmem:[#allocation2 + $0x129] sm:$0xff]  ;;  %v4619_v22 = vld [vmem:[#allocation2 + $0xb1] sm:$0xff] }
 0x28a   : > { %3993 = vst.msk [vmem:[#allocation2 + $0x148] sm:$0xff] %vm3951_vm5, %v3920_v25  ;;  %15005 = vmatprep.mubr.msk.bf16.mxu0 %vm3951_vm5, %v4640_v40  ;;  %v4648_v3 = vpack.c.bf16 %v4629_v48, %v4628_v61 }
 0x28c   : > { %v14881_v37 = vpop.f32.mrb[140].mxu0  ;;  %15021 = vmatprep.mubr.msk.bf16.mxu1 %vm3951_vm5, %v4648_v3  ;;  %v4643_v3 = vpack.c.bf16 %v4619_v22, %v4618_v56  ;;  %v4556_v56 = vld [vmem:[#allocation2 + $0x18] sm:$0xff] }
 0x28d   : > { %v3925_v11 = vmax.f32 %v14881_v37, 0.0  ;;  %v3768_v20 = vpop.f32.mrb[141].mxu0 }
 0x28e   : > { %v3923_v42 = vmax.f32 %v3768_v20, 0.0  ;;  %v14882_v14 = vpop.f32.mrb[142].mxu0 }
 0x28f   : > { %3998 = vst.msk [vmem:[#allocation2 + $0x170] sm:$0xff] %vm3951_vm5, %v3925_v11  ;;  %v3926_v45 = vmax.f32 %v14882_v14, 0.0  ;;  %v3771_v4 = vpop.f32.mrb[143].mxu0  ;;  %v4630_v41 = vld [vmem:[#allocation2 + $0x139] sm:$0xff] }
 0x290   : > { %3996 = vst.msk [vmem:[#allocation2 + $0x160] sm:$0xff] %vm3951_vm5, %v3923_v42  ;;  %v3924_v55 = vmax.f32 %v3771_v4, 0.0  ;;  %v4632_v37 = vld [vmem:[#allocation2 + $0x151] sm:$0xff]  ;;  %v4555_v42 = vld [vmem:[#allocation2 + $0x8] sm:$0xff] }
 0x291   : > { %3999 = vst.msk [vmem:[#allocation2 + $0x178] sm:$0xff] %vm3951_vm5, %v3926_v45  ;;  %15006 = vmatmul.mubr.msk.bf16.gmra.mrb[248].mxu0 %vm3951_vm5, %v4641_v19  ;;  %v4631_v5 = vld [vmem:[#allocation2 + $0x141] sm:$0xff] }
 0x292   : > { %3997 = vst.msk [vmem:[#allocation2 + $0x168] sm:$0xff] %vm3951_vm5, %v3924_v55  ;;  %15009 = vmatprep.mubr.msk.bf16.mxu0 %vm3951_vm5, %v4642_v38  ;;  %v4649_v26 = vpack.c.bf16 %v4631_v5, %v4630_v41  ;;  %v4554_v45 = vld [vmem:[#allocation2] sm:$0xff] }
 0x293   : > { %v4586_v4 = vpack.c.bf16 %v4555_v42, %v4554_v45  ;;  %v4557_v5 = vld [vmem:[#allocation2 + $0x20] sm:$0xff] }
 0x294   : > { %v14885_v2 = vpop.f32.mrb[144].mxu0  ;;  %15022 = vmatmul.mubr.msk.bf16.gmra.mrb[8].mxu1 %vm3951_vm5, %v4649_v26  ;;  %v18706_v22 = vpack.c.bf16 %v4557_v5, %v4556_v56 }
 0x295   : > { %v3929_v63 = vmax.f32 %v14885_v2, 0.0  ;;  %v3784_v0 = vpop.f32.mrb[145].mxu0  ;;  %v4559_v2 = vld [vmem:[#allocation2 + $0x38] sm:$0xff] }
 0x296   : > { %v3927_v25 = vmax.f32 %v3784_v0, 0.0  ;;  %v14886_v40 = vpop.f32.mrb[146].mxu0  ;;  %v18711_v0 = vld [vmem:[%s20385_s3 + $0x18] sm:$0xff]  }
 0x297   : > { %4002 = vst.msk [vmem:[#allocation2 + $0x190] sm:$0xff] %vm3951_vm5, %v3929_v63  ;;  %v3930_v61 = vmax.f32 %v14886_v40, 0.0  ;;  %v3787_v48 = vpop.f32.mrb[147].mxu0  ;;  %v4633_v60 = vld [vmem:[#allocation2 + $0x159] sm:$0xff]  ;;  %v4558_v63 = vld [vmem:[#allocation2 + $0x30] sm:$0xff] }
 0x298   : > { %4000 = vst.msk [vmem:[#allocation2 + $0x180] sm:$0xff] %vm3951_vm5, %v3927_v25  ;;  %v3928_v11 = vmax.f32 %v3787_v48, 0.0  ;;  %v4650_v20 = vpack.c.bf16 %v4633_v60, %v4632_v37  ;;  %v4635_v58 = vld [vmem:[#allocation2 + $0x171] sm:$0xff]  ;;  %v18713_v25 = vpack.c.bf16 %v4559_v2, %v4558_v63  ;;  %v4560_v37 = vld [vmem:[#allocation2 + $0x48] sm:$0xff] }
 0x299   : > { %4003 = vst.msk [vmem:[#allocation2 + $0x198] sm:$0xff] %vm3951_vm5, %v3930_v61  ;;  %15010 = vmatmul.mubr.msk.bf16.gmra.mrb[252].mxu0 %vm3951_vm5, %v4643_v3  ;;  %v4634_v14 = vld [vmem:[#allocation2 + $0x169] sm:$0xff] }
 0x29a   : > { %4001 = vst.msk [vmem:[#allocation2 + $0x188] sm:$0xff] %vm3951_vm5, %v3928_v11  ;;  %15025 = vmatprep.mubr.msk.bf16.mxu1 %vm3951_vm5, %v4650_v20  ;;  %v4651_v50 = vpack.c.bf16 %v4635_v58, %v4634_v14  ;;  %v4563_v60 = vld [vmem:[#allocation2 + $0x68] sm:$0xff]  ;;  %v4561_v11 = vld [vmem:[#allocation2 + $0x50] sm:$0xff]  ;;  %v4562_v58 = vld [vmem:[#allocation2 + $0x60] sm:$0xff] }
 0x29b   : > { %v18721_v20 = vpack.c.bf16 %v4561_v11, %v4560_v37  ;;  %v18723_v42 = vpack.c.bf16 %v4563_v60, %v4562_v58  ;;  %v4568_v63 = vld [vmem:[#allocation2 + $0xa8] sm:$0xff] }
 0x29c   : > { %v14889_v19 = vpop.f32.mrb[148].mxu0  ;;  %15026 = vmatmul.mubr.msk.bf16.gmra.mrb[12].mxu1 %vm3951_vm5, %v4651_v50 }
 0x29d   : > { %v3800_v43 = vpop.f32.mrb[149].mxu0  ;;  %15031 = vmatprep.mubr.msk.bf16.mxu1 %vm3951_vm5, %v4586_v4  ;;  %v4565_v4 = vld [vmem:[#allocation2 + $0x80] sm:$0xff]  ;;  %v4567_v19 = vld [vmem:[#allocation2 + $0x98] sm:$0xff] }
 0x29e   : > { %v3931_v55 = vmax.f32 %v3800_v43, 0.0  ;;  %v14890_v38 = vpop.f32.mrb[150].mxu0  ;;  %v4564_v43 = vld [vmem:[#allocation2 + $0x78] sm:$0xff] }
 0x29f   : > { %v3803_v41 = vpop.f32.mrb[151].mxu0  ;;  %v4566_v38 = vld [vmem:[#allocation2 + $0x90] sm:$0xff] }
 0x2a0   : > { %4004 = vst.msk [vmem:[#allocation2 + $0x1a0] sm:$0xff] %vm3951_vm5, %v3931_v55  ;;  %v3932_v26 = vmax.f32 %v3803_v41, 0.0  ;;  %v18729_v55 = vpack.c.bf16 %v4565_v4, %v4564_v43  ;;  %v18731_v41 = vpack.c.bf16 %v4567_v19, %v4566_v38  ;;  %v4574_v19 = vld [vmem:[#allocation2 + $0xf0] sm:$0xff] }
 0x2a2   : > { %4005 = vst.msk [vmem:[#allocation2 + $0x1a8] sm:$0xff] %vm3951_vm5, %v3932_v26 }
 0x2a4   : > { %v14893_v40 = vpop.f32.mrb[152].mxu0  ;;  %15032 = vmatmul.mubr.msk.bf16.vlgmr.msra.gmra.mrb[16].mxu1 %vm3951_vm5, %v18706_v22 }
 0x2a5   : > { %v3816_v61 = vpop.f32.mrb[153].mxu0  ;;  %15035 = vmatprep.mubr.msk.bf16.mxu1 %vm3951_vm5, %v18713_v25  ;;  %15064 = vmatpush3.bf16.msra.mxu1 %v18659_v1  ;;  %v4571_v40 = vld [vmem:[#allocation2 + $0xc8] sm:$0xff] }
 0x2a6   : > { %v14894_v48 = vpop.f32.mrb[154].mxu0  ;;  %15097 = vmatprep.subr.bf16.mxu1 %v18711_v0  ;;  %v4569_v61 = vld [vmem:[#allocation2 + $0xb0] sm:$0xff] }
 0x2a7   : > { %v3819_v3 = vpop.f32.mrb[155].mxu0  ;;  %v18737_v48 = vpack.c.bf16 %v4569_v61, %v4568_v63  ;;  %v4576_v61 = vld [vmem:[#allocation2 + $0x108] sm:$0xff] }
 0x2a8   : > { %v4570_v3 = vld [vmem:[#allocation2 + $0xc0] sm:$0xff] }
 0x2a9   : > { %v18739_v37 = vpack.c.bf16 %v4571_v40, %v4570_v3 }
 0x2ac   : > { %v14897_v14 = vpop.f32.mrb[156].mxu0  ;;  %15036 = vmatmul.mubr.msk.bf16.gmra.mrb[20].mxu1 %vm3951_vm5, %v18721_v20 }
 0x2ad   : > { %v3832_v50 = vpop.f32.mrb[157].mxu0  ;;  %15039 = vmatprep.mubr.msk.bf16.mxu1 %vm3951_vm5, %v18723_v42 }
 0x2ae   : > { %v14898_v1 = vpop.f32.mrb[158].mxu0  ;;  %v4573_v50 = vld [vmem:[#allocation2 + $0xe0] sm:$0xff] }
 0x2af   : > { %v3835_v45 = vpop.f32.mrb[159].mxu0  ;;  %v4575_v1 = vld [vmem:[#allocation2 + $0xf8] sm:$0xff] }
 0x2b0   : > { %v4572_v45 = vld [vmem:[#allocation2 + $0xd8] sm:$0xff]  ;;  %v18747_v43 = vpack.c.bf16 %v4575_v1, %v4574_v19 }
 0x2b1   : > { %v18745_v4 = vpack.c.bf16 %v4573_v50, %v4572_v45 }
 0x2b4   : > { %v14901_v5 = vpop.f32.mrb[160].mxu0  ;;  %15040 = vmatmul.mubr.msk.bf16.gmra.mrb[24].mxu1 %vm3951_vm5, %v18729_v55 }
 0x2b5   : > { %v3848_v26 = vpop.f32.mrb[161].mxu0  ;;  %15043 = vmatprep.mubr.msk.bf16.mxu1 %vm3951_vm5, %v18731_v41 }
 0x2b6   : > { %v14902_v2 = vpop.f32.mrb[162].mxu0 }
 0x2b7   : > { %v3851_v56 = vpop.f32.mrb[163].mxu0 }
 0x2bc   : > { %v14905_v60 = vpop.f32.mrb[164].mxu0  ;;  %15044 = vmatmul.mubr.msk.bf16.gmra.mrb[28].mxu1 %vm3951_vm5, %v18737_v48 }
 0x2bd   : > { %v3864_v11 = vpop.f32.mrb[165].mxu0  ;;  %15047 = vmatprep.mubr.msk.bf16.mxu1 %vm3951_vm5, %v18739_v37  ;;  %v4579_v60 = vld [vmem:[#allocation2 + $0x128] sm:$0xff] }
 0x2be   : > { %v14906_v58 = vpop.f32.mrb[166].mxu0  ;;  %v4577_v11 = vld [vmem:[#allocation2 + $0x110] sm:$0xff] }
 0x2bf   : > { %v3867_v14 = vpop.f32.mrb[167].mxu0  ;;  %v18757_v58 = vpack.c.bf16 %v4577_v11, %v4576_v61  ;;  %v4580_v61 = vld [vmem:[#allocation2 + $0x138] sm:$0xff] }
 0x2c0   : > { %v4578_v14 = vld [vmem:[#allocation2 + $0x120] sm:$0xff] }
 0x2c1   : > { %v18759_v50 = vpack.c.bf16 %v4579_v60, %v4578_v14 }
 0x2c4   : > { %v14925_v38 = vpop.f32.mrb[168].mxu0  ;;  %15048 = vmatmul.mubr.msk.bf16.gmra.mrb[0].mxu1 %vm3951_vm5, %v18745_v4 }
 0x2c5   : > { %v4411_v5 = vmax.f32 %v14925_v38, 0.0  ;;  %v4122_v26 = vpop.f32.mrb[169].mxu0  ;;  %15051 = vmatprep.mubr.msk.bf16.mxu1 %vm3951_vm5, %v18747_v43 }
 0x2c6   : > { %v4409_v2 = vmax.f32 %v4122_v26, 0.0  ;;  %v14926_v56 = vpop.f32.mrb[170].mxu0 }
 0x2c7   : > { %4484 = vst.msk [vmem:[#allocation3 + $0x10] sm:$0xff] %vm4481_vm6, %v4411_v5  ;;  %v4412_v63 = vmax.f32 %v14926_v56, 0.0  ;;  %v4125_v40 = vpop.f32.mrb[171].mxu0  ;;  %v4581_v56 = vld [vmem:[#allocation2 + $0x140] sm:$0xff] }
 0x2c8   : > { %4482 = vst.msk [vmem:[#allocation3] sm:$0xff] %vm4481_vm6, %v4409_v2  ;;  %v4410_v3 = vmax.f32 %v4125_v40, 0.0  ;;  %v4583_v40 = vld [vmem:[#allocation2 + $0x158] sm:$0xff]  ;;  %v18769_v11 = vpack.c.bf16 %v4581_v56, %v4580_v61  ;;  %v4584_v61 = vld [vmem:[#allocation2 + $0x168] sm:$0xff] }
 0x2c9   : > { %4485 = vst.msk [vmem:[#allocation3 + $0x18] sm:$0xff] %vm4481_vm6, %v4412_v63 }
 0x2ca   : > { %4483 = vst.msk [vmem:[#allocation3 + $0x8] sm:$0xff] %vm4481_vm6, %v4410_v3 }
 0x2cc   : > { %v14929_v1 = vpop.f32.mrb[172].mxu0  ;;  %15052 = vmatmul.mubr.msk.bf16.gmra.mrb[4].mxu1 %vm3951_vm5, %v18757_v58 }
 0x2cd   : > { %v4415_v45 = vmax.f32 %v14929_v1, 0.0  ;;  %v4138_v19 = vpop.f32.mrb[173].mxu0  ;;  %15055 = vmatprep.mubr.msk.bf16.mxu1 %vm3951_vm5, %v18759_v50  ;;  %v4582_v1 = vld [vmem:[#allocation2 + $0x150] sm:$0xff] }
 0x2ce   : > { %v4413_v38 = vmax.f32 %v4138_v19, 0.0  ;;  %v14930_v5 = vpop.f32.mrb[174].mxu0  ;;  %v18771_v19 = vpack.c.bf16 %v4583_v40, %v4582_v1 }
 0x2cf   : > { %4488 = vst.msk [vmem:[#allocation3 + $0x30] sm:$0xff] %vm4481_vm6, %v4415_v45  ;;  %v4416_v26 = vmax.f32 %v14930_v5, 0.0  ;;  %v4141_v2 = vpop.f32.mrb[175].mxu0 }
 0x2d0   : > { %4486 = vst.msk [vmem:[#allocation3 + $0x20] sm:$0xff] %vm4481_vm6, %v4413_v38  ;;  %v4414_v63 = vmax.f32 %v4141_v2, 0.0 }
 0x2d1   : > { %4489 = vst.msk [vmem:[#allocation3 + $0x38] sm:$0xff] %vm4481_vm6, %v4416_v26  ;;  %v7257_v3 = vld [vmem:[#allocation3 + $0x1] sm:$0xff]  ;;  %v7258_v60 = vld [vmem:[#allocation3 + $0x9] sm:$0xff] }
 0x2d2   : > { %4487 = vst.msk [vmem:[#allocation3 + $0x28] sm:$0xff] %vm4481_vm6, %v4414_v63  ;;  %v7289_v14 = vpack.c.bf16 %v7258_v60, %v7257_v3  ;;  %v5085_v3 = vld [vmem:[#allocation2 + $0x2] sm:$0xff]  ;;  %v5086_v60 = vld [vmem:[#allocation2 + $0xa] sm:$0xff] }
 0x2d3   : > { %v7753_v31 = vld [vmem:[#allocation3 + $0xa] sm:$0xff] }
 0x2d4   : > { %v14933_v45 = vpop.f32.mrb[176].mxu0  ;;  %15056 = vmatmul.mubr.msk.bf16.gmra.mrb[8].mxu1 %vm3951_vm5, %v18769_v11  ;;  %15305 = vmatprep.mubr.msk.bf16.mxu0 %vm4481_vm6, %v7289_v14  ;;  %v4585_v14 = vld [vmem:[#allocation2 + $0x170] sm:$0xff] }
 0x2d5   : > { %v4419_v38 = vmax.f32 %v14933_v45, 0.0  ;;  %v4154_v5 = vpop.f32.mrb[177].mxu0  ;;  %15059 = vmatprep.mubr.msk.bf16.mxu1 %vm3951_vm5, %v18771_v19 }
 0x2d6   : > { %v4417_v26 = vmax.f32 %v4154_v5, 0.0  ;;  %v14934_v2 = vpop.f32.mrb[178].mxu0  ;;  %v18782_v5 = vpack.c.bf16 %v4585_v14, %v4584_v61  ;;  %v18795_v61 = vld [vmem:[%s20387_s5 + $0x20] sm:$0xff]  }
 0x2d7   : > { %4492 = vst.msk [vmem:[#allocation3 + $0x50] sm:$0xff] %vm4481_vm6, %v4419_v38  ;;  %v4420_v56 = vmax.f32 %v14934_v2, 0.0  ;;  %v4157_v63 = vpop.f32.mrb[179].mxu0  ;;  %v7259_v1 = vld [vmem:[#allocation3 + $0x19] sm:$0xff]  ;;  %v16862_v38 = vld [vmem:[%s20387_s5 + $0x8] sm:$0xff]   ;;  %v5117_v2 = vpack.c.bf16 %v5086_v60, %v5085_v3 }
 0x2d8   : > { %4490 = vst.msk [vmem:[#allocation3 + $0x40] sm:$0xff] %vm4481_vm6, %v4417_v26  ;;  %v4418_v40 = vmax.f32 %v4157_v63, 0.0  ;;  %v7756_v28 = vld [vmem:[#allocation3 + $0x32] sm:$0xff] }
 0x2d9   : > { %v7260_v54 = vld [vmem:[#allocation3 + $0x21] sm:$0xff]  ;;  %4493 = vst.msk [vmem:[#allocation3 + $0x58] sm:$0xff] %vm4481_vm6, %v4420_v56 }
 0x2da   : > { %v7290_v45 = vpack.c.bf16 %v7260_v54, %v7259_v1  ;;  %4491 = vst.msk [vmem:[#allocation3 + $0x48] sm:$0xff] %vm4481_vm6, %v4418_v40  ;;  %v8367_v40 = vld [vmem:[#allocation3 + $0x31] sm:$0xff] }
 0x2dc   : > { %v14937_v57 = vpop.f32.mrb[180].mxu0  ;;  %15060 = vmatmul.mubr.msk.bf16.gmra.mrb[12].mxu1 %vm3951_vm5, %v18782_v5  ;;  %15306 = vmatmul.mubr.msk.bf16.vlgmr.msra.gmra.mrb[0].mxu0 %vm4481_vm6, %v7290_v45 }
 0x2dd   : > { %v4423_v26 = vmax.f32 %v14937_v57, 0.0  ;;  %v4170_v63 = vpop.f32.mrb[181].mxu0  ;;  %15065 = vmatprep.mubr.msk.bf16.mxu1 %vm3951_vm5, %v5117_v2  ;;  %15338 = vmatpush3.bf16.msra.mxu0 %v18679_v30  ;;  %v5088_v57 = vld [vmem:[#allocation2 + $0x22] sm:$0xff]  ;;  %v5090_v2 = vld [vmem:[#allocation2 + $0x3a] sm:$0xff] }
 0x2de   : > { %v4421_v54 = vmax.f32 %v4170_v63, 0.0  ;;  %v14938_v56 = vpop.f32.mrb[182].mxu0  ;;  %15339 = vmatprep.subr.bf16.mxu0 %v16862_v38 }
 0x2df   : > { %v8368_v3 = vld [vmem:[#allocation3 + $0x39] sm:$0xff]  ;;  %4496 = vst.msk [vmem:[#allocation3 + $0x70] sm:$0xff] %vm4481_vm6, %v4423_v26  ;;  %v4424_v60 = vmax.f32 %v14938_v56, 0.0  ;;  %v4173_v1 = vpop.f32.mrb[183].mxu0  ;;  %v5118_v26 = vpack.c.bf16 %v5088_v57, %v5087_v18 }
 0x2e0   : > { %v18798_v14 = vpack.c.bf16 %v8368_v3, %v8367_v40  ;;  %v9287_v45 = vld [vmem:[#allocation3 + $0x51] sm:$0xff]  ;;  %4494 = vst.msk [vmem:[#allocation3 + $0x60] sm:$0xff] %vm4481_vm6, %v4421_v54  ;;  %v4422_v30 = vmax.f32 %v4173_v1, 0.0  ;;  %v18811_v54 = vld [vmem:[%s20385_s3 + $0x20] sm:$0xff]  }
 0x2e1   : > { %v9286_v63 = vld [vmem:[#allocation3 + $0x49] sm:$0xff]  ;;  %4497 = vst.msk [vmem:[#allocation3 + $0x78] sm:$0xff] %vm4481_vm6, %v4424_v60  ;;  %15340 = vmatpush3.bf16.msra.mxu0 %v16862_v38  ;;  %v5089_v56 = vld [vmem:[#allocation2 + $0x32] sm:$0xff] }
 0x2e2   : > { %v18802_v12 = vpack.c.bf16 %v9287_v45, %v9286_v63  ;;  %4495 = vst.msk [vmem:[#allocation3 + $0x68] sm:$0xff] %vm4481_vm6, %v4422_v30  ;;  %15309 = vmatprep.mubr.msk.bf16.mxu0 %vm4481_vm6, %v18798_v14  ;;  %15373 = vmatprep.subr.bf16.mxu0 %v18795_v61  ;;  %v5119_v40 = vpack.c.bf16 %v5090_v2, %v5089_v56  ;;  %v5091_v30 = vld [vmem:[#allocation2 + $0x4a] sm:$0xff]  ;;  %v5092_v2 = vld [vmem:[#allocation2 + $0x52] sm:$0xff] }
 0x2e3   : > { %v5094_v56 = vld [vmem:[#allocation2 + $0x6a] sm:$0xff] }
 0x2e4   : > { %v14941_v3 = vpop.f32.mrb[184].mxu0  ;;  %15066 = vmatmul.mubr.msk.bf16.vlgmr.msra.gmra.mrb[16].mxu1 %vm3951_vm5, %v5118_v26  ;;  %15310 = vmatmul.mubr.msk.bf16.gmra.mrb[4].mxu0 %vm4481_vm6, %v18802_v12  ;;  %v5093_v26 = vld [vmem:[#allocation2 + $0x62] sm:$0xff] }
 0x2e5   : > { %v4427_v38 = vmax.f32 %v14941_v3, 0.0  ;;  %v4186_v60 = vpop.f32.mrb[185].mxu0  ;;  %15069 = vmatprep.mubr.msk.bf16.mxu1 %vm3951_vm5, %v5119_v40  ;;  %15098 = vmatpush3.bf16.msra.mxu1 %v18711_v0  ;;  %v5120_v0 = vpack.c.bf16 %v5092_v2, %v5091_v30  ;;  %v5121_v44 = vpack.c.bf16 %v5094_v56, %v5093_v26  ;;  %v5098_v2 = vld [vmem:[#allocation2 + $0x9a] sm:$0xff] }
 0x2e6   : > { %v4425_v18 = vmax.f32 %v4186_v60, 0.0  ;;  %v14942_v1 = vpop.f32.mrb[186].mxu0  ;;  %15131 = vmatprep.subr.bf16.mxu1 %v18811_v54 }
 0x2e7   : > { %4500 = vst.msk [vmem:[#allocation3 + $0x90] sm:$0xff] %vm4481_vm6, %v4427_v38  ;;  %v4428_v57 = vmax.f32 %v14942_v1, 0.0  ;;  %v4189_v45 = vpop.f32.mrb[187].mxu0 }
 0x2e8   : > { %4498 = vst.msk [vmem:[#allocation3 + $0x80] sm:$0xff] %vm4481_vm6, %v4425_v18  ;;  %v4426_v63 = vmax.f32 %v4189_v45, 0.0 }
 0x2e9   : > { %4501 = vst.msk [vmem:[#allocation3 + $0x98] sm:$0xff] %vm4481_vm6, %v4428_v57  ;;  %v7265_v40 = vld [vmem:[#allocation3 + $0x61] sm:$0xff]  ;;  %v7266_v3 = vld [vmem:[#allocation3 + $0x69] sm:$0xff] }
 0x2ea   : > { %4499 = vst.msk [vmem:[#allocation3 + $0x88] sm:$0xff] %vm4481_vm6, %v4426_v63  ;;  %v7293_v60 = vpack.c.bf16 %v7266_v3, %v7265_v40  ;;  %v5095_v63 = vld [vmem:[#allocation2 + $0x7a] sm:$0xff]  ;;  %v5097_v40 = vld [vmem:[#allocation2 + $0x92] sm:$0xff] }
 0x2eb   : > { %v5123_v3 = vpack.c.bf16 %v5098_v2, %v5097_v40 }
 0x2ec   : > { %v14945_v62 = vpop.f32.mrb[188].mxu0  ;;  %15070 = vmatmul.mubr.msk.bf16.gmra.mrb[20].mxu1 %vm3951_vm5, %v5120_v0  ;;  %15313 = vmatprep.mubr.msk.bf16.mxu0 %vm4481_vm6, %v7293_v60 }
 0x2ed   : > { %v4431_v38 = vmax.f32 %v14945_v62, 0.0  ;;  %v4202_v1 = vpop.f32.mrb[189].mxu0  ;;  %15073 = vmatprep.mubr.msk.bf16.mxu1 %vm3951_vm5, %v5121_v44  ;;  %v5122_v62 = vpack.c.bf16 %v5096_v6, %v5095_v63  ;;  %v5099_v63 = vld [vmem:[#allocation2 + $0xaa] sm:$0xff] }
 0x2ee   : > { %v4429_v18 = vmax.f32 %v4202_v1, 0.0  ;;  %v14946_v45 = vpop.f32.mrb[190].mxu0 }
 0x2ef   : > { %4504 = vst.msk [vmem:[#allocation3 + $0xb0] sm:$0xff] %vm4481_vm6, %v4431_v38  ;;  %v4432_v57 = vmax.f32 %v14946_v45, 0.0  ;;  %v4205_v16 = vpop.f32.mrb[191].mxu0  ;;  %v7267_v26 = vld [vmem:[#allocation3 + $0x79] sm:$0xff] }
 0x2f0   : > { %4502 = vst.msk [vmem:[#allocation3 + $0xa0] sm:$0xff] %vm4481_vm6, %v4429_v18  ;;  %v4430_v30 = vmax.f32 %v4205_v16, 0.0  ;;  %v5100_v18 = vld [vmem:[#allocation2 + $0xb2] sm:$0xff] }
 0x2f1   : > { %4505 = vst.msk [vmem:[#allocation3 + $0xb8] sm:$0xff] %vm4481_vm6, %v4432_v57  ;;  %v7268_v56 = vld [vmem:[#allocation3 + $0x81] sm:$0xff]  ;;  %v7269_v6 = vld [vmem:[#allocation3 + $0x91] sm:$0xff] }
 0x2f2   : > { %4503 = vst.msk [vmem:[#allocation3 + $0xa8] sm:$0xff] %vm4481_vm6, %v4430_v30  ;;  %v7294_v44 = vpack.c.bf16 %v7268_v56, %v7267_v26  ;;  %v7764_v29 = vld [vmem:[#allocation3 + $0x92] sm:$0xff] }
 0x2f4   : > { %v14949_v0 = vpop.f32.mrb[192].mxu0  ;;  %15074 = vmatmul.mubr.msk.bf16.gmra.mrb[24].mxu1 %vm3951_vm5, %v5122_v62  ;;  %15314 = vmatmul.mubr.msk.bf16.gmra.mrb[8].mxu0 %vm4481_vm6, %v7294_v44  ;;  %v5101_v62 = vld [vmem:[#allocation2 + $0xc2] sm:$0xff]  ;;  %v5102_v44 = vld [vmem:[#allocation2 + $0xca] sm:$0xff] }
 0x2f5   : > { %v4435_v60 = vmax.f32 %v14949_v0, 0.0  ;;  %v4218_v38 = vpop.f32.mrb[193].mxu0  ;;  %15077 = vmatprep.mubr.msk.bf16.mxu1 %vm3951_vm5, %v5123_v3  ;;  %v5124_v3 = vpack.c.bf16 %v5100_v18, %v5099_v63  ;;  %v5106_v63 = vld [vmem:[#allocation2 + $0xfa] sm:$0xff] }
 0x2f6   : > { %v4433_v16 = vmax.f32 %v4218_v38, 0.0  ;;  %v14950_v1 = vpop.f32.mrb[194].mxu0 }
 0x2f7   : > { %4508 = vst.msk [vmem:[#allocation3 + $0xd0] sm:$0xff] %vm4481_vm6, %v4435_v60  ;;  %v4436_v45 = vmax.f32 %v14950_v1, 0.0  ;;  %v4221_v57 = vpop.f32.mrb[195].mxu0  ;;  %v7270_v30 = vld [vmem:[#allocation3 + $0x99] sm:$0xff]  ;;  %v5125_v60 = vpack.c.bf16 %v5102_v44, %v5101_v62 }
 0x2f8   : > { %4506 = vst.msk [vmem:[#allocation3 + $0xc0] sm:$0xff] %vm4481_vm6, %v4433_v16  ;;  %v4434_v2 = vmax.f32 %v4221_v57, 0.0  ;;  %v7295_v26 = vpack.c.bf16 %v7270_v30, %v7269_v6  ;;  %v7272_v56 = vld [vmem:[#allocation3 + $0xb1] sm:$0xff] }
 0x2f9   : > { %4509 = vst.msk [vmem:[#allocation3 + $0xd8] sm:$0xff] %vm4481_vm6, %v4436_v45  ;;  %v7271_v40 = vld [vmem:[#allocation3 + $0xa9] sm:$0xff] }
 0x2fa   : > { %4507 = vst.msk [vmem:[#allocation3 + $0xc8] sm:$0xff] %vm4481_vm6, %v4434_v2  ;;  %15317 = vmatprep.mubr.msk.bf16.mxu0 %vm4481_vm6, %v7295_v26  ;;  %v7296_v0 = vpack.c.bf16 %v7272_v56, %v7271_v40  ;;  %v5104_v2 = vld [vmem:[#allocation2 + $0xe2] sm:$0xff]  ;;  %v5103_v26 = vld [vmem:[#allocation2 + $0xda] sm:$0xff] }
 0x2fb   : > { %v5126_v44 = vpack.c.bf16 %v5104_v2, %v5103_v26  ;;  %v5108_v2 = vld [vmem:[#allocation2 + $0x112] sm:$0xff]  ;;  %v5110_v26 = vld [vmem:[#allocation2 + $0x12a] sm:$0xff] }
 0x2fc   : > { %v14953_v38 = vpop.f32.mrb[196].mxu0  ;;  %15078 = vmatmul.mubr.msk.bf16.gmra.mrb[28].mxu1 %vm3951_vm5, %v5124_v3  ;;  %15318 = vmatmul.mubr.msk.bf16.gmra.mrb[12].mxu0 %vm4481_vm6, %v7296_v0  ;;  %v5105_v3 = vld [vmem:[#allocation2 + $0xf2] sm:$0xff] }
 0x2fd   : > { %v4439_v16 = vmax.f32 %v14953_v38, 0.0  ;;  %v4234_v1 = vpop.f32.mrb[197].mxu0  ;;  %15081 = vmatprep.mubr.msk.bf16.mxu1 %vm3951_vm5, %v5125_v60  ;;  %v5127_v0 = vpack.c.bf16 %v5106_v63, %v5105_v3  ;;  %v5109_v63 = vld [vmem:[#allocation2 + $0x122] sm:$0xff] }
 0x2fe   : > { %v4437_v57 = vmax.f32 %v4234_v1, 0.0  ;;  %v14954_v6 = vpop.f32.mrb[198].mxu0  ;;  %v5129_v3 = vpack.c.bf16 %v5110_v26, %v5109_v63 }
 0x2ff   : > { %4512 = vst.msk [vmem:[#allocation3 + $0xf0] sm:$0xff] %vm4481_vm6, %v4439_v16  ;;  %v4440_v45 = vmax.f32 %v14954_v6, 0.0  ;;  %v4237_v30 = vpop.f32.mrb[199].mxu0 }
 0x300   : > { %4510 = vst.msk [vmem:[#allocation3 + $0xe0] sm:$0xff] %vm4481_vm6, %v4437_v57  ;;  %v4438_v18 = vmax.f32 %v4237_v30, 0.0  ;;  %v5107_v30 = vld [vmem:[#allocation2 + $0x10a] sm:$0xff] }
 0x301   : > { %4513 = vst.msk [vmem:[#allocation3 + $0xf8] sm:$0xff] %vm4481_vm6, %v4440_v45  ;;  %v7273_v56 = vld [vmem:[#allocation3 + $0xc1] sm:$0xff]  ;;  %v7274_v62 = vld [vmem:[#allocation3 + $0xc9] sm:$0xff] }
 0x302   : > { %4511 = vst.msk [vmem:[#allocation3 + $0xe8] sm:$0xff] %vm4481_vm6, %v4438_v18  ;;  %v7297_v40 = vpack.c.bf16 %v7274_v62, %v7273_v56 }
 0x304   : > { %v14957_v60 = vpop.f32.mrb[200].mxu0  ;;  %15082 = vmatmul.mubr.msk.bf16.gmra.mrb[0].mxu1 %vm3951_vm5, %v5126_v44  ;;  %15321 = vmatprep.mubr.msk.bf16.mxu0 %vm4481_vm6, %v7297_v40  ;;  %v5128_v44 = vpack.c.bf16 %v5108_v2, %v5107_v30  ;;  %v5112_v30 = vld [vmem:[#allocation2 + $0x142] sm:$0xff] }
 0x305   : > { %v4443_v38 = vmax.f32 %v14957_v60, 0.0  ;;  %v4250_v16 = vpop.f32.mrb[201].mxu0  ;;  %15085 = vmatprep.mubr.msk.bf16.mxu1 %vm3951_vm5, %v5127_v0 }
 0x306   : > { %v4441_v1 = vmax.f32 %v4250_v16, 0.0  ;;  %v14958_v57 = vpop.f32.mrb[202].mxu0 }
 0x307   : > { %4516 = vst.msk [vmem:[#allocation3 + $0x110] sm:$0xff] %vm4481_vm6, %v4443_v38  ;;  %v4444_v6 = vmax.f32 %v14958_v57, 0.0  ;;  %v4253_v45 = vpop.f32.mrb[203].mxu0  ;;  %v7275_v56 = vld [vmem:[#allocation3 + $0xd9] sm:$0xff] }
 0x308   : > { %4514 = vst.msk [vmem:[#allocation3 + $0x100] sm:$0xff] %vm4481_vm6, %v4441_v1  ;;  %v4442_v18 = vmax.f32 %v4253_v45, 0.0  ;;  %v7277_v45 = vld [vmem:[#allocation3 + $0xf1] sm:$0xff] }
 0x309   : > { %4517 = vst.msk [vmem:[#allocation3 + $0x118] sm:$0xff] %vm4481_vm6, %v4444_v6  ;;  %v7276_v62 = vld [vmem:[#allocation3 + $0xe1] sm:$0xff]  ;;  %v7772_v21 = vld [vmem:[#allocation3 + $0xf2] sm:$0xff] }
 0x30a   : > { %4515 = vst.msk [vmem:[#allocation3 + $0x108] sm:$0xff] %vm4481_vm6, %v4442_v18  ;;  %v7298_v40 = vpack.c.bf16 %v7276_v62, %v7275_v56  ;;  %v5114_v56 = vld [vmem:[#allocation2 + $0x15a] sm:$0xff] }
 0x30b   : > { %v5111_v62 = vld [vmem:[#allocation2 + $0x13a] sm:$0xff] }
 0x30c   : > { %v14961_v0 = vpop.f32.mrb[204].mxu0  ;;  %15086 = vmatmul.mubr.msk.bf16.gmra.mrb[4].mxu1 %vm3951_vm5, %v5128_v44  ;;  %15322 = vmatmul.mubr.msk.bf16.gmra.mrb[16].mxu0 %vm4481_vm6, %v7298_v40  ;;  %v5130_v40 = vpack.c.bf16 %v5112_v30, %v5111_v62  ;;  %v5115_v30 = vld [vmem:[#allocation2 + $0x16a] sm:$0xff] }
 0x30d   : > { %v4447_v60 = vmax.f32 %v14961_v0, 0.0  ;;  %v4266_v38 = vpop.f32.mrb[205].mxu0  ;;  %15089 = vmatprep.mubr.msk.bf16.mxu1 %vm3951_vm5, %v5129_v3  ;;  %v5113_v0 = vld [vmem:[#allocation2 + $0x152] sm:$0xff] }
 0x30e   : > { %v4445_v16 = vmax.f32 %v4266_v38, 0.0  ;;  %v14962_v1 = vpop.f32.mrb[206].mxu0 }
 0x30f   : > { %4520 = vst.msk [vmem:[#allocation3 + $0x130] sm:$0xff] %vm4481_vm6, %v4447_v60  ;;  %v4448_v57 = vmax.f32 %v14962_v1, 0.0  ;;  %v4269_v6 = vpop.f32.mrb[207].mxu0  ;;  %v7278_v18 = vld [vmem:[#allocation3 + $0xf9] sm:$0xff]  ;;  %v18860_v60 = vpack.c.bf16 %v5114_v56, %v5113_v0 }
 0x310   : > { %4518 = vst.msk [vmem:[#allocation3 + $0x120] sm:$0xff] %vm4481_vm6, %v4445_v16  ;;  %v4446_v2 = vmax.f32 %v4269_v6, 0.0  ;;  %v7299_v63 = vpack.c.bf16 %v7278_v18, %v7277_v45  ;;  %v7280_v26 = vld [vmem:[#allocation3 + $0x111] sm:$0xff] }
 0x311   : > { %4521 = vst.msk [vmem:[#allocation3 + $0x138] sm:$0xff] %vm4481_vm6, %v4448_v57  ;;  %v7279_v44 = vld [vmem:[#allocation3 + $0x109] sm:$0xff] }
 0x312   : > { %4519 = vst.msk [vmem:[#allocation3 + $0x128] sm:$0xff] %vm4481_vm6, %v4446_v2  ;;  %15325 = vmatprep.mubr.msk.bf16.mxu0 %vm4481_vm6, %v7299_v63  ;;  %v7300_v3 = vpack.c.bf16 %v7280_v26, %v7279_v44  ;;  %v5116_v2 = vld [vmem:[#allocation2 + $0x172] sm:$0xff] }
 0x313   : > { %v18870_v62 = vpack.c.bf16 %v5116_v2, %v5115_v30 }
 0x314   : > { %v14965_v38 = vpop.f32.mrb[208].mxu0  ;;  %15090 = vmatmul.mubr.msk.bf16.gmra.mrb[8].mxu1 %vm3951_vm5, %v5130_v40  ;;  %15326 = vmatmul.mubr.msk.bf16.gmra.mrb[20].mxu0 %vm4481_vm6, %v7300_v3 }
 0x315   : > { %v4451_v16 = vmax.f32 %v14965_v38, 0.0  ;;  %v4282_v1 = vpop.f32.mrb[209].mxu0  ;;  %15093 = vmatprep.mubr.msk.bf16.mxu1 %vm3951_vm5, %v18860_v60 }
 0x316   : > { %v4449_v57 = vmax.f32 %v4282_v1, 0.0  ;;  %v14966_v6 = vpop.f32.mrb[210].mxu0 }
 0x317   : > { %4524 = vst.msk [vmem:[#allocation3 + $0x150] sm:$0xff] %vm4481_vm6, %v4451_v16  ;;  %v4452_v45 = vmax.f32 %v14966_v6, 0.0  ;;  %v4285_v18 = vpop.f32.mrb[211].mxu0 }
 0x318   : > { %4522 = vst.msk [vmem:[#allocation3 + $0x140] sm:$0xff] %vm4481_vm6, %v4449_v57  ;;  %v4450_v63 = vmax.f32 %v4285_v18, 0.0 }
 0x319   : > { %4525 = vst.msk [vmem:[#allocation3 + $0x158] sm:$0xff] %vm4481_vm6, %v4452_v45  ;;  %v7281_v26 = vld [vmem:[#allocation3 + $0x121] sm:$0xff]  ;;  %v7282_v56 = vld [vmem:[#allocation3 + $0x129] sm:$0xff] }
 0x31a   : > { %4523 = vst.msk [vmem:[#allocation3 + $0x148] sm:$0xff] %vm4481_vm6, %v4450_v63  ;;  %v7301_v44 = vpack.c.bf16 %v7282_v56, %v7281_v26 }
 0x31c   : > { %v14969_v40 = vpop.f32.mrb[212].mxu0  ;;  %15094 = vmatmul.mubr.msk.bf16.gmra.mrb[12].mxu1 %vm3951_vm5, %v18870_v62  ;;  %15329 = vmatprep.mubr.msk.bf16.mxu0 %vm4481_vm6, %v7301_v44 }
 0x31d   : > { %v4455_v3 = vmax.f32 %v14969_v40, 0.0  ;;  %v4298_v0 = vpop.f32.mrb[213].mxu0  ;;  %15099 = vmatprep.mubr.msk.bf16.mxu1 %vm3951_vm5, %v18706_v22  ;;  %v18884_v22 = vld [vmem:[%s20385_s3 + $0x28] sm:$0xff]  }
 0x31e   : > { %v4453_v38 = vmax.f32 %v4298_v0, 0.0  ;;  %v14970_v16 = vpop.f32.mrb[214].mxu0 }
 0x31f   : > { %4528 = vst.msk [vmem:[#allocation3 + $0x170] sm:$0xff] %vm4481_vm6, %v4455_v3  ;;  %v4456_v1 = vmax.f32 %v14970_v16, 0.0  ;;  %v4301_v57 = vpop.f32.mrb[215].mxu0  ;;  %v7283_v45 = vld [vmem:[#allocation3 + $0x139] sm:$0xff] }
 0x320   : > { %4526 = vst.msk [vmem:[#allocation3 + $0x160] sm:$0xff] %vm4481_vm6, %v4453_v38  ;;  %v4454_v6 = vmax.f32 %v4301_v57, 0.0  ;;  %v7285_v40 = vld [vmem:[#allocation3 + $0x151] sm:$0xff] }
 0x321   : > { %4529 = vst.msk [vmem:[#allocation3 + $0x178] sm:$0xff] %vm4481_vm6, %v4456_v1  ;;  %v7284_v18 = vld [vmem:[#allocation3 + $0x141] sm:$0xff] }
 0x322   : > { %4527 = vst.msk [vmem:[#allocation3 + $0x168] sm:$0xff] %vm4481_vm6, %v4454_v6  ;;  %v7302_v30 = vpack.c.bf16 %v7284_v18, %v7283_v45  ;;  %v7206_v1 = vld [vmem:[#allocation3 + $0x8] sm:$0xff]  ;;  %v7205_v6 = vld [vmem:[#allocation3] sm:$0xff] }
 0x323   : > { %v7237_v45 = vpack.c.bf16 %v7206_v1, %v7205_v6  ;;  %v8981_v6 = vld [vmem:[#allocation3 + $0x50] sm:$0xff] }
 0x324   : > { %15100 = vmatmul.mubr.msk.bf16.vlgmr.msra.gmra.mrb[16].mxu1 %vm3951_vm5, %v18713_v25  ;;  %15330 = vmatmul.mubr.msk.bf16.gmra.mrb[24].mxu0 %vm4481_vm6, %v7302_v30  ;;  %v14973_v2 = vpop.f32.mrb[216].mxu0 }
 0x325   : > { %15103 = vmatprep.mubr.msk.bf16.mxu1 %vm3951_vm5, %v18721_v20  ;;  %v4459_v63 = vmax.f32 %v14973_v2, 0.0  ;;  %v4314_v26 = vpop.f32.mrb[217].mxu0  ;;  %15132 = vmatpush3.bf16.msra.mxu1 %v18811_v54 }
 0x326   : > { %v4457_v56 = vmax.f32 %v4314_v26, 0.0  ;;  %v14974_v44 = vpop.f32.mrb[218].mxu0  ;;  %15165 = vmatprep.subr.bf16.mxu1 %v18884_v22  ;;  %v7208_v26 = vld [vmem:[#allocation3 + $0x20] sm:$0xff]  ;;  %v7236_v7 = vld [vmem:[#allocation3 + $0x170] sm:$0xff] }
 0x327   : > { %v7286_v3 = vld [vmem:[#allocation3 + $0x159] sm:$0xff]  ;;  %4532 = vst.msk [vmem:[#allocation3 + $0x190] sm:$0xff] %vm4481_vm6, %v4459_v63  ;;  %v4460_v0 = vmax.f32 %v14974_v44, 0.0  ;;  %v4317_v25 = vpop.f32.mrb[219].mxu0 }
 0x328   : > { %v7303_v38 = vpack.c.bf16 %v7286_v3, %v7285_v40  ;;  %v7288_v16 = vld [vmem:[#allocation3 + $0x171] sm:$0xff]  ;;  %4530 = vst.msk [vmem:[#allocation3 + $0x180] sm:$0xff] %vm4481_vm6, %v4457_v56  ;;  %v4458_v20 = vmax.f32 %v4317_v25, 0.0 }
 0x329   : > { %v7287_v57 = vld [vmem:[#allocation3 + $0x169] sm:$0xff]  ;;  %4533 = vst.msk [vmem:[#allocation3 + $0x198] sm:$0xff] %vm4481_vm6, %v4460_v0  ;;  %v8062_v44 = vld [vmem:[#allocation3 + $0x38] sm:$0xff] }
 0x32a   : > { %15333 = vmatprep.mubr.msk.bf16.mxu0 %vm4481_vm6, %v7303_v38  ;;  %v7304_v54 = vpack.c.bf16 %v7288_v16, %v7287_v57  ;;  %4531 = vst.msk [vmem:[#allocation3 + $0x188] sm:$0xff] %vm4481_vm6, %v4458_v20  ;;  %v7207_v3 = vld [vmem:[#allocation3 + $0x18] sm:$0xff]  ;;  %v8061_v0 = vld [vmem:[#allocation3 + $0x30] sm:$0xff]  ;;  %v8980_v20 = vld [vmem:[#allocation3 + $0x48] sm:$0xff] }
 0x32b   : > { %v18906_v25 = vpack.c.bf16 %v8062_v44, %v8061_v0  ;;  %v7215_v44 = vld [vmem:[#allocation3 + $0x78] sm:$0xff] }
 0x32c   : > { %15104 = vmatmul.mubr.msk.bf16.gmra.mrb[20].mxu1 %vm3951_vm5, %v18723_v42  ;;  %15334 = vmatmul.mubr.msk.bf16.gmra.mrb[28].mxu0 %vm4481_vm6, %v7304_v54  ;;  %v14977_v18 = vpop.f32.mrb[220].mxu0  ;;  %v7238_v42 = vpack.c.bf16 %v7208_v26, %v7207_v3  ;;  %v7214_v54 = vld [vmem:[#allocation3 + $0x68] sm:$0xff]  ;;  %v7217_v3 = vld [vmem:[#allocation3 + $0x90] sm:$0xff] }
 0x32d   : > { %15107 = vmatprep.mubr.msk.bf16.mxu1 %vm3951_vm5, %v18729_v55  ;;  %15341 = vmatprep.mubr.msk.bf16.mxu0 %vm4481_vm6, %v7237_v45  ;;  %v4330_v30 = vpop.f32.mrb[221].mxu0  ;;  %v16865_v55 = vld [vmem:[%s20387_s5 + $0x28] sm:$0xff]   ;;  %v18924_v45 = vpack.c.bf16 %v8981_v6, %v8980_v20 }
 0x32e   : > { %v4461_v2 = vmax.f32 %v4330_v30, 0.0  ;;  %v14978_v63 = vpop.f32.mrb[222].mxu0 }
 0x32f   : > { %v4333_v56 = vpop.f32.mrb[223].mxu0  ;;  %v7216_v63 = vld [vmem:[#allocation3 + $0x80] sm:$0xff] }
 0x330   : > { %4534 = vst.msk [vmem:[#allocation3 + $0x1a0] sm:$0xff] %vm4481_vm6, %v4461_v2  ;;  %v4462_v40 = vmax.f32 %v4333_v56, 0.0  ;;  %v7218_v56 = vld [vmem:[#allocation3 + $0x98] sm:$0xff] }
 0x332   : > { %4535 = vst.msk [vmem:[#allocation3 + $0x1a8] sm:$0xff] %vm4481_vm6, %v4462_v40  ;;  %v18937_v40 = vpack.c.bf16 %v7216_v63, %v7215_v44 }
 0x334   : > { %15108 = vmatmul.mubr.msk.bf16.gmra.mrb[24].mxu1 %vm3951_vm5, %v18731_v41  ;;  %15342 = vmatmul.mubr.msk.bf16.vlgmr.msra.gmra.mrb[0].mxu0 %vm4481_vm6, %v7238_v42  ;;  %v14981_v38 = vpop.f32.mrb[224].mxu0  ;;  %v18922_v41 = vld [vmem:[%s20387_s5 + $0x30] sm:$0xff]  }
 0x335   : > { %15111 = vmatprep.mubr.msk.bf16.mxu1 %vm3951_vm5, %v18737_v48  ;;  %15345 = vmatprep.mubr.msk.bf16.mxu0 %vm4481_vm6, %v18906_v25  ;;  %v4346_v16 = vpop.f32.mrb[225].mxu0  ;;  %v7213_v48 = vld [vmem:[#allocation3 + $0x60] sm:$0xff] }
 0x336   : > { %15374 = vmatpush3.bf16.msra.mxu0 %v18795_v61  ;;  %v14982_v1 = vpop.f32.mrb[226].mxu0  ;;  %v18926_v18 = vpack.c.bf16 %v7214_v54, %v7213_v48  ;;  %v7222_v16 = vld [vmem:[#allocation3 + $0xc8] sm:$0xff] }
 0x337   : > { %v4349_v57 = vpop.f32.mrb[227].mxu0  ;;  %15375 = vmatprep.subr.bf16.mxu0 %v16865_v55  ;;  %v7220_v1 = vld [vmem:[#allocation3 + $0xb0] sm:$0xff] }
 0x338   : > { %v7221_v57 = vld [vmem:[#allocation3 + $0xc0] sm:$0xff] }
 0x33a   : > { %15376 = vmatpush3.bf16.msra.mxu0 %v16865_v55  ;;  %v7219_v55 = vld [vmem:[#allocation3 + $0xa8] sm:$0xff] }
 0x33b   : > { %15409 = vmatprep.subr.bf16.mxu0 %v18922_v41  ;;  %v18949_v20 = vpack.c.bf16 %v7220_v1, %v7219_v55  ;;  %v7230_v55 = vld [vmem:[#allocation3 + $0x128] sm:$0xff] }
 0x33c   : > { %15112 = vmatmul.mubr.msk.bf16.gmra.mrb[28].mxu1 %vm3951_vm5, %v18739_v37  ;;  %15346 = vmatmul.mubr.msk.bf16.gmra.mrb[4].mxu0 %vm4481_vm6, %v18924_v45  ;;  %v14985_v61 = vpop.f32.mrb[228].mxu0  ;;  %v18939_v37 = vpack.c.bf16 %v7218_v56, %v7217_v3 }
 0x33d   : > { %15115 = vmatprep.mubr.msk.bf16.mxu1 %vm3951_vm5, %v18745_v4  ;;  %15349 = vmatprep.mubr.msk.bf16.mxu0 %vm4481_vm6, %v18926_v18  ;;  %v4362_v30 = vpop.f32.mrb[229].mxu0  ;;  %v7224_v61 = vld [vmem:[#allocation3 + $0xe0] sm:$0xff] }
 0x33e   : > { %v14986_v2 = vpop.f32.mrb[230].mxu0  ;;  %v7226_v30 = vld [vmem:[#allocation3 + $0xf8] sm:$0xff] }
 0x33f   : > { %v4365_v26 = vpop.f32.mrb[231].mxu0  ;;  %v7223_v2 = vld [vmem:[#allocation3 + $0xd8] sm:$0xff] }
 0x340   : > { %v18961_v63 = vpack.c.bf16 %v7224_v61, %v7223_v2  ;;  %v7225_v26 = vld [vmem:[#allocation3 + $0xf0] sm:$0xff]  ;;  %v5685_v2 = vld [vmem:[#allocation2 + $0x39] sm:$0xff] }
 0x344   : > { %15116 = vmatmul.mubr.msk.bf16.gmra.mrb[0].mxu1 %vm3951_vm5, %v18747_v43  ;;  %15350 = vmatmul.mubr.msk.bf16.gmra.mrb[8].mxu0 %vm4481_vm6, %v18937_v40  ;;  %v14989_v4 = vpop.f32.mrb[232].mxu0  ;;  %v18951_v43 = vpack.c.bf16 %v7222_v16, %v7221_v57  ;;  %v5682_v57 = vld [vmem:[#allocation2 + $0x19] sm:$0xff] }
 0x345   : > { %15119 = vmatprep.mubr.msk.bf16.mxu1 %vm3951_vm5, %v18757_v58  ;;  %15353 = vmatprep.mubr.msk.bf16.mxu0 %vm4481_vm6, %v18939_v37  ;;  %v4378_v0 = vpop.f32.mrb[233].mxu0  ;;  %v5415_v4 = vld [vmem:[#allocation2 + $0x188] sm:$0xff] }
 0x346   : > { %v14990_v42 = vpop.f32.mrb[234].mxu0  ;;  %v7227_v0 = vld [vmem:[#allocation3 + $0x108] sm:$0xff] }
 0x347   : > { %v4381_v38 = vpop.f32.mrb[235].mxu0  ;;  %v5683_v42 = vld [vmem:[#allocation2 + $0x21] sm:$0xff] }
 0x348   : > { %v7228_v38 = vld [vmem:[#allocation3 + $0x110] sm:$0xff] }
 0x349   : > { %v18983_v1 = vpack.c.bf16 %v7228_v38, %v7227_v0  ;;  %v5687_v0 = vld [vmem:[#allocation2 + $0x51] sm:$0xff] }
 0x34c   : > { %15120 = vmatmul.mubr.msk.bf16.gmra.mrb[4].mxu1 %vm3951_vm5, %v18759_v50  ;;  %15354 = vmatmul.mubr.msk.bf16.gmra.mrb[12].mxu0 %vm4481_vm6, %v18949_v20  ;;  %v14993_v58 = vpop.f32.mrb[236].mxu0  ;;  %v18963_v50 = vpack.c.bf16 %v7226_v30, %v7225_v26  ;;  %v7232_v26 = vld [vmem:[#allocation3 + $0x140] sm:$0xff] }
 0x34d   : > { %15123 = vmatprep.mubr.msk.bf16.mxu1 %vm3951_vm5, %v18769_v11  ;;  %15357 = vmatprep.mubr.msk.bf16.mxu0 %vm4481_vm6, %v18951_v43  ;;  %v4394_v54 = vpop.f32.mrb[237].mxu0  ;;  %v7229_v58 = vld [vmem:[#allocation3 + $0x120] sm:$0xff] }
 0x34e   : > { %v14994_v6 = vpop.f32.mrb[238].mxu0  ;;  %v18985_v54 = vpack.c.bf16 %v7230_v55, %v7229_v58  ;;  %v5684_v55 = vld [vmem:[#allocation2 + $0x31] sm:$0xff] }
 0x34f   : > { %v4397_v48 = vpop.f32.mrb[239].mxu0  ;;  %v19002_v38 = vpack.c.bf16 %v5685_v2, %v5684_v55  ;;  %v7233_v58 = vld [vmem:[#allocation3 + $0x150] sm:$0xff]  ;;  %v7235_v55 = vld [vmem:[#allocation3 + $0x168] sm:$0xff] }
 0x350   : > { %v19035_v24 = vpack.c.bf16 %v7236_v7, %v7235_v55  ;;  %v5695_v55 = vld [vmem:[#allocation2 + $0xb1] sm:$0xff] }
 0x354   : > { %v18965_v56 = vpop.f32.mrb[240].mxu0  ;;  %15124 = vmatmul.mubr.msk.bf16.gmra.mrb[8].mxu1 %vm3951_vm5, %v18771_v19  ;;  %15358 = vmatmul.mubr.msk.bf16.gmra.mrb[16].mxu0 %vm4481_vm6, %v18961_v63  ;;  %v5414_v19 = vld [vmem:[#allocation2 + $0x180] sm:$0xff] }
 0x355   : > { %20632 = vst [vmem:[#allocation104_spill] sm:$0xff] %v18965_v56  ;;  %v18971_v11 = vpop.f32.mrb[241].mxu0  ;;  %15127 = vmatprep.mubr.msk.bf16.mxu1 %vm3951_vm5, %v18782_v5  ;;  %15361 = vmatprep.mubr.msk.bf16.mxu0 %vm4481_vm6, %v18963_v50  ;;  %v18981_v16 = vpack.c.bf16 %v5415_v4, %v5414_v19  ;;  %v5714_v5 = vpack.c.bf16 %v5683_v42, %v5682_v57  ;;  %v5686_v4 = vld [vmem:[#allocation2 + $0x49] sm:$0xff]  ;;  %v7234_v42 = vld [vmem:[#allocation3 + $0x158] sm:$0xff] }
 0x356   : > { %20633 = vst [vmem:[#allocation105_spill] sm:$0xff] %v18971_v11  ;;  %v18977_v44 = vpop.f32.mrb[242].mxu0  ;;  %v7231_v19 = vld [vmem:[#allocation3 + $0x138] sm:$0xff]  ;;  %v19008_v39 = vpack.c.bf16 %v7234_v42, %v7233_v58  ;;  %v5689_v42 = vld [vmem:[#allocation2 + $0x69] sm:$0xff] }
 0x357   : > { %20634 = vst [vmem:[#allocation106_spill] sm:$0xff] %v18977_v44  ;;  %v18979_v3 = vpop.f32.mrb[243].mxu0  ;;  %v19004_v57 = vpack.c.bf16 %v7232_v26, %v7231_v19  ;;  %v5691_v19 = vld [vmem:[#allocation2 + $0x81] sm:$0xff]  ;;  %v8059_v44 = vld [vmem:[#allocation3 + $0x18] sm:$0xff] }
 0x358   : > { %20635 = vst [vmem:[#allocation107_spill] sm:$0xff] %v18979_v3  ;;  %v7752_v58 = vld [vmem:[#allocation3 + $0x2] sm:$0xff]  ;;  %v19037_v46 = vpack.c.bf16 %v5691_v19, %v5690_v15  ;;  %v7757_v19 = vld [vmem:[#allocation3 + $0x3a] sm:$0xff] }
 0x359   : > { %v7784_v52 = vpack.c.bf16 %v7753_v31, %v7752_v58  ;;  %v7755_v15 = vld [vmem:[#allocation3 + $0x22] sm:$0xff]  ;;  %v5693_v31 = vld [vmem:[#allocation2 + $0x99] sm:$0xff] }
 0x35a   : > { %v7754_v58 = vld [vmem:[#allocation3 + $0x1a] sm:$0xff]  ;;  %v19054_v10 = vpack.c.bf16 %v5693_v31, %v5692_v59  ;;  %v7758_v31 = vld [vmem:[#allocation3 + $0x4a] sm:$0xff] }
 0x35b   : > { %v7785_v47 = vpack.c.bf16 %v7755_v15, %v7754_v58  ;;  %v5696_v59 = vld [vmem:[#allocation2 + $0xc1] sm:$0xff]  ;;  %v5697_v15 = vld [vmem:[#allocation2 + $0xc9] sm:$0xff] }
 0x35c   : > { %v18987_v6 = vpop.f32.mrb[244].mxu0  ;;  %15128 = vmatmul.mubr.msk.bf16.gmra.mrb[12].mxu1 %vm3951_vm5, %v18981_v16  ;;  %15362 = vmatmul.mubr.msk.bf16.gmra.mrb[20].mxu0 %vm4481_vm6, %v18983_v1  ;;  %v19073_v58 = vpack.c.bf16 %v5697_v15, %v5696_v59  ;;  %v5701_v59 = vld [vmem:[#allocation2 + $0xf9] sm:$0xff]  ;;  %v5702_v15 = vld [vmem:[#allocation2 + $0x109] sm:$0xff] }
 0x35d   : > { %20636 = vst [vmem:[#allocation108_spill] sm:$0xff] %v18987_v6  ;;  %v18993_v48 = vpop.f32.mrb[245].mxu0  ;;  %15133 = vmatprep.mubr.msk.bf16.mxu1 %vm3951_vm5, %v5714_v5  ;;  %15365 = vmatprep.mubr.msk.bf16.mxu0 %vm4481_vm6, %v18985_v54  ;;  %v19006_v5 = vpack.c.bf16 %v5687_v0, %v5686_v4  ;;  %v5688_v0 = vld [vmem:[#allocation2 + $0x61] sm:$0xff] }
 0x35e   : > { %20637 = vst [vmem:[#allocation109_spill] sm:$0xff] %v18993_v48  ;;  %v18998_v61 = vpop.f32.mrb[246].mxu0  ;;  %v19033_v8 = vpack.c.bf16 %v5689_v42, %v5688_v0  ;;  %v5694_v42 = vld [vmem:[#allocation2 + $0xa9] sm:$0xff]  ;;  %v5983_v6 = vld [vmem:[#allocation2 + $0x3a] sm:$0xff] }
 0x35f   : > { %20638 = vst [vmem:[#allocation110_spill] sm:$0xff] %v18998_v61  ;;  %v19000_v30 = vpop.f32.mrb[247].mxu0  ;;  %v5980_v61 = vld [vmem:[#allocation2 + $0x1a] sm:$0xff] }
 0x360   : > { %20639 = vst [vmem:[#allocation111_spill] sm:$0xff] %v19000_v30 }
 0x364   : > { %v19015_v36 = vpop.f32.mrb[248].mxu0  ;;  %15134 = vmatmul.mubr.msk.bf16.vlgmr.msra.gmra.mrb[16].mxu1 %vm3951_vm5, %v19002_v38  ;;  %15366 = vmatmul.mubr.msk.bf16.gmra.mrb[24].mxu0 %vm4481_vm6, %v19004_v57 }
 0x365   : > { %20640 = vst [vmem:[#allocation112_spill] sm:$0xff] %v19015_v36  ;;  %v19021_v2 = vpop.f32.mrb[249].mxu0  ;;  %15137 = vmatprep.mubr.msk.bf16.mxu1 %vm3951_vm5, %v19006_v5  ;;  %15369 = vmatprep.mubr.msk.bf16.mxu0 %vm4481_vm6, %v19008_v39 }
 0x366   : > { %20641 = vst [vmem:[#allocation113_spill] sm:$0xff] %v19021_v2  ;;  %v19027_v26 = vpop.f32.mrb[250].mxu0  ;;  %15166 = vmatpush3.bf16.msra.mxu1 %v18884_v22 }
 0x367   : > { %20642 = vst [vmem:[#allocation114_spill] sm:$0xff] %v19027_v26  ;;  %v19030_v4 = vpop.f32.mrb[251].mxu0  ;;  %15199 = vmatprep.subr.bf16.mxu1 %v19013_v13  ;;  %v5706_v26 = vld [vmem:[#allocation2 + $0x139] sm:$0xff] }
 0x368   : > { %20643 = vst [vmem:[#allocation115_spill] sm:$0xff] %v19030_v4 }
 0x36c   : > { %v19039_v22 = vpop.f32.mrb[252].mxu0  ;;  %15138 = vmatmul.mubr.msk.bf16.gmra.mrb[20].mxu1 %vm3951_vm5, %v19033_v8  ;;  %15370 = vmatmul.mubr.msk.bf16.gmra.mrb[28].mxu0 %vm4481_vm6, %v19035_v24 }
 0x36d   : > { %20644 = vst [vmem:[#allocation116_spill] sm:$0xff] %v19039_v22  ;;  %v19045_v35 = vpop.f32.mrb[253].mxu0  ;;  %15141 = vmatprep.mubr.msk.bf16.mxu1 %vm3951_vm5, %v19037_v46  ;;  %15377 = vmatprep.mubr.msk.bf16.mxu0 %vm4481_vm6, %v7784_v52  ;;  %v7786_v22 = vpack.c.bf16 %v7757_v19, %v7756_v28  ;;  %v16868_v52 = vld [vmem:[%s20387_s5 + $0x38] sm:$0xff]   ;;  %v7760_v19 = vld [vmem:[#allocation3 + $0x62] sm:$0xff] }
 0x36e   : > { %20645 = vst [vmem:[#allocation117_spill] sm:$0xff] %v19045_v35  ;;  %v19050_v7 = vpop.f32.mrb[254].mxu0  ;;  %v19056_v35 = vpack.c.bf16 %v5695_v55, %v5694_v42  ;;  %v7759_v28 = vld [vmem:[#allocation3 + $0x52] sm:$0xff]  ;;  %v19071_v42 = vld [vmem:[%s20387_s5 + $0x40] sm:$0xff]  }
 0x36f   : > { %20646 = vst [vmem:[#allocation118_spill] sm:$0xff] %v19050_v7  ;;  %v19052_v0 = vpop.f32.mrb[255].mxu0  ;;  %v5699_v55 = vld [vmem:[#allocation2 + $0xe1] sm:$0xff] }
 0x370   : > { %20647 = vst [vmem:[#allocation119_spill] sm:$0xff] %v19052_v0  ;;  %v19075_v0 = vpack.c.bf16 %v7759_v28, %v7758_v31  ;;  %v5703_v31 = vld [vmem:[#allocation2 + $0x111] sm:$0xff]  ;;  %v7765_v28 = vld [vmem:[#allocation3 + $0x9a] sm:$0xff] }
 0x371   : > { %v19094_v23 = vpack.c.bf16 %v5703_v31, %v5702_v15  ;;  %v19096_v4 = vpack.c.bf16 %v7765_v28, %v7764_v29  ;;  %v5707_v15 = vld [vmem:[#allocation2 + $0x141] sm:$0xff]  ;;  %v7769_v29 = vld [vmem:[#allocation3 + $0xca] sm:$0xff] }
 0x372   : > { %v7768_v31 = vld [vmem:[#allocation3 + $0xc2] sm:$0xff]  ;;  %v19110_v53 = vpack.c.bf16 %v5707_v15, %v5706_v26  ;;  %v7773_v26 = vld [vmem:[#allocation3 + $0xfa] sm:$0xff]  ;;  %v5708_v15 = vld [vmem:[#allocation2 + $0x151] sm:$0xff] }
 0x373   : > { %v19112_v2 = vpack.c.bf16 %v7769_v29, %v7768_v31  ;;  %v7770_v31 = vld [vmem:[#allocation3 + $0xda] sm:$0xff]  ;;  %v19128_v30 = vpack.c.bf16 %v7773_v26, %v7772_v21  ;;  %v7777_v21 = vld [vmem:[#allocation3 + $0x12a] sm:$0xff] }
 0x374   : > { %15142 = vmatmul.mubr.msk.bf16.gmra.mrb[24].mxu1 %vm3951_vm5, %v19054_v10  ;;  %15378 = vmatmul.mubr.msk.bf16.vlgmr.msra.gmra.mrb[0].mxu0 %vm4481_vm6, %v7785_v47  ;;  %v7761_v47 = vld [vmem:[#allocation3 + $0x6a] sm:$0xff] }
 0x375   : > { %15145 = vmatprep.mubr.msk.bf16.mxu1 %vm3951_vm5, %v19056_v35  ;;  %15381 = vmatprep.mubr.msk.bf16.mxu0 %vm4481_vm6, %v7786_v22  ;;  %v5698_v22 = vld [vmem:[#allocation2 + $0xd9] sm:$0xff]  ;;  %v19079_v7 = vpack.c.bf16 %v7761_v47, %v7760_v19 }
 0x376   : > { %15410 = vmatpush3.bf16.msra.mxu0 %v18922_v41  ;;  %v19077_v41 = vpack.c.bf16 %v5699_v55, %v5698_v22  ;;  %v5700_v55 = vld [vmem:[#allocation2 + $0xf1] sm:$0xff]  ;;  %v7762_v19 = vld [vmem:[#allocation3 + $0x7a] sm:$0xff] }
 0x377   : > { %15411 = vmatprep.subr.bf16.mxu0 %v16868_v52  ;;  %v19090_v47 = vpack.c.bf16 %v5701_v59, %v5700_v55  ;;  %v5704_v59 = vld [vmem:[#allocation2 + $0x121] sm:$0xff]  ;;  %v7766_v55 = vld [vmem:[#allocation3 + $0xaa] sm:$0xff] }
 0x37a   : > { %15412 = vmatpush3.bf16.msra.mxu0 %v16868_v52  ;;  %v7763_v52 = vld [vmem:[#allocation3 + $0x82] sm:$0xff] }
 0x37b   : > { %15445 = vmatprep.subr.bf16.mxu0 %v19071_v42  ;;  %v19092_v22 = vpack.c.bf16 %v7763_v52, %v7762_v19  ;;  %v5705_v52 = vld [vmem:[#allocation2 + $0x129] sm:$0xff]  ;;  %v7767_v19 = vld [vmem:[#allocation3 + $0xb2] sm:$0xff] }
 0x37c   : > { %15146 = vmatmul.mubr.msk.bf16.gmra.mrb[28].mxu1 %vm3951_vm5, %v19073_v58  ;;  %15382 = vmatmul.mubr.msk.bf16.gmra.mrb[4].mxu0 %vm4481_vm6, %v19075_v0  ;;  %v19106_v28 = vpack.c.bf16 %v5705_v52, %v5704_v59  ;;  %v19108_v27 = vpack.c.bf16 %v7767_v19, %v7766_v55  ;;  %v5709_v59 = vld [vmem:[#allocation2 + $0x159] sm:$0xff]  ;;  %v7771_v52 = vld [vmem:[#allocation3 + $0xe2] sm:$0xff]  ;;  %v5711_v19 = vld [vmem:[#allocation2 + $0x171] sm:$0xff] }
 0x37d   : > { %15149 = vmatprep.mubr.msk.bf16.mxu1 %vm3951_vm5, %v19077_v41  ;;  %15385 = vmatprep.mubr.msk.bf16.mxu0 %vm4481_vm6, %v19079_v7  ;;  %v5710_v55 = vld [vmem:[#allocation2 + $0x169] sm:$0xff]  ;;  %v19122_v29 = vpack.c.bf16 %v5709_v59, %v5708_v15  ;;  %v19124_v36 = vpack.c.bf16 %v7771_v52, %v7770_v31  ;;  %v5712_v59 = vld [vmem:[#allocation2 + $0x181] sm:$0xff]  ;;  %v7775_v31 = vld [vmem:[#allocation3 + $0x112] sm:$0xff] }
 0x37e   : > { %v19126_v51 = vpack.c.bf16 %v5711_v19, %v5710_v55  ;;  %v5713_v52 = vld [vmem:[#allocation2 + $0x189] sm:$0xff] }
 0x37f   : > { %v7774_v15 = vld [vmem:[#allocation3 + $0x10a] sm:$0xff]  ;;  %v5981_v55 = vld [vmem:[#allocation2 + $0x22] sm:$0xff]  ;;  %v19138_v26 = vpack.c.bf16 %v5713_v52, %v5712_v59 }
 0x380   : > { %v7776_v19 = vld [vmem:[#allocation3 + $0x122] sm:$0xff]  ;;  %v19140_v34 = vpack.c.bf16 %v7775_v31, %v7774_v15  ;;  %v6012_v49 = vpack.c.bf16 %v5981_v55, %v5980_v61  ;;  %v5984_v52 = vld [vmem:[#allocation2 + $0x4a] sm:$0xff]  ;;  %v5985_v15 = vld [vmem:[#allocation2 + $0x52] sm:$0xff]  ;;  %v19151_v55 = vpack.c.bf16 %v5983_v6, %v5982_v33 }
 0x381   : > { %v19142_v48 = vpack.c.bf16 %v7777_v21, %v7776_v19  ;;  %v7779_v59 = vld [vmem:[#allocation3 + $0x142] sm:$0xff]  ;;  %v7781_v31 = vld [vmem:[#allocation3 + $0x15a] sm:$0xff]  ;;  %v7780_v21 = vld [vmem:[#allocation3 + $0x152] sm:$0xff]  ;;  %v19155_v9 = vpack.c.bf16 %v5985_v15, %v5984_v52 }
 0x382   : > { %v7778_v61 = vld [vmem:[#allocation3 + $0x13a] sm:$0xff]  ;;  %v19157_v3 = vpack.c.bf16 %v7781_v31, %v7780_v21  ;;  %v5986_v33 = vld [vmem:[#allocation2 + $0x62] sm:$0xff]  ;;  %v5987_v6 = vld [vmem:[#allocation2 + $0x6a] sm:$0xff] }
 0x383   : > { %v19153_v19 = vpack.c.bf16 %v7779_v59, %v7778_v61  ;;  %v7782_v59 = vld [vmem:[#allocation3 + $0x16a] sm:$0xff]  ;;  %v7783_v52 = vld [vmem:[#allocation3 + $0x172] sm:$0xff]  ;;  %v5989_v15 = vld [vmem:[#allocation2 + $0x82] sm:$0xff]  ;;  %v19174_v61 = vpack.c.bf16 %v5987_v6, %v5986_v33 }
 0x384   : > { %15150 = vmatmul.mubr.msk.bf16.gmra.mrb[0].mxu1 %vm3951_vm5, %v19090_v47  ;;  %15386 = vmatmul.mubr.msk.bf16.gmra.mrb[8].mxu0 %vm4481_vm6, %v19092_v22  ;;  %v8060_v31 = vld [vmem:[#allocation3 + $0x20] sm:$0xff]  ;;  %v19176_v21 = vpack.c.bf16 %v7783_v52, %v7782_v59  ;;  %v19178_v32 = vpack.c.bf16 %v5989_v15, %v5988_v17  ;;  %v5992_v33 = vld [vmem:[#allocation2 + $0xaa] sm:$0xff]  ;;  %v5993_v6 = vld [vmem:[#allocation2 + $0xb2] sm:$0xff] }
 0x385   : > { %15153 = vmatprep.mubr.msk.bf16.mxu1 %vm3951_vm5, %v19094_v23  ;;  %15389 = vmatprep.mubr.msk.bf16.mxu0 %vm4481_vm6, %v19096_v4  ;;  %v8091_v11 = vpack.c.bf16 %v8060_v31, %v8059_v44  ;;  %v8063_v59 = vld [vmem:[#allocation3 + $0x48] sm:$0xff]  ;;  %v5990_v52 = vld [vmem:[#allocation2 + $0x92] sm:$0xff]  ;;  %v19189_v44 = vpack.c.bf16 %v5993_v6, %v5992_v33 }
 0x386   : > { %v8064_v17 = vld [vmem:[#allocation3 + $0x50] sm:$0xff]  ;;  %v16871_v31 = vld [vmem:[%s20387_s5 + $0x48] sm:$0xff]  }
 0x387   : > { %v8093_v15 = vpack.c.bf16 %v8064_v17, %v8063_v59  ;;  %v19205_v33 = vld [vmem:[%s20387_s5 + $0x50] sm:$0xff]   ;;  %v5997_v6 = vld [vmem:[#allocation2 + $0xe2] sm:$0xff] }
 0x388   : > { %v6000_v17 = vld [vmem:[#allocation2 + $0x10a] sm:$0xff] }
 0x38c   : > { %15154 = vmatmul.mubr.msk.bf16.gmra.mrb[4].mxu1 %vm3951_vm5, %v19106_v28  ;;  %15390 = vmatmul.mubr.msk.bf16.gmra.mrb[12].mxu0 %vm4481_vm6, %v19108_v27 }
 0x38d   : > { %15157 = vmatprep.mubr.msk.bf16.mxu1 %vm3951_vm5, %v19110_v53  ;;  %15393 = vmatprep.mubr.msk.bf16.mxu0 %vm4481_vm6, %v19112_v2 }
 0x394   : > { %15158 = vmatmul.mubr.msk.bf16.gmra.mrb[8].mxu1 %vm3951_vm5, %v19122_v29  ;;  %15394 = vmatmul.mubr.msk.bf16.gmra.mrb[16].mxu0 %vm4481_vm6, %v19124_v36 }
 0x395   : > { %15161 = vmatprep.mubr.msk.bf16.mxu1 %vm3951_vm5, %v19126_v51  ;;  %15397 = vmatprep.mubr.msk.bf16.mxu0 %vm4481_vm6, %v19128_v30 }
 0x39c   : > { %15162 = vmatmul.mubr.msk.bf16.gmra.mrb[12].mxu1 %vm3951_vm5, %v19138_v26  ;;  %15398 = vmatmul.mubr.msk.bf16.gmra.mrb[20].mxu0 %vm4481_vm6, %v19140_v34 }
 0x39d   : > { %15167 = vmatprep.mubr.msk.bf16.mxu1 %vm3951_vm5, %v6012_v49  ;;  %15401 = vmatprep.mubr.msk.bf16.mxu0 %vm4481_vm6, %v19142_v48  ;;  %v19162_v49 = vld [vmem:[%s20385_s3 + $0x38] sm:$0xff]  }
 0x3a4   : > { %15168 = vmatmul.mubr.msk.bf16.vlgmr.msra.gmra.mrb[16].mxu1 %vm3951_vm5, %v19151_v55  ;;  %15402 = vmatmul.mubr.msk.bf16.gmra.mrb[24].mxu0 %vm4481_vm6, %v19153_v19 }
 0x3a5   : > { %15171 = vmatprep.mubr.msk.bf16.mxu1 %vm3951_vm5, %v19155_v9  ;;  %15405 = vmatprep.mubr.msk.bf16.mxu0 %vm4481_vm6, %v19157_v3 }
 0x3a6   : > { %15200 = vmatpush3.bf16.msra.mxu1 %v19013_v13  ;;  %v5991_v13 = vld [vmem:[#allocation2 + $0x9a] sm:$0xff] }
 0x3a7   : > { %15233 = vmatprep.subr.bf16.mxu1 %v19162_v49  ;;  %v19187_v56 = vpack.c.bf16 %v5991_v13, %v5990_v52  ;;  %v5995_v13 = vld [vmem:[#allocation2 + $0xca] sm:$0xff]  ;;  %v5996_v52 = vld [vmem:[#allocation2 + $0xda] sm:$0xff] }
 0x3ac   : > { %15172 = vmatmul.mubr.msk.bf16.gmra.mrb[20].mxu1 %vm3951_vm5, %v19174_v61  ;;  %15406 = vmatmul.mubr.msk.bf16.gmra.mrb[28].mxu0 %vm4481_vm6, %v19176_v21 }
 0x3ad   : > { %15175 = vmatprep.mubr.msk.bf16.mxu1 %vm3951_vm5, %v19178_v32  ;;  %15413 = vmatprep.mubr.msk.bf16.mxu0 %vm4481_vm6, %v8091_v11  ;;  %v5994_v11 = vld [vmem:[#allocation2 + $0xc2] sm:$0xff] }
 0x3ae   : > { %v19207_v59 = vpack.c.bf16 %v5995_v13, %v5994_v11 }
 0x3b4   : > { %15176 = vmatmul.mubr.msk.bf16.gmra.mrb[24].mxu1 %vm3951_vm5, %v19187_v56  ;;  %15414 = vmatmul.mubr.msk.bf16.vlgmr.msra.gmra.mrb[0].mxu0 %vm4481_vm6, %v18906_v25  ;;  %v19209_v25 = vpack.c.bf16 %v5997_v6, %v5996_v52  ;;  %v6005_v6 = vld [vmem:[#allocation2 + $0x142] sm:$0xff] }
 0x3b5   : > { %15179 = vmatprep.mubr.msk.bf16.mxu1 %vm3951_vm5, %v19189_v44  ;;  %15417 = vmatprep.mubr.msk.bf16.mxu0 %vm4481_vm6, %v8093_v15  ;;  %v6001_v15 = vld [vmem:[#allocation2 + $0x112] sm:$0xff] }
 0x3b6   : > { %15446 = vmatpush3.bf16.msra.mxu0 %v19071_v42  ;;  %v5999_v42 = vld [vmem:[#allocation2 + $0xfa] sm:$0xff]  ;;  %v19222_v13 = vpack.c.bf16 %v6001_v15, %v6000_v17 }
 0x3b7   : > { %15447 = vmatprep.subr.bf16.mxu0 %v16871_v31 }
 0x3ba   : > { %15448 = vmatpush3.bf16.msra.mxu0 %v16871_v31  ;;  %v5998_v31 = vld [vmem:[#allocation2 + $0xf2] sm:$0xff] }
 0x3bb   : > { %15481 = vmatprep.subr.bf16.mxu0 %v19205_v33  ;;  %v19220_v11 = vpack.c.bf16 %v5999_v42, %v5998_v31  ;;  %v6004_v42 = vld [vmem:[#allocation2 + $0x13a] sm:$0xff]  ;;  %v6279_v31 = vld [vmem:[#allocation2 + $0x30] sm:$0xff] }
 0x3bc   : > { %15180 = vmatmul.mubr.msk.bf16.gmra.mrb[28].mxu1 %vm3951_vm5, %v19207_v59  ;;  %15418 = vmatmul.mubr.msk.bf16.gmra.mrb[4].mxu0 %vm4481_vm6, %v18926_v18  ;;  %v6002_v18 = vld [vmem:[#allocation2 + $0x122] sm:$0xff]  ;;  %v19234_v17 = vpack.c.bf16 %v6005_v6, %v6004_v42 }
 0x3bd   : > { %15183 = vmatprep.mubr.msk.bf16.mxu1 %vm3951_vm5, %v19209_v25  ;;  %15421 = vmatprep.mubr.msk.bf16.mxu0 %vm4481_vm6, %v18937_v40  ;;  %v6003_v40 = vld [vmem:[#allocation2 + $0x12a] sm:$0xff]  ;;  %v19264_v6 = vld [vmem:[%s20385_s3 + $0x40] sm:$0xff]  }
 0x3be   : > { %v19232_v52 = vpack.c.bf16 %v6003_v40, %v6002_v18  ;;  %v8090_v42 = vld [vmem:[#allocation3 + $0x188] sm:$0xff] }
 0x3c4   : > { %15184 = vmatmul.mubr.msk.bf16.gmra.mrb[0].mxu1 %vm3951_vm5, %v19220_v11  ;;  %15422 = vmatmul.mubr.msk.bf16.gmra.mrb[8].mxu0 %vm4481_vm6, %v18939_v37  ;;  %v6010_v37 = vld [vmem:[#allocation2 + $0x182] sm:$0xff] }
 0x3c5   : > { %15187 = vmatprep.mubr.msk.bf16.mxu1 %vm3951_vm5, %v19222_v13  ;;  %15425 = vmatprep.mubr.msk.bf16.mxu0 %vm4481_vm6, %v18949_v20  ;;  %v6011_v20 = vld [vmem:[#allocation2 + $0x18a] sm:$0xff] }
 0x3c6   : > { %v19252_v15 = vpack.c.bf16 %v6011_v20, %v6010_v37  ;;  %v6288_v37 = vld [vmem:[#allocation2 + $0x98] sm:$0xff]  ;;  %v8366_v20 = vld [vmem:[#allocation3 + $0x21] sm:$0xff] }
 0x3cc   : > { %15188 = vmatmul.mubr.msk.bf16.gmra.mrb[4].mxu1 %vm3951_vm5, %v19232_v52  ;;  %15426 = vmatmul.mubr.msk.bf16.gmra.mrb[12].mxu0 %vm4481_vm6, %v18951_v43  ;;  %v6280_v43 = vld [vmem:[#allocation2 + $0x38] sm:$0xff] }
 0x3cd   : > { %15191 = vmatprep.mubr.msk.bf16.mxu1 %vm3951_vm5, %v19234_v17  ;;  %15429 = vmatprep.mubr.msk.bf16.mxu0 %vm4481_vm6, %v18961_v63  ;;  %v6311_v18 = vpack.c.bf16 %v6280_v43, %v6279_v31  ;;  %v6282_v63 = vld [vmem:[#allocation2 + $0x50] sm:$0xff]  ;;  %v6285_v43 = vld [vmem:[#allocation2 + $0x78] sm:$0xff] }
 0x3d4   : > { %15192 = vmatmul.mubr.msk.bf16.gmra.mrb[8].mxu1 %vm3951_vm5, %v18860_v60  ;;  %15430 = vmatmul.mubr.msk.bf16.gmra.mrb[16].mxu0 %vm4481_vm6, %v18963_v50  ;;  %v6281_v60 = vld [vmem:[#allocation2 + $0x48] sm:$0xff] }
 0x3d5   : > { %15195 = vmatprep.mubr.msk.bf16.mxu1 %vm3951_vm5, %v18870_v62  ;;  %15433 = vmatprep.mubr.msk.bf16.mxu0 %vm4481_vm6, %v18983_v1  ;;  %v6284_v62 = vld [vmem:[#allocation2 + $0x68] sm:$0xff]  ;;  %v6312_v50 = vpack.c.bf16 %v6282_v63, %v6281_v60  ;;  %v6283_v1 = vld [vmem:[#allocation2 + $0x60] sm:$0xff]  ;;  %v6287_v60 = vld [vmem:[#allocation2 + $0x90] sm:$0xff] }
 0x3d6   : > { %v6313_v40 = vpack.c.bf16 %v6284_v62, %v6283_v1  ;;  %v6315_v62 = vpack.c.bf16 %v6288_v37, %v6287_v60  ;;  %v8370_v1 = vld [vmem:[#allocation3 + $0x51] sm:$0xff]  ;;  %v8372_v60 = vld [vmem:[#allocation3 + $0x69] sm:$0xff] }
 0x3d7   : > { %v16874_v37 = vld [vmem:[%s20387_s5 + $0x58] sm:$0xff]  }
 0x3dc   : > { %15196 = vmatmul.mubr.msk.bf16.gmra.mrb[12].mxu1 %vm3951_vm5, %v19252_v15  ;;  %15434 = vmatmul.mubr.msk.bf16.gmra.mrb[20].mxu0 %vm4481_vm6, %v18985_v54  ;;  %v6286_v54 = vld [vmem:[#allocation2 + $0x80] sm:$0xff] }
 0x3dd   : > { %15201 = vmatprep.mubr.msk.bf16.mxu1 %vm3951_vm5, %v6311_v18  ;;  %15437 = vmatprep.mubr.msk.bf16.mxu0 %vm4481_vm6, %v19004_v57  ;;  %v8089_v57 = vld [vmem:[#allocation3 + $0x180] sm:$0xff]  ;;  %v6314_v31 = vpack.c.bf16 %v6286_v54, %v6285_v43 }
 0x3de   : > { %v19274_v18 = vpack.c.bf16 %v8090_v42, %v8089_v57  ;;  %v6291_v57 = vld [vmem:[#allocation2 + $0xc0] sm:$0xff] }
 0x3e4   : > { %15202 = vmatmul.mubr.msk.bf16.vlgmr.msra.gmra.mrb[16].mxu1 %vm3951_vm5, %v6312_v50  ;;  %15438 = vmatmul.mubr.msk.bf16.gmra.mrb[24].mxu0 %vm4481_vm6, %v19008_v39  ;;  %v8365_v39 = vld [vmem:[#allocation3 + $0x19] sm:$0xff]  ;;  %v8369_v50 = vld [vmem:[#allocation3 + $0x49] sm:$0xff] }
 0x3e5   : > { %15205 = vmatprep.mubr.msk.bf16.mxu1 %vm3951_vm5, %v6313_v40  ;;  %15441 = vmatprep.mubr.msk.bf16.mxu0 %vm4481_vm6, %v19035_v24  ;;  %v8397_v63 = vpack.c.bf16 %v8366_v20, %v8365_v39  ;;  %v6289_v24 = vld [vmem:[#allocation2 + $0xa8] sm:$0xff]  ;;  %v6290_v40 = vld [vmem:[#allocation2 + $0xb0] sm:$0xff]  ;;  %v8399_v43 = vpack.c.bf16 %v8370_v1, %v8369_v50  ;;  %v6294_v20 = vld [vmem:[#allocation2 + $0xe0] sm:$0xff] }
 0x3e6   : > { %15234 = vmatpush3.bf16.msra.mxu1 %v19162_v49  ;;  %v6292_v49 = vld [vmem:[#allocation2 + $0xc8] sm:$0xff]  ;;  %v6316_v54 = vpack.c.bf16 %v6290_v40, %v6289_v24  ;;  %v19293_v39 = vld [vmem:[%s20387_s5 + $0x60] sm:$0xff]   ;;  %v6293_v24 = vld [vmem:[#allocation2 + $0xd8] sm:$0xff] }
 0x3e7   : > { %15267 = vmatprep.subr.bf16.mxu1 %v19264_v6  ;;  %v6317_v42 = vpack.c.bf16 %v6292_v49, %v6291_v57  ;;  %v6318_v49 = vpack.c.bf16 %v6294_v20, %v6293_v24  ;;  %v6295_v50 = vld [vmem:[#allocation2 + $0xf0] sm:$0xff]  ;;  %v8373_v1 = vld [vmem:[#allocation3 + $0x79] sm:$0xff] }
 0x3e8   : > { %v8376_v57 = vld [vmem:[#allocation3 + $0x99] sm:$0xff]  ;;  %v6298_v20 = vld [vmem:[#allocation2 + $0x110] sm:$0xff] }
 0x3ec   : > { %15206 = vmatmul.mubr.msk.bf16.gmra.mrb[20].mxu1 %vm3951_vm5, %v6314_v31  ;;  %15442 = vmatmul.mubr.msk.bf16.gmra.mrb[28].mxu0 %vm4481_vm6, %v19274_v18  ;;  %v8371_v31 = vld [vmem:[#allocation3 + $0x61] sm:$0xff] }
 0x3ed   : > { %15209 = vmatprep.mubr.msk.bf16.mxu1 %vm3951_vm5, %v6315_v62  ;;  %15449 = vmatprep.mubr.msk.bf16.mxu0 %vm4481_vm6, %v8397_v63  ;;  %v6296_v62 = vld [vmem:[#allocation2 + $0xf8] sm:$0xff]  ;;  %v8374_v63 = vld [vmem:[#allocation3 + $0x81] sm:$0xff] }
 0x3ee   : > { %v6319_v40 = vpack.c.bf16 %v6296_v62, %v6295_v50  ;;  %v6302_v50 = vld [vmem:[#allocation2 + $0x140] sm:$0xff] }
 0x3f4   : > { %15210 = vmatmul.mubr.msk.bf16.gmra.mrb[24].mxu1 %vm3951_vm5, %v6316_v54  ;;  %15450 = vmatmul.mubr.msk.bf16.vlgmr.msra.gmra.mrb[0].mxu0 %vm4481_vm6, %v18798_v14  ;;  %v19295_v14 = vpack.c.bf16 %v8372_v60, %v8371_v31  ;;  %v6297_v54 = vld [vmem:[#allocation2 + $0x108] sm:$0xff]  ;;  %v8375_v31 = vld [vmem:[#allocation3 + $0x91] sm:$0xff] }
 0x3f5   : > { %15213 = vmatprep.mubr.msk.bf16.mxu1 %vm3951_vm5, %v6317_v42  ;;  %15453 = vmatprep.mubr.msk.bf16.mxu0 %vm4481_vm6, %v8399_v43  ;;  %v6300_v42 = vld [vmem:[#allocation2 + $0x128] sm:$0xff]  ;;  %v6320_v60 = vpack.c.bf16 %v6298_v20, %v6297_v54  ;;  %v19306_v62 = vpack.c.bf16 %v8376_v57, %v8375_v31  ;;  %v6304_v54 = vld [vmem:[#allocation2 + $0x158] sm:$0xff] }
 0x3f6   : > { %15482 = vmatpush3.bf16.msra.mxu0 %v19205_v33  ;;  %v19297_v33 = vpack.c.bf16 %v8374_v63, %v8373_v1  ;;  %v8377_v43 = vld [vmem:[#allocation3 + $0xa9] sm:$0xff]  ;;  %v6299_v63 = vld [vmem:[#allocation2 + $0x120] sm:$0xff]  ;;  %v6301_v20 = vld [vmem:[#allocation2 + $0x138] sm:$0xff] }
 0x3f7   : > { %15483 = vmatprep.subr.bf16.mxu0 %v16874_v37  ;;  %20648 = vst [vmem:[#allocation120_spill] sm:$0xff] %v19306_v62  ;;  %v6321_v24 = vpack.c.bf16 %v6300_v42, %v6299_v63  ;;  %v8379_v1 = vld [vmem:[#allocation3 + $0xc1] sm:$0xff]  ;;  %v6322_v31 = vpack.c.bf16 %v6302_v50, %v6301_v20  ;;  %v8385_v50 = vld [vmem:[#allocation3 + $0x109] sm:$0xff]  ;;  %v8383_v20 = vld [vmem:[#allocation3 + $0xf1] sm:$0xff] }
 0x3f8   : > { %v8382_v57 = vld [vmem:[#allocation3 + $0xe1] sm:$0xff] }
 0x3fa   : > { %15484 = vmatpush3.bf16.msra.mxu0 %v16874_v37  ;;  %v8378_v37 = vld [vmem:[#allocation3 + $0xb1] sm:$0xff] }
 0x3fb   : > { %15517 = vmatprep.subr.bf16.mxu0 %v19293_v39 }
 0x3fc   : > { %15214 = vmatmul.mubr.msk.bf16.gmra.mrb[28].mxu1 %vm3951_vm5, %v6318_v49  ;;  %15454 = vmatmul.mubr.msk.bf16.gmra.mrb[4].mxu0 %vm4481_vm6, %v19295_v14  ;;  %v19308_v49 = vpack.c.bf16 %v8378_v37, %v8377_v43  ;;  %v6303_v43 = vld [vmem:[#allocation2 + $0x150] sm:$0xff]  ;;  %v8381_v37 = vld [vmem:[#allocation3 + $0xd9] sm:$0xff] }
 0x3fd   : > { %15217 = vmatprep.mubr.msk.bf16.mxu1 %vm3951_vm5, %v6319_v40  ;;  %15457 = vmatprep.mubr.msk.bf16.mxu0 %vm4481_vm6, %v19297_v33  ;;  %v8380_v40 = vld [vmem:[#allocation3 + $0xc9] sm:$0xff]  ;;  %v19318_v63 = vpack.c.bf16 %v8382_v57, %v8381_v37 }
 0x3fe   : > { %20649 = vst [vmem:[#allocation121_spill] sm:$0xff] %v19308_v49  ;;  %v19316_v42 = vpack.c.bf16 %v8380_v40, %v8379_v1  ;;  %v8386_v1 = vld [vmem:[#allocation3 + $0x111] sm:$0xff]  ;;  %v8388_v37 = vld [vmem:[#allocation3 + $0x129] sm:$0xff] }
 0x3ff   : > { %v6306_v40 = vld [vmem:[#allocation2 + $0x170] sm:$0xff]  ;;  %v19328_v57 = vpack.c.bf16 %v8386_v1, %v8385_v50  ;;  %v8389_v50 = vld [vmem:[#allocation3 + $0x139] sm:$0xff] }
 0x404   : > { %15218 = vmatmul.mubr.msk.bf16.gmra.mrb[0].mxu1 %vm3951_vm5, %v6320_v60  ;;  %15458 = vmatmul.mubr.msk.bf16.gmra.mrb[8].mxu0 %vm4481_vm6, %v19306_v62  ;;  %v6323_v60 = vpack.c.bf16 %v6304_v54, %v6303_v43  ;;  %v8387_v43 = vld [vmem:[#allocation3 + $0x121] sm:$0xff] }
 0x405   : > { %15221 = vmatprep.mubr.msk.bf16.mxu1 %vm3951_vm5, %v6321_v24  ;;  %15461 = vmatprep.mubr.msk.bf16.mxu0 %vm4481_vm6, %v19308_v49  ;;  %v6305_v24 = vld [vmem:[#allocation2 + $0x168] sm:$0xff]  ;;  %v8384_v49 = vld [vmem:[#allocation3 + $0xf9] sm:$0xff] }
 0x406   : > { %v6324_v62 = vpack.c.bf16 %v6306_v40, %v6305_v24  ;;  %v19326_v54 = vpack.c.bf16 %v8384_v49, %v8383_v20  ;;  %v6309_v24 = vld [vmem:[#allocation2 + $0x198] sm:$0xff]  ;;  %v19337_v40 = vpack.c.bf16 %v8388_v37, %v8387_v43 }
 0x407   : > { %v8394_v20 = vld [vmem:[#allocation3 + $0x171] sm:$0xff] }
 0x40c   : > { %15222 = vmatmul.mubr.msk.bf16.gmra.mrb[4].mxu1 %vm3951_vm5, %v6322_v31  ;;  %15462 = vmatmul.mubr.msk.bf16.gmra.mrb[12].mxu0 %vm4481_vm6, %v19316_v42  ;;  %v6310_v31 = vld [vmem:[#allocation2 + $0x1a0] sm:$0xff] }
 0x40d   : > { %15225 = vmatprep.mubr.msk.bf16.mxu1 %vm3951_vm5, %v6323_v60  ;;  %15465 = vmatprep.mubr.msk.bf16.mxu0 %vm4481_vm6, %v19318_v63  ;;  %v8390_v60 = vld [vmem:[#allocation3 + $0x141] sm:$0xff]  ;;  %v6326_v49 = vpack.c.bf16 %v6310_v31, %v6309_v24  ;;  %v8391_v31 = vld [vmem:[#allocation3 + $0x151] sm:$0xff] }
 0x40e   : > { %v19339_v1 = vpack.c.bf16 %v8390_v60, %v8389_v50  ;;  %v8396_v60 = vld [vmem:[#allocation3 + $0x189] sm:$0xff]  ;;  %v8671_v50 = vld [vmem:[#allocation3 + $0x1a] sm:$0xff] }
 0x40f   : > { %v8672_v24 = vld [vmem:[#allocation3 + $0x22] sm:$0xff] }
 0x414   : > { %15226 = vmatmul.mubr.msk.bf16.gmra.mrb[8].mxu1 %vm3951_vm5, %v6324_v62  ;;  %15466 = vmatmul.mubr.msk.bf16.gmra.mrb[16].mxu0 %vm4481_vm6, %v19326_v54  ;;  %v8393_v62 = vld [vmem:[#allocation3 + $0x169] sm:$0xff] }
 0x415   : > { %15229 = vmatprep.mubr.msk.bf16.mxu1 %vm3951_vm5, %v18981_v16  ;;  %15469 = vmatprep.mubr.msk.bf16.mxu0 %vm4481_vm6, %v19328_v57  ;;  %v8392_v16 = vld [vmem:[#allocation3 + $0x159] sm:$0xff]  ;;  %v19350_v37 = vpack.c.bf16 %v8394_v20, %v8393_v62  ;;  %v16877_v62 = vld [vmem:[%s20387_s5 + $0x68] sm:$0xff]  }
 0x416   : > { %v19348_v43 = vpack.c.bf16 %v8392_v16, %v8391_v31  ;;  %v8703_v16 = vpack.c.bf16 %v8672_v24, %v8671_v50  ;;  %v8996_v20 = vld [vmem:[#allocation3 + $0x108] sm:$0xff]  ;;  %v8998_v50 = vld [vmem:[#allocation3 + $0x120] sm:$0xff] }
 0x417   : > { %v8999_v31 = vld [vmem:[#allocation3 + $0x128] sm:$0xff] }
 0x41c   : > { %15230 = vmatmul.mubr.msk.bf16.gmra.mrb[12].mxu1 %vm3951_vm5, %v6326_v49  ;;  %15470 = vmatmul.mubr.msk.bf16.gmra.mrb[20].mxu0 %vm4481_vm6, %v19337_v40 }
 0x41d   : > { %15235 = vmatprep.mubr.msk.bf16.mxu1 %vm3951_vm5, %v19002_v38  ;;  %15473 = vmatprep.mubr.msk.bf16.mxu0 %vm4481_vm6, %v19339_v1  ;;  %v8395_v38 = vld [vmem:[#allocation3 + $0x181] sm:$0xff] }
 0x41e   : > { %v19361_v49 = vpack.c.bf16 %v8396_v60, %v8395_v38  ;;  %v8997_v38 = vld [vmem:[#allocation3 + $0x110] sm:$0xff] }
 0x41f   : > { %v9019_v24 = vpack.c.bf16 %v8997_v38, %v8996_v20  ;;  %v9610_v20 = vld [vmem:[#allocation3 + $0x122] sm:$0xff] }
 0x424   : > { %15236 = vmatmul.mubr.msk.bf16.vlgmr.msra.gmra.mrb[16].mxu1 %vm3951_vm5, %v19006_v5  ;;  %15474 = vmatmul.mubr.msk.bf16.gmra.mrb[24].mxu0 %vm4481_vm6, %v19348_v43  ;;  %v8673_v5 = vld [vmem:[#allocation3 + $0x32] sm:$0xff] }
 0x425   : > { %15239 = vmatprep.mubr.msk.bf16.mxu1 %vm3951_vm5, %v19033_v8  ;;  %15477 = vmatprep.mubr.msk.bf16.mxu0 %vm4481_vm6, %v19350_v37  ;;  %v8674_v8 = vld [vmem:[#allocation3 + $0x3a] sm:$0xff] }
 0x426   : > { %15268 = vmatpush3.bf16.msra.mxu1 %v19264_v6  ;;  %v8704_v6 = vpack.c.bf16 %v8674_v8, %v8673_v5  ;;  %v9001_v8 = vld [vmem:[#allocation3 + $0x140] sm:$0xff]  ;;  %v9003_v5 = vld [vmem:[#allocation3 + $0x158] sm:$0xff] }
 0x42c   : > { %15240 = vmatmul.mubr.msk.bf16.gmra.mrb[20].mxu1 %vm3951_vm5, %v19037_v46  ;;  %15478 = vmatmul.mubr.msk.bf16.gmra.mrb[28].mxu0 %vm4481_vm6, %v19361_v49 }
 0x42d   : > { %15243 = vmatprep.mubr.msk.bf16.mxu1 %vm3951_vm5, %v19054_v10  ;;  %15485 = vmatprep.mubr.msk.bf16.mxu0 %vm4481_vm6, %v8703_v16  ;;  %v16879_v10 = vld [vmem:[%s20387_s5 + $0x70] sm:$0xff]   ;;  %v9020_v16 = vpack.c.bf16 %v8999_v31, %v8998_v50  ;;  %v9615_v50 = vld [vmem:[#allocation3 + $0x15a] sm:$0xff] }
 0x42e   : > { %v9611_v31 = vld [vmem:[#allocation3 + $0x12a] sm:$0xff] }
 0x434   : > { %15244 = vmatmul.mubr.msk.bf16.gmra.mrb[24].mxu1 %vm3951_vm5, %v19056_v35  ;;  %15486 = vmatmul.mubr.msk.bf16.vlgmr.msra.gmra.mrb[0].mxu0 %vm4481_vm6, %v8704_v6  ;;  %v8979_v35 = vld [vmem:[#allocation3 + $0x38] sm:$0xff] }
 0x435   : > { %15247 = vmatprep.mubr.msk.bf16.mxu1 %vm3951_vm5, %v19073_v58  ;;  %15489 = vmatprep.mubr.msk.bf16.mxu0 %vm4481_vm6, %v19075_v0  ;;  %v8986_v58 = vld [vmem:[#allocation3 + $0x90] sm:$0xff]  ;;  %v6905_v6 = vld [vmem:[#allocation2 + $0x19a] sm:$0xff] }
 0x436   : > { %15518 = vmatpush3.bf16.msra.mxu0 %v19293_v39 }
 0x437   : > { %15519 = vmatprep.subr.bf16.mxu0 %v16877_v62 }
 0x43a   : > { %15520 = vmatpush3.bf16.msra.mxu0 %v16877_v62  ;;  %v9000_v62 = vld [vmem:[#allocation3 + $0x138] sm:$0xff] }
 0x43b   : > { %15553 = vmatprep.subr.bf16.mxu0 %v16879_v10 }
 0x43c   : > { %15248 = vmatmul.mubr.msk.bf16.gmra.mrb[28].mxu1 %vm3951_vm5, %v19077_v41  ;;  %15490 = vmatmul.mubr.msk.bf16.gmra.mrb[4].mxu0 %vm4481_vm6, %v19079_v7  ;;  %v8984_v7 = vld [vmem:[#allocation3 + $0x78] sm:$0xff] }
 0x43d   : > { %15251 = vmatprep.mubr.msk.bf16.mxu1 %vm3951_vm5, %v19090_v47  ;;  %15493 = vmatprep.mubr.msk.bf16.mxu0 %vm4481_vm6, %v19092_v22  ;;  %v8991_v47 = vld [vmem:[#allocation3 + $0xc8] sm:$0xff]  ;;  %v8989_v22 = vld [vmem:[#allocation3 + $0xb0] sm:$0xff] }
 0x444   : > { %15252 = vmatmul.mubr.msk.bf16.gmra.mrb[0].mxu1 %vm3951_vm5, %v19094_v23  ;;  %15494 = vmatmul.mubr.msk.bf16.gmra.mrb[8].mxu0 %vm4481_vm6, %v19096_v4  ;;  %v8987_v4 = vld [vmem:[#allocation3 + $0x98] sm:$0xff] }
 0x445   : > { %15255 = vmatprep.mubr.msk.bf16.mxu1 %vm3951_vm5, %v19106_v28  ;;  %15497 = vmatprep.mubr.msk.bf16.mxu0 %vm4481_vm6, %v19108_v27  ;;  %v6607_v27 = vld [vmem:[#allocation2 + $0x199] sm:$0xff]  ;;  %v9014_v41 = vpack.c.bf16 %v8987_v4, %v8986_v58 }
 0x446   : > { %v9596_v58 = vld [vmem:[#allocation3 + $0x7a] sm:$0xff] }
 0x44c   : > { %15256 = vmatmul.mubr.msk.bf16.gmra.mrb[4].mxu1 %vm3951_vm5, %v19110_v53  ;;  %15498 = vmatmul.mubr.msk.bf16.gmra.mrb[12].mxu0 %vm4481_vm6, %v19112_v2  ;;  %v6608_v53 = vld [vmem:[#allocation2 + $0x1a1] sm:$0xff]  ;;  %v16880_v2 = vld [vmem:[%s20387_s5 + $0x78] sm:$0xff]  }
 0x44d   : > { %15259 = vmatprep.mubr.msk.bf16.mxu1 %vm3951_vm5, %v19122_v29  ;;  %15501 = vmatprep.mubr.msk.bf16.mxu0 %vm4481_vm6, %v19124_v36  ;;  %v6624_v23 = vpack.c.bf16 %v6608_v53, %v6607_v27  ;;  %v8978_v36 = vld [vmem:[#allocation3 + $0x30] sm:$0xff]  ;;  %v8990_v29 = vld [vmem:[#allocation3 + $0xc0] sm:$0xff]  ;;  %v9021_v53 = vpack.c.bf16 %v9001_v8, %v9000_v62 }
 0x44e   : > { %v9002_v27 = vld [vmem:[#allocation3 + $0x150] sm:$0xff] }
 0x44f   : > { %v9614_v8 = vld [vmem:[#allocation3 + $0x152] sm:$0xff] }
 0x450   : > { %v9617_v62 = vld [vmem:[#allocation3 + $0x172] sm:$0xff] }
 0x454   : > { %15260 = vmatmul.mubr.msk.bf16.gmra.mrb[8].mxu1 %vm3951_vm5, %v19126_v51  ;;  %15502 = vmatmul.mubr.msk.bf16.gmra.mrb[16].mxu0 %vm4481_vm6, %v19128_v30  ;;  %v8702_v51 = vld [vmem:[#allocation3 + $0x18a] sm:$0xff] }
 0x455   : > { %15263 = vmatprep.mubr.msk.bf16.mxu1 %vm3951_vm5, %v19138_v26  ;;  %15505 = vmatprep.mubr.msk.bf16.mxu0 %vm4481_vm6, %v19140_v34  ;;  %v8701_v34 = vld [vmem:[#allocation3 + $0x182] sm:$0xff]  ;;  %v9016_v26 = vpack.c.bf16 %v8991_v47, %v8990_v29  ;;  %v9598_v47 = vld [vmem:[#allocation3 + $0x92] sm:$0xff] }
 0x456   : > { %v19431_v46 = vpack.c.bf16 %v8702_v51, %v8701_v34  ;;  %v9004_v34 = vld [vmem:[#allocation3 + $0x168] sm:$0xff]  ;;  %v9005_v51 = vld [vmem:[#allocation3 + $0x170] sm:$0xff] }
 0x457   : > { %v9601_v29 = vld [vmem:[#allocation3 + $0xb2] sm:$0xff] }
 0x45c   : > { %15264 = vmatmul.mubr.msk.bf16.gmra.mrb[12].mxu1 %vm3951_vm5, %v6624_v23  ;;  %15506 = vmatmul.mubr.msk.bf16.gmra.mrb[20].mxu0 %vm4481_vm6, %v19142_v48  ;;  %v9010_v48 = vpack.c.bf16 %v8979_v35, %v8978_v36  ;;  %v9022_v23 = vpack.c.bf16 %v9003_v5, %v9002_v27  ;;  %v9008_v35 = vld [vmem:[#allocation3 + $0x198] sm:$0xff]  ;;  %v9009_v36 = vld [vmem:[#allocation3 + $0x1a0] sm:$0xff]  ;;  %v9634_v5 = vpack.c.bf16 %v9615_v50, %v9614_v8 }
 0x45d   : > { %15269 = vmatprep.mubr.msk.bf16.mxu1 %vm3951_vm5, %v19151_v55  ;;  %15509 = vmatprep.mubr.msk.bf16.mxu0 %vm4481_vm6, %v19153_v19  ;;  %v8993_v55 = vld [vmem:[#allocation3 + $0xe0] sm:$0xff] }
 0x45e   : > { %v6900_v19 = vld [vmem:[#allocation2 + $0x15a] sm:$0xff]  ;;  %v9621_v27 = vld [vmem:[#allocation3 + $0x1a2] sm:$0xff] }
 0x464   : > { %15270 = vmatmul.mubr.msk.bf16.vlgmr.msra.gmra.mrb[16].mxu1 %vm3951_vm5, %v19155_v9  ;;  %15510 = vmatmul.mubr.msk.bf16.gmra.mrb[24].mxu0 %vm4481_vm6, %v19157_v3  ;;  %v8983_v9 = vld [vmem:[#allocation3 + $0x68] sm:$0xff]  ;;  %v8982_v3 = vld [vmem:[#allocation3 + $0x60] sm:$0xff] }
 0x465   : > { %15273 = vmatprep.mubr.msk.bf16.mxu1 %vm3951_vm5, %v19174_v61  ;;  %15513 = vmatprep.mubr.msk.bf16.mxu0 %vm4481_vm6, %v19176_v21  ;;  %v9012_v30 = vpack.c.bf16 %v8983_v9, %v8982_v3  ;;  %v8995_v61 = vld [vmem:[#allocation3 + $0xf8] sm:$0xff]  ;;  %v9025_v9 = vpack.c.bf16 %v9009_v36, %v9008_v35  ;;  %v20653_v36 = vld [vmem:[#allocation105_spill] sm:$0xff] }
 0x466   : > { %v8992_v21 = vld [vmem:[#allocation3 + $0xd8] sm:$0xff] }
 0x467   : > { %v9284_v3 = vld [vmem:[#allocation3 + $0x31] sm:$0xff] }
 0x46c   : > { %15274 = vmatmul.mubr.msk.bf16.gmra.mrb[20].mxu1 %vm3951_vm5, %v19178_v32  ;;  %15514 = vmatmul.mubr.msk.bf16.gmra.mrb[28].mxu0 %vm4481_vm6, %v19431_v46  ;;  %v8985_v32 = vld [vmem:[#allocation3 + $0x80] sm:$0xff] }
 0x46d   : > { %15277 = vmatprep.mubr.msk.bf16.mxu1 %vm3951_vm5, %v19187_v56  ;;  %15521 = vmatprep.mubr.msk.bf16.mxu0 %vm4481_vm6, %v9010_v48  ;;  %v19453_v56 = vld [vmem:[%s20387_s5 + $0x80] sm:$0xff]   ;;  %v9013_v0 = vpack.c.bf16 %v8985_v32, %v8984_v7  ;;  %v20651_v32 = vld [vmem:[#allocation121_spill] sm:$0xff] }
 0x46e   : > { %v9285_v48 = vld [vmem:[#allocation3 + $0x39] sm:$0xff]  ;;  %v9597_v7 = vld [vmem:[#allocation3 + $0x82] sm:$0xff] }
 0x474   : > { %15278 = vmatmul.mubr.msk.bf16.gmra.mrb[24].mxu1 %vm3951_vm5, %v19189_v44  ;;  %15522 = vmatmul.mubr.msk.bf16.vlgmr.msra.gmra.mrb[0].mxu0 %vm4481_vm6, %v18924_v45  ;;  %v8988_v45 = vld [vmem:[#allocation3 + $0xa8] sm:$0xff]  ;;  %v9017_v44 = vpack.c.bf16 %v8993_v55, %v8992_v21 }
 0x475   : > { %15281 = vmatprep.mubr.msk.bf16.mxu1 %vm3951_vm5, %v19207_v59  ;;  %15525 = vmatprep.mubr.msk.bf16.mxu0 %vm4481_vm6, %v9012_v30  ;;  %v9015_v28 = vpack.c.bf16 %v8989_v22, %v8988_v45  ;;  %v6899_v59 = vld [vmem:[#allocation2 + $0x152] sm:$0xff]  ;;  %v9316_v30 = vpack.c.bf16 %v9285_v48, %v9284_v3  ;;  %v9625_v45 = vpack.c.bf16 %v9597_v7, %v9596_v58  ;;  %v9603_v55 = vld [vmem:[#allocation3 + $0xca] sm:$0xff]  ;;  %v9605_v21 = vld [vmem:[#allocation3 + $0xe2] sm:$0xff] }
 0x476   : > { %15554 = vmatpush3.bf16.msra.mxu0 %v16879_v10  ;;  %v20654_v3 = vld [vmem:[#allocation48_spill] sm:$0xff] }
 0x477   : > { %15555 = vmatprep.subr.bf16.mxu0 %v16880_v2  ;;  %v20660_v58 = vld [vmem:[#allocation108_spill] sm:$0xff] }
 0x47a   : > { %15556 = vmatpush3.bf16.msra.mxu0 %v16880_v2  ;;  %v16882_v2 = vld [vmem:[%s20387_s5 + $0x88] sm:$0xff]  }
 0x47b   : > { %15589 = vmatprep.subr.bf16.mxu0 %v19453_v56 }
 0x47c   : > { %15282 = vmatmul.mubr.msk.bf16.gmra.mrb[28].mxu1 %vm3951_vm5, %v19209_v25  ;;  %15526 = vmatmul.mubr.msk.bf16.gmra.mrb[4].mxu0 %vm4481_vm6, %v9013_v0  ;;  %v8994_v25 = vld [vmem:[#allocation3 + $0xf0] sm:$0xff]  ;;  %v9599_v0 = vld [vmem:[#allocation3 + $0x9a] sm:$0xff] }
 0x47d   : > { %15285 = vmatprep.mubr.msk.bf16.mxu1 %vm3951_vm5, %v19220_v11  ;;  %15529 = vmatprep.mubr.msk.bf16.mxu0 %vm4481_vm6, %v9014_v41  ;;  %v6919_v11 = vpack.c.bf16 %v6900_v19, %v6899_v59  ;;  %v9018_v39 = vpack.c.bf16 %v8995_v61, %v8994_v25  ;;  %v16885_v41 = vld [vmem:[%s20388_s6 + $0x28] sm:$0xff]   ;;  %v9626_v22 = vpack.c.bf16 %v9599_v0, %v9598_v47  ;;  %v9604_v59 = vld [vmem:[#allocation3 + $0xda] sm:$0xff] }
 0x47e   : > { %v9629_v25 = vpack.c.bf16 %v9605_v21, %v9604_v59  ;;  %v20661_v47 = vld [vmem:[#allocation109_spill] sm:$0xff] }
 0x484   : > { %15286 = vmatmul.mubr.msk.bf16.gmra.mrb[0].mxu1 %vm3951_vm5, %v19222_v13  ;;  %15530 = vmatmul.mubr.msk.bf16.gmra.mrb[8].mxu0 %vm4481_vm6, %v9015_v28  ;;  %v6901_v13 = vld [vmem:[#allocation2 + $0x16a] sm:$0xff] }
 0x485   : > { %15289 = vmatprep.mubr.msk.bf16.mxu1 %vm3951_vm5, %v19232_v52  ;;  %15533 = vmatprep.mubr.msk.bf16.mxu0 %vm4481_vm6, %v9016_v26  ;;  %v6902_v52 = vld [vmem:[#allocation2 + $0x172] sm:$0xff]  ;;  %v9600_v28 = vld [vmem:[#allocation3 + $0xaa] sm:$0xff]  ;;  %v9602_v26 = vld [vmem:[#allocation3 + $0xc2] sm:$0xff] }
 0x486   : > { %v6920_v60 = vpack.c.bf16 %v6902_v52, %v6901_v13  ;;  %v9627_v19 = vpack.c.bf16 %v9601_v29, %v9600_v28  ;;  %v9628_v61 = vpack.c.bf16 %v9603_v55, %v9602_v26  ;;  %v9608_v13 = vld [vmem:[#allocation3 + $0x10a] sm:$0xff]  ;;  %v9609_v52 = vld [vmem:[#allocation3 + $0x112] sm:$0xff] }
 0x487   : > { %v9631_v38 = vpack.c.bf16 %v9609_v52, %v9608_v13  ;;  %v20662_v29 = vld [vmem:[#allocation54_spill] sm:$0xff] }
 0x488   : > { %v1135_v26 = vmax.f32 %v20662_v29, 0.0  ;;  %v20666_v52 = vld [vmem:[#allocation10_spill] sm:$0xff] }
 0x489   : > { %v20680_v29 = vld [vmem:[#allocation118_spill] sm:$0xff] }
 0x48c   : > { %15290 = vmatmul.mubr.msk.bf16.gmra.mrb[4].mxu1 %vm3951_vm5, %v19234_v17  ;;  %15534 = vmatmul.mubr.msk.bf16.gmra.mrb[12].mxu0 %vm4481_vm6, %v9017_v44  ;;  %v6906_v17 = vld [vmem:[#allocation2 + $0x1a2] sm:$0xff]  ;;  %v9607_v44 = vld [vmem:[#allocation3 + $0xfa] sm:$0xff] }
 0x48d   : > { %15293 = vmatprep.mubr.msk.bf16.mxu1 %vm3951_vm5, %v6919_v11  ;;  %15537 = vmatprep.mubr.msk.bf16.mxu0 %vm4481_vm6, %v9018_v39  ;;  %v6922_v10 = vpack.c.bf16 %v6906_v17, %v6905_v6  ;;  %v9606_v11 = vld [vmem:[#allocation3 + $0xf2] sm:$0xff]  ;;  %v9616_v6 = vld [vmem:[#allocation3 + $0x16a] sm:$0xff] }
 0x48e   : > { %v9630_v39 = vpack.c.bf16 %v9607_v44, %v9606_v11  ;;  %v20664_v44 = vld [vmem:[#allocation12_spill] sm:$0xff]  ;;  %v20665_v11 = vld [vmem:[#allocation111_spill] sm:$0xff] }
 0x48f   : > { %v1133_v59 = vmax.f32 %v20664_v44, 0.0  ;;  %v20682_v44 = vld [vmem:[#allocation119_spill] sm:$0xff] }
 0x494   : > { %15294 = vmatmul.mubr.msk.bf16.gmra.mrb[8].mxu1 %vm3951_vm5, %v6920_v60  ;;  %15538 = vmatmul.mubr.msk.bf16.gmra.mrb[16].mxu0 %vm4481_vm6, %v9019_v24  ;;  %v9632_v60 = vpack.c.bf16 %v9611_v31, %v9610_v20  ;;  %v9613_v24 = vld [vmem:[#allocation3 + $0x142] sm:$0xff]  ;;  %v1136_v20 = vmax.f32 %v20666_v52, 0.0 }
 0x495   : > { %15297 = vmatprep.mubr.msk.bf16.mxu1 %vm3951_vm5, %v19252_v15  ;;  %15541 = vmatprep.mubr.msk.bf16.mxu0 %vm4481_vm6, %v9020_v16  ;;  %v9023_v15 = vpack.c.bf16 %v9005_v51, %v9004_v34  ;;  %v9612_v16 = vld [vmem:[#allocation3 + $0x13a] sm:$0xff] }
 0x496   : > { %v9633_v17 = vpack.c.bf16 %v9613_v24, %v9612_v16  ;;  %v20652_v51 = vld [vmem:[#allocation104_spill] sm:$0xff] }
 0x49c   : > { %15298 = vmatmul.mubr.msk.bf16.gmra.mrb[12].mxu1 %vm3951_vm5, %v6922_v10  ;;  %15542 = vmatmul.mubr.msk.bf16.gmra.mrb[20].mxu0 %vm4481_vm6, %v9021_v53  ;;  %v9635_v10 = vpack.c.bf16 %v9617_v62, %v9616_v6  ;;  %v9620_v53 = vld [vmem:[#allocation3 + $0x19a] sm:$0xff] }
 0x49d   : > { %15545 = vmatprep.mubr.msk.bf16.mxu0 %vm4481_vm6, %v9022_v23  ;;  %v9637_v23 = vpack.c.bf16 %v9621_v27, %v9620_v53 }
 0x4a4   : > { %15546 = vmatmul.mubr.msk.bf16.gmra.mrb[24].mxu0 %vm4481_vm6, %v9023_v15 }
 0x4a5   : > { %15549 = vmatprep.mubr.msk.bf16.mxu0 %vm4481_vm6, %v19274_v18  ;;  %v20650_v18 = vld [vmem:[#allocation120_spill] sm:$0xff] }
 0x4ac   : > { %15550 = vmatmul.mubr.msk.bf16.gmra.mrb[28].mxu0 %vm4481_vm6, %v9025_v9 }
 0x4ad   : > { %15557 = vmatprep.mubr.msk.bf16.mxu0 %vm4481_vm6, %v9316_v30  ;;  %v1131_v30 = vmax.f32 %v20654_v3, 0.0 }
 0x4b4   : > { %15558 = vmatmul.mubr.msk.bf16.vlgmr.msra.gmra.mrb[0].mxu0 %vm4481_vm6, %v18802_v12  ;;  %v9314_v12 = vld [vmem:[#allocation3 + $0x199] sm:$0xff] }
 0x4b5   : > { %15561 = vmatprep.mubr.msk.bf16.mxu0 %vm4481_vm6, %v19295_v14  ;;  %15590 = vmatpush3.bf16.msra.mxu0 %v19453_v56  ;;  %v9315_v14 = vld [vmem:[#allocation3 + $0x1a1] sm:$0xff] }
 0x4b6   : > { %15591 = vmatprep.subr.bf16.mxu0 %v16882_v2 }
 0x4b9   : > { %15592 = vmatpush3.bf16.msra.mxu0 %v16882_v2 }
 0x4bc   : > { %15562 = vmatmul.mubr.msk.bf16.gmra.mrb[4].mxu0 %vm4481_vm6, %v19297_v33  ;;  %v9591_v33 = vld [vmem:[#allocation3 + $0x3a] sm:$0xff] }
 0x4bd   : > { %15565 = vmatprep.mubr.msk.bf16.mxu0 %vm4481_vm6, %v20650_v18  ;;  %v20655_v18 = vld [vmem:[#allocation106_spill] sm:$0xff] }
 0x4c4   : > { %15566 = vmatmul.mubr.msk.bf16.gmra.mrb[8].mxu0 %vm4481_vm6, %v20651_v32 }
 0x4c5   : > { %15569 = vmatprep.mubr.msk.bf16.mxu0 %vm4481_vm6, %v19316_v42  ;;  %v9331_v42 = vpack.c.bf16 %v9315_v14, %v9314_v12  ;;  %v20656_v14 = vld [vmem:[#allocation9_spill] sm:$0xff] }
 0x4cc   : > { %15570 = vmatmul.mubr.msk.bf16.gmra.mrb[12].mxu0 %vm4481_vm6, %v19318_v63  ;;  %v9590_v63 = vld [vmem:[#allocation3 + $0x32] sm:$0xff] }
 0x4cd   : > { %15573 = vmatprep.mubr.msk.bf16.mxu0 %vm4481_vm6, %v19326_v54  ;;  %v9622_v54 = vpack.c.bf16 %v9591_v33, %v9590_v63 }
 0x4d4   : > { %15574 = vmatmul.mubr.msk.bf16.gmra.mrb[16].mxu0 %vm4481_vm6, %v19328_v57  ;;  %v9593_v57 = vld [vmem:[#allocation3 + $0x52] sm:$0xff] }
 0x4d5   : > { %15577 = vmatprep.mubr.msk.bf16.mxu0 %vm4481_vm6, %v19337_v40  ;;  %v9592_v40 = vld [vmem:[#allocation3 + $0x4a] sm:$0xff] }
 0x4d6   : > { %v9623_v56 = vpack.c.bf16 %v9593_v57, %v9592_v40  ;;  %v20658_v57 = vld [vmem:[#allocation8_spill] sm:$0xff] }
 0x4d7   : > { %v1132_v40 = vmax.f32 %v20658_v57, 0.0 }
 0x4dc   : > { %15578 = vmatmul.mubr.msk.bf16.gmra.mrb[20].mxu0 %vm4481_vm6, %v19339_v1  ;;  %v9594_v1 = vld [vmem:[#allocation3 + $0x62] sm:$0xff] }
 0x4dd   : > { %15581 = vmatprep.mubr.msk.bf16.mxu0 %vm4481_vm6, %v19348_v43  ;;  %v9595_v43 = vld [vmem:[#allocation3 + $0x6a] sm:$0xff] }
 0x4de   : > { %v9624_v4 = vpack.c.bf16 %v9595_v43, %v9594_v1 }
 0x4e4   : > { %15582 = vmatmul.mubr.msk.bf16.gmra.mrb[24].mxu0 %vm4481_vm6, %v19350_v37  ;;  %v16883_v37 = vld [vmem:[%s20388_s6 + $0x18] sm:$0xff]  }
 0x4e5   : > { %15585 = vmatprep.mubr.msk.bf16.mxu0 %vm4481_vm6, %v19361_v49  ;;  %v16884_v49 = vld [vmem:[%s20388_s6 + $0x20] sm:$0xff]   ;;  %15625 = vmatprep.subr.bf16.mxu1 %v16883_v37 }
 0x4e6   : > { %15626 = vmatpush3.bf16.msra.mxu1 %v16883_v37 }
 0x4e7   : > { %15627 = vmatprep.subr.bf16.mxu1 %v16884_v49 }
 0x4ea   : > { %15628 = vmatpush3.bf16.msra.mxu1 %v16884_v49 }
 0x4eb   : > { %15629 = vmatprep.subr.bf16.mxu1 %v16885_v41 }
 0x4ec   : > { %15586 = vmatmul.mubr.msk.bf16.gmra.mrb[28].mxu0 %vm4481_vm6, %v9331_v42  ;;  %v20657_v42 = vld [vmem:[#allocation107_spill] sm:$0xff] }
 0x4ed   : > { %15593 = vmatprep.mubr.msk.bf16.mxu0 %vm4481_vm6, %v9622_v54 }
 0x4ee   : > { %15630 = vmatpush3.bf16.msra.mxu1 %v16885_v41 }
 0x4f4   : > { %15594 = vmatmul.mubr.msk.bf16.vlgmr.msra.gmra.mrb[0].mxu0 %vm4481_vm6, %v9623_v56  ;;  %v20659_v56 = vld [vmem:[#allocation11_spill] sm:$0xff] }
 0x4f5   : > { %15597 = vmatprep.mubr.msk.bf16.mxu0 %vm4481_vm6, %v9624_v4  ;;  %v1130_v4 = vmax.f32 %v20659_v56, 0.0 }
 0x4fc   : > { %15598 = vmatmul.mubr.msk.bf16.gmra.mrb[4].mxu0 %vm4481_vm6, %v9625_v45 }
 0x4fd   : > { %15601 = vmatprep.mubr.msk.bf16.mxu0 %vm4481_vm6, %v9626_v22 }
 0x504   : > { %15602 = vmatmul.mubr.msk.bf16.gmra.mrb[8].mxu0 %vm4481_vm6, %v9627_v19  ;;  %v20663_v19 = vld [vmem:[#allocation110_spill] sm:$0xff] }
 0x505   : > { %15605 = vmatprep.mubr.msk.bf16.mxu0 %vm4481_vm6, %v9628_v61 }
 0x50c   : > { %15606 = vmatmul.mubr.msk.bf16.gmra.mrb[12].mxu0 %vm4481_vm6, %v9629_v25 }
 0x50d   : > { %15609 = vmatprep.mubr.msk.bf16.mxu0 %vm4481_vm6, %v9630_v39 }
 0x514   : > { %15610 = vmatmul.mubr.msk.bf16.gmra.mrb[16].mxu0 %vm4481_vm6, %v9631_v38 }
 0x515   : > { %15613 = vmatprep.mubr.msk.bf16.mxu0 %vm4481_vm6, %v9632_v60  ;;  %v20667_v60 = vld [vmem:[#allocation14_spill] sm:$0xff] }
 0x516   : > { %v1134_v24 = vmax.f32 %v20667_v60, 0.0 }
 0x51c   : > { %15614 = vmatmul.mubr.msk.bf16.gmra.mrb[20].mxu0 %vm4481_vm6, %v9633_v17 }
 0x51d   : > { %15617 = vmatprep.mubr.msk.bf16.mxu0 %vm4481_vm6, %v9634_v5  ;;  %v20668_v5 = vld [vmem:[#allocation112_spill] sm:$0xff] }
 0x524   : > { %15618 = vmatmul.mubr.msk.bf16.gmra.mrb[24].mxu0 %vm4481_vm6, %v9635_v10  ;;  %v20669_v10 = vld [vmem:[#allocation113_spill] sm:$0xff] }
 0x525   : > { %15621 = vmatprep.mubr.msk.bf16.mxu0 %vm4481_vm6, %v19431_v46  ;;  %v1129_v46 = vmax.f32 %v20656_v14, 0.0 }
 0x52c   : > { %15622 = vmatmul.mubr.msk.bf16.gmra.mrb[28].mxu0 %vm4481_vm6, %v9637_v23  ;;  %v16974_v23 = vmov 0.0  }
 0x52d   : > { %9935 = vst.msk [vmem:[#allocation4 + $0x30] sm:$0xff] %vm9928_vm7, %v16974_v23  ;;  %9936 = vst.msk [vmem:[#allocation4 + $0x38] sm:$0xff] %vm9928_vm7, %v16974_v23 }
 0x52e   : > { %9929 = vst.msk [vmem:[#allocation4] sm:$0xff] %vm9928_vm7, %v16974_v23  ;;  %9930 = vst.msk [vmem:[#allocation4 + $0x8] sm:$0xff] %vm9928_vm7, %v16974_v23 }
 0x52f   : > { %9931 = vst.msk [vmem:[#allocation4 + $0x10] sm:$0xff] %vm9928_vm7, %v16974_v23  ;;  %9932 = vst.msk [vmem:[#allocation4 + $0x18] sm:$0xff] %vm9928_vm7, %v16974_v23 }
 0x530   : > { %9933 = vst.msk [vmem:[#allocation4 + $0x20] sm:$0xff] %vm9928_vm7, %v16974_v23  ;;  %9934 = vst.msk [vmem:[#allocation4 + $0x28] sm:$0xff] %vm9928_vm7, %v16974_v23 }
 0x531   : > { %9937 = vst.msk [vmem:[#allocation4 + $0x40] sm:$0xff] %vm9928_vm7, %v16974_v23  ;;  %9938 = vst.msk [vmem:[#allocation4 + $0x48] sm:$0xff] %vm9928_vm7, %v16974_v23 }
 0x532   : > { %9939 = vst.msk [vmem:[#allocation4 + $0x50] sm:$0xff] %vm9928_vm7, %v16974_v23  ;;  %9940 = vst.msk [vmem:[#allocation4 + $0x58] sm:$0xff] %vm9928_vm7, %v16974_v23 }
 0x533   : > { %9941 = vst.msk [vmem:[#allocation4 + $0x60] sm:$0xff] %vm9928_vm7, %v16974_v23  ;;  %9942 = vst.msk [vmem:[#allocation4 + $0x68] sm:$0xff] %vm9928_vm7, %v16974_v23 }
 0x534   : > { %9943 = vst.msk [vmem:[#allocation4 + $0x70] sm:$0xff] %vm9928_vm7, %v16974_v23  ;;  %9944 = vst.msk [vmem:[#allocation4 + $0x78] sm:$0xff] %vm9928_vm7, %v16974_v23 }
 0x535   : > { %9945 = vst.msk [vmem:[#allocation4 + $0x80] sm:$0xff] %vm9928_vm7, %v16974_v23  ;;  %9946 = vst.msk [vmem:[#allocation4 + $0x88] sm:$0xff] %vm9928_vm7, %v16974_v23 }
 0x536   : > { %9947 = vst.msk [vmem:[#allocation4 + $0x90] sm:$0xff] %vm9928_vm7, %v16974_v23  ;;  %9948 = vst.msk [vmem:[#allocation4 + $0x98] sm:$0xff] %vm9928_vm7, %v16974_v23 }
 0x537   : > { %v15271_v34 = vpop.f32.mrb[16].mxu1  ;;  %9949 = vst.msk [vmem:[#allocation4 + $0xa0] sm:$0xff] %vm9928_vm7, %v16974_v23  ;;  %9950 = vst.msk [vmem:[#allocation4 + $0xa8] sm:$0xff] %vm9928_vm7, %v16974_v23 }
 0x538   : > { %v15969_v15 = vadd.f32 %v15271_v34, %v20652_v51  ;;  %v7014_v35 = vpop.f32.mrb[17].mxu1  ;;  %9951 = vst.msk [vmem:[#allocation4 + $0xb0] sm:$0xff] %vm9928_vm7, %v16974_v23  ;;  %9952 = vst.msk [vmem:[#allocation4 + $0xb8] sm:$0xff] %vm9928_vm7, %v16974_v23  ;;  %v20670_v34 = vld [vmem:[#allocation13_spill] sm:$0xff] }
 0x539   : > { %v15970_v48 = vadd.f32 %v7014_v35, %v20653_v36  ;;  %v15272_v9 = vpop.f32.mrb[18].mxu1  ;;  %9953 = vst.msk [vmem:[#allocation4 + $0xc0] sm:$0xff] %vm9928_vm7, %v16974_v23  ;;  %9954 = vst.msk [vmem:[#allocation4 + $0xc8] sm:$0xff] %vm9928_vm7, %v16974_v23  ;;  %v1139_v51 = vmax.f32 %v20670_v34, 0.0  ;;  %v20671_v35 = vld [vmem:[#allocation114_spill] sm:$0xff] }
 0x53a   : > { %v7175_v2 = vmax.f32 %v15969_v15, 0.0  ;;  %v15971_v32 = vadd.f32 %v15272_v9, %v20655_v18  ;;  %v7017_v12 = vpop.f32.mrb[19].mxu1  ;;  %9955 = vst.msk [vmem:[#allocation4 + $0xd0] sm:$0xff] %vm9928_vm7, %v16974_v23  ;;  %9956 = vst.msk [vmem:[#allocation4 + $0xd8] sm:$0xff] %vm9928_vm7, %v16974_v23  ;;  %v20672_v9 = vld [vmem:[#allocation15_spill] sm:$0xff] }
 0x53b   : > { %v7173_v33 = vmax.f32 %v15970_v48, 0.0  ;;  %v15972_v63 = vadd.f32 %v7017_v12, %v20657_v42  ;;  %9957 = vst.msk [vmem:[#allocation4 + $0xe0] sm:$0xff] %vm9928_vm7, %v16974_v23  ;;  %9958 = vst.msk [vmem:[#allocation4 + $0xe8] sm:$0xff] %vm9928_vm7, %v16974_v23  ;;  %v1137_v3 = vmax.f32 %v20672_v9, 0.0  ;;  %v20674_v12 = vld [vmem:[#allocation17_spill] sm:$0xff]  ;;  %v20675_v42 = vld [vmem:[#allocation16_spill] sm:$0xff] }
 0x53c   : > { %v19551_v54 = vadd.f32 %v7175_v2, %v1131_v30  ;;  %v7176_v1 = vmax.f32 %v15971_v32, 0.0  ;;  %9959 = vst.msk [vmem:[#allocation4 + $0xf0] sm:$0xff] %vm9928_vm7, %v16974_v23  ;;  %9960 = vst.msk [vmem:[#allocation4 + $0xf8] sm:$0xff] %vm9928_vm7, %v16974_v23  ;;  %v20673_v2 = vld [vmem:[#allocation115_spill] sm:$0xff]  ;;  %v1140_v14 = vmax.f32 %v20674_v12, 0.0 }
 0x53d   : > { %v19554_v43 = vadd.f32 %v7173_v33, %v1129_v46  ;;  %v7174_v37 = vmax.f32 %v15972_v63, 0.0  ;;  %9961 = vst.msk [vmem:[#allocation4 + $0x100] sm:$0xff] %vm9928_vm7, %v16974_v23  ;;  %9962 = vst.msk [vmem:[#allocation4 + $0x108] sm:$0xff] %vm9928_vm7, %v16974_v23  ;;  %v1138_v63 = vmax.f32 %v20675_v42, 0.0  ;;  %v20692_v9 = vld [vmem:[#allocation23_spill] sm:$0xff] }
 0x53e   : > { %v19557_v49 = vadd.f32 %v7176_v1, %v1132_v40  ;;  %9963 = vst.msk [vmem:[#allocation4 + $0x110] sm:$0xff] %vm9928_vm7, %v16974_v23  ;;  %9964 = vst.msk [vmem:[#allocation4 + $0x118] sm:$0xff] %vm9928_vm7, %v16974_v23 }
 0x53f   : > { %v19559_v7 = vadd.f32 %v7174_v37, %v1130_v4  ;;  %v15275_v0 = vpop.f32.mrb[20].mxu1  ;;  %9965 = vst.msk [vmem:[#allocation4 + $0x120] sm:$0xff] %vm9928_vm7, %v16974_v23  ;;  %9966 = vst.msk [vmem:[#allocation4 + $0x128] sm:$0xff] %vm9928_vm7, %v16974_v23  ;;  %v20677_v4 = vld [vmem:[#allocation116_spill] sm:$0xff] }
 0x540   : > { %v15973_v41 = vadd.f32 %v15275_v0, %v20660_v58  ;;  %v7030_v45 = vpop.f32.mrb[21].mxu1  ;;  %9967 = vst.msk [vmem:[#allocation4 + $0x130] sm:$0xff] %vm9928_vm7, %v16974_v23  ;;  %9968 = vst.msk [vmem:[#allocation4 + $0x138] sm:$0xff] %vm9928_vm7, %v16974_v23  ;;  %v20678_v58 = vld [vmem:[#allocation117_spill] sm:$0xff] }
 0x541   : > { %v15974_v22 = vadd.f32 %v7030_v45, %v20661_v47  ;;  %v15276_v28 = vpop.f32.mrb[22].mxu1  ;;  %9969 = vst.msk [vmem:[#allocation4 + $0x140] sm:$0xff] %vm9928_vm7, %v16974_v23  ;;  %9970 = vst.msk [vmem:[#allocation4 + $0x148] sm:$0xff] %vm9928_vm7, %v16974_v23  ;;  %v20679_v47 = vld [vmem:[#allocation19_spill] sm:$0xff] }
 0x542   : > { %v7179_v55 = vmax.f32 %v15973_v41, 0.0  ;;  %v15975_v61 = vadd.f32 %v15276_v28, %v20663_v19  ;;  %v7033_v21 = vpop.f32.mrb[23].mxu1  ;;  %9971 = vst.msk [vmem:[#allocation4 + $0x150] sm:$0xff] %vm9928_vm7, %v16974_v23  ;;  %9972 = vst.msk [vmem:[#allocation4 + $0x158] sm:$0xff] %vm9928_vm7, %v16974_v23  ;;  %v20681_v19 = vld [vmem:[#allocation18_spill] sm:$0xff] }
 0x543   : > { %v7177_v25 = vmax.f32 %v15974_v22, 0.0  ;;  %v15976_v39 = vadd.f32 %v7033_v21, %v20665_v11  ;;  %9973 = vst.msk [vmem:[#allocation4 + $0x160] sm:$0xff] %vm9928_vm7, %v16974_v23  ;;  %9974 = vst.msk [vmem:[#allocation4 + $0x168] sm:$0xff] %vm9928_vm7, %v16974_v23  ;;  %v1143_v22 = vmax.f32 %v20679_v47, 0.0  ;;  %v20684_v11 = vld [vmem:[#allocation21_spill] sm:$0xff] }
 0x544   : > { %v19567_v13 = vadd.f32 %v7179_v55, %v1135_v26  ;;  %v7180_v31 = vmax.f32 %v15975_v61, 0.0  ;;  %9975 = vst.msk [vmem:[#allocation4 + $0x170] sm:$0xff] %vm9928_vm7, %v16974_v23  ;;  %9976 = vst.msk [vmem:[#allocation4 + $0x178] sm:$0xff] %vm9928_vm7, %v16974_v23  ;;  %v1141_v61 = vmax.f32 %v20681_v19, 0.0 }
 0x545   : > { %v19570_v38 = vadd.f32 %v7177_v25, %v1133_v59  ;;  %v7178_v50 = vmax.f32 %v15976_v39, 0.0  ;;  %9977 = vst.msk [vmem:[#allocation4 + $0x180] sm:$0xff] %vm9928_vm7, %v16974_v23  ;;  %9978 = vst.msk [vmem:[#allocation4 + $0x188] sm:$0xff] %vm9928_vm7, %v16974_v23  ;;  %v1144_v39 = vmax.f32 %v20684_v11, 0.0 }
 0x546   : > { %v19573_v16 = vadd.f32 %v7180_v31, %v1136_v20  ;;  %9979 = vst.msk [vmem:[#allocation4 + $0x190] sm:$0xff] %vm9928_vm7, %v16974_v23  ;;  %9980 = vst.msk [vmem:[#allocation4 + $0x198] sm:$0xff] %vm9928_vm7, %v16974_v23  ;;  %v20686_v31 = vld [vmem:[#allocation22_spill] sm:$0xff] }
 0x547   : > { %v19575_v17 = vadd.f32 %v7178_v50, %v1134_v24  ;;  %v15279_v8 = vpop.f32.mrb[24].mxu1  ;;  %9981 = vst.msk [vmem:[#allocation4 + $0x1a0] sm:$0xff] %vm9928_vm7, %v16974_v23  ;;  %9982 = vst.msk [vmem:[#allocation4 + $0x1a8] sm:$0xff] %vm9928_vm7, %v16974_v23  ;;  %v1142_v60 = vmax.f32 %v20686_v31, 0.0  ;;  %v10088_v50 = vld [vmem:[#allocation4 + $0x1] sm:$0xff]  ;;  %v20705_v31 = vld [vmem:[#allocation31_spill] sm:$0xff] }
 0x548   : > { %v19578_v6 = vadd.f32 %v15279_v8, %v20668_v5  ;;  %v7046_v62 = vpop.f32.mrb[25].mxu1  ;;  %v10089_v8 = vld [vmem:[#allocation4 + $0x9] sm:$0xff] }
 0x549   : > { %v19581_v53 = vadd.f32 %v7046_v62, %v20669_v10  ;;  %v15280_v27 = vpop.f32.mrb[26].mxu1 }
 0x54a   : > { %v7183_v15 = vmax.f32 %v19578_v6, 0.0  ;;  %v15979_v36 = vadd.f32 %v15280_v27, %v20671_v35  ;;  %v7049_v48 = vpop.f32.mrb[27].mxu1  ;;  %v10120_v6 = vpack.c.bf16 %v10089_v8, %v10088_v50  ;;  %v20706_v8 = vld [vmem:[#allocation32_spill] sm:$0xff] }
 0x54b   : > { %v7181_v30 = vmax.f32 %v19581_v53, 0.0  ;;  %v15980_v18 = vadd.f32 %v7049_v48, %v20673_v2  ;;  %v20689_v53 = vld [vmem:[#allocation20_spill] sm:$0xff] }
 0x54c   : > { %v19643_v32 = vadd.f32 %v7183_v15, %v1139_v51  ;;  %v7184_v46 = vmax.f32 %v15979_v36, 0.0  ;;  %v1147_v27 = vmax.f32 %v20689_v53, 0.0  ;;  %15631 = vmatprep.mubr.msk.bf16.mxu1 %vm9928_vm7, %v10120_v6  ;;  %v20690_v51 = vld [vmem:[#allocation24_spill] sm:$0xff]  ;;  %v1153_v6 = vmax.f32 %v20706_v8, 0.0 }
 0x54d   : > { %v19646_v33 = vadd.f32 %v7181_v30, %v1137_v3  ;;  %v7182_v57 = vmax.f32 %v15980_v18, 0.0  ;;  %v1145_v15 = vmax.f32 %v20690_v51, 0.0  ;;  %v1148_v3 = vmax.f32 %v20692_v9, 0.0  ;;  %v19678_v18 = vld [vmem:[%s20388_s6] sm:$0xff]  }
 0x54e   : > { %v19649_v40 = vadd.f32 %v7184_v46, %v1140_v14  ;;  %v20694_v14 = vld [vmem:[#allocation26_spill] sm:$0xff]  ;;  %15663 = vmatprep.subr.bf16.mxu1 %v19678_v18 }
 0x54f   : > { %v19651_v1 = vadd.f32 %v7182_v57, %v1138_v63  ;;  %v15283_v56 = vpop.f32.mrb[28].mxu1  ;;  %v1146_v46 = vmax.f32 %v20694_v14, 0.0 }
 0x550   : > { %v15981_v37 = vadd.f32 %v15283_v56, %v20677_v4  ;;  %v7062_v0 = vpop.f32.mrb[29].mxu1  ;;  %v20697_v4 = vld [vmem:[#allocation27_spill] sm:$0xff] }
 0x551   : > { %20676 = vst [vmem:[#allocation120_spill] sm:$0xff] %v19651_v1  ;;  %v15982_v41 = vadd.f32 %v7062_v0, %v20678_v58  ;;  %v15284_v45 = vpop.f32.mrb[30].mxu1 }
 0x552   : > { %v7187_v28 = vmax.f32 %v15981_v37, 0.0  ;;  %v15983_v26 = vadd.f32 %v15284_v45, %v20680_v29  ;;  %v7065_v55 = vpop.f32.mrb[31].mxu1  ;;  %v1151_v37 = vmax.f32 %v20697_v4, 0.0  ;;  %v20700_v29 = vld [vmem:[#allocation29_spill] sm:$0xff] }
 0x553   : > { %v7185_v21 = vmax.f32 %v15982_v41, 0.0  ;;  %v15984_v59 = vadd.f32 %v7065_v55, %v20682_v44  ;;  %v20698_v41 = vld [vmem:[#allocation25_spill] sm:$0xff] }
 0x554   : > { %v19659_v25 = vadd.f32 %v7187_v28, %v1143_v22  ;;  %v7188_v52 = vmax.f32 %v15983_v26, 0.0  ;;  %v1149_v45 = vmax.f32 %v20698_v41, 0.0  ;;  %v1152_v26 = vmax.f32 %v20700_v29, 0.0 }
 0x555   : > { %v19662_v20 = vadd.f32 %v7185_v21, %v1141_v61  ;;  %v7186_v24 = vmax.f32 %v15984_v59, 0.0  ;;  %v20702_v21 = vld [vmem:[#allocation28_spill] sm:$0xff] }
 0x556   : > { %20683 = vst [vmem:[#allocation121_spill] sm:$0xff] %v19659_v25  ;;  %v19665_v5 = vadd.f32 %v7188_v52, %v1144_v39  ;;  %v1150_v44 = vmax.f32 %v20702_v21, 0.0 }
 0x557   : > { %20685 = vst [vmem:[#allocation104_spill] sm:$0xff] %v19662_v20  ;;  %v19667_v62 = vadd.f32 %v7186_v24, %v1142_v60  ;;  %v15287_v10 = vpop.f32.mrb[0].mxu1  ;;  %v1155_v60 = vmax.f32 %v20705_v31, 0.0 }
 0x558   : > { %20687 = vst [vmem:[#allocation105_spill] sm:$0xff] %v19665_v5  ;;  %v7191_v23 = vmax.f32 %v15287_v10, 0.0  ;;  %v7078_v34 = vpop.f32.mrb[1].mxu1 }
 0x559   : > { %20688 = vst [vmem:[#allocation48_spill] sm:$0xff] %v19667_v62  ;;  %v7189_v35 = vmax.f32 %v7078_v34, 0.0  ;;  %v15288_v36 = vpop.f32.mrb[2].mxu1 }
 0x55a   : > { %v19672_v48 = vadd.f32 %v7191_v23, %v1147_v27  ;;  %v7192_v30 = vmax.f32 %v15288_v36, 0.0  ;;  %v7081_v2 = vpop.f32.mrb[3].mxu1  ;;  %v20708_v23 = vld [vmem:[#allocation30_spill] sm:$0xff] }
 0x55b   : > { %v19680_v12 = vadd.f32 %v7189_v35, %v1145_v15  ;;  %v7190_v42 = vmax.f32 %v7081_v2, 0.0  ;;  %v1156_v34 = vmax.f32 %v20708_v23, 0.0  ;;  %v20710_v36 = vld [vmem:[#allocation34_spill] sm:$0xff] }
 0x55c   : > { %20691 = vst [vmem:[#allocation106_spill] sm:$0xff] %v19672_v48  ;;  %v19683_v63 = vadd.f32 %v7192_v30, %v1148_v3  ;;  %v1154_v9 = vmax.f32 %v20710_v36, 0.0 }
 0x55d   : > { %20693 = vst [vmem:[#allocation9_spill] sm:$0xff] %v19680_v12  ;;  %v19686_v57 = vadd.f32 %v7190_v42, %v1146_v46  ;;  %v20713_v46 = vld [vmem:[#allocation33_spill] sm:$0xff] }
 0x55e   : > { %20695 = vst [vmem:[#allocation107_spill] sm:$0xff] %v19683_v63  ;;  %v1159_v42 = vmax.f32 %v20713_v46, 0.0 }
 0x55f   : > { %20696 = vst [vmem:[#allocation8_spill] sm:$0xff] %v19686_v57  ;;  %v15291_v56 = vpop.f32.mrb[4].mxu1 }
 0x560   : > { %v7195_v0 = vmax.f32 %v15291_v56, 0.0  ;;  %v7094_v58 = vpop.f32.mrb[5].mxu1 }
 0x561   : > { %v7193_v47 = vmax.f32 %v7094_v58, 0.0  ;;  %v15292_v22 = vpop.f32.mrb[6].mxu1 }
 0x562   : > { %v19690_v28 = vadd.f32 %v7195_v0, %v1151_v37  ;;  %v7196_v55 = vmax.f32 %v15292_v22, 0.0  ;;  %v7097_v19 = vpop.f32.mrb[7].mxu1  ;;  %v20714_v37 = vld [vmem:[#allocation35_spill] sm:$0xff] }
 0x563   : > { %v19693_v61 = vadd.f32 %v7193_v47, %v1149_v45  ;;  %v7194_v59 = vmax.f32 %v7097_v19, 0.0  ;;  %v1157_v0 = vmax.f32 %v20714_v37, 0.0  ;;  %v20716_v47 = vld [vmem:[#allocation37_spill] sm:$0xff]  ;;  %v20718_v19 = vld [vmem:[#allocation36_spill] sm:$0xff] }
 0x564   : > { %20699 = vst [vmem:[#allocation11_spill] sm:$0xff] %v19690_v28  ;;  %v19696_v11 = vadd.f32 %v7196_v55, %v1152_v26  ;;  %v1160_v22 = vmax.f32 %v20716_v47, 0.0  ;;  %v1158_v21 = vmax.f32 %v20718_v19, 0.0  ;;  %v16888_v19 = vld [vmem:[%s20388_s6 + $0x10] sm:$0xff]  }
 0x565   : > { %20701 = vst [vmem:[#allocation108_spill] sm:$0xff] %v19693_v61  ;;  %v19698_v39 = vadd.f32 %v7194_v59, %v1150_v44 }
 0x566   : > { %20703 = vst [vmem:[#allocation109_spill] sm:$0xff] %v19696_v11  ;;  %v16893_v11 = vld [vmem:[%s20388_s6 + $0x50] sm:$0xff]  }
 0x567   : > { %20704 = vst [vmem:[#allocation54_spill] sm:$0xff] %v19698_v39  ;;  %v15295_v52 = vpop.f32.mrb[8].mxu1 }
 0x568   : > { %v7199_v24 = vmax.f32 %v15295_v52, 0.0  ;;  %v7110_v50 = vpop.f32.mrb[9].mxu1 }
 0x569   : > { %v7197_v10 = vmax.f32 %v7110_v50, 0.0  ;;  %v15296_v53 = vpop.f32.mrb[10].mxu1 }
 0x56a   : > { %v19702_v27 = vadd.f32 %v7199_v24, %v1155_v60  ;;  %v7200_v51 = vmax.f32 %v15296_v53, 0.0  ;;  %v7113_v15 = vpop.f32.mrb[11].mxu1 }
 0x56b   : > { %v19705_v35 = vadd.f32 %v7197_v10, %v1153_v6  ;;  %v7198_v3 = vmax.f32 %v7113_v15, 0.0 }
 0x56c   : > { %20707 = vst [vmem:[#allocation110_spill] sm:$0xff] %v19702_v27  ;;  %v19708_v30 = vadd.f32 %v7200_v51, %v1156_v34 }
 0x56d   : > { %20709 = vst [vmem:[#allocation12_spill] sm:$0xff] %v19705_v35  ;;  %v19710_v2 = vadd.f32 %v7198_v3, %v1154_v9 }
 0x56e   : > { %20711 = vst [vmem:[#allocation111_spill] sm:$0xff] %v19708_v30 }
 0x56f   : > { %20712 = vst [vmem:[#allocation10_spill] sm:$0xff] %v19710_v2  ;;  %v15299_v14 = vpop.f32.mrb[12].mxu1 }
 0x570   : > { %v7203_v56 = vmax.f32 %v15299_v14, 0.0  ;;  %v7126_v4 = vpop.f32.mrb[13].mxu1 }
 0x571   : > { %v7201_v58 = vmax.f32 %v7126_v4, 0.0  ;;  %v15300_v41 = vpop.f32.mrb[14].mxu1 }
 0x572   : > { %v19714_v45 = vadd.f32 %v7203_v56, %v1159_v42  ;;  %v7204_v29 = vmax.f32 %v15300_v41, 0.0  ;;  %v7129_v26 = vpop.f32.mrb[15].mxu1 }
 0x573   : > { %v19717_v55 = vadd.f32 %v7201_v58, %v1157_v0  ;;  %v7202_v44 = vmax.f32 %v7129_v26, 0.0  ;;  %v16887_v0 = vld [vmem:[%s20388_s6 + $0x8] sm:$0xff]  }
 0x574   : > { %20715 = vst [vmem:[#allocation14_spill] sm:$0xff] %v19714_v45  ;;  %v19720_v59 = vadd.f32 %v7204_v29, %v1160_v22 }
 0x575   : > { %20717 = vst [vmem:[#allocation112_spill] sm:$0xff] %v19717_v55  ;;  %v19722_v52 = vadd.f32 %v7202_v44, %v1158_v21 }
 0x576   : > { %20719 = vst [vmem:[#allocation113_spill] sm:$0xff] %v19720_v59 }
 0x577   : > { %20720 = vst [vmem:[#allocation13_spill] sm:$0xff] %v19722_v52 }
 0x5c7   : > { %v15595_v31 = vpop.f32.mrb[0].mxu0 }
 0x5c8   : > { %v9898_v60 = vmax.f32 %v15595_v31, 0.0  ;;  %v9737_v24 = vpop.f32.mrb[1].mxu0 }
 0x5c9   : > { %v9896_v50 = vmax.f32 %v9737_v24, 0.0  ;;  %v15596_v8 = vpop.f32.mrb[2].mxu0 }
 0x5ca   : > { %10004 = vst.msk [vmem:[#allocation4 + $0x31] sm:$0xff] %vm9928_vm7, %v9898_v60  ;;  %v9899_v6 = vmax.f32 %v15596_v8, 0.0  ;;  %v9740_v10 = vpop.f32.mrb[3].mxu0 }
 0x5cb   : > { %10002 = vst.msk [vmem:[#allocation4 + $0x19] sm:$0xff] %vm9928_vm7, %v9896_v50  ;;  %v9897_v53 = vmax.f32 %v9740_v10, 0.0 }
 0x5cc   : > { %10005 = vst.msk [vmem:[#allocation4 + $0x39] sm:$0xff] %vm9928_vm7, %v9899_v6  ;;  %v19756_v6 = vld [vmem:[%s20388_s6 + $0x30] sm:$0xff]  }
 0x5cd   : > { %10003 = vst.msk [vmem:[#allocation4 + $0x21] sm:$0xff] %vm9928_vm7, %v9897_v53 }
 0x5cf   : > { %v15599_v23 = vpop.f32.mrb[4].mxu0 }
 0x5d0   : > { %v9902_v34 = vmax.f32 %v15599_v23, 0.0  ;;  %v9753_v51 = vpop.f32.mrb[5].mxu0 }
 0x5d1   : > { %v9900_v15 = vmax.f32 %v9753_v51, 0.0  ;;  %v15600_v36 = vpop.f32.mrb[6].mxu0  ;;  %v10092_v37 = vld [vmem:[#allocation4 + $0x31] sm:$0xff] }
 0x5d2   : > { %10008 = vst.msk [vmem:[#allocation4 + $0x61] sm:$0xff] %vm9928_vm7, %v9902_v34  ;;  %v9903_v9 = vmax.f32 %v15600_v36, 0.0  ;;  %v9756_v3 = vpop.f32.mrb[7].mxu0  ;;  %v10090_v42 = vld [vmem:[#allocation4 + $0x19] sm:$0xff] }
 0x5d3   : > { %10006 = vst.msk [vmem:[#allocation4 + $0x49] sm:$0xff] %vm9928_vm7, %v9900_v15  ;;  %v9901_v14 = vmax.f32 %v9756_v3, 0.0  ;;  %v10093_v46 = vld [vmem:[#allocation4 + $0x39] sm:$0xff] }
 0x5d4   : > { %10009 = vst.msk [vmem:[#allocation4 + $0x69] sm:$0xff] %vm9928_vm7, %v9903_v9  ;;  %v10091_v56 = vld [vmem:[#allocation4 + $0x21] sm:$0xff]  ;;  %v19737_v58 = vpack.c.bf16 %v10093_v46, %v10092_v37 }
 0x5d5   : > { %10007 = vst.msk [vmem:[#allocation4 + $0x51] sm:$0xff] %vm9928_vm7, %v9901_v14  ;;  %v19732_v4 = vpack.c.bf16 %v10091_v56, %v10090_v42 }
 0x5d7   : > { %v15603_v41 = vpop.f32.mrb[8].mxu0  ;;  %15632 = vmatmul.mubr.msk.bf16.vlgmr.msra.gmra.mrb[32].mxu1 %vm9928_vm7, %v19732_v4 }
 0x5d8   : > { %v9906_v47 = vmax.f32 %v15603_v41, 0.0  ;;  %v9769_v22 = vpop.f32.mrb[9].mxu0  ;;  %15635 = vmatprep.mubr.msk.bf16.mxu1 %vm9928_vm7, %v19737_v58  ;;  %15664 = vmatpush3.bf16.msra.mxu1 %v19678_v18 }
 0x5d9   : > { %v9904_v29 = vmax.f32 %v9769_v22, 0.0  ;;  %v15604_v26 = vpop.f32.mrb[10].mxu0  ;;  %15665 = vmatprep.subr.bf16.mxu1 %v16887_v0  ;;  %v10096_v8 = vld [vmem:[#allocation4 + $0x61] sm:$0xff] }
 0x5da   : > { %10012 = vst.msk [vmem:[#allocation4 + $0x91] sm:$0xff] %vm9928_vm7, %v9906_v47  ;;  %v9907_v21 = vmax.f32 %v15604_v26, 0.0  ;;  %v9772_v44 = vpop.f32.mrb[11].mxu0  ;;  %v10094_v24 = vld [vmem:[#allocation4 + $0x49] sm:$0xff] }
 0x5db   : > { %10010 = vst.msk [vmem:[#allocation4 + $0x79] sm:$0xff] %vm9928_vm7, %v9904_v29  ;;  %v9905_v31 = vmax.f32 %v9772_v44, 0.0  ;;  %v10097_v60 = vld [vmem:[#allocation4 + $0x69] sm:$0xff] }
 0x5dc   : > { %10013 = vst.msk [vmem:[#allocation4 + $0x99] sm:$0xff] %vm9928_vm7, %v9907_v21  ;;  %v10095_v50 = vld [vmem:[#allocation4 + $0x51] sm:$0xff]  ;;  %15666 = vmatpush3.bf16.msra.mxu1 %v16887_v0  ;;  %v19758_v10 = vpack.c.bf16 %v10097_v60, %v10096_v8 }
 0x5dd   : > { %10011 = vst.msk [vmem:[#allocation4 + $0x81] sm:$0xff] %vm9928_vm7, %v9905_v31  ;;  %v19751_v18 = vpack.c.bf16 %v10095_v50, %v10094_v24  ;;  %15667 = vmatprep.subr.bf16.mxu1 %v16888_v19 }
 0x5df   : > { %v15607_v53 = vpop.f32.mrb[12].mxu0  ;;  %15636 = vmatmul.mubr.msk.bf16.gmra.mrb[36].mxu1 %vm9928_vm7, %v19751_v18 }
 0x5e0   : > { %v9910_v23 = vmax.f32 %v15607_v53, 0.0  ;;  %v9785_v34 = vpop.f32.mrb[13].mxu0  ;;  %15639 = vmatprep.mubr.msk.bf16.mxu1 %vm9928_vm7, %v19758_v10  ;;  %15668 = vmatpush3.bf16.msra.mxu1 %v16888_v19 }
 0x5e1   : > { %v9908_v51 = vmax.f32 %v9785_v34, 0.0  ;;  %v15608_v15 = vpop.f32.mrb[14].mxu0  ;;  %15701 = vmatprep.subr.bf16.mxu1 %v19756_v6  ;;  %v10100_v37 = vld [vmem:[#allocation4 + $0x91] sm:$0xff] }
 0x5e2   : > { %10016 = vst.msk [vmem:[#allocation4 + $0xc1] sm:$0xff] %vm9928_vm7, %v9910_v23  ;;  %v9911_v36 = vmax.f32 %v15608_v15, 0.0  ;;  %v9788_v9 = vpop.f32.mrb[15].mxu0  ;;  %v10098_v46 = vld [vmem:[#allocation4 + $0x79] sm:$0xff] }
 0x5e3   : > { %10014 = vst.msk [vmem:[#allocation4 + $0xa9] sm:$0xff] %vm9928_vm7, %v9908_v51  ;;  %v9909_v3 = vmax.f32 %v9788_v9, 0.0  ;;  %v10101_v14 = vld [vmem:[#allocation4 + $0x99] sm:$0xff] }
 0x5e4   : > { %10017 = vst.msk [vmem:[#allocation4 + $0xc9] sm:$0xff] %vm9928_vm7, %v9911_v36  ;;  %v10099_v42 = vld [vmem:[#allocation4 + $0x81] sm:$0xff]  ;;  %v19771_v0 = vpack.c.bf16 %v10101_v14, %v10100_v37 }
 0x5e5   : > { %10015 = vst.msk [vmem:[#allocation4 + $0xb1] sm:$0xff] %vm9928_vm7, %v9909_v3  ;;  %v19769_v56 = vpack.c.bf16 %v10099_v42, %v10098_v46 }
 0x5e7   : > { %v15611_v41 = vpop.f32.mrb[16].mxu0  ;;  %15640 = vmatmul.mubr.msk.bf16.gmra.mrb[40].mxu1 %vm9928_vm7, %v19769_v56 }
 0x5e8   : > { %v9914_v47 = vmax.f32 %v15611_v41, 0.0  ;;  %v9801_v22 = vpop.f32.mrb[17].mxu0  ;;  %15643 = vmatprep.mubr.msk.bf16.mxu1 %vm9928_vm7, %v19771_v0 }
 0x5e9   : > { %v9912_v29 = vmax.f32 %v9801_v22, 0.0  ;;  %v15612_v26 = vpop.f32.mrb[18].mxu0  ;;  %v10104_v8 = vld [vmem:[#allocation4 + $0xc1] sm:$0xff] }
 0x5ea   : > { %10020 = vst.msk [vmem:[#allocation4 + $0xf1] sm:$0xff] %vm9928_vm7, %v9914_v47  ;;  %v9915_v19 = vmax.f32 %v15612_v26, 0.0  ;;  %v9804_v21 = vpop.f32.mrb[19].mxu0  ;;  %v10102_v60 = vld [vmem:[#allocation4 + $0xa9] sm:$0xff] }
 0x5eb   : > { %10018 = vst.msk [vmem:[#allocation4 + $0xd9] sm:$0xff] %vm9928_vm7, %v9912_v29  ;;  %v9913_v44 = vmax.f32 %v9804_v21, 0.0  ;;  %v10105_v31 = vld [vmem:[#allocation4 + $0xc9] sm:$0xff] }
 0x5ec   : > { %10021 = vst.msk [vmem:[#allocation4 + $0xf9] sm:$0xff] %vm9928_vm7, %v9915_v19  ;;  %v10103_v24 = vld [vmem:[#allocation4 + $0xb1] sm:$0xff]  ;;  %v19783_v53 = vpack.c.bf16 %v10105_v31, %v10104_v8  ;;  %v10613_v57 = vld [vmem:[#allocation4 + $0xc2] sm:$0xff] }
 0x5ed   : > { %10019 = vst.msk [vmem:[#allocation4 + $0xe1] sm:$0xff] %vm9928_vm7, %v9913_v44  ;;  %v19781_v50 = vpack.c.bf16 %v10103_v24, %v10102_v60  ;;  %v10614_v63 = vld [vmem:[#allocation4 + $0xca] sm:$0xff] }
 0x5ee   : > { %v19940_v12 = vpack.c.bf16 %v10614_v63, %v10613_v57 }
 0x5ef   : > { %v15615_v23 = vpop.f32.mrb[20].mxu0  ;;  %15644 = vmatmul.mubr.msk.bf16.gmra.mrb[44].mxu1 %vm9928_vm7, %v19781_v50 }
 0x5f0   : > { %v9918_v34 = vmax.f32 %v15615_v23, 0.0  ;;  %v9817_v51 = vpop.f32.mrb[21].mxu0  ;;  %15647 = vmatprep.mubr.msk.bf16.mxu1 %vm9928_vm7, %v19783_v53 }
 0x5f1   : > { %v9916_v15 = vmax.f32 %v9817_v51, 0.0  ;;  %v15616_v36 = vpop.f32.mrb[22].mxu0  ;;  %v10108_v47 = vld [vmem:[#allocation4 + $0xf1] sm:$0xff] }
 0x5f2   : > { %10024 = vst.msk [vmem:[#allocation4 + $0x121] sm:$0xff] %vm9928_vm7, %v9918_v34  ;;  %v9919_v9 = vmax.f32 %v15616_v36, 0.0  ;;  %v9820_v3 = vpop.f32.mrb[23].mxu0  ;;  %v10106_v42 = vld [vmem:[#allocation4 + $0xd9] sm:$0xff]  ;;  %v10054_v52 = vld [vmem:[#allocation4 + $0xf0] sm:$0xff] }
 0x5f3   : > { %10022 = vst.msk [vmem:[#allocation4 + $0x109] sm:$0xff] %vm9928_vm7, %v9916_v15  ;;  %v9917_v14 = vmax.f32 %v9820_v3, 0.0  ;;  %v10109_v46 = vld [vmem:[#allocation4 + $0xf9] sm:$0xff] }
 0x5f4   : > { %10025 = vst.msk [vmem:[#allocation4 + $0x129] sm:$0xff] %vm9928_vm7, %v9919_v9  ;;  %v10107_v37 = vld [vmem:[#allocation4 + $0xe1] sm:$0xff]  ;;  %v19795_v22 = vpack.c.bf16 %v10109_v46, %v10108_v47 }
 0x5f5   : > { %10023 = vst.msk [vmem:[#allocation4 + $0x111] sm:$0xff] %vm9928_vm7, %v9917_v14  ;;  %v19793_v41 = vpack.c.bf16 %v10107_v37, %v10106_v42 }
 0x5f7   : > { %v15619_v29 = vpop.f32.mrb[24].mxu0  ;;  %15648 = vmatmul.mubr.msk.bf16.gmra.mrb[48].mxu1 %vm9928_vm7, %v19793_v41 }
 0x5f8   : > { %v9922_v26 = vmax.f32 %v15619_v29, 0.0  ;;  %v9833_v19 = vpop.f32.mrb[25].mxu0  ;;  %15651 = vmatprep.mubr.msk.bf16.mxu1 %vm9928_vm7, %v19795_v22 }
 0x5f9   : > { %v9920_v21 = vmax.f32 %v9833_v19, 0.0  ;;  %v15620_v44 = vpop.f32.mrb[26].mxu0  ;;  %v10112_v15 = vld [vmem:[#allocation4 + $0x121] sm:$0xff] }
 0x5fa   : > { %10028 = vst.msk [vmem:[#allocation4 + $0x151] sm:$0xff] %vm9928_vm7, %v9922_v26  ;;  %v9923_v31 = vmax.f32 %v15620_v44, 0.0  ;;  %v9836_v60 = vpop.f32.mrb[27].mxu0  ;;  %v10110_v23 = vld [vmem:[#allocation4 + $0x109] sm:$0xff]  ;;  %v10058_v55 = vld [vmem:[#allocation4 + $0x120] sm:$0xff] }
 0x5fb   : > { %10026 = vst.msk [vmem:[#allocation4 + $0x139] sm:$0xff] %vm9928_vm7, %v9920_v21  ;;  %v9921_v24 = vmax.f32 %v9836_v60, 0.0  ;;  %v10113_v8 = vld [vmem:[#allocation4 + $0x129] sm:$0xff] }
 0x5fc   : > { %10029 = vst.msk [vmem:[#allocation4 + $0x159] sm:$0xff] %vm9928_vm7, %v9923_v31  ;;  %v10111_v34 = vld [vmem:[#allocation4 + $0x111] sm:$0xff]  ;;  %v19807_v36 = vpack.c.bf16 %v10113_v8, %v10112_v15  ;;  %v10035_v8 = vld [vmem:[#allocation4 + $0x8] sm:$0xff] }
 0x5fd   : > { %10027 = vst.msk [vmem:[#allocation4 + $0x141] sm:$0xff] %vm9928_vm7, %v9921_v24  ;;  %v19805_v51 = vpack.c.bf16 %v10111_v34, %v10110_v23  ;;  %v10034_v24 = vld [vmem:[#allocation4] sm:$0xff]  ;;  %v10619_v63 = vld [vmem:[#allocation4 + $0x10a] sm:$0xff]  ;;  %v10620_v57 = vld [vmem:[#allocation4 + $0x112] sm:$0xff] }
 0x5fe   : > { %v10066_v15 = vpack.c.bf16 %v10035_v8, %v10034_v24  ;;  %v10042_v8 = vld [vmem:[#allocation4 + $0x60] sm:$0xff]  ;;  %v19954_v5 = vpack.c.bf16 %v10620_v57, %v10619_v63 }
 0x5ff   : > { %v15623_v9 = vpop.f32.mrb[28].mxu0  ;;  %15652 = vmatmul.mubr.msk.bf16.gmra.mrb[52].mxu1 %vm9928_vm7, %v19805_v51 }
 0x600   : > { %v9926_v3 = vmax.f32 %v15623_v9, 0.0  ;;  %v9849_v14 = vpop.f32.mrb[29].mxu0  ;;  %15655 = vmatprep.mubr.msk.bf16.mxu1 %vm9928_vm7, %v19807_v36 }
 0x601   : > { %v9924_v46 = vmax.f32 %v9849_v14, 0.0  ;;  %v15624_v42 = vpop.f32.mrb[30].mxu0  ;;  %v10116_v31 = vld [vmem:[#allocation4 + $0x151] sm:$0xff] }
 0x602   : > { %10032 = vst.msk [vmem:[#allocation4 + $0x181] sm:$0xff] %vm9928_vm7, %v9926_v3  ;;  %v9927_v37 = vmax.f32 %v15624_v42, 0.0  ;;  %v9852_v47 = vpop.f32.mrb[31].mxu0  ;;  %v10114_v19 = vld [vmem:[#allocation4 + $0x139] sm:$0xff]  ;;  %v10062_v2 = vld [vmem:[#allocation4 + $0x150] sm:$0xff] }
 0x603   : > { %10030 = vst.msk [vmem:[#allocation4 + $0x169] sm:$0xff] %vm9928_vm7, %v9924_v46  ;;  %v9925_v29 = vmax.f32 %v9852_v47, 0.0  ;;  %v10117_v26 = vld [vmem:[#allocation4 + $0x159] sm:$0xff] }
 0x604   : > { %10033 = vst.msk [vmem:[#allocation4 + $0x189] sm:$0xff] %vm9928_vm7, %v9927_v37  ;;  %v10115_v21 = vld [vmem:[#allocation4 + $0x141] sm:$0xff]  ;;  %v19819_v60 = vpack.c.bf16 %v10117_v26, %v10116_v31  ;;  %v10039_v14 = vld [vmem:[#allocation4 + $0x38] sm:$0xff]  ;;  %v10038_v37 = vld [vmem:[#allocation4 + $0x30] sm:$0xff] }
 0x605   : > { %10031 = vst.msk [vmem:[#allocation4 + $0x171] sm:$0xff] %vm9928_vm7, %v9925_v29  ;;  %v19817_v44 = vpack.c.bf16 %v10115_v21, %v10114_v19  ;;  %v10037_v3 = vld [vmem:[#allocation4 + $0x20] sm:$0xff]  ;;  %v10036_v46 = vld [vmem:[#allocation4 + $0x18] sm:$0xff]  ;;  %v19835_v29 = vpack.c.bf16 %v10039_v14, %v10038_v37  ;;  %v10041_v19 = vld [vmem:[#allocation4 + $0x50] sm:$0xff] }
 0x606   : > { %v19830_v42 = vpack.c.bf16 %v10037_v3, %v10036_v46  ;;  %v16890_v47 = vld [vmem:[%s20388_s6 + $0x38] sm:$0xff]   ;;  %v16891_v26 = vld [vmem:[%s20388_s6 + $0x40] sm:$0xff]   ;;  %v10043_v21 = vld [vmem:[#allocation4 + $0x68] sm:$0xff] }
 0x607   : > { %15656 = vmatmul.mubr.msk.bf16.gmra.mrb[56].mxu1 %vm9928_vm7, %v19817_v44  ;;  %v10040_v31 = vld [vmem:[#allocation4 + $0x48] sm:$0xff]  ;;  %v10044_v3 = vld [vmem:[#allocation4 + $0x78] sm:$0xff]  ;;  %v10046_v46 = vld [vmem:[#allocation4 + $0x90] sm:$0xff] }
 0x608   : > { %15659 = vmatprep.mubr.msk.bf16.mxu1 %vm9928_vm7, %v19819_v60  ;;  %v19845_v24 = vpack.c.bf16 %v10041_v19, %v10040_v31  ;;  %v10051_v19 = vld [vmem:[#allocation4 + $0xc8] sm:$0xff]  ;;  %v10050_v31 = vld [vmem:[#allocation4 + $0xc0] sm:$0xff] }
 0x60a   : > { %v10118_v23 = vld [vmem:[#allocation4 + $0x169] sm:$0xff] }
 0x60c   : > { %v10119_v34 = vld [vmem:[#allocation4 + $0x171] sm:$0xff] }
 0x60d   : > { %v19825_v9 = vpack.c.bf16 %v10119_v34, %v10118_v23  ;;  %v19850_v23 = vld [vmem:[%s20388_s6 + $0x48] sm:$0xff]   ;;  %v19852_v34 = vpack.c.bf16 %v10043_v21, %v10042_v8  ;;  %v19869_v8 = vpack.c.bf16 %v10051_v19, %v10050_v31  ;;  %v10628_v57 = vld [vmem:[#allocation4 + $0x172] sm:$0xff] }
 0x60e   : > { %v10048_v21 = vld [vmem:[#allocation4 + $0xa8] sm:$0xff] }
 0x60f   : > { %15660 = vmatmul.mubr.msk.bf16.gmra.mrb[60].mxu1 %vm9928_vm7, %v19825_v9  ;;  %v10059_v19 = vld [vmem:[#allocation4 + $0x128] sm:$0xff] }
 0x610   : > { %15669 = vmatprep.mubr.msk.bf16.mxu1 %vm9928_vm7, %v10066_v15  ;;  %v10047_v15 = vld [vmem:[#allocation4 + $0x98] sm:$0xff]  ;;  %v19885_v45 = vpack.c.bf16 %v10059_v19, %v10058_v55  ;;  %v10597_v55 = vld [vmem:[#allocation4 + $0x2] sm:$0xff]  ;;  %v10065_v19 = vld [vmem:[#allocation4 + $0x170] sm:$0xff] }
 0x611   : > { %v19861_v37 = vpack.c.bf16 %v10047_v15, %v10046_v46  ;;  %v10055_v15 = vld [vmem:[#allocation4 + $0xf8] sm:$0xff]  ;;  %v10627_v63 = vld [vmem:[#allocation4 + $0x16a] sm:$0xff] }
 0x612   : > { %v19877_v59 = vpack.c.bf16 %v10055_v15, %v10054_v52  ;;  %v10061_v52 = vld [vmem:[#allocation4 + $0x140] sm:$0xff]  ;;  %v10060_v15 = vld [vmem:[#allocation4 + $0x138] sm:$0xff] }
 0x617   : > { %15670 = vmatmul.mubr.msk.bf16.vlgmr.msra.gmra.mrb[32].mxu1 %vm9928_vm7, %v19830_v42 }
 0x618   : > { %15673 = vmatprep.mubr.msk.bf16.mxu1 %vm9928_vm7, %v19835_v29  ;;  %15702 = vmatpush3.bf16.msra.mxu1 %v19756_v6  ;;  %v10045_v6 = vld [vmem:[#allocation4 + $0x80] sm:$0xff] }
 0x619   : > { %15703 = vmatprep.subr.bf16.mxu1 %v16890_v47  ;;  %v19859_v14 = vpack.c.bf16 %v10045_v6, %v10044_v3  ;;  %v10053_v6 = vld [vmem:[#allocation4 + $0xe0] sm:$0xff]  ;;  %v10052_v3 = vld [vmem:[#allocation4 + $0xd8] sm:$0xff] }
 0x61a   : > { %v19875_v46 = vpack.c.bf16 %v10053_v6, %v10052_v3  ;;  %v10063_v6 = vld [vmem:[#allocation4 + $0x158] sm:$0xff]  ;;  %v19891_v3 = vpack.c.bf16 %v10061_v52, %v10060_v15  ;;  %v10600_v52 = vld [vmem:[#allocation4 + $0x22] sm:$0xff] }
 0x61b   : > { %v19893_v30 = vpack.c.bf16 %v10063_v6, %v10062_v2  ;;  %v10599_v2 = vld [vmem:[#allocation4 + $0x1a] sm:$0xff]  ;;  %v10601_v6 = vld [vmem:[#allocation4 + $0x32] sm:$0xff] }
 0x61c   : > { %15704 = vmatpush3.bf16.msra.mxu1 %v16890_v47  ;;  %v10049_v47 = vld [vmem:[#allocation4 + $0xb0] sm:$0xff]  ;;  %v10602_v15 = vld [vmem:[#allocation4 + $0x3a] sm:$0xff]  ;;  %v19904_v39 = vpack.c.bf16 %v10600_v52, %v10599_v2 }
 0x61d   : > { %15705 = vmatprep.subr.bf16.mxu1 %v16891_v26  ;;  %v19909_v61 = vpack.c.bf16 %v10602_v15, %v10601_v6  ;;  %v16895_v52 = vld [vmem:[%s20388_s6 + $0x60] sm:$0xff]  }
 0x61e   : > { %v10608_v15 = vld [vmem:[#allocation4 + $0x82] sm:$0xff] }
 0x61f   : > { %15674 = vmatmul.mubr.msk.bf16.gmra.mrb[36].mxu1 %vm9928_vm7, %v19845_v24 }
 0x620   : > { %15677 = vmatprep.mubr.msk.bf16.mxu1 %vm9928_vm7, %v19852_v34  ;;  %15706 = vmatpush3.bf16.msra.mxu1 %v16891_v26  ;;  %v19867_v26 = vpack.c.bf16 %v10049_v47, %v10048_v21  ;;  %v10057_v47 = vld [vmem:[#allocation4 + $0x110] sm:$0xff]  ;;  %v10056_v21 = vld [vmem:[#allocation4 + $0x108] sm:$0xff] }
 0x621   : > { %15739 = vmatprep.subr.bf16.mxu1 %v19850_v23  ;;  %v19883_v31 = vpack.c.bf16 %v10057_v47, %v10056_v21  ;;  %v10598_v47 = vld [vmem:[#allocation4 + $0xa] sm:$0xff] }
 0x622   : > { %v10064_v21 = vld [vmem:[#allocation4 + $0x168] sm:$0xff]  ;;  %v10629_v35 = vpack.c.bf16 %v10598_v47, %v10597_v55  ;;  %v10604_v47 = vld [vmem:[#allocation4 + $0x52] sm:$0xff] }
 0x623   : > { %v19899_v27 = vpack.c.bf16 %v10065_v19, %v10064_v21  ;;  %v10603_v55 = vld [vmem:[#allocation4 + $0x4a] sm:$0xff]  ;;  %v10605_v19 = vld [vmem:[#allocation4 + $0x62] sm:$0xff] }
 0x624   : > { %v10606_v21 = vld [vmem:[#allocation4 + $0x6a] sm:$0xff]  ;;  %v19919_v2 = vpack.c.bf16 %v10604_v47, %v10603_v55  ;;  %v10610_v55 = vld [vmem:[#allocation4 + $0x9a] sm:$0xff] }
 0x625   : > { %v19924_v6 = vpack.c.bf16 %v10606_v21, %v10605_v19  ;;  %v10611_v19 = vld [vmem:[#allocation4 + $0xaa] sm:$0xff]  ;;  %v10612_v21 = vld [vmem:[#allocation4 + $0xb2] sm:$0xff] }
 0x627   : > { %15678 = vmatmul.mubr.msk.bf16.gmra.mrb[40].mxu1 %vm9928_vm7, %v19859_v14 }
 0x628   : > { %15681 = vmatprep.mubr.msk.bf16.mxu1 %vm9928_vm7, %v19861_v37 }
 0x62f   : > { %15682 = vmatmul.mubr.msk.bf16.gmra.mrb[44].mxu1 %vm9928_vm7, %v19867_v26 }
 0x630   : > { %15685 = vmatprep.mubr.msk.bf16.mxu1 %vm9928_vm7, %v19869_v8 }
 0x637   : > { %15686 = vmatmul.mubr.msk.bf16.gmra.mrb[48].mxu1 %vm9928_vm7, %v19875_v46 }
 0x638   : > { %15689 = vmatprep.mubr.msk.bf16.mxu1 %vm9928_vm7, %v19877_v59 }
 0x63f   : > { %15690 = vmatmul.mubr.msk.bf16.gmra.mrb[52].mxu1 %vm9928_vm7, %v19883_v31 }
 0x640   : > { %15693 = vmatprep.mubr.msk.bf16.mxu1 %vm9928_vm7, %v19885_v45 }
 0x647   : > { %15694 = vmatmul.mubr.msk.bf16.gmra.mrb[56].mxu1 %vm9928_vm7, %v19891_v3 }
 0x648   : > { %15697 = vmatprep.mubr.msk.bf16.mxu1 %vm9928_vm7, %v19893_v30 }
 0x64f   : > { %15698 = vmatmul.mubr.msk.bf16.gmra.mrb[60].mxu1 %vm9928_vm7, %v19899_v27 }
 0x650   : > { %15707 = vmatprep.mubr.msk.bf16.mxu1 %vm9928_vm7, %v10629_v35  ;;  %v16894_v35 = vld [vmem:[%s20388_s6 + $0x58] sm:$0xff]  }
 0x657   : > { %15708 = vmatmul.mubr.msk.bf16.vlgmr.msra.gmra.mrb[32].mxu1 %vm9928_vm7, %v19904_v39 }
 0x658   : > { %15711 = vmatprep.mubr.msk.bf16.mxu1 %vm9928_vm7, %v19909_v61  ;;  %15740 = vmatpush3.bf16.msra.mxu1 %v19850_v23  ;;  %v10607_v23 = vld [vmem:[#allocation4 + $0x7a] sm:$0xff] }
 0x659   : > { %15741 = vmatprep.subr.bf16.mxu1 %v16893_v11  ;;  %v19930_v47 = vpack.c.bf16 %v10608_v15, %v10607_v23  ;;  %v10615_v23 = vld [vmem:[#allocation4 + $0xda] sm:$0xff]  ;;  %v10616_v15 = vld [vmem:[#allocation4 + $0xe2] sm:$0xff] }
 0x65a   : > { %v19946_v48 = vpack.c.bf16 %v10616_v15, %v10615_v23  ;;  %v10623_v23 = vld [vmem:[#allocation4 + $0x13a] sm:$0xff]  ;;  %v10624_v15 = vld [vmem:[#allocation4 + $0x142] sm:$0xff] }
 0x65b   : > { %v19962_v25 = vpack.c.bf16 %v10624_v15, %v10623_v23  ;;  %v16897_v23 = vld [vmem:[%s20388_s6 + $0x70] sm:$0xff]   ;;  %v10941_v15 = vld [vmem:[#allocation4 + $0x180] sm:$0xff] }
 0x65c   : > { %15742 = vmatpush3.bf16.msra.mxu1 %v16893_v11  ;;  %v10609_v11 = vld [vmem:[#allocation4 + $0x92] sm:$0xff] }
 0x65d   : > { %15743 = vmatprep.subr.bf16.mxu1 %v16894_v35  ;;  %v19932_v28 = vpack.c.bf16 %v10610_v55, %v10609_v11  ;;  %v10617_v11 = vld [vmem:[#allocation4 + $0xf2] sm:$0xff]  ;;  %v10618_v55 = vld [vmem:[#allocation4 + $0xfa] sm:$0xff] }
 0x65e   : > { %v19948_v62 = vpack.c.bf16 %v10618_v55, %v10617_v11  ;;  %v10625_v11 = vld [vmem:[#allocation4 + $0x152] sm:$0xff]  ;;  %v10626_v55 = vld [vmem:[#allocation4 + $0x15a] sm:$0xff] }
 0x65f   : > { %15712 = vmatmul.mubr.msk.bf16.gmra.mrb[36].mxu1 %vm9928_vm7, %v19919_v2  ;;  %v19964_v1 = vpack.c.bf16 %v10626_v55, %v10625_v11  ;;  %v16899_v55 = vld [vmem:[%s20388_s6 + $0x80] sm:$0xff]  }
 0x660   : > { %15715 = vmatprep.mubr.msk.bf16.mxu1 %vm9928_vm7, %v19924_v6  ;;  %15744 = vmatpush3.bf16.msra.mxu1 %v16894_v35  ;;  %v19938_v35 = vpack.c.bf16 %v10612_v21, %v10611_v19  ;;  %v10621_v19 = vld [vmem:[#allocation4 + $0x122] sm:$0xff]  ;;  %v10622_v21 = vld [vmem:[#allocation4 + $0x12a] sm:$0xff] }
 0x661   : > { %15777 = vmatprep.subr.bf16.mxu1 %v16895_v52  ;;  %v19956_v20 = vpack.c.bf16 %v10622_v21, %v10621_v19  ;;  %v19970_v19 = vpack.c.bf16 %v10628_v57, %v10627_v63  ;;  %v16896_v21 = vld [vmem:[%s20388_s6 + $0x68] sm:$0xff]  }
 0x662   : > { %v16900_v63 = vld [vmem:[%s20388_s6 + $0x88] sm:$0xff]  }
 0x667   : > { %15716 = vmatmul.mubr.msk.bf16.gmra.mrb[40].mxu1 %vm9928_vm7, %v19930_v47 }
 0x668   : > { %15719 = vmatprep.mubr.msk.bf16.mxu1 %vm9928_vm7, %v19932_v28 }
 0x66f   : > { %15720 = vmatmul.mubr.msk.bf16.gmra.mrb[44].mxu1 %vm9928_vm7, %v19938_v35 }
 0x670   : > { %15723 = vmatprep.mubr.msk.bf16.mxu1 %vm9928_vm7, %v19940_v12 }
 0x677   : > { %15724 = vmatmul.mubr.msk.bf16.gmra.mrb[48].mxu1 %vm9928_vm7, %v19946_v48 }
 0x678   : > { %15727 = vmatprep.mubr.msk.bf16.mxu1 %vm9928_vm7, %v19948_v62 }
 0x67f   : > { %15728 = vmatmul.mubr.msk.bf16.gmra.mrb[52].mxu1 %vm9928_vm7, %v19954_v5 }
 0x680   : > { %15731 = vmatprep.mubr.msk.bf16.mxu1 %vm9928_vm7, %v19956_v20 }
 0x687   : > { %15732 = vmatmul.mubr.msk.bf16.gmra.mrb[56].mxu1 %vm9928_vm7, %v19962_v25 }
 0x688   : > { %15735 = vmatprep.mubr.msk.bf16.mxu1 %vm9928_vm7, %v19964_v1 }
 0x68f   : > { %15736 = vmatmul.mubr.msk.bf16.gmra.mrb[60].mxu1 %vm9928_vm7, %v19970_v19 }
 0x690   : > { %15745 = vmatprep.mubr.msk.bf16.mxu1 %vm9928_vm7, %v19830_v42  ;;  %v16898_v42 = vld [vmem:[%s20388_s6 + $0x78] sm:$0xff]  }
 0x697   : > { %15746 = vmatmul.mubr.msk.bf16.vlgmr.msra.gmra.mrb[32].mxu1 %vm9928_vm7, %v19835_v29 }
 0x698   : > { %15749 = vmatprep.mubr.msk.bf16.mxu1 %vm9928_vm7, %v19845_v24  ;;  %15778 = vmatpush3.bf16.msra.mxu1 %v16895_v52  ;;  %v10942_v52 = vld [vmem:[#allocation4 + $0x188] sm:$0xff] }
 0x699   : > { %15779 = vmatprep.subr.bf16.mxu1 %v16896_v21  ;;  %v20013_v11 = vpack.c.bf16 %v10942_v52, %v10941_v15  ;;  %v12181_v52 = vld [vmem:[#allocation4 + $0xc9] sm:$0xff] }
 0x69a   : > { %v12178_v15 = vld [vmem:[#allocation4 + $0xa9] sm:$0xff] }
 0x69c   : > { %15780 = vmatpush3.bf16.msra.mxu1 %v16896_v21  ;;  %v12176_v21 = vld [vmem:[#allocation4 + $0x91] sm:$0xff] }
 0x69d   : > { %15781 = vmatprep.subr.bf16.mxu1 %v16897_v23 }
 0x69f   : > { %15750 = vmatmul.mubr.msk.bf16.gmra.mrb[36].mxu1 %vm9928_vm7, %v19852_v34 }
 0x6a0   : > { %15753 = vmatprep.mubr.msk.bf16.mxu1 %vm9928_vm7, %v19859_v14  ;;  %15782 = vmatpush3.bf16.msra.mxu1 %v16897_v23 }
 0x6a1   : > { %15815 = vmatprep.subr.bf16.mxu1 %v16898_v42 }
 0x6a7   : > { %15754 = vmatmul.mubr.msk.bf16.gmra.mrb[40].mxu1 %vm9928_vm7, %v19861_v37 }
 0x6a8   : > { %15757 = vmatprep.mubr.msk.bf16.mxu1 %vm9928_vm7, %v19867_v26 }
 0x6af   : > { %15758 = vmatmul.mubr.msk.bf16.gmra.mrb[44].mxu1 %vm9928_vm7, %v19869_v8 }
 0x6b0   : > { %15761 = vmatprep.mubr.msk.bf16.mxu1 %vm9928_vm7, %v19875_v46 }
 0x6b7   : > { %15762 = vmatmul.mubr.msk.bf16.gmra.mrb[48].mxu1 %vm9928_vm7, %v19877_v59 }
 0x6b8   : > { %15765 = vmatprep.mubr.msk.bf16.mxu1 %vm9928_vm7, %v19883_v31 }
 0x6bf   : > { %15766 = vmatmul.mubr.msk.bf16.gmra.mrb[52].mxu1 %vm9928_vm7, %v19885_v45 }
 0x6c0   : > { %15769 = vmatprep.mubr.msk.bf16.mxu1 %vm9928_vm7, %v19891_v3 }
 0x6c7   : > { %15770 = vmatmul.mubr.msk.bf16.gmra.mrb[56].mxu1 %vm9928_vm7, %v19893_v30 }
 0x6c8   : > { %15773 = vmatprep.mubr.msk.bf16.mxu1 %vm9928_vm7, %v19899_v27 }
 0x6cf   : > { %15774 = vmatmul.mubr.msk.bf16.gmra.mrb[60].mxu1 %vm9928_vm7, %v20013_v11 }
 0x6d0   : > { %15783 = vmatprep.mubr.msk.bf16.mxu1 %vm9928_vm7, %v19732_v4  ;;  %v16901_v4 = vld [vmem:[%s20388_s6 + $0x90] sm:$0xff]  }
 0x6d7   : > { %15784 = vmatmul.mubr.msk.bf16.vlgmr.msra.gmra.mrb[32].mxu1 %vm9928_vm7, %v19737_v58  ;;  %v11256_v58 = vld [vmem:[#allocation4 + $0x189] sm:$0xff] }
 0x6d8   : > { %15787 = vmatprep.mubr.msk.bf16.mxu1 %vm9928_vm7, %v19751_v18  ;;  %15816 = vmatpush3.bf16.msra.mxu1 %v16898_v42  ;;  %v11255_v18 = vld [vmem:[#allocation4 + $0x181] sm:$0xff]  ;;  %v12179_v42 = vld [vmem:[#allocation4 + $0xb1] sm:$0xff] }
 0x6d9   : > { %15817 = vmatprep.subr.bf16.mxu1 %v16899_v55 }
 0x6dc   : > { %15818 = vmatpush3.bf16.msra.mxu1 %v16899_v55  ;;  %v12180_v55 = vld [vmem:[#allocation4 + $0xc1] sm:$0xff] }
 0x6dd   : > { %15819 = vmatprep.subr.bf16.mxu1 %v16900_v63 }
 0x6df   : > { %15788 = vmatmul.mubr.msk.bf16.gmra.mrb[36].mxu1 %vm9928_vm7, %v19758_v10  ;;  %v20056_v10 = vpack.c.bf16 %v11256_v58, %v11255_v18  ;;  %v12185_v58 = vld [vmem:[#allocation4 + $0xf9] sm:$0xff] }
 0x6e0   : > { %15791 = vmatprep.mubr.msk.bf16.mxu1 %vm9928_vm7, %v19769_v56  ;;  %15820 = vmatpush3.bf16.msra.mxu1 %v16900_v63  ;;  %v16902_v56 = vld [vmem:[%s20388_s6 + $0x98] sm:$0xff]   ;;  %v12206_v63 = vpack.c.bf16 %v12181_v52, %v12180_v55 }
 0x6e1   : > { %15853 = vmatprep.subr.bf16.mxu1 %v16901_v4  ;;  %v12182_v18 = vld [vmem:[#allocation4 + $0xd9] sm:$0xff] }
 0x6e7   : > { %15792 = vmatmul.mubr.msk.bf16.gmra.mrb[40].mxu1 %vm9928_vm7, %v19771_v0  ;;  %v16903_v0 = vld [vmem:[%s20388_s6 + $0xa0] sm:$0xff]  }
 0x6e8   : > { %15795 = vmatprep.mubr.msk.bf16.mxu1 %vm9928_vm7, %v19781_v50  ;;  %v11569_v50 = vld [vmem:[#allocation4 + $0x182] sm:$0xff] }
 0x6ef   : > { %15796 = vmatmul.mubr.msk.bf16.gmra.mrb[44].mxu1 %vm9928_vm7, %v19783_v53  ;;  %v11570_v53 = vld [vmem:[#allocation4 + $0x18a] sm:$0xff] }
 0x6f0   : > { %15799 = vmatprep.mubr.msk.bf16.mxu1 %vm9928_vm7, %v19793_v41  ;;  %v20099_v41 = vpack.c.bf16 %v11570_v53, %v11569_v50  ;;  %v12187_v50 = vld [vmem:[#allocation4 + $0x111] sm:$0xff]  ;;  %v12189_v53 = vld [vmem:[#allocation4 + $0x129] sm:$0xff] }
 0x6f7   : > { %15800 = vmatmul.mubr.msk.bf16.gmra.mrb[48].mxu1 %vm9928_vm7, %v19795_v22  ;;  %v16905_v22 = vld [vmem:[%s20388_s6 + $0xb0] sm:$0xff]  }
 0x6f8   : > { %15803 = vmatprep.mubr.msk.bf16.mxu1 %vm9928_vm7, %v19805_v51  ;;  %v16906_v51 = vld [vmem:[%s20388_s6 + $0xb8] sm:$0xff]  }
 0x6ff   : > { %15804 = vmatmul.mubr.msk.bf16.gmra.mrb[52].mxu1 %vm9928_vm7, %v19807_v36  ;;  %v16907_v36 = vld [vmem:[%s20388_s6 + $0xc0] sm:$0xff]  }
 0x700   : > { %15807 = vmatprep.mubr.msk.bf16.mxu1 %vm9928_vm7, %v19817_v44  ;;  %v11884_v44 = vld [vmem:[#allocation4 + $0x198] sm:$0xff] }
 0x707   : > { %15808 = vmatmul.mubr.msk.bf16.gmra.mrb[56].mxu1 %vm9928_vm7, %v19819_v60 }
 0x708   : > { %15811 = vmatprep.mubr.msk.bf16.mxu1 %vm9928_vm7, %v19825_v9  ;;  %v12169_v9 = vld [vmem:[#allocation4 + $0x39] sm:$0xff] }
 0x70f   : > { %15812 = vmatmul.mubr.msk.bf16.gmra.mrb[60].mxu1 %vm9928_vm7, %v20056_v10 }
 0x710   : > { %15821 = vmatprep.mubr.msk.bf16.mxu1 %vm9928_vm7, %v19904_v39  ;;  %v16904_v39 = vld [vmem:[%s20388_s6 + $0xa8] sm:$0xff]  }
 0x717   : > { %15822 = vmatmul.mubr.msk.bf16.vlgmr.msra.gmra.mrb[32].mxu1 %vm9928_vm7, %v19909_v61 }
 0x718   : > { %15825 = vmatprep.mubr.msk.bf16.mxu1 %vm9928_vm7, %v19919_v2  ;;  %15854 = vmatpush3.bf16.msra.mxu1 %v16901_v4  ;;  %v12183_v4 = vld [vmem:[#allocation4 + $0xe1] sm:$0xff] }
 0x719   : > { %15855 = vmatprep.subr.bf16.mxu1 %v16902_v56 }
 0x71c   : > { %15856 = vmatpush3.bf16.msra.mxu1 %v16902_v56  ;;  %v12207_v56 = vpack.c.bf16 %v12183_v4, %v12182_v18 }
 0x71d   : > { %15857 = vmatprep.subr.bf16.mxu1 %v16903_v0 }
 0x71f   : > { %15826 = vmatmul.mubr.msk.bf16.gmra.mrb[36].mxu1 %vm9928_vm7, %v19924_v6 }
 0x720   : > { %15829 = vmatprep.mubr.msk.bf16.mxu1 %vm9928_vm7, %v19930_v47  ;;  %15858 = vmatpush3.bf16.msra.mxu1 %v16903_v0  ;;  %v12184_v0 = vld [vmem:[#allocation4 + $0xf1] sm:$0xff] }
 0x721   : > { %15891 = vmatprep.subr.bf16.mxu1 %v16904_v39 }
 0x727   : > { %15830 = vmatmul.mubr.msk.bf16.gmra.mrb[40].mxu1 %vm9928_vm7, %v19932_v28 }
 0x728   : > { %15833 = vmatprep.mubr.msk.bf16.mxu1 %vm9928_vm7, %v19938_v35 }
 0x72f   : > { %15834 = vmatmul.mubr.msk.bf16.gmra.mrb[44].mxu1 %vm9928_vm7, %v19940_v12 }
 0x730   : > { %15837 = vmatprep.mubr.msk.bf16.mxu1 %vm9928_vm7, %v19946_v48 }
 0x737   : > { %15838 = vmatmul.mubr.msk.bf16.gmra.mrb[48].mxu1 %vm9928_vm7, %v19948_v62 }
 0x738   : > { %15841 = vmatprep.mubr.msk.bf16.mxu1 %vm9928_vm7, %v19954_v5 }
 0x73f   : > { %15842 = vmatmul.mubr.msk.bf16.gmra.mrb[52].mxu1 %vm9928_vm7, %v19956_v20 }
 0x740   : > { %15845 = vmatprep.mubr.msk.bf16.mxu1 %vm9928_vm7, %v19962_v25 }
 0x747   : > { %15846 = vmatmul.mubr.msk.bf16.gmra.mrb[56].mxu1 %vm9928_vm7, %v19964_v1 }
 0x748   : > { %15849 = vmatprep.mubr.msk.bf16.mxu1 %vm9928_vm7, %v19970_v19 }
 0x74f   : > { %15850 = vmatmul.mubr.msk.bf16.gmra.mrb[60].mxu1 %vm9928_vm7, %v20099_v41 }
 0x750   : > { %15859 = vmatprep.mubr.msk.bf16.mxu1 %vm9928_vm7, %v19835_v29  ;;  %v12168_v29 = vld [vmem:[#allocation4 + $0x31] sm:$0xff] }
 0x757   : > { %15860 = vmatmul.mubr.msk.bf16.vlgmr.msra.gmra.mrb[32].mxu1 %vm9928_vm7, %v19845_v24  ;;  %v12200_v24 = vpack.c.bf16 %v12169_v9, %v12168_v29  ;;  %v12190_v9 = vld [vmem:[#allocation4 + $0x139] sm:$0xff] }
 0x758   : > { %15863 = vmatprep.mubr.msk.bf16.mxu1 %vm9928_vm7, %v19852_v34  ;;  %15892 = vmatpush3.bf16.msra.mxu1 %v16904_v39  ;;  %v12173_v34 = vld [vmem:[#allocation4 + $0x69] sm:$0xff]  ;;  %v12208_v39 = vpack.c.bf16 %v12185_v58, %v12184_v0 }
 0x759   : > { %15893 = vmatprep.subr.bf16.mxu1 %v16905_v22 }
 0x75c   : > { %15894 = vmatpush3.bf16.msra.mxu1 %v16905_v22  ;;  %v12186_v22 = vld [vmem:[#allocation4 + $0x109] sm:$0xff] }
 0x75d   : > { %15895 = vmatprep.subr.bf16.mxu1 %v16906_v51 }
 0x75f   : > { %15864 = vmatmul.mubr.msk.bf16.gmra.mrb[36].mxu1 %vm9928_vm7, %v19859_v14  ;;  %v12170_v14 = vld [vmem:[#allocation4 + $0x49] sm:$0xff] }
 0x760   : > { %15867 = vmatprep.mubr.msk.bf16.mxu1 %vm9928_vm7, %v19861_v37  ;;  %15896 = vmatpush3.bf16.msra.mxu1 %v16906_v51  ;;  %v12172_v37 = vld [vmem:[#allocation4 + $0x61] sm:$0xff]  ;;  %v12209_v51 = vpack.c.bf16 %v12187_v50, %v12186_v22 }
 0x761   : > { %15929 = vmatprep.subr.bf16.mxu1 %v16907_v36 }
 0x767   : > { %15868 = vmatmul.mubr.msk.bf16.gmra.mrb[40].mxu1 %vm9928_vm7, %v19867_v26  ;;  %v12202_v26 = vpack.c.bf16 %v12173_v34, %v12172_v37  ;;  %v12195_v34 = vld [vmem:[#allocation4 + $0x171] sm:$0xff]  ;;  %v12198_v37 = vld [vmem:[#allocation4 + $0x199] sm:$0xff] }
 0x768   : > { %15871 = vmatprep.mubr.msk.bf16.mxu1 %vm9928_vm7, %v19869_v8  ;;  %v16909_v8 = vld [vmem:[%s20388_s6 + $0xd0] sm:$0xff]  }
 0x76f   : > { %15872 = vmatmul.mubr.msk.bf16.gmra.mrb[44].mxu1 %vm9928_vm7, %v19875_v46  ;;  %v12175_v46 = vld [vmem:[#allocation4 + $0x81] sm:$0xff] }
 0x770   : > { %15875 = vmatprep.mubr.msk.bf16.mxu1 %vm9928_vm7, %v19877_v59  ;;  %v11885_v59 = vld [vmem:[#allocation4 + $0x1a0] sm:$0xff] }
 0x771   : > { %v11901_v60 = vpack.c.bf16 %v11885_v59, %v11884_v44  ;;  %v12191_v59 = vld [vmem:[#allocation4 + $0x141] sm:$0xff] }
 0x772   : > { %v12211_v29 = vpack.c.bf16 %v12191_v59, %v12190_v9 }
 0x777   : > { %15876 = vmatmul.mubr.msk.bf16.gmra.mrb[48].mxu1 %vm9928_vm7, %v19883_v31  ;;  %v12177_v31 = vld [vmem:[#allocation4 + $0x99] sm:$0xff] }
 0x778   : > { %15879 = vmatprep.mubr.msk.bf16.mxu1 %vm9928_vm7, %v19885_v45  ;;  %v12171_v45 = vld [vmem:[#allocation4 + $0x51] sm:$0xff]  ;;  %v12204_v23 = vpack.c.bf16 %v12177_v31, %v12176_v21 }
 0x77f   : > { %15880 = vmatmul.mubr.msk.bf16.gmra.mrb[52].mxu1 %vm9928_vm7, %v19891_v3  ;;  %v12174_v3 = vld [vmem:[#allocation4 + $0x79] sm:$0xff] }
 0x780   : > { %15883 = vmatprep.mubr.msk.bf16.mxu1 %vm9928_vm7, %v19893_v30  ;;  %v12201_v30 = vpack.c.bf16 %v12171_v45, %v12170_v14  ;;  %v12203_v57 = vpack.c.bf16 %v12175_v46, %v12174_v3  ;;  %v12194_v14 = vld [vmem:[#allocation4 + $0x169] sm:$0xff]  ;;  %v20723_v46 = vld [vmem:[#allocation39_spill] sm:$0xff] }
 0x781   : > { %v1388_v31 = vmax.f32 %v20723_v46, 0.0  ;;  %v20724_v3 = vld [vmem:[#allocation74_spill] sm:$0xff] }
 0x787   : > { %15884 = vmatmul.mubr.msk.bf16.gmra.mrb[56].mxu1 %vm9928_vm7, %v19899_v27  ;;  %v16908_v27 = vld [vmem:[%s20388_s6 + $0xc8] sm:$0xff]  }
 0x788   : > { %15887 = vmatprep.mubr.msk.bf16.mxu1 %vm9928_vm7, %v20013_v11  ;;  %v12205_v11 = vpack.c.bf16 %v12179_v42, %v12178_v15  ;;  %v20725_v42 = vld [vmem:[#allocation38_spill] sm:$0xff]  ;;  %v20726_v15 = vld [vmem:[#allocation75_spill] sm:$0xff] }
 0x789   : > { %v1386_v52 = vmax.f32 %v20725_v42, 0.0 }
 0x78f   : > { %15888 = vmatmul.mubr.msk.bf16.gmra.mrb[60].mxu1 %vm9928_vm7, %v11901_v60  ;;  %v12193_v60 = vld [vmem:[#allocation4 + $0x159] sm:$0xff] }
 0x790   : > { %15897 = vmatprep.mubr.msk.bf16.mxu1 %vm9928_vm7, %v12200_v24  ;;  %v12192_v24 = vld [vmem:[#allocation4 + $0x151] sm:$0xff] }
 0x791   : > { %v12212_v45 = vpack.c.bf16 %v12193_v60, %v12192_v24  ;;  %v20730_v24 = vld [vmem:[#allocation77_spill] sm:$0xff] }
 0x797   : > { %15898 = vmatmul.mubr.msk.bf16.vlgmr.msra.gmra.mrb[32].mxu1 %vm9928_vm7, %v12201_v30  ;;  %v12213_v30 = vpack.c.bf16 %v12195_v34, %v12194_v14 }
 0x798   : > { %15901 = vmatprep.mubr.msk.bf16.mxu1 %vm9928_vm7, %v12202_v26  ;;  %15930 = vmatpush3.bf16.msra.mxu1 %v16907_v36  ;;  %v12188_v36 = vld [vmem:[#allocation4 + $0x121] sm:$0xff] }
 0x799   : > { %15931 = vmatprep.subr.bf16.mxu1 %v16908_v27  ;;  %v12210_v44 = vpack.c.bf16 %v12189_v53, %v12188_v36 }
 0x79c   : > { %15932 = vmatpush3.bf16.msra.mxu1 %v16908_v27  ;;  %v12199_v27 = vld [vmem:[#allocation4 + $0x1a1] sm:$0xff] }
 0x79d   : > { %15933 = vmatprep.subr.bf16.mxu1 %v16909_v8  ;;  %v12215_v26 = vpack.c.bf16 %v12199_v27, %v12198_v37  ;;  %v20732_v27 = vld [vmem:[#allocation78_spill] sm:$0xff] }
 0x79f   : > { %15902 = vmatmul.mubr.msk.bf16.gmra.mrb[36].mxu1 %vm9928_vm7, %v12203_v57  ;;  %v3249_v57 = vmax.f32 %v20724_v3, 0.0 }
 0x7a0   : > { %15905 = vmatprep.mubr.msk.bf16.mxu1 %vm9928_vm7, %v12204_v23  ;;  %15934 = vmatpush3.bf16.msra.mxu1 %v16909_v8 }
 0x7a7   : > { %15906 = vmatmul.mubr.msk.bf16.gmra.mrb[40].mxu1 %vm9928_vm7, %v12205_v11  ;;  %v3247_v11 = vmax.f32 %v20726_v15, 0.0 }
 0x7a8   : > { %15909 = vmatprep.mubr.msk.bf16.mxu1 %vm9928_vm7, %v12206_v63  ;;  %v20727_v63 = vld [vmem:[#allocation41_spill] sm:$0xff] }
 0x7a9   : > { %v1389_v4 = vmax.f32 %v20727_v63, 0.0 }
 0x7af   : > { %15910 = vmatmul.mubr.msk.bf16.gmra.mrb[44].mxu1 %vm9928_vm7, %v12207_v56 }
 0x7b0   : > { %15913 = vmatprep.mubr.msk.bf16.mxu1 %vm9928_vm7, %v12208_v39 }
 0x7b7   : > { %15914 = vmatmul.mubr.msk.bf16.gmra.mrb[48].mxu1 %vm9928_vm7, %v12209_v51 }
 0x7b8   : > { %15917 = vmatprep.mubr.msk.bf16.mxu1 %vm9928_vm7, %v12210_v44  ;;  %v20729_v44 = vld [vmem:[#allocation76_spill] sm:$0xff] }
 0x7b9   : > { %v3252_v59 = vmax.f32 %v20729_v44, 0.0 }
 0x7bf   : > { %15918 = vmatmul.mubr.msk.bf16.gmra.mrb[52].mxu1 %vm9928_vm7, %v12211_v29 }
 0x7c0   : > { %15921 = vmatprep.mubr.msk.bf16.mxu1 %vm9928_vm7, %v12212_v45  ;;  %v3250_v45 = vmax.f32 %v20730_v24, 0.0 }
 0x7c7   : > { %15922 = vmatmul.mubr.msk.bf16.gmra.mrb[56].mxu1 %vm9928_vm7, %v12213_v30  ;;  %v20731_v30 = vld [vmem:[#allocation40_spill] sm:$0xff] }
 0x7c8   : > { %15925 = vmatprep.mubr.msk.bf16.mxu1 %vm9928_vm7, %v20056_v10  ;;  %v1392_v37 = vmax.f32 %v20731_v30, 0.0  ;;  %v20746_v30 = vld [vmem:[#allocation84_spill] sm:$0xff] }
 0x7cf   : > { %15926 = vmatmul.mubr.msk.bf16.gmra.mrb[60].mxu1 %vm9928_vm7, %v12215_v26  ;;  %v3253_v26 = vmax.f32 %v20732_v27, 0.0  ;;  %v20747_v27 = vld [vmem:[#allocation121_spill] sm:$0xff] }
 0x7d0   : > { %15935 = vmatprep.mubr.msk.bf16.mxu1 %vm9928_vm7, %v19909_v61 }
 0x7d7   : > { %15936 = vmatmul.mubr.msk.bf16.vlgmr.msra.gmra.mrb[32].mxu1 %vm9928_vm7, %v19919_v2  ;;  %v20721_v2 = vld [vmem:[#allocation72_spill] sm:$0xff] }
 0x7d8   : > { %15939 = vmatprep.mubr.msk.bf16.mxu1 %vm9928_vm7, %v19924_v6  ;;  %v3248_v6 = vmax.f32 %v20721_v2, 0.0 }
 0x7df   : > { %15940 = vmatmul.mubr.msk.bf16.gmra.mrb[36].mxu1 %vm9928_vm7, %v19930_v47 }
 0x7e0   : > { %15943 = vmatprep.mubr.msk.bf16.mxu1 %vm9928_vm7, %v19932_v28 }
 0x7e7   : > { %15944 = vmatmul.mubr.msk.bf16.gmra.mrb[40].mxu1 %vm9928_vm7, %v19938_v35 }
 0x7e8   : > { %15947 = vmatprep.mubr.msk.bf16.mxu1 %vm9928_vm7, %v19940_v12 }
 0x7ef   : > { %15948 = vmatmul.mubr.msk.bf16.gmra.mrb[44].mxu1 %vm9928_vm7, %v19946_v48  ;;  %v12513_v48 = vld [vmem:[#allocation4 + $0x1a2] sm:$0xff] }
 0x7f0   : > { %15951 = vmatprep.mubr.msk.bf16.mxu1 %vm9928_vm7, %v19948_v62  ;;  %v12512_v62 = vld [vmem:[#allocation4 + $0x19a] sm:$0xff] }
 0x7f1   : > { %v12529_v12 = vpack.c.bf16 %v12513_v48, %v12512_v62 }
 0x7f7   : > { %15952 = vmatmul.mubr.msk.bf16.gmra.mrb[48].mxu1 %vm9928_vm7, %v19954_v5 }
 0x7f8   : > { %15955 = vmatprep.mubr.msk.bf16.mxu1 %vm9928_vm7, %v19956_v20 }
 0x7ff   : > { %15956 = vmatmul.mubr.msk.bf16.gmra.mrb[52].mxu1 %vm9928_vm7, %v19962_v25 }
 0x800   : > { %15959 = vmatprep.mubr.msk.bf16.mxu1 %vm9928_vm7, %v19964_v1 }
 0x807   : > { %15960 = vmatmul.mubr.msk.bf16.gmra.mrb[56].mxu1 %vm9928_vm7, %v19970_v19  ;;  %v20722_v19 = vld [vmem:[#allocation73_spill] sm:$0xff] }
 0x808   : > { %15963 = vmatprep.mubr.msk.bf16.mxu1 %vm9928_vm7, %v20099_v41  ;;  %v3246_v10 = vmax.f32 %v20722_v19, 0.0 }
 0x80f   : > { %15964 = vmatmul.mubr.msk.bf16.gmra.mrb[60].mxu1 %vm9928_vm7, %v12529_v12  ;;  %v20733_v12 = vld [vmem:[#allocation44_spill] sm:$0xff] }
 0x8aa   : > { %v15937_v20 = vpop.f32.mrb[32].mxu1 }
 0x8ab   : > { %v12798_v5 = vmax.f32 %v15937_v20, 0.0  ;;  %v12637_v28 = vpop.f32.mrb[33].mxu1  ;;  %v1390_v20 = vmax.f32 %v20733_v12, 0.0  ;;  %v20748_v12 = vld [vmem:[#allocation85_spill] sm:$0xff] }
 0x8ac   : > { %v12796_v61 = vmax.f32 %v12637_v28, 0.0  ;;  %v15938_v25 = vpop.f32.mrb[34].mxu1 }
 0x8ad   : > { %v12862_v1 = vadd.f32 %v19551_v54, %v12798_v5  ;;  %v12799_v47 = vmax.f32 %v15938_v25, 0.0  ;;  %v12640_v35 = vpop.f32.mrb[35].mxu1  ;;  %v20735_v25 = vld [vmem:[#allocation43_spill] sm:$0xff] }
 0x8ae   : > { %v12860_v41 = vadd.f32 %v19554_v43, %v12796_v61  ;;  %v12797_v8 = vmax.f32 %v12640_v35, 0.0  ;;  %v20728_v43 = vld [vmem:[#allocation42_spill] sm:$0xff]  ;;  %v1393_v2 = vmax.f32 %v20735_v25, 0.0 }
 0x8af   : > { %v12894_v21 = vadd.f32 %v12862_v1, %v3248_v6  ;;  %v12863_v23 = vadd.f32 %v19557_v49, %v12799_v47  ;;  %v1387_v56 = vmax.f32 %v20728_v43, 0.0  ;;  %v20736_v1 = vld [vmem:[#allocation46_spill] sm:$0xff] }
 0x8b0   : > { %v12892_v55 = vadd.f32 %v12860_v41, %v3246_v10  ;;  %v12861_v54 = vadd.f32 %v19559_v7, %v12797_v8  ;;  %v1391_v47 = vmax.f32 %v20736_v1, 0.0  ;;  %v20752_v1 = vld [vmem:[#allocation105_spill] sm:$0xff] }
 0x8b1   : > { %v12926_v58 = vadd.f32 %v12894_v21, %v1388_v31  ;;  %v12895_v18 = vadd.f32 %v12863_v23, %v3249_v57 }
 0x8b2   : > { %v12924_v0 = vadd.f32 %v12892_v55, %v1386_v52  ;;  %v12893_v39 = vadd.f32 %v12861_v54, %v3247_v11  ;;  %v15941_v50 = vpop.f32.mrb[36].mxu1  ;;  %v20738_v52 = vld [vmem:[#allocation81_spill] sm:$0xff]  ;;  %v20739_v54 = vld [vmem:[#allocation47_spill] sm:$0xff] }
 0x8b3   : > { %12958 = vst [vmem:[%s20212_s16 + $0x10] sm:$0xff] %v12926_v58  ;;  %v12927_v49 = vadd.f32 %v12895_v18, %v1389_v4  ;;  %v12802_v53 = vmax.f32 %v15941_v50, 0.0  ;;  %v12653_v22 = vpop.f32.mrb[37].mxu1  ;;  %v3254_v15 = vmax.f32 %v20738_v52, 0.0  ;;  %v1396_v63 = vmax.f32 %v20739_v54, 0.0  ;;  %v20740_v4 = vld [vmem:[#allocation82_spill] sm:$0xff] }
 0x8b4   : > { %12956 = vst [vmem:[%s20212_s16] sm:$0xff] %v12924_v0  ;;  %v12925_v7 = vadd.f32 %v12893_v39, %v1387_v56  ;;  %v12800_v51 = vmax.f32 %v12653_v22, 0.0  ;;  %v15942_v36 = vpop.f32.mrb[38].mxu1  ;;  %v3257_v58 = vmax.f32 %v20740_v4, 0.0  ;;  %v20741_v56 = vld [vmem:[#allocation45_spill] sm:$0xff]  ;;  %v20744_v22 = vld [vmem:[#allocation50_spill] sm:$0xff] }
 0x8b5   : > { %12959 = vst [vmem:[%s20212_s16 + $0x18] sm:$0xff] %v12927_v49  ;;  %v12866_v60 = vadd.f32 %v19567_v13, %v12802_v53  ;;  %v12803_v9 = vmax.f32 %v15942_v36, 0.0  ;;  %v12656_v29 = vpop.f32.mrb[39].mxu1  ;;  %v20734_v13 = vld [vmem:[#allocation79_spill] sm:$0xff]  ;;  %v1394_v0 = vmax.f32 %v20741_v56, 0.0  ;;  %v20743_v49 = vld [vmem:[#allocation120_spill] sm:$0xff] }
 0x8b6   : > { %12957 = vst [vmem:[%s20212_s16 + $0x8] sm:$0xff] %v12925_v7  ;;  %v12864_v34 = vadd.f32 %v19570_v38, %v12800_v51  ;;  %v12801_v14 = vmax.f32 %v12656_v29, 0.0  ;;  %v3251_v5 = vmax.f32 %v20734_v13, 0.0  ;;  %v1397_v7 = vmax.f32 %v20744_v22, 0.0  ;;  %v20745_v36 = vld [vmem:[#allocation49_spill] sm:$0xff]  ;;  %v20749_v13 = vld [vmem:[#allocation104_spill] sm:$0xff] }
 0x8b7   : > { %v12898_v62 = vadd.f32 %v12866_v60, %v3252_v59  ;;  %v12867_v48 = vadd.f32 %v19573_v16, %v12803_v9  ;;  %v1395_v44 = vmax.f32 %v20745_v36, 0.0  ;;  %v20759_v56 = vld [vmem:[#allocation106_spill] sm:$0xff] }
 0x8b8   : > { %v12896_v28 = vadd.f32 %v12864_v34, %v3250_v45  ;;  %v12865_v61 = vadd.f32 %v19575_v17, %v12801_v14  ;;  %v20737_v17 = vld [vmem:[#allocation80_spill] sm:$0xff]  ;;  %v20763_v36 = vld [vmem:[#allocation90_spill] sm:$0xff] }
 0x8b9   : > { %v12930_v38 = vadd.f32 %v12898_v62, %v1392_v37  ;;  %v12899_v6 = vadd.f32 %v12867_v48, %v3253_v26  ;;  %v3256_v57 = vmax.f32 %v20737_v17, 0.0  ;;  %v3260_v37 = vmax.f32 %v20746_v30, 0.0 }
 0x8ba   : > { %v12928_v35 = vadd.f32 %v12896_v28, %v1390_v20  ;;  %v12897_v19 = vadd.f32 %v12865_v61, %v3251_v5  ;;  %v15945_v10 = vpop.f32.mrb[40].mxu1  ;;  %v3258_v20 = vmax.f32 %v20748_v12, 0.0  ;;  %v20750_v61 = vld [vmem:[#allocation52_spill] sm:$0xff] }
 0x8bb   : > { %12962 = vst [vmem:[%s20212_s16 + $0x30] sm:$0xff] %v12930_v38  ;;  %v12931_v16 = vadd.f32 %v12899_v6, %v1393_v2  ;;  %v12806_v41 = vmax.f32 %v15945_v10, 0.0  ;;  %v12669_v8 = vpop.f32.mrb[41].mxu1  ;;  %v1400_v25 = vmax.f32 %v20750_v61, 0.0  ;;  %v20751_v2 = vld [vmem:[#allocation86_spill] sm:$0xff]  ;;  %v20754_v10 = vld [vmem:[#allocation87_spill] sm:$0xff] }
 0x8bc   : > { %12960 = vst [vmem:[%s20212_s16 + $0x20] sm:$0xff] %v12928_v35  ;;  %v12929_v46 = vadd.f32 %v12897_v19, %v1391_v47  ;;  %v12804_v31 = vmax.f32 %v12669_v8, 0.0  ;;  %v15946_v3 = vpop.f32.mrb[42].mxu1  ;;  %v3261_v38 = vmax.f32 %v20751_v2, 0.0  ;;  %v20753_v35 = vld [vmem:[#allocation53_spill] sm:$0xff]  ;;  %v20755_v8 = vld [vmem:[#allocation48_spill] sm:$0xff] }
 0x8bd   : > { %12963 = vst [vmem:[%s20212_s16 + $0x38] sm:$0xff] %v12931_v16  ;;  %v12870_v21 = vadd.f32 %v19643_v32, %v12806_v41  ;;  %v12807_v23 = vmax.f32 %v15946_v3, 0.0  ;;  %v12672_v42 = vpop.f32.mrb[43].mxu1  ;;  %v20742_v32 = vld [vmem:[#allocation83_spill] sm:$0xff]  ;;  %v1398_v19 = vmax.f32 %v20753_v35, 0.0  ;;  %v3259_v16 = vmax.f32 %v20754_v10, 0.0 }
 0x8be   : > { %12961 = vst [vmem:[%s20212_s16 + $0x28] sm:$0xff] %v12929_v46  ;;  %v12868_v11 = vadd.f32 %v19646_v33, %v12804_v31  ;;  %v12805_v55 = vmax.f32 %v12672_v42, 0.0  ;;  %v3255_v39 = vmax.f32 %v20742_v32, 0.0  ;;  %v20756_v31 = vld [vmem:[#allocation51_spill] sm:$0xff] }
 0x8bf   : > { %v12902_v18 = vadd.f32 %v12870_v21, %v3256_v57  ;;  %v12871_v43 = vadd.f32 %v19649_v40, %v12807_v23  ;;  %v1401_v3 = vmax.f32 %v20756_v31, 0.0  ;;  %v20757_v21 = vld [vmem:[#allocation56_spill] sm:$0xff]  ;;  %v20771_v35 = vld [vmem:[#allocation11_spill] sm:$0xff] }
 0x8c0   : > { %v12900_v50 = vadd.f32 %v12868_v11, %v3254_v15  ;;  %v12869_v53 = vadd.f32 %v20743_v49, %v12805_v55  ;;  %v1399_v23 = vmax.f32 %v20757_v21, 0.0  ;;  %v20775_v21 = vld [vmem:[#allocation94_spill] sm:$0xff] }
 0x8c1   : > { %v12934_v33 = vadd.f32 %v12902_v18, %v1396_v63  ;;  %v12903_v51 = vadd.f32 %v12871_v43, %v3257_v58  ;;  %v20758_v18 = vld [vmem:[#allocation88_spill] sm:$0xff] }
 0x8c2   : > { %v12932_v59 = vadd.f32 %v12900_v50, %v1394_v0  ;;  %v12901_v60 = vadd.f32 %v12869_v53, %v3255_v39  ;;  %v15949_v9 = vpop.f32.mrb[44].mxu1  ;;  %v3264_v43 = vmax.f32 %v20758_v18, 0.0  ;;  %v20760_v50 = vld [vmem:[#allocation89_spill] sm:$0xff] }
 0x8c3   : > { %12966 = vst [vmem:[%s20212_s16 + $0x50] sm:$0xff] %v12934_v33  ;;  %v12935_v40 = vadd.f32 %v12903_v51, %v1397_v7  ;;  %v12810_v29 = vmax.f32 %v15949_v9, 0.0  ;;  %v12685_v24 = vpop.f32.mrb[45].mxu1  ;;  %v3262_v49 = vmax.f32 %v20760_v50, 0.0  ;;  %v20761_v53 = vld [vmem:[#allocation9_spill] sm:$0xff]  ;;  %v20762_v33 = vld [vmem:[#allocation55_spill] sm:$0xff] }
 0x8c4   : > { %12964 = vst [vmem:[%s20212_s16 + $0x40] sm:$0xff] %v12932_v59  ;;  %v12933_v45 = vadd.f32 %v12901_v60, %v1395_v44  ;;  %v12808_v34 = vmax.f32 %v12685_v24, 0.0  ;;  %v15950_v14 = vpop.f32.mrb[46].mxu1  ;;  %v1404_v51 = vmax.f32 %v20762_v33, 0.0  ;;  %v3265_v44 = vmax.f32 %v20763_v36, 0.0  ;;  %v20764_v60 = vld [vmem:[#allocation107_spill] sm:$0xff] }
 0x8c5   : > { %12967 = vst [vmem:[%s20212_s16 + $0x58] sm:$0xff] %v12935_v40  ;;  %v12874_v26 = vadd.f32 %v20747_v27, %v12810_v29  ;;  %v12811_v62 = vmax.f32 %v15950_v14, 0.0  ;;  %v12688_v48 = vpop.f32.mrb[47].mxu1  ;;  %v20765_v40 = vld [vmem:[#allocation57_spill] sm:$0xff]  ;;  %v20766_v24 = vld [vmem:[#allocation91_spill] sm:$0xff]  ;;  %v20767_v14 = vld [vmem:[#allocation8_spill] sm:$0xff] }
 0x8c6   : > { %12965 = vst [vmem:[%s20212_s16 + $0x48] sm:$0xff] %v12933_v45  ;;  %v12872_v5 = vadd.f32 %v20749_v13, %v12808_v34  ;;  %v12809_v28 = vmax.f32 %v12688_v48, 0.0  ;;  %v1402_v29 = vmax.f32 %v20765_v40, 0.0  ;;  %v3263_v45 = vmax.f32 %v20766_v24, 0.0  ;;  %v20769_v48 = vld [vmem:[#allocation58_spill] sm:$0xff] }
 0x8c7   : > { %v12906_v6 = vadd.f32 %v12874_v26, %v3260_v37  ;;  %v12875_v47 = vadd.f32 %v20752_v1, %v12811_v62  ;;  %v20768_v37 = vld [vmem:[#allocation59_spill] sm:$0xff]  ;;  %v1403_v12 = vmax.f32 %v20769_v48, 0.0  ;;  %v20770_v1 = vld [vmem:[#allocation92_spill] sm:$0xff]  ;;  %v20783_v40 = vld [vmem:[#allocation110_spill] sm:$0xff] }
 0x8c8   : > { %v12904_v41 = vadd.f32 %v12872_v5, %v3258_v20  ;;  %v12873_v46 = vadd.f32 %v20755_v8, %v12809_v28  ;;  %v1405_v27 = vmax.f32 %v20768_v37, 0.0  ;;  %v20787_v48 = vld [vmem:[#allocation98_spill] sm:$0xff] }
 0x8c9   : > { %v12938_v17 = vadd.f32 %v12906_v6, %v1400_v25  ;;  %v12907_v57 = vadd.f32 %v12875_v47, %v3261_v38  ;;  %v3268_v47 = vmax.f32 %v20770_v1, 0.0 }
 0x8ca   : > { %v12936_v42 = vadd.f32 %v12904_v41, %v1398_v19  ;;  %v12905_v52 = vadd.f32 %v12873_v46, %v3259_v16  ;;  %v15953_v15 = vpop.f32.mrb[48].mxu1  ;;  %v20772_v41 = vld [vmem:[#allocation93_spill] sm:$0xff]  ;;  %v20773_v46 = vld [vmem:[#allocation108_spill] sm:$0xff] }
 0x8cb   : > { %12970 = vst [vmem:[%s20212_s16 + $0x70] sm:$0xff] %v12938_v17  ;;  %v12939_v11 = vadd.f32 %v12907_v57, %v1401_v3  ;;  %v12814_v55 = vmax.f32 %v15953_v15, 0.0  ;;  %v12701_v54 = vpop.f32.mrb[49].mxu1  ;;  %v3266_v8 = vmax.f32 %v20772_v41, 0.0  ;;  %v20774_v17 = vld [vmem:[#allocation61_spill] sm:$0xff] }
 0x8cc   : > { %12968 = vst [vmem:[%s20212_s16 + $0x60] sm:$0xff] %v12936_v42  ;;  %v12937_v63 = vadd.f32 %v12905_v52, %v1399_v23  ;;  %v12812_v4 = vmax.f32 %v12701_v54, 0.0  ;;  %v15954_v58 = vpop.f32.mrb[50].mxu1  ;;  %v1408_v57 = vmax.f32 %v20774_v17, 0.0  ;;  %v3269_v23 = vmax.f32 %v20775_v21, 0.0  ;;  %v20776_v52 = vld [vmem:[#allocation109_spill] sm:$0xff] }
 0x8cd   : > { %12971 = vst [vmem:[%s20212_s16 + $0x78] sm:$0xff] %v12939_v11  ;;  %v12878_v0 = vadd.f32 %v20759_v56, %v12814_v55  ;;  %v12815_v32 = vmax.f32 %v15954_v58, 0.0  ;;  %v12704_v39 = vpop.f32.mrb[51].mxu1  ;;  %v20777_v11 = vld [vmem:[#allocation60_spill] sm:$0xff]  ;;  %v20778_v54 = vld [vmem:[#allocation95_spill] sm:$0xff]  ;;  %v20779_v58 = vld [vmem:[#allocation54_spill] sm:$0xff] }
 0x8ce   : > { %12969 = vst [vmem:[%s20212_s16 + $0x68] sm:$0xff] %v12937_v63  ;;  %v12876_v22 = vadd.f32 %v20761_v53, %v12812_v4  ;;  %v12813_v7 = vmax.f32 %v12704_v39, 0.0  ;;  %v1406_v55 = vmax.f32 %v20777_v11, 0.0  ;;  %v3267_v63 = vmax.f32 %v20778_v54, 0.0  ;;  %v20781_v39 = vld [vmem:[#allocation64_spill] sm:$0xff]  ;;  %v20795_v11 = vld [vmem:[#allocation14_spill] sm:$0xff] }
 0x8cf   : > { %v12910_v59 = vadd.f32 %v12878_v0, %v3264_v43  ;;  %v12879_v9 = vadd.f32 %v20764_v60, %v12815_v32  ;;  %v20780_v43 = vld [vmem:[#allocation63_spill] sm:$0xff]  ;;  %v1407_v50 = vmax.f32 %v20781_v39, 0.0  ;;  %v20782_v60 = vld [vmem:[#allocation96_spill] sm:$0xff]  ;;  %v20799_v39 = vld [vmem:[#allocation102_spill] sm:$0xff] }
 0x8d0   : > { %v12908_v34 = vadd.f32 %v12876_v22, %v3262_v49  ;;  %v12877_v30 = vadd.f32 %v20767_v14, %v12813_v7  ;;  %v1409_v56 = vmax.f32 %v20780_v43, 0.0 }
 0x8d1   : > { %v12942_v26 = vadd.f32 %v12910_v59, %v1404_v51  ;;  %v12911_v62 = vadd.f32 %v12879_v9, %v3265_v44  ;;  %v3272_v9 = vmax.f32 %v20782_v60, 0.0 }
 0x8d2   : > { %v12940_v20 = vadd.f32 %v12908_v34, %v1402_v29  ;;  %v12909_v13 = vadd.f32 %v12877_v30, %v3263_v45  ;;  %v15957_v5 = vpop.f32.mrb[52].mxu1  ;;  %v20784_v34 = vld [vmem:[#allocation97_spill] sm:$0xff]  ;;  %v20785_v30 = vld [vmem:[#allocation12_spill] sm:$0xff] }
 0x8d3   : > { %12974 = vst [vmem:[%s20212_s16 + $0x90] sm:$0xff] %v12942_v26  ;;  %v12943_v28 = vadd.f32 %v12911_v62, %v1405_v27  ;;  %v12818_v61 = vmax.f32 %v15957_v5, 0.0  ;;  %v12717_v25 = vpop.f32.mrb[53].mxu1  ;;  %v3270_v14 = vmax.f32 %v20784_v34, 0.0  ;;  %v20786_v26 = vld [vmem:[#allocation62_spill] sm:$0xff] }
 0x8d4   : > { %12972 = vst [vmem:[%s20212_s16 + $0x80] sm:$0xff] %v12940_v20  ;;  %v12941_v2 = vadd.f32 %v12909_v13, %v1403_v12  ;;  %v12816_v38 = vmax.f32 %v12717_v25, 0.0  ;;  %v15958_v6 = vpop.f32.mrb[54].mxu1  ;;  %v1412_v62 = vmax.f32 %v20786_v26, 0.0  ;;  %v3273_v12 = vmax.f32 %v20787_v48, 0.0  ;;  %v20788_v13 = vld [vmem:[#allocation111_spill] sm:$0xff] }
 0x8d5   : > { %12975 = vst [vmem:[%s20212_s16 + $0x98] sm:$0xff] %v12943_v28  ;;  %v12882_v19 = vadd.f32 %v20771_v35, %v12818_v61  ;;  %v12819_v10 = vmax.f32 %v15958_v6, 0.0  ;;  %v12720_v16 = vpop.f32.mrb[55].mxu1  ;;  %v20789_v28 = vld [vmem:[#allocation65_spill] sm:$0xff]  ;;  %v20790_v25 = vld [vmem:[#allocation99_spill] sm:$0xff]  ;;  %v20791_v6 = vld [vmem:[#allocation10_spill] sm:$0xff] }
 0x8d6   : > { %12973 = vst [vmem:[%s20212_s16 + $0x88] sm:$0xff] %v12941_v2  ;;  %v12880_v31 = vadd.f32 %v20773_v46, %v12816_v38  ;;  %v12817_v3 = vmax.f32 %v12720_v16, 0.0  ;;  %v1410_v61 = vmax.f32 %v20789_v28, 0.0  ;;  %v3271_v2 = vmax.f32 %v20790_v25, 0.0  ;;  %v20793_v16 = vld [vmem:[#allocation67_spill] sm:$0xff] }
 0x8d7   : > { %v12914_v42 = vadd.f32 %v12882_v19, %v3268_v47  ;;  %v12883_v15 = vadd.f32 %v20776_v52, %v12819_v10  ;;  %v20792_v47 = vld [vmem:[#allocation66_spill] sm:$0xff]  ;;  %v1411_v41 = vmax.f32 %v20793_v16, 0.0  ;;  %v20794_v52 = vld [vmem:[#allocation100_spill] sm:$0xff] }
 0x8d8   : > { %v12912_v4 = vadd.f32 %v12880_v31, %v3266_v8  ;;  %v12881_v18 = vadd.f32 %v20779_v58, %v12817_v3  ;;  %v1413_v35 = vmax.f32 %v20792_v47, 0.0 }
 0x8d9   : > { %v12946_v0 = vadd.f32 %v12914_v42, %v1408_v57  ;;  %v12915_v32 = vadd.f32 %v12883_v15, %v3269_v23  ;;  %v3276_v15 = vmax.f32 %v20794_v52, 0.0 }
 0x8da   : > { %v12944_v49 = vadd.f32 %v12912_v4, %v1406_v55  ;;  %v12913_v53 = vadd.f32 %v12881_v18, %v3267_v63  ;;  %v15961_v22 = vpop.f32.mrb[56].mxu1  ;;  %v20796_v4 = vld [vmem:[#allocation101_spill] sm:$0xff]  ;;  %v20797_v18 = vld [vmem:[#allocation112_spill] sm:$0xff] }
 0x8db   : > { %12978 = vst [vmem:[%s20212_s16 + $0xb0] sm:$0xff] %v12946_v0  ;;  %v12947_v7 = vadd.f32 %v12915_v32, %v1409_v56  ;;  %v12822_v33 = vmax.f32 %v15961_v22, 0.0  ;;  %v12733_v51 = vpop.f32.mrb[57].mxu1  ;;  %v3274_v58 = vmax.f32 %v20796_v4, 0.0  ;;  %v20798_v0 = vld [vmem:[#allocation68_spill] sm:$0xff] }
 0x8dc   : > { %12976 = vst [vmem:[%s20212_s16 + $0xa0] sm:$0xff] %v12944_v49  ;;  %v12945_v36 = vadd.f32 %v12913_v53, %v1407_v50  ;;  %v12820_v44 = vmax.f32 %v12733_v51, 0.0  ;;  %v15962_v59 = vpop.f32.mrb[58].mxu1  ;;  %v1416_v32 = vmax.f32 %v20798_v0, 0.0  ;;  %v3277_v50 = vmax.f32 %v20799_v39, 0.0  ;;  %v20800_v53 = vld [vmem:[#allocation113_spill] sm:$0xff] }
 0x8dd   : > { %12979 = vst [vmem:[%s20212_s16 + $0xb8] sm:$0xff] %v12947_v7  ;;  %v12886_v29 = vadd.f32 %v20783_v40, %v12822_v33  ;;  %v12823_v24 = vmax.f32 %v15962_v59, 0.0  ;;  %v12736_v45 = vpop.f32.mrb[59].mxu1  ;;  %v20801_v7 = vld [vmem:[#allocation69_spill] sm:$0xff]  ;;  %v20802_v51 = vld [vmem:[#allocation103_spill] sm:$0xff] }
 0x8de   : > { %12977 = vst [vmem:[%s20212_s16 + $0xa8] sm:$0xff] %v12945_v36  ;;  %v12884_v37 = vadd.f32 %v20785_v30, %v12820_v44  ;;  %v12821_v27 = vmax.f32 %v12736_v45, 0.0  ;;  %v1414_v33 = vmax.f32 %v20801_v7, 0.0  ;;  %v3275_v36 = vmax.f32 %v20802_v51, 0.0  ;;  %v20803_v59 = vld [vmem:[#allocation13_spill] sm:$0xff]  ;;  %v20805_v45 = vld [vmem:[#allocation71_spill] sm:$0xff] }
 0x8df   : > { %v12918_v20 = vadd.f32 %v12886_v29, %v3272_v9  ;;  %v12887_v5 = vadd.f32 %v20788_v13, %v12823_v24  ;;  %v20804_v9 = vld [vmem:[#allocation70_spill] sm:$0xff]  ;;  %v1415_v34 = vmax.f32 %v20805_v45, 0.0 }
 0x8e0   : > { %v12916_v38 = vadd.f32 %v12884_v37, %v3270_v14  ;;  %v12885_v1 = vadd.f32 %v20791_v6, %v12821_v27  ;;  %v1417_v40 = vmax.f32 %v20804_v9, 0.0 }
 0x8e1   : > { %v12950_v19 = vadd.f32 %v12918_v20, %v1412_v62  ;;  %v12919_v10 = vadd.f32 %v12887_v5, %v3273_v12 }
 0x8e2   : > { %v12948_v8 = vadd.f32 %v12916_v38, %v1410_v61  ;;  %v12917_v46 = vadd.f32 %v12885_v1, %v3271_v2  ;;  %v15965_v31 = vpop.f32.mrb[60].mxu1 }
 0x8e3   : > { %12982 = vst [vmem:[%s20212_s16 + $0xd0] sm:$0xff] %v12950_v19  ;;  %v12951_v3 = vadd.f32 %v12919_v10, %v1413_v35  ;;  %v12826_v17 = vmax.f32 %v15965_v31, 0.0  ;;  %v12749_v57 = vpop.f32.mrb[61].mxu1 }
 0x8e4   : > { %12980 = vst [vmem:[%s20212_s16 + $0xc0] sm:$0xff] %v12948_v8  ;;  %v12949_v21 = vadd.f32 %v12917_v46, %v1411_v41  ;;  %v12824_v23 = vmax.f32 %v12749_v57, 0.0  ;;  %v15966_v42 = vpop.f32.mrb[62].mxu1 }
 0x8e5   : > { %12983 = vst [vmem:[%s20212_s16 + $0xd8] sm:$0xff] %v12951_v3  ;;  %v12890_v55 = vadd.f32 %v20795_v11, %v12826_v17  ;;  %v12827_v54 = vmax.f32 %v15966_v42, 0.0  ;;  %v12752_v63 = vpop.f32.mrb[63].mxu1 }
 0x8e6   : > { %12981 = vst [vmem:[%s20212_s16 + $0xc8] sm:$0xff] %v12949_v21  ;;  %v12888_v43 = vadd.f32 %v20797_v18, %v12824_v23  ;;  %v12825_v56 = vmax.f32 %v12752_v63, 0.0 }
 0x8e7   : > { %v12922_v49 = vadd.f32 %v12890_v55, %v3276_v15  ;;  %v12891_v22 = vadd.f32 %v20800_v53, %v12827_v54 }
 0x8e8   : > { %v12920_v44 = vadd.f32 %v12888_v43, %v3274_v58  ;;  %v12889_v60 = vadd.f32 %v20803_v59, %v12825_v56 }
 0x8e9   : > { %v12954_v29 = vadd.f32 %v12922_v49, %v1416_v32  ;;  %v12923_v24 = vadd.f32 %v12891_v22, %v3277_v50 }
 0x8ea   : > { %v12952_v14 = vadd.f32 %v12920_v44, %v1414_v33  ;;  %v12921_v30 = vadd.f32 %v12889_v60, %v3275_v36 }
 0x8eb   : > { %12986 = vst [vmem:[%s20212_s16 + $0xf0] sm:$0xff] %v12954_v29  ;;  %v12955_v37 = vadd.f32 %v12923_v24, %v1417_v40 }
 0x8ec   : > { %12984 = vst [vmem:[%s20212_s16 + $0xe0] sm:$0xff] %v12952_v14  ;;  %v12953_v27 = vadd.f32 %v12921_v30, %v1415_v34 }
 0x8ed   : > { %12987 = vst [vmem:[%s20212_s16 + $0xf8] sm:$0xff] %v12955_v37 }
 0x8ee   : > { %12985 = vst [vmem:[%s20212_s16 + $0xe8] sm:$0xff] %v12953_v27 }
 0x8ef   : > { %16923 = shalt.err (!%p16920_p3)
}
 0x8f0   : > { %s16924_s28 = scalar_lea.hbm %s20332_s23, 4096  ;;  %s16928_s14 = scalar_lea.hbm %s20391_s9, 8192 }
 0x8f1   : > { %p16925_p4 = scmp.ne.s32.totalorder %s20332_s23, %s16924_s28  ;;  %p16929_p9 = scmp.lt.u32.totalorder %s20332_s23, %s20391_s9 }
 0x8f2   : > { %p16930_p10 = scmp.lt.u32.totalorder %s16928_s14, %s16924_s28  ;;  %p16932_p12 = scmp.lt.u32.totalorder %s16924_s28, %s20332_s23 }
 0x8f3   : > { %p16926_p7 = pnand %p16925_p4, %p17066_p5 }
 0x8f4   : > { %p16931_p11 = por %p16930_p10, %p16929_p9 }
 0x8f5   : > { %p16927_p8 = pneg %p16926_p7 }
 0x8f6   : > { %p16933_p13 = por %p16932_p12, %p16931_p11 }
 0x8f8   : > { %p16934_p0 = pnand %p16933_p13, %p16927_p8 }
 0x8fa   : > { %16937 = shalt.err (!%p16934_p0)
}
 0x8fb   : > { %s16976_s24 = smov 128   ;;  %s16977_s25 = smov 8  }
 0x8fc   : > { %16738 = dma.vmem_to_hbm [thread:$0]  (%p17066_p5), %s20334_s17, 4096, %s20332_s23, %s20341_s13, %s16976_s24, %s16976_s24, %s16977_s25  }
 0x8fd PF: > { %p16744_p1 = scmp.ge.s32.totalorder %s16972_s12, 2  ;;  %s13017_s26 = sand.u32 1, %s16960_s30  }
 0x8fe   : > { %s13018_s27 = scalar_lea.sflag [#allocation6], %s13017_s26 }
 0x8ff   : > { %p16741_p2 = pnand %p16744_p1, %p17070_p6 }
 0x901   : > { %16955 = dma.done.wait (!%p16741_p2), %s13018_s27, 4096  }
 0x902   : > { %16957 = vsyncadd (!%p16741_p2), %s13018_s27, 4294963200  ;;  %p19_p3 = scmp.ge.s32.totalorder %s17053_s15, 4   ;;  %s20806_s30 = smov %s16964_s10 }
 0x903   : > { %s20807_s10 = smov %s16968_s11  ;;  %s20808_s11 = smov %s17064_s18 }
 0x904   : > { %s20809_s12 = smov %s17053_s15  ;;  %21 = sbr.rel (!%p19_p3) target bundleno = 3 (0x3), region = 123 }
 0x90b   :  { %13023 = vsyncpa [#allocation6], 1 }
 0x90c   :  { %13025 = vsyncpa [#allocation6 + $0x1], 1 }

</bundles_post_ra>
